<compile_context>
chip_gen: v7x
topology: tpu7x:2x2x1
jax: 0.10.0
libtpu: 0.0.40
codegen_flags: <defaults>
</compile_context>

<pallas_src>
import functools

import jax
import jax.numpy as jnp
from jax.experimental import pallas as pl
from jax.experimental.pallas import tpu as pltpu


# ----------------------------------------------------------------------------
# Pallas kernel: fused conv1+bn1+relu -> conv2+bn2+residual+relu (one image)
# ----------------------------------------------------------------------------
def _basic_block_kernel(xp_ref, w1_ref, b1_ref, w2_ref, b2_ref, o_ref,
                        h1_ref, slab_ref, acc_ref, *, w_img):
    # xp_ref  : (H+2, Wp, Cp) bf16  zero-padded input image
    # w*_ref  : (3, 3*Cp, Cp) bf16  per-kx weight slabs (ky-major K rows),
    #                               BN scale folded into Cout
    # b*_ref  : (1, Cp)       f32   folded BN/conv bias
    # o_ref   : (H, Wp, Cp)   bf16  output (full padded width; wrapper slices)
    # h1_ref  : (H+2, Wp, Cp) bf16  scratch: stage-1 activation with zero halo
    # slab_ref: (H, Wp, 3*Cp) bf16  scratch: ky-concatenated matmul LHS
    # acc_ref : (H*Wp, Cp)    f32   scratch: MXU accumulator (both convs)
    hp, wp, cp = h1_ref.shape
    h = hp - 2
    m = h * wp

    # Re-zero only the 2 halo rows (12 KB) every step; the interior is fully
    # rewritten below and halo *columns* are zeroed via the interior mask.
    # (Not hoisted under program_id==0: with a "parallel" batch axis each core
    # has its own, uninitialized scratch and may never see grid step 0.)
    zrow = jnp.zeros((1, wp, cp), h1_ref.dtype)
    h1_ref[0:1, :, :] = zrow
    h1_ref[hp - 1:hp, :, :] = zrow

    def conv3x3(src_ref, w_ref):
        # Build the ky-concatenated LHS slab: lanes [ky*Cp,(ky+1)*Cp) hold the
        # source shifted down by ky rows.  First-axis slices are layout-free.
        for ky in range(3):
            slab_ref[:, :, ky * cp:(ky + 1) * cp] = src_ref[ky:ky + h, :, :]
        slab = slab_ref[...].reshape(m, 3 * cp)
        # One K=3*Cp matmul per kx tap (3 instead of 9 matmuls).  The +-1
        # column shift of the kx!=1 taps is realigned on the f32 result with a
        # sublane roll (m-1 == -1, kept non-negative for the rotate lowering);
        # wrap-around lands only in the discarded halo columns.
        acc_ref[...] = jnp.dot(slab, w_ref[1],
                               preferred_element_type=jnp.float32)
        acc_ref[...] += pltpu.roll(
            jnp.dot(slab, w_ref[0], preferred_element_type=jnp.float32), 1, 0)
        acc_ref[...] += pltpu.roll(
            jnp.dot(slab, w_ref[2], preferred_element_type=jnp.float32),
            m - 1, 0)
        return acc_ref[...]

    # Valid image columns sit at [1, 1+w_img) of the padded width.
    col = jax.lax.broadcasted_iota(jnp.int32, (1, wp, 1), 1)
    interior = jnp.logical_and(col >= 1, col <= w_img)

    # ---- conv1 + bn1 + relu -> h1 scratch; halo columns forced to zero so
    #      they act as conv2's zero padding.
    a1 = jnp.maximum(conv3x3(xp_ref, w1_ref) + b1_ref[...], 0.0)
    a1 = jnp.where(interior, a1.reshape(h, wp, cp), 0.0)
    h1_ref[1:h + 1, :, :] = a1.astype(h1_ref.dtype)

    # ---- conv2 + bn2 + identity residual + relu -> bf16 output (full padded
    #      width, lane-dense store; halo columns are sliced off in the wrapper)
    a2 = conv3x3(h1_ref, w2_ref) + b2_ref[...]
    res = xp_ref[1:h + 1, :, :].astype(jnp.float32).reshape(m, cp)
    out = jnp.maximum(a2 + res, 0.0)
    o_ref[...] = out.astype(o_ref.dtype).reshape(h, wp, cp)


# ----------------------------------------------------------------------------
# Wrapper
# ----------------------------------------------------------------------------
def _round_up(x, mult):
    return (x + mult - 1) // mult * mult


def basic_block_forward(x_nchw, params):
    n, cin, h, w = x_nchw.shape
    planes = params["w1"].shape[0]
    assert cin == planes, "identity residual requires inplanes == planes"
    cp = _round_up(max(cin, planes), 128)      # lane-dense channels
    wp = _round_up(w + 2, 8)                   # sublane-aligned padded width

    # NCHW -> NHWC, zero halo (1px top/bottom/left, right pad to Wp),
    # channel pad, cast to bf16.
    x_nhwc = jnp.transpose(x_nchw, (0, 2, 3, 1))
    xp = jnp.pad(x_nhwc, ((0, 0), (1, 1), (1, wp - w - 1), (0, cp - cin))
                 ).astype(jnp.bfloat16)

    def fold(conv_w, conv_b, g, be, mu, var, eps=1e-5):
        # Inference BN folded into conv:  y = s*(conv(x)+b-mu)+beta,
        # s = g/sqrt(var+eps).  Scale goes into the weights (Cout axis).
        s = g / jnp.sqrt(var + eps)
        return conv_w * s[:, None, None, None], be + s * (conv_b - mu)

    def wslab(wt):
        # (Cout, Cin, 3, 3) -> (kx, 3*Cin_p, Cout_p) bf16, ky-major K rows
        # matching the in-kernel slab lane order.
        co, ci = wt.shape[:2]
        wt = jnp.transpose(wt, (2, 3, 1, 0))                  # (ky,kx,Cin,Cout)
        wt = jnp.pad(wt, ((0, 0), (0, 0), (0, cp - ci), (0, cp - co)))
        wt = jnp.transpose(wt, (1, 0, 2, 3)).reshape(3, 3 * cp, cp)
        return wt.astype(jnp.bfloat16)

    def bvec(b):
        return jnp.pad(b, ((0, cp - planes),)).astype(jnp.float32)[None, :]

    w1f, b1f = fold(params["w1"], params["b1"], params["bn1_g"],
                    params["bn1_b"], params["bn1_m"], params["bn1_v"])
    w2f, b2f = fold(params["w2"], params["b2"], params["bn2_g"],
                    params["bn2_b"], params["bn2_m"], params["bn2_v"])
    w1c, w2c = wslab(w1f), wslab(w2f)
    b1v, b2v = bvec(b1f), bvec(b2f)

    # Constant index_maps -> weights / bias vectors stay VMEM-resident.
    wspec = pl.BlockSpec((3, 3 * cp, cp), lambda i: (0, 0, 0))
    vspec = pl.BlockSpec((1, cp), lambda i: (0, 0))

    out = pl.pallas_call(
        functools.partial(_basic_block_kernel, w_img=w),
        out_shape=jax.ShapeDtypeStruct((n, h, wp, cp), jnp.bfloat16),
        grid_spec=pltpu.PrefetchScalarGridSpec(
            num_scalar_prefetch=0,
            grid=(n,),                                    # one image per step
            in_specs=[
                pl.BlockSpec((None, h + 2, wp, cp), lambda i: (i, 0, 0, 0)),
                wspec, vspec,                             # conv1 / bn1
                wspec, vspec,                             # conv2 / bn2
            ],
            out_specs=pl.BlockSpec((None, h, wp, cp), lambda i: (i, 0, 0, 0)),
            scratch_shapes=[
                pltpu.VMEM((h + 2, wp, cp), jnp.bfloat16),   # stage-1 act+halo
                pltpu.VMEM((h, wp, 3 * cp), jnp.bfloat16),   # ky-concat slab
                pltpu.VMEM((h * wp, cp), jnp.float32),       # MXU accumulator
            ],
        ),
        compiler_params=pltpu.CompilerParams(
            dimension_semantics=("parallel",),            # megacore / v7x 2-TC
            vmem_limit_bytes=32 * 1024 * 1024,            # safe on v5e/v6e/v7x
        ),
    )(xp, w1c, b1v, w2c, b2v)

    # Drop width halo + channel padding, back to NCHW (module contract).
    out = out[:, :, 1:1 + w, :planes].astype(jnp.float32)
    return jnp.transpose(out, (0, 3, 1, 2))


# ----------------------------------------------------------------------------
# Pure-JAX reference (f32, lax.conv) for validation
# ----------------------------------------------------------------------------
def _reference(x_nchw, params):
    def conv(x, wt, b):
        y = jax.lax.conv_general_dilated(
            x, wt, window_strides=(1, 1), padding=((1, 1), (1, 1)),
            dimension_numbers=("NCHW", "OIHW", "NCHW"))
        return y + b[None, :, None, None]

    def bn(x, g, be, mu, var, eps=1e-5):
        return (x - mu[None, :, None, None]) \
            / jnp.sqrt(var + eps)[None, :, None, None] \
            * g[None, :, None, None] + be[None, :, None, None]

    out = conv(x_nchw, params["w1"], params["b1"])
    out = jnp.maximum(bn(out, params["bn1_g"], params["bn1_b"],
                         params["bn1_m"], params["bn1_v"]), 0.0)
    out = conv(out, params["w2"], params["b2"])
    out = bn(out, params["bn2_g"], params["bn2_b"],
             params["bn2_m"], params["bn2_v"])
    out = out + x_nchw
    return jnp.maximum(out, 0.0)


# ----------------------------------------------------------------------------
if __name__ == "__main__":
    key = jax.random.PRNGKey(0)
    N, C, H, W = 2, 8, 16, 16            # inplanes == planes (downsample=None)
    planes = C

    keys = jax.random.split(key, 12)
    params = {
        "w1": jax.random.normal(keys[0], (planes, C, 3, 3), jnp.float32) * 0.1,
        "b1": jax.random.normal(keys[1], (planes,), jnp.float32) * 0.1,
        "w2": jax.random.normal(keys[2], (planes, planes, 3, 3), jnp.float32) * 0.1,
        "b2": jax.random.normal(keys[3], (planes,), jnp.float32) * 0.1,
        "bn1_g": 1.0 + 0.1 * jax.random.normal(keys[4], (planes,), jnp.float32),
        "bn1_b": 0.1 * jax.random.normal(keys[5], (planes,), jnp.float32),
        "bn1_m": 0.1 * jax.random.normal(keys[6], (planes,), jnp.float32),
        "bn1_v": jnp.abs(1.0 + 0.1 * jax.random.normal(keys[7], (planes,), jnp.float32)),
        "bn2_g": 1.0 + 0.1 * jax.random.normal(keys[8], (planes,), jnp.float32),
        "bn2_b": 0.1 * jax.random.normal(keys[9], (planes,), jnp.float32),
        "bn2_m": 0.1 * jax.random.normal(keys[10], (planes,), jnp.float32),
        "bn2_v": jnp.abs(1.0 + 0.1 * jax.random.normal(keys[11], (planes,), jnp.float32)),
    }

    x = jax.random.normal(jax.random.PRNGKey(42), (N, C, H, W), jnp.float32)

    fwd = jax.jit(functools.partial(basic_block_forward, params=params))
    out = jax.block_until_ready(fwd(x))

    ref = _reference(x, params)
    assert out.shape == ref.shape == (N, planes, H, W)
    # bf16 activations/weights/output with f32 accumulation -> loose tolerance.
    max_err = float(jnp.max(jnp.abs(out - ref)))
    assert jnp.allclose(out, ref, atol=1e-1, rtol=1e-1), f"max abs err {max_err}"

    print("KERNEL_OK")
</pallas_src>

<mosaic_0001>
module attributes {stable_mosaic.version = 11 : i64} {
  func.func @_basic_block_kernel(%arg0: i32, %arg1: memref<1x18x24x128xbf16, #tpu.memory_space<vmem>>, %arg2: memref<3x384x128xbf16, #tpu.memory_space<vmem>>, %arg3: memref<1x128xf32, #tpu.memory_space<vmem>>, %arg4: memref<3x384x128xbf16, #tpu.memory_space<vmem>>, %arg5: memref<1x128xf32, #tpu.memory_space<vmem>>, %arg6: memref<1x16x24x128xbf16, #tpu.memory_space<vmem>>, %arg7: memref<18x24x128xbf16, #tpu.memory_space<vmem>>, %arg8: memref<16x24x384xbf16, #tpu.memory_space<vmem>>, %arg9: memref<384x128xf32, #tpu.memory_space<vmem>>) attributes {dimension_semantics = [#tpu.dimension_semantics<parallel>], iteration_bounds = array<i64: 2>, scalar_prefetch = 0 : i64, scratch_operands = 3 : i64, tpu.core_type = #tpu.core_type<tc>, window_params = [{transform_indices = @transform_0, window_bounds = array<i64: 1, 18, 24, 128>}, {pipeline_mode = #tpu.pipeline_mode<synchronous>, transform_indices = @transform_1, window_bounds = array<i64: 3, 384, 128>}, {pipeline_mode = #tpu.pipeline_mode<synchronous>, transform_indices = @transform_2, window_bounds = array<i64: 1, 128>}, {pipeline_mode = #tpu.pipeline_mode<synchronous>, transform_indices = @transform_3, window_bounds = array<i64: 3, 384, 128>}, {pipeline_mode = #tpu.pipeline_mode<synchronous>, transform_indices = @transform_4, window_bounds = array<i64: 1, 128>}, {transform_indices = @transform_5, window_bounds = array<i64: 1, 16, 24, 128>}]} {
    %cst = arith.constant 0.000000e+00 : bf16
    %0 = vector.broadcast %cst : bf16 to vector<1x24x128xbf16>
    %c0 = arith.constant 0 : index
    %c0_0 = arith.constant 0 : index
    %c0_1 = arith.constant 0 : index
    %1 = vector.load %arg7[%c0, %c0_0, %c0_1] : memref<18x24x128xbf16, #tpu.memory_space<vmem>>, vector<1x24x128xbf16>
    tpu.vector_store %arg7[%c0, %c0_0, %c0_1], %0 {strides = array<i32>} : memref<18x24x128xbf16, #tpu.memory_space<vmem>>, vector<1x24x128xbf16>,
    %c17 = arith.constant 17 : index
    %c0_2 = arith.constant 0 : index
    %c0_3 = arith.constant 0 : index
    %2 = vector.load %arg7[%c17, %c0_2, %c0_3] : memref<18x24x128xbf16, #tpu.memory_space<vmem>>, vector<1x24x128xbf16>
    tpu.vector_store %arg7[%c17, %c0_2, %c0_3], %0 {strides = array<i32>} : memref<18x24x128xbf16, #tpu.memory_space<vmem>>, vector<1x24x128xbf16>,
    %3 = tpu.iota {dimensions = array<i32: 1>} : vector<1x24x1xi32>
    %c1_i32 = arith.constant 1 : i32
    %4 = vector.broadcast %c1_i32 : i32 to vector<1x24x1xi32>
    %5 = arith.cmpi sge, %3, %4 : vector<1x24x1xi32>
    %c16_i32 = arith.constant 16 : i32
    %6 = vector.broadcast %c16_i32 : i32 to vector<1x24x1xi32>
    %7 = arith.cmpi sle, %3, %6 : vector<1x24x1xi32>
    %8 = arith.andi %5, %7 : vector<1x24x1xi1>
    %c0_4 = arith.constant 0 : index
    %c0_5 = arith.constant 0 : index
    %c0_6 = arith.constant 0 : index
    %c0_7 = arith.constant 0 : index
    %9 = vector.load %arg1[%c0_4, %c0_5, %c0_6, %c0_7] : memref<1x18x24x128xbf16, #tpu.memory_space<vmem>>, vector<1x16x24x128xbf16>
    %10 = vector.shape_cast %9 : vector<1x16x24x128xbf16> to vector<16x24x128xbf16>
    %c0_8 = arith.constant 0 : index
    %c0_9 = arith.constant 0 : index
    %c0_10 = arith.constant 0 : index
    %11 = vector.load %arg8[%c0_8, %c0_9, %c0_10] : memref<16x24x384xbf16, #tpu.memory_space<vmem>>, vector<16x24x128xbf16>
    tpu.vector_store %arg8[%c0_8, %c0_9, %c0_10], %10 {strides = array<i32>} : memref<16x24x384xbf16, #tpu.memory_space<vmem>>, vector<16x24x128xbf16>,
    %c0_11 = arith.constant 0 : index
    %c1 = arith.constant 1 : index
    %c0_12 = arith.constant 0 : index
    %c0_13 = arith.constant 0 : index
    %12 = vector.load %arg1[%c0_11, %c1, %c0_12, %c0_13] : memref<1x18x24x128xbf16, #tpu.memory_space<vmem>>, vector<1x16x24x128xbf16>
    %13 = vector.shape_cast %12 : vector<1x16x24x128xbf16> to vector<16x24x128xbf16>
    %c0_14 = arith.constant 0 : index
    %c0_15 = arith.constant 0 : index
    %c128 = arith.constant 128 : index
    %14 = vector.load %arg8[%c0_14, %c0_15, %c128] : memref<16x24x384xbf16, #tpu.memory_space<vmem>>, vector<16x24x128xbf16>
    tpu.vector_store %arg8[%c0_14, %c0_15, %c128], %13 {strides = array<i32>} : memref<16x24x384xbf16, #tpu.memory_space<vmem>>, vector<16x24x128xbf16>,
    %c0_16 = arith.constant 0 : index
    %c2 = arith.constant 2 : index
    %c0_17 = arith.constant 0 : index
    %c0_18 = arith.constant 0 : index
    %15 = vector.load %arg1[%c0_16, %c2, %c0_17, %c0_18] : memref<1x18x24x128xbf16, #tpu.memory_space<vmem>>, vector<1x16x24x128xbf16>
    %16 = vector.shape_cast %15 : vector<1x16x24x128xbf16> to vector<16x24x128xbf16>
    %c0_19 = arith.constant 0 : index
    %c0_20 = arith.constant 0 : index
    %c256 = arith.constant 256 : index
    %17 = vector.load %arg8[%c0_19, %c0_20, %c256] : memref<16x24x384xbf16, #tpu.memory_space<vmem>>, vector<16x24x128xbf16>
    tpu.vector_store %arg8[%c0_19, %c0_20, %c256], %16 {strides = array<i32>} : memref<16x24x384xbf16, #tpu.memory_space<vmem>>, vector<16x24x128xbf16>,
    %c0_21 = arith.constant 0 : index
    %c0_22 = arith.constant 0 : index
    %c0_23 = arith.constant 0 : index
    %18 = vector.load %arg8[%c0_21, %c0_22, %c0_23] : memref<16x24x384xbf16, #tpu.memory_space<vmem>>, vector<16x24x384xbf16>
    %19 = vector.shape_cast %18 : vector<16x24x384xbf16> to vector<384x384xbf16>
    %c1_24 = arith.constant 1 : index
    %c0_25 = arith.constant 0 : index
    %c0_26 = arith.constant 0 : index
    %20 = vector.load %arg2[%c1_24, %c0_25, %c0_26] : memref<3x384x128xbf16, #tpu.memory_space<vmem>>, vector<1x384x128xbf16>
    %21 = vector.shape_cast %20 : vector<1x384x128xbf16> to vector<384x128xbf16>
    %cst_27 = arith.constant dense<0.000000e+00> : vector<384x128xf32>
    %22 = tpu.matmul %19, %21, %cst_27 {dimension_numbers = #tpu.dot_dimension_numbers<[1], [0], [0], [1], [0, 0, 1, 1], [], []>} : vector<384x384xbf16>, vector<384x128xbf16>, vector<384x128xf32> -> vector<384x128xf32>
    %c0_28 = arith.constant 0 : index
    %c0_29 = arith.constant 0 : index
    %23 = vector.load %arg9[%c0_28, %c0_29] : memref<384x128xf32, #tpu.memory_space<vmem>>, vector<384x128xf32>
    tpu.vector_store %arg9[%c0_28, %c0_29], %22 {strides = array<i32>} : memref<384x128xf32, #tpu.memory_space<vmem>>, vector<384x128xf32>,
    %c0_30 = arith.constant 0 : index
    %c0_31 = arith.constant 0 : index
    %24 = vector.load %arg9[%c0_30, %c0_31] : memref<384x128xf32, #tpu.memory_space<vmem>>, vector<384x128xf32>
    %c0_32 = arith.constant 0 : index
    %c0_33 = arith.constant 0 : index
    %c0_34 = arith.constant 0 : index
    %25 = vector.load %arg2[%c0_32, %c0_33, %c0_34] : memref<3x384x128xbf16, #tpu.memory_space<vmem>>, vector<1x384x128xbf16>
    %26 = vector.shape_cast %25 : vector<1x384x128xbf16> to vector<384x128xbf16>
    %cst_35 = arith.constant dense<0.000000e+00> : vector<384x128xf32>
    %27 = tpu.matmul %19, %26, %cst_35 {dimension_numbers = #tpu.dot_dimension_numbers<[1], [0], [0], [1], [0, 0, 1, 1], [], []>} : vector<384x384xbf16>, vector<384x128xbf16>, vector<384x128xf32> -> vector<384x128xf32>
    %c1_i32_36 = arith.constant 1 : i32
    %28 = tpu.dynamic_rotate %27 by %c1_i32_36 dim 0 : vector<384x128xf32>, i32 -> vector<384x128xf32>
    %29 = arith.addf %24, %28 : vector<384x128xf32>
    %c0_37 = arith.constant 0 : index
    %c0_38 = arith.constant 0 : index
    %30 = vector.load %arg9[%c0_37, %c0_38] : memref<384x128xf32, #tpu.memory_space<vmem>>, vector<384x128xf32>
    tpu.vector_store %arg9[%c0_37, %c0_38], %29 {strides = array<i32>} : memref<384x128xf32, #tpu.memory_space<vmem>>, vector<384x128xf32>,
    %c0_39 = arith.constant 0 : index
    %c0_40 = arith.constant 0 : index
    %31 = vector.load %arg9[%c0_39, %c0_40] : memref<384x128xf32, #tpu.memory_space<vmem>>, vector<384x128xf32>
    %c2_41 = arith.constant 2 : index
    %c0_42 = arith.constant 0 : index
    %c0_43 = arith.constant 0 : index
    %32 = vector.load %arg2[%c2_41, %c0_42, %c0_43] : memref<3x384x128xbf16, #tpu.memory_space<vmem>>, vector<1x384x128xbf16>
    %33 = vector.shape_cast %32 : vector<1x384x128xbf16> to vector<384x128xbf16>
    %cst_44 = arith.constant dense<0.000000e+00> : vector<384x128xf32>
    %34 = tpu.matmul %19, %33, %cst_44 {dimension_numbers = #tpu.dot_dimension_numbers<[1], [0], [0], [1], [0, 0, 1, 1], [], []>} : vector<384x384xbf16>, vector<384x128xbf16>, vector<384x128xf32> -> vector<384x128xf32>
    %c383_i32 = arith.constant 383 : i32
    %35 = tpu.dynamic_rotate %34 by %c383_i32 dim 0 : vector<384x128xf32>, i32 -> vector<384x128xf32>
    %36 = arith.addf %31, %35 : vector<384x128xf32>
    %c0_45 = arith.constant 0 : index
    %c0_46 = arith.constant 0 : index
    %37 = vector.load %arg9[%c0_45, %c0_46] : memref<384x128xf32, #tpu.memory_space<vmem>>, vector<384x128xf32>
    tpu.vector_store %arg9[%c0_45, %c0_46], %36 {strides = array<i32>} : memref<384x128xf32, #tpu.memory_space<vmem>>, vector<384x128xf32>,
    %c0_47 = arith.constant 0 : index
    %c0_48 = arith.constant 0 : index
    %38 = vector.load %arg9[%c0_47, %c0_48] : memref<384x128xf32, #tpu.memory_space<vmem>>, vector<384x128xf32>
    %c0_49 = arith.constant 0 : index
    %c0_50 = arith.constant 0 : index
    %39 = vector.load %arg3[%c0_49, %c0_50] : memref<1x128xf32, #tpu.memory_space<vmem>>, vector<1x128xf32>
    %40 = vector.broadcast %39 : vector<1x128xf32> to vector<384x128xf32>
    %41 = arith.addf %38, %40 : vector<384x128xf32>
    %cst_51 = arith.constant 0.000000e+00 : f32
    %42 = vector.broadcast %cst_51 : f32 to vector<384x128xf32>
    %43 = arith.maximumf %41, %42 : vector<384x128xf32>
    %44 = vector.shape_cast %43 : vector<384x128xf32> to vector<16x24x128xf32>
    %cst_52 = arith.constant 0.000000e+00 : f32
    %45 = vector.shape_cast %8 : vector<1x24x1xi1> to vector<1x24x1xi1>
    %46 = vector.broadcast %45 : vector<1x24x1xi1> to vector<16x24x128xi1>
    %47 = vector.broadcast %cst_52 : f32 to vector<16x24x128xf32>
    %48 = arith.select %46, %44, %47 : vector<16x24x128xi1>, vector<16x24x128xf32>
    %49 = arith.truncf %48 : vector<16x24x128xf32> to vector<16x24x128xbf16>
    %c1_53 = arith.constant 1 : index
    %c0_54 = arith.constant 0 : index
    %c0_55 = arith.constant 0 : index
    %50 = vector.load %arg7[%c1_53, %c0_54, %c0_55] : memref<18x24x128xbf16, #tpu.memory_space<vmem>>, vector<16x24x128xbf16>
    tpu.vector_store %arg7[%c1_53, %c0_54, %c0_55], %49 {strides = array<i32>} : memref<18x24x128xbf16, #tpu.memory_space<vmem>>, vector<16x24x128xbf16>,
    %c0_56 = arith.constant 0 : index
    %c0_57 = arith.constant 0 : index
    %c0_58 = arith.constant 0 : index
    %51 = vector.load %arg7[%c0_56, %c0_57, %c0_58] : memref<18x24x128xbf16, #tpu.memory_space<vmem>>, vector<16x24x128xbf16>
    %c0_59 = arith.constant 0 : index
    %c0_60 = arith.constant 0 : index
    %c0_61 = arith.constant 0 : index
    %52 = vector.load %arg8[%c0_59, %c0_60, %c0_61] : memref<16x24x384xbf16, #tpu.memory_space<vmem>>, vector<16x24x128xbf16>
    tpu.vector_store %arg8[%c0_59, %c0_60, %c0_61], %51 {strides = array<i32>} : memref<16x24x384xbf16, #tpu.memory_space<vmem>>, vector<16x24x128xbf16>,
    %c1_62 = arith.constant 1 : index
    %c0_63 = arith.constant 0 : index
    %c0_64 = arith.constant 0 : index
    %53 = vector.load %arg7[%c1_62, %c0_63, %c0_64] : memref<18x24x128xbf16, #tpu.memory_space<vmem>>, vector<16x24x128xbf16>
    %c0_65 = arith.constant 0 : index
    %c0_66 = arith.constant 0 : index
    %c128_67 = arith.constant 128 : index
    %54 = vector.load %arg8[%c0_65, %c0_66, %c128_67] : memref<16x24x384xbf16, #tpu.memory_space<vmem>>, vector<16x24x128xbf16>
    tpu.vector_store %arg8[%c0_65, %c0_66, %c128_67], %53 {strides = array<i32>} : memref<16x24x384xbf16, #tpu.memory_space<vmem>>, vector<16x24x128xbf16>,
    %c2_68 = arith.constant 2 : index
    %c0_69 = arith.constant 0 : index
    %c0_70 = arith.constant 0 : index
    %55 = vector.load %arg7[%c2_68, %c0_69, %c0_70] : memref<18x24x128xbf16, #tpu.memory_space<vmem>>, vector<16x24x128xbf16>
    %c0_71 = arith.constant 0 : index
    %c0_72 = arith.constant 0 : index
    %c256_73 = arith.constant 256 : index
    %56 = vector.load %arg8[%c0_71, %c0_72, %c256_73] : memref<16x24x384xbf16, #tpu.memory_space<vmem>>, vector<16x24x128xbf16>
    tpu.vector_store %arg8[%c0_71, %c0_72, %c256_73], %55 {strides = array<i32>} : memref<16x24x384xbf16, #tpu.memory_space<vmem>>, vector<16x24x128xbf16>,
    %c0_74 = arith.constant 0 : index
    %c0_75 = arith.constant 0 : index
    %c0_76 = arith.constant 0 : index
    %57 = vector.load %arg8[%c0_74, %c0_75, %c0_76] : memref<16x24x384xbf16, #tpu.memory_space<vmem>>, vector<16x24x384xbf16>
    %58 = vector.shape_cast %57 : vector<16x24x384xbf16> to vector<384x384xbf16>
    %c1_77 = arith.constant 1 : index
    %c0_78 = arith.constant 0 : index
    %c0_79 = arith.constant 0 : index
    %59 = vector.load %arg4[%c1_77, %c0_78, %c0_79] : memref<3x384x128xbf16, #tpu.memory_space<vmem>>, vector<1x384x128xbf16>
    %60 = vector.shape_cast %59 : vector<1x384x128xbf16> to vector<384x128xbf16>
    %cst_80 = arith.constant dense<0.000000e+00> : vector<384x128xf32>
    %61 = tpu.matmul %58, %60, %cst_80 {dimension_numbers = #tpu.dot_dimension_numbers<[1], [0], [0], [1], [0, 0, 1, 1], [], []>} : vector<384x384xbf16>, vector<384x128xbf16>, vector<384x128xf32> -> vector<384x128xf32>
    %c0_81 = arith.constant 0 : index
    %c0_82 = arith.constant 0 : index
    %62 = vector.load %arg9[%c0_81, %c0_82] : memref<384x128xf32, #tpu.memory_space<vmem>>, vector<384x128xf32>
    tpu.vector_store %arg9[%c0_81, %c0_82], %61 {strides = array<i32>} : memref<384x128xf32, #tpu.memory_space<vmem>>, vector<384x128xf32>,
    %c0_83 = arith.constant 0 : index
    %c0_84 = arith.constant 0 : index
    %63 = vector.load %arg9[%c0_83, %c0_84] : memref<384x128xf32, #tpu.memory_space<vmem>>, vector<384x128xf32>
    %c0_85 = arith.constant 0 : index
    %c0_86 = arith.constant 0 : index
    %c0_87 = arith.constant 0 : index
    %64 = vector.load %arg4[%c0_85, %c0_86, %c0_87] : memref<3x384x128xbf16, #tpu.memory_space<vmem>>, vector<1x384x128xbf16>
    %65 = vector.shape_cast %64 : vector<1x384x128xbf16> to vector<384x128xbf16>
    %cst_88 = arith.constant dense<0.000000e+00> : vector<384x128xf32>
    %66 = tpu.matmul %58, %65, %cst_88 {dimension_numbers = #tpu.dot_dimension_numbers<[1], [0], [0], [1], [0, 0, 1, 1], [], []>} : vector<384x384xbf16>, vector<384x128xbf16>, vector<384x128xf32> -> vector<384x128xf32>
    %c1_i32_89 = arith.constant 1 : i32
    %67 = tpu.dynamic_rotate %66 by %c1_i32_89 dim 0 : vector<384x128xf32>, i32 -> vector<384x128xf32>
    %68 = arith.addf %63, %67 : vector<384x128xf32>
    %c0_90 = arith.constant 0 : index
    %c0_91 = arith.constant 0 : index
    %69 = vector.load %arg9[%c0_90, %c0_91] : memref<384x128xf32, #tpu.memory_space<vmem>>, vector<384x128xf32>
    tpu.vector_store %arg9[%c0_90, %c0_91], %68 {strides = array<i32>} : memref<384x128xf32, #tpu.memory_space<vmem>>, vector<384x128xf32>,
    %c0_92 = arith.constant 0 : index
    %c0_93 = arith.constant 0 : index
    %70 = vector.load %arg9[%c0_92, %c0_93] : memref<384x128xf32, #tpu.memory_space<vmem>>, vector<384x128xf32>
    %c2_94 = arith.constant 2 : index
    %c0_95 = arith.constant 0 : index
    %c0_96 = arith.constant 0 : index
    %71 = vector.load %arg4[%c2_94, %c0_95, %c0_96] : memref<3x384x128xbf16, #tpu.memory_space<vmem>>, vector<1x384x128xbf16>
    %72 = vector.shape_cast %71 : vector<1x384x128xbf16> to vector<384x128xbf16>
    %cst_97 = arith.constant dense<0.000000e+00> : vector<384x128xf32>
    %73 = tpu.matmul %58, %72, %cst_97 {dimension_numbers = #tpu.dot_dimension_numbers<[1], [0], [0], [1], [0, 0, 1, 1], [], []>} : vector<384x384xbf16>, vector<384x128xbf16>, vector<384x128xf32> -> vector<384x128xf32>
    %c383_i32_98 = arith.constant 383 : i32
    %74 = tpu.dynamic_rotate %73 by %c383_i32_98 dim 0 : vector<384x128xf32>, i32 -> vector<384x128xf32>
    %75 = arith.addf %70, %74 : vector<384x128xf32>
    %c0_99 = arith.constant 0 : index
    %c0_100 = arith.constant 0 : index
    %76 = vector.load %arg9[%c0_99, %c0_100] : memref<384x128xf32, #tpu.memory_space<vmem>>, vector<384x128xf32>
    tpu.vector_store %arg9[%c0_99, %c0_100], %75 {strides = array<i32>} : memref<384x128xf32, #tpu.memory_space<vmem>>, vector<384x128xf32>,
    %c0_101 = arith.constant 0 : index
    %c0_102 = arith.constant 0 : index
    %77 = vector.load %arg9[%c0_101, %c0_102] : memref<384x128xf32, #tpu.memory_space<vmem>>, vector<384x128xf32>
    %c0_103 = arith.constant 0 : index
    %c0_104 = arith.constant 0 : index
    %78 = vector.load %arg5[%c0_103, %c0_104] : memref<1x128xf32, #tpu.memory_space<vmem>>, vector<1x128xf32>
    %79 = vector.broadcast %78 : vector<1x128xf32> to vector<384x128xf32>
    %80 = arith.addf %77, %79 : vector<384x128xf32>
    %c0_105 = arith.constant 0 : index
    %c1_106 = arith.constant 1 : index
    %c0_107 = arith.constant 0 : index
    %c0_108 = arith.constant 0 : index
    %81 = vector.load %arg1[%c0_105, %c1_106, %c0_107, %c0_108] : memref<1x18x24x128xbf16, #tpu.memory_space<vmem>>, vector<1x16x24x128xbf16>
    %82 = vector.shape_cast %81 : vector<1x16x24x128xbf16> to vector<16x24x128xbf16>
    %83 = arith.extf %82 : vector<16x24x128xbf16> to vector<16x24x128xf32>
    %84 = vector.shape_cast %83 : vector<16x24x128xf32> to vector<384x128xf32>
    %85 = arith.addf %80, %84 : vector<384x128xf32>
    %cst_109 = arith.constant 0.000000e+00 : f32
    %86 = vector.broadcast %cst_109 : f32 to vector<384x128xf32>
    %87 = arith.maximumf %85, %86 : vector<384x128xf32>
    %88 = arith.truncf %87 : vector<384x128xf32> to vector<384x128xbf16>
    %89 = vector.shape_cast %88 : vector<384x128xbf16> to vector<16x24x128xbf16>
    %c0_110 = arith.constant 0 : index
    %c0_111 = arith.constant 0 : index
    %c0_112 = arith.constant 0 : index
    %c0_113 = arith.constant 0 : index
    %90 = vector.load %arg6[%c0_110, %c0_111, %c0_112, %c0_113] : memref<1x16x24x128xbf16, #tpu.memory_space<vmem>>, vector<1x16x24x128xbf16>
    %91 = vector.shape_cast %90 : vector<1x16x24x128xbf16> to vector<16x24x128xbf16>
    %92 = vector.shape_cast %89 : vector<16x24x128xbf16> to vector<1x16x24x128xbf16>
    tpu.vector_store %arg6[%c0_110, %c0_111, %c0_112, %c0_113], %92 {strides = array<i32>} : memref<1x16x24x128xbf16, #tpu.memory_space<vmem>>, vector<1x16x24x128xbf16>,
    return
  }
  func.func @transform_0(%arg0: i32) -> (i32, i32, i32, i32) {
    %c0_i32 = arith.constant 0 : i32
    %c0_i32_0 = arith.constant 0 : i32
    %c0_i32_1 = arith.constant 0 : i32
    %c0_i32_2 = arith.constant 0 : i32
    return %arg0, %c0_i32, %c0_i32_0, %c0_i32_1 : i32, i32, i32, i32
  }
  func.func @transform_1(%arg0: i32) -> (i32, i32, i32) {
    %c0_i32 = arith.constant 0 : i32
    %c0_i32_0 = arith.constant 0 : i32
    %c0_i32_1 = arith.constant 0 : i32
    %c0_i32_2 = arith.constant 0 : i32
    return %c0_i32, %c0_i32_0, %c0_i32_1 : i32, i32, i32
  }
  func.func @transform_2(%arg0: i32) -> (i32, i32) {
    %c0_i32 = arith.constant 0 : i32
    %c0_i32_0 = arith.constant 0 : i32
    %c0_i32_1 = arith.constant 0 : i32
    return %c0_i32, %c0_i32_0 : i32, i32
  }
  func.func @transform_3(%arg0: i32) -> (i32, i32, i32) {
    %c0_i32 = arith.constant 0 : i32
    %c0_i32_0 = arith.constant 0 : i32
    %c0_i32_1 = arith.constant 0 : i32
    %c0_i32_2 = arith.constant 0 : i32
    return %c0_i32, %c0_i32_0, %c0_i32_1 : i32, i32, i32
  }
  func.func @transform_4(%arg0: i32) -> (i32, i32) {
    %c0_i32 = arith.constant 0 : i32
    %c0_i32_0 = arith.constant 0 : i32
    %c0_i32_1 = arith.constant 0 : i32
    return %c0_i32, %c0_i32_0 : i32, i32
  }
  func.func @transform_5(%arg0: i32) -> (i32, i32, i32, i32) {
    %c0_i32 = arith.constant 0 : i32
    %c0_i32_0 = arith.constant 0 : i32
    %c0_i32_1 = arith.constant 0 : i32
    %c0_i32_2 = arith.constant 0 : i32
    return %arg0, %c0_i32, %c0_i32_0, %c0_i32_1 : i32, i32, i32, i32
  }
}

</mosaic_0001>

<bundles_post_ra>
// kernel: basic_block_forward.1
= control target key start
LH: loop header
LB: loop body
LE: loop exit
PB: predicated region body
PF: predicated region fallthrough
CT: control target
= control target key end

     0   :  { %s10070_s18 = smov 0   ;;  %s13291_s0 = inlined_call_operand.vmem [shape: bf16[2,18,24,128], index: 0, kind: input, shape index: {}]   ;;  %s13292_s1 = inlined_call_operand.vmem [shape: bf16[3,384,128], index: 1, kind: input, shape index: {}]   ;;  %s13293_s2 = inlined_call_operand.vmem [shape: f32[1,128], index: 2, kind: input, shape index: {}]   ;;  %s13294_s3 = inlined_call_operand.vmem [shape: bf16[3,384,128], index: 3, kind: input, shape index: {}]   ;;  %s13295_s4 = inlined_call_operand.vmem [shape: f32[1,128], index: 4, kind: input, shape index: {}]   ;;  %s13296_s5 = inlined_call_operand.vmem [shape: bf16[2,16,24,128], index: 5, kind: output, shape index: {}]  }
   0x1 LB: > { %s7751_s19 = sadd.s32 4294967295, %s10037_s18   ;;  %p7755_p0 = scmp.ge.s32.totalorder %s10037_s18, 1  ;;  %s10037_s18 = sphi %s10070_s18, %s15_s18  }
   0x2   : > { %p187_p1 = scmp.lt.s32.totalorder %s10037_s18, 3 }
   0x4   : > { %p188_p2 = pnand %p7755_p0, %p187_p1 }
   0x6   : > { %191 = sbr.rel (%p188_p2) target bundleno = 1325 (0x52d), region = 40 }
   0xd   : > { %v9561_v0 = vld [vmem:[%s13292_s1 + $0xc0] sm:$0xff]   ;;  %v13297_v1 = vmov 0   ;;  %p215_p3 = scmp.lt.s32.totalorder %s7751_s19, 1  ;;  %v9563_v3 = vld [vmem:[%s13292_s1 + $0xc8] sm:$0xff]   ;;  %v9566_v5 = vld [vmem:[%s13292_s1 + $0x150] sm:$0xff]  }
   0xe   : > { %1209 = vmatprep.subr.bf16.mxu0 %v13297_v1  ;;  %226 = vst [vmem:[#allocation2] sm:$0xf] %v13297_v1  ;;  %227 = vst [vmem:[#allocation2 + $0x4] sm:$0xf] %v13297_v1  ;;  %v9562_v2 = vld [vmem:[%s13292_s1 + $0x140] sm:$0xff]   ;;  %v9564_v4 = vld [vmem:[%s13292_s1 + $0x148] sm:$0xff]  }
   0xf   : > { %228 = vst [vmem:[#allocation2 + $0x8] sm:$0xf] %v13297_v1  ;;  %230 = vst [vmem:[#allocation2 + $0xcc] sm:$0xf] %v13297_v1  ;;  %1210 = vmatpush1.bf16.msra.mxu0 %v9561_v0  ;;  %9166 = vmatprep.subr.bf16.mxu1 %v9562_v2  ;;  %s13582_s19 = smov (!%p215_p3, %s7751_s19), 1  ;;  %v9565_v6 = vld [vmem:[%s13292_s1 + $0xd0] sm:$0xff]  }
  0x10   : > { %231 = vst [vmem:[#allocation2 + $0xd0] sm:$0xf] %v13297_v1  ;;  %232 = vst [vmem:[#allocation2 + $0xd4] sm:$0xf] %v13297_v1  ;;  %1211 = vmatprep.subr.bf16.mxu0 %v13297_v1  ;;  %9167 = vmatpush3.bf16.msra.mxu1 %v9562_v2  ;;  %v9568_v7 = vld [vmem:[%s13292_s1 + $0x158] sm:$0xff]   ;;  %s9550_s9 = smul.u32 216, %s13582_s19 }
  0x11   : > { %9168 = vmatprep.subr.bf16.mxu1 %v9564_v4  ;;  %v9567_v8 = vld [vmem:[%s13292_s1 + $0xd8] sm:$0xff]   ;;  %v9570_v9 = vld [vmem:[%s13292_s1 + $0x160] sm:$0xff]   ;;  %v9571_v11 = vld [vmem:[%s13292_s1 + $0xe8] sm:$0xff]   ;;  %s9551_s6 = smul.u32 192, %s13582_s19 }
  0x12   : > { %s10121_s16 = scalar_lea.vmem %s13291_s0, %s9550_s9  ;;  %v9569_v10 = vld [vmem:[%s13292_s1 + $0xe0] sm:$0xff]   ;;  %v9572_v14 = vld [vmem:[%s13292_s1 + $0x168] sm:$0xff]   ;;  %v9574_v19 = vld [vmem:[%s13292_s1 + $0x170] sm:$0xff]  }
  0x13   : > { %1212 = vmatpush1.bf16.msra.mxu0 %v9563_v3  ;;  %v7806_v12 = vld [vmem:[%s10121_s16 + $0x18] sm:$0xf]  ;;  %v7807_v13 = vld [vmem:[%s10121_s16 + $0x1c] sm:$0xf]  ;;  %v7808_v15 = vld [vmem:[%s10121_s16 + $0x20] sm:$0xf]  ;;  %s12942_s8 = scalar_lea.vmem %s13296_s5, %s9551_s6 }
  0x14   : > { %1213 = vmatprep.subr.bf16.mxu0 %v13297_v1  ;;  %9169 = vmatpush3.bf16.msra.mxu1 %v9564_v4  ;;  %488 = vst [vmem:[#allocation3 + $0x8] sm:$0xf] %v7806_v12  ;;  %489 = vst [vmem:[#allocation3 + $0x14] sm:$0xf] %v7807_v13  ;;  %v7809_v16 = vld [vmem:[%s10121_s16 + $0x24] sm:$0xf] }
  0x15   : > { %9170 = vmatprep.subr.bf16.mxu1 %v9566_v5  ;;  %490 = vst [vmem:[#allocation3 + $0x20] sm:$0xf] %v7808_v15  ;;  %491 = vst [vmem:[#allocation3 + $0x2c] sm:$0xf] %v7809_v16  ;;  %v7810_v17 = vld [vmem:[%s10121_s16 + $0x28] sm:$0xf] }
  0x16   : > { %v7811_v18 = vld [vmem:[%s10121_s16 + $0x2c] sm:$0xf]  ;;  %492 = vst [vmem:[#allocation3 + $0x38] sm:$0xf] %v7810_v17  ;;  %v7812_v20 = vld [vmem:[%s10121_s16 + $0x30] sm:$0xf] }
  0x17   : > { %1214 = vmatpush1.bf16.msra.mxu0 %v9565_v6  ;;  %493 = vst [vmem:[#allocation3 + $0x44] sm:$0xf] %v7811_v18  ;;  %v7813_v21 = vld [vmem:[%s10121_s16 + $0x34] sm:$0xf]  ;;  %494 = vst [vmem:[#allocation3 + $0x50] sm:$0xf] %v7812_v20 }
  0x18   : > { %1215 = vmatprep.subr.bf16.mxu0 %v13297_v1  ;;  %9171 = vmatpush3.bf16.msra.mxu1 %v9566_v5  ;;  %v9573_v22 = vld [vmem:[%s13292_s1 + $0xf0] sm:$0xff]   ;;  %495 = vst [vmem:[#allocation3 + $0x5c] sm:$0xf] %v7813_v21  ;;  %v7814_v23 = vld [vmem:[%s10121_s16 + $0x38] sm:$0xf]  ;;  %v9578_v30 = vld [vmem:[%s13292_s1 + $0x100] sm:$0xff]  }
  0x19   : > { %9172 = vmatprep.subr.bf16.mxu1 %v9568_v7  ;;  %v7815_v24 = vld [vmem:[%s10121_s16 + $0x3c] sm:$0xf]  ;;  %496 = vst [vmem:[#allocation3 + $0x68] sm:$0xf] %v7814_v23  ;;  %v7816_v27 = vld [vmem:[%s10121_s16 + $0x40] sm:$0xf] }
  0x1a   : > { %497 = vst [vmem:[#allocation3 + $0x74] sm:$0xf] %v7815_v24  ;;  %v9576_v26 = vld [vmem:[%s13292_s1 + $0x178] sm:$0xff]   ;;  %v7817_v29 = vld [vmem:[%s10121_s16 + $0x44] sm:$0xf]  ;;  %v9580_v37 = vld [vmem:[%s13292_s1 + $0x108] sm:$0xff]  }
  0x1b   : > { %1216 = vmatpush1.bf16.msra.mxu0 %v9567_v8  ;;  %v9577_v25 = vld [vmem:[#allocation3 + $0x8] ss:$12 sps:$4 sm:$0xff]   ;;  %v9575_v28 = vld [vmem:[%s13292_s1 + $0xf8] sm:$0xff]   ;;  %498 = vst [vmem:[#allocation3 + $0x80] sm:$0xf] %v7816_v27  ;;  %v9582_v41 = vld [vmem:[%s13292_s1 + $0x110] sm:$0xff]  }
  0x1c   : > { %1217 = vmatprep.subr.bf16.mxu0 %v13297_v1  ;;  %9173 = vmatpush3.bf16.msra.mxu1 %v9568_v7  ;;  %499 = vst [vmem:[#allocation3 + $0x8c] sm:$0xf] %v7817_v29  ;;  %v7818_v31 = vld [vmem:[%s10121_s16 + $0x48] sm:$0xf]  ;;  %v7819_v32 = vld [vmem:[%s10121_s16 + $0x4c] sm:$0xf] }
  0x1d   : > { %9174 = vmatprep.subr.bf16.mxu1 %v9570_v9  ;;  %9182 = vmatprep.mubr.bf16.mxu1 %v9577_v25  ;;  %v9579_v33 = vld [vmem:[#allocation3 + $0x20] ss:$12 sps:$4 sm:$0xff]   ;;  %500 = vst [vmem:[#allocation3 + $0x98] sm:$0xf] %v7818_v31  ;;  %501 = vst [vmem:[#allocation3 + $0xa4] sm:$0xf] %v7819_v32 }
  0x1e   : > { %v9581_v34 = vld [vmem:[#allocation3 + $0x38] ss:$12 sps:$4 sm:$0xff]   ;;  %v7821_v36 = vld [vmem:[%s10121_s16 + $0x54] sm:$0xf]  ;;  %v9592_v38 = vld [vmem:[%s13292_s1] sm:$0xff]  }
  0x1f   : > { %1218 = vmatpush1.bf16.msra.mxu0 %v9569_v10  ;;  %v7820_v35 = vld [vmem:[%s10121_s16 + $0x50] sm:$0xf]  ;;  %503 = vst [vmem:[#allocation3 + $0xbc] sm:$0xf] %v7821_v36  ;;  %v246_v39 = vld [vmem:[%s10121_s16] sm:$0xf] }
  0x20   : > { %1219 = vmatprep.subr.bf16.mxu0 %v13297_v1  ;;  %9175 = vmatpush3.bf16.msra.mxu1 %v9570_v9  ;;  %502 = vst [vmem:[#allocation3 + $0xb0] sm:$0xf] %v7820_v35  ;;  %v247_v40 = vld [vmem:[%s10121_s16 + $0x4] sm:$0xf]  ;;  %294 = vst [vmem:[#allocation3] sm:$0xf] %v246_v39 }
  0x21   : > { %9176 = vmatprep.subr.bf16.mxu1 %v9572_v14  ;;  %295 = vst [vmem:[#allocation3 + $0xc] sm:$0xf] %v247_v40  ;;  %v7758_v42 = vld [vmem:[%s10121_s16 + $0xc] sm:$0xf]  ;;  %v7759_v43 = vld [vmem:[%s10121_s16 + $0x10] sm:$0xf] }
  0x22   : > { %v9583_v44 = vld [vmem:[#allocation3 + $0x50] ss:$12 sps:$4 sm:$0xff]   ;;  %391 = vst [vmem:[#allocation3 + $0x4] sm:$0xf] %v7758_v42  ;;  %392 = vst [vmem:[#allocation3 + $0x10] sm:$0xf] %v7759_v43 }
  0x23   : > { %1220 = vmatpush1.bf16.msra.mxu0 %v9571_v11  ;;  %v9585_v45 = vld [vmem:[#allocation3 + $0x68] ss:$12 sps:$4 sm:$0xff]   ;;  %v7822_v46 = vld [vmem:[%s10121_s16 + $0x58] sm:$0xf]  ;;  %v7823_v47 = vld [vmem:[%s10121_s16 + $0x5c] sm:$0xf] }
  0x24   : > { %1221 = vmatprep.subr.bf16.mxu0 %v13297_v1  ;;  %9177 = vmatpush3.bf16.msra.mxu1 %v9572_v14  ;;  %v9584_v48 = vld [vmem:[%s13292_s1 + $0x118] sm:$0xff]   ;;  %504 = vst [vmem:[#allocation3 + $0xc8] sm:$0xf] %v7822_v46  ;;  %505 = vst [vmem:[#allocation3 + $0xd4] sm:$0xf] %v7823_v47  ;;  %v9597_v50 = vld [vmem:[%s13292_s1 + $0x8] sm:$0xff]  }
  0x25   : > { %9178 = vmatprep.subr.bf16.mxu1 %v9574_v19  ;;  %v3936_v49 = vld [vmem:[#allocation2] sm:$0xf]  ;;  %v3937_v51 = vld [vmem:[#allocation2 + $0x4] sm:$0xf]  ;;  %v9600_v54 = vld [vmem:[%s13292_s1 + $0x10] sm:$0xff]  }
  0x26   : > { %v7824_v52 = vld [vmem:[%s10121_s16 + $0x60] sm:$0xf]  ;;  %v7825_v53 = vld [vmem:[%s10121_s16 + $0x64] sm:$0xf]  ;;  %v248_v55 = vld [vmem:[%s10121_s16 + $0x8] sm:$0xf] }
  0x27   : > { %1222 = vmatpush1.bf16.msra.mxu0 %v9573_v22  ;;  %506 = vst [vmem:[#allocation3 + $0xe0] sm:$0xf] %v7824_v52  ;;  %507 = vst [vmem:[#allocation3 + $0xec] sm:$0xf] %v7825_v53  ;;  %v9586_v56 = vld [vmem:[%s13292_s1 + $0x120] sm:$0xff]   ;;  %v9588_v62 = vld [vmem:[%s13292_s1 + $0x128] sm:$0xff]  }
  0x28   : > { %1223 = vmatprep.subr.bf16.mxu0 %v13297_v1  ;;  %9179 = vmatpush3.bf16.msra.mxu1 %v9574_v19  ;;  %296 = vst [vmem:[#allocation3 + $0x18] sm:$0xf] %v248_v55  ;;  %3984 = vst [vmem:[#allocation3] sm:$0xf] %v3936_v49  ;;  %v249_v58 = vld [vmem:[%s10121_s16 + $0xc] sm:$0xf] }
  0x29   : > { %9180 = vmatprep.subr.bf16.mxu1 %v9576_v26  ;;  %v10203_v57 = vld [vmem:[#allocation3 + $0x4] ss:$12 sps:$4 sm:$0xff]   ;;  %3985 = vst [vmem:[#allocation3 + $0xc] sm:$0xf] %v3937_v51  ;;  %v7760_v59 = vld [vmem:[%s10121_s16 + $0x14] sm:$0xf] }
  0x2a   : > { %v7761_v60 = vld [vmem:[%s10121_s16 + $0x18] sm:$0xf]  ;;  %1241 = vmatprep.mubr.bf16.mxu0 %v10203_v57  ;;  %297 = vst [vmem:[#allocation3 + $0x24] sm:$0xf] %v249_v58  ;;  %393 = vst [vmem:[#allocation3 + $0x1c] sm:$0xf] %v7760_v59 }
  0x2b   : > { %1224 = vmatpush1.bf16.msra.mxu0 %v9575_v28  ;;  %v9587_v61 = vld [vmem:[#allocation3 + $0x80] ss:$12 sps:$4 sm:$0xff]   ;;  %394 = vst [vmem:[#allocation3 + $0x28] sm:$0xf] %v7761_v60  ;;  %v9589_v63 = vld [vmem:[#allocation3 + $0x98] ss:$12 sps:$4 sm:$0xff]  }
  0x2c   : > { %1225 = vmatprep.subr.bf16.mxu0 %v13297_v1  ;;  %9181 = vmatpush3.bf16.msra.mxu1 %v9576_v26  ;;  %v7826_v0 = vld [vmem:[%s10121_s16 + $0x68] sm:$0xf]  ;;  %v7827_v2 = vld [vmem:[%s10121_s16 + $0x6c] sm:$0xf]  ;;  %v7828_v3 = vld [vmem:[%s10121_s16 + $0x70] sm:$0xf] }
  0x2d   : > { %1947 = vmatprep.subr.bf16.mxu1 %v13297_v1  ;;  %508 = vst [vmem:[#allocation3 + $0xf8] sm:$0xf] %v7826_v0  ;;  %509 = vst [vmem:[#allocation3 + $0x104] sm:$0xf] %v7827_v2  ;;  %v7829_v4 = vld [vmem:[%s10121_s16 + $0x74] sm:$0xf] }
  0x2e   : > { %510 = vst [vmem:[#allocation3 + $0x110] sm:$0xf] %v7828_v3  ;;  %511 = vst [vmem:[#allocation3 + $0x11c] sm:$0xf] %v7829_v4  ;;  %v9605_v5 = vld [vmem:[%s13292_s1 + $0x18] sm:$0xff]   ;;  %v9590_v14 = vld [vmem:[%s13292_s1 + $0x130] sm:$0xff]  }
  0x2f   : > { %1226 = vmatpush1.bf16.msra.mxu0 %v9578_v30  ;;  %9183 = vmatmul.mubr.bf16.vlgmr.msra.gmra.mrb[0].mxu1 %v9579_v33  ;;  %v250_v6 = vld [vmem:[%s10121_s16 + $0x10] sm:$0xf]  ;;  %v3938_v7 = vld [vmem:[#allocation2 + $0x8] sm:$0xf]  ;;  %v251_v8 = vld [vmem:[%s10121_s16 + $0x14] sm:$0xf] }
  0x30   : > { %1227 = vmatprep.subr.bf16.mxu0 %v13297_v1  ;;  %9186 = vmatprep.mubr.bf16.mxu1 %v9581_v34  ;;  %298 = vst [vmem:[#allocation3 + $0x30] sm:$0xf] %v250_v6  ;;  %v7762_v9 = vld [vmem:[%s10121_s16 + $0x1c] sm:$0xf]  ;;  %v7763_v10 = vld [vmem:[%s10121_s16 + $0x20] sm:$0xf] }
  0x31   : > { %1948 = vmatpush1.bf16.msra.mxu1 %v9592_v38  ;;  %299 = vst [vmem:[#allocation3 + $0x3c] sm:$0xf] %v251_v8  ;;  %395 = vst [vmem:[#allocation3 + $0x34] sm:$0xf] %v7762_v9  ;;  %v7830_v11 = vld [vmem:[%s10121_s16 + $0x78] sm:$0xf] }
  0x32   : > { %1949 = vmatprep.subr.bf16.mxu1 %v13297_v1  ;;  %396 = vst [vmem:[#allocation3 + $0x40] sm:$0xf] %v7763_v10  ;;  %v7831_v12 = vld [vmem:[%s10121_s16 + $0x7c] sm:$0xf]  ;;  %v7832_v13 = vld [vmem:[%s10121_s16 + $0x80] sm:$0xf] }
  0x33   : > { %1228 = vmatpush1.bf16.msra.mxu0 %v9580_v37  ;;  %v9591_v15 = vld [vmem:[#allocation3 + $0xb0] ss:$12 sps:$4 sm:$0xff]   ;;  %512 = vst [vmem:[#allocation3 + $0x128] sm:$0xf] %v7830_v11  ;;  %513 = vst [vmem:[#allocation3 + $0x134] sm:$0xf] %v7831_v12 }
  0x34   : > { %1229 = vmatprep.subr.bf16.mxu0 %v13297_v1  ;;  %v10234_v16 = vld [vmem:[#allocation3 + $0x1c] ss:$12 sps:$4 sm:$0xff]   ;;  %514 = vst [vmem:[#allocation3 + $0x140] sm:$0xf] %v7832_v13  ;;  %3986 = vst [vmem:[#allocation3 + $0x18] sm:$0xf] %v3938_v7 }
  0x35   : > { %1950 = vmatpush1.bf16.msra.mxu1 %v9597_v50  ;;  %v7833_v17 = vld [vmem:[%s10121_s16 + $0x84] sm:$0xf]  ;;  %v9593_v18 = vld [vmem:[%s13292_s1 + $0x138] sm:$0xff]   ;;  %v9596_v20 = vld [vmem:[#allocation3 + $0xc8] ss:$12 sps:$4 sm:$0xff]  }
  0x36   : > { %1951 = vmatprep.subr.bf16.mxu1 %v13297_v1  ;;  %v536_v19 = vld [vmem:[#allocation3] sm:$0xff]  ;;  %515 = vst [vmem:[#allocation3 + $0x14c] sm:$0xf] %v7833_v17  ;;  %v538_v21 = vld [vmem:[#allocation3 + $0xc] sm:$0xff]  ;;  %v7835_v35 = vld [vmem:[%s10121_s16 + $0x8c] sm:$0xf] }
  0x37   : > { %1230 = vmatpush1.bf16.msra.mxu0 %v9582_v41  ;;  %9187 = vmatmul.mubr.bf16.gmra.mrb[4].mxu1 %v9583_v44  ;;  %v9611_v22 = vld [vmem:[%s13292_s1 + $0x20] sm:$0xff]   ;;  %v252_v24 = vld [vmem:[%s10121_s16 + $0x18] sm:$0xf]  ;;  %v253_v25 = vld [vmem:[%s10121_s16 + $0x1c] sm:$0xf]  ;;  %v10253_v27 = vcombine.low %v536_v19, %v538_v21 }
  0x38   : > { %1231 = vmatprep.subr.bf16.mxu0 %v13297_v1  ;;  %9190 = vmatprep.mubr.bf16.mxu1 %v9585_v45  ;;  %v9598_v23 = vld [vmem:[%s13292_s1 + $0x80] sm:$0xff]   ;;  %v9612_v26 = vld [vmem:[%s13292_s1 + $0x28] sm:$0xff]   ;;  %300 = vst [vmem:[#allocation3 + $0x48] sm:$0xf] %v252_v24  ;;  %301 = vst [vmem:[#allocation3 + $0x54] sm:$0xf] %v253_v25 }
  0x39   : > { %1952 = vmatpush1.bf16.msra.mxu1 %v9600_v54  ;;  %v9599_v28 = vld [vmem:[#allocation3 + $0xe0] ss:$12 sps:$4 sm:$0xff]   ;;  %v9603_v30 = vld [vmem:[#allocation3 + $0xf8] ss:$12 sps:$4 sm:$0xff]   ;;  %v7765_v31 = vld [vmem:[%s10121_s16 + $0x28] sm:$0xf] }
  0x3a   : > { %1953 = vmatprep.subr.bf16.mxu1 %v13297_v1  ;;  %v7764_v29 = vld [vmem:[%s10121_s16 + $0x24] sm:$0xf]  ;;  %v542_v33 = vld [vmem:[#allocation3 + $0x24] sm:$0xff]  ;;  %398 = vst [vmem:[#allocation3 + $0x58] sm:$0xf] %v7765_v31  ;;  %v9617_v36 = vld [vmem:[%s13292_s1 + $0x88] sm:$0xff]  }
  0x3b   : > { %1232 = vmatpush1.bf16.msra.mxu0 %v9584_v48  ;;  %397 = vst [vmem:[#allocation3 + $0x4c] sm:$0xf] %v7764_v29  ;;  %v540_v32 = vld [vmem:[#allocation3 + $0x18] sm:$0xff]  ;;  %v7834_v34 = vld [vmem:[%s10121_s16 + $0x88] sm:$0xf]  ;;  %v9620_v41 = vld [vmem:[%s13292_s1 + $0x38] sm:$0xff]  }
  0x3c   : > { %1233 = vmatprep.subr.bf16.mxu0 %v13297_v1  ;;  %516 = vst [vmem:[#allocation3 + $0x158] sm:$0xf] %v7834_v34  ;;  %517 = vst [vmem:[#allocation3 + $0x164] sm:$0xf] %v7835_v35  ;;  %v7836_v37 = vld [vmem:[%s10121_s16 + $0x90] sm:$0xf]  ;;  %v10278_v44 = vcombine.low %v540_v32, %v542_v33 }
  0x3d   : > { %1954 = vmatpush1.bf16.msra.mxu1 %v9605_v5  ;;  %v7837_v38 = vld [vmem:[%s10121_s16 + $0x94] sm:$0xf]  ;;  %518 = vst [vmem:[#allocation3 + $0x170] sm:$0xf] %v7836_v37  ;;  %v10271_v40 = vld [vmem:[#allocation3 + $0x34] ss:$12 sps:$4 sm:$0xff]  }
  0x3e   : > { %1955 = vmatprep.subr.bf16.mxu1 %v13297_v1  ;;  %519 = vst [vmem:[#allocation3 + $0x17c] sm:$0xf] %v7837_v38  ;;  %v9619_v39 = vld [vmem:[%s13292_s1 + $0x30] sm:$0xff]   ;;  %v254_v42 = vld [vmem:[%s10121_s16 + $0x20] sm:$0xf]  ;;  %v9627_v59 = vld [vmem:[%s13292_s1 + $0x48] sm:$0xff]  }
  0x3f   : > { %1234 = vmatpush1.bf16.msra.mxu0 %v9586_v56  ;;  %9191 = vmatmul.mubr.bf16.gmra.mrb[8].mxu1 %v9587_v61  ;;  %v255_v43 = vld [vmem:[%s10121_s16 + $0x24] sm:$0xf]  ;;  %302 = vst [vmem:[#allocation3 + $0x60] sm:$0xf] %v254_v42  ;;  %v7766_v45 = vld [vmem:[%s10121_s16 + $0x2c] sm:$0xf] }
  0x40   : > { %1235 = vmatprep.subr.bf16.mxu0 %v13297_v1  ;;  %9194 = vmatprep.mubr.bf16.mxu1 %v9589_v63  ;;  %303 = vst [vmem:[#allocation3 + $0x6c] sm:$0xf] %v255_v43  ;;  %v7767_v46 = vld [vmem:[%s10121_s16 + $0x30] sm:$0xf]  ;;  %v7838_v47 = vld [vmem:[%s10121_s16 + $0x98] sm:$0xf] }
  0x41   : > { %1956 = vmatpush1.bf16.msra.mxu1 %v9611_v22  ;;  %399 = vst [vmem:[#allocation3 + $0x64] sm:$0xf] %v7766_v45  ;;  %400 = vst [vmem:[#allocation3 + $0x70] sm:$0xf] %v7767_v46  ;;  %v7839_v48 = vld [vmem:[%s10121_s16 + $0x9c] sm:$0xf] }
  0x42   : > { %1957 = vmatprep.subr.bf16.mxu1 %v13297_v1  ;;  %520 = vst [vmem:[#allocation3 + $0x188] sm:$0xf] %v7838_v47  ;;  %v7840_v49 = vld [vmem:[%s10121_s16 + $0xa0] sm:$0xf]  ;;  %v9604_v50 = vld [vmem:[#allocation3 + $0x110] ss:$12 sps:$4 sm:$0xff]  }
  0x43   : > { %1236 = vmatpush1.bf16.msra.mxu0 %v9588_v62  ;;  %521 = vst [vmem:[#allocation3 + $0x194] sm:$0xf] %v7839_v48  ;;  %522 = vst [vmem:[#allocation3 + $0x1a0] sm:$0xf] %v7840_v49  ;;  %v9609_v51 = vld [vmem:[#allocation3 + $0x128] ss:$12 sps:$4 sm:$0xff]  }
  0x44   : > { %1237 = vmatprep.subr.bf16.mxu0 %v13297_v1  ;;  %v7841_v52 = vld [vmem:[%s10121_s16 + $0xa4] sm:$0xf]  ;;  %v10293_v54 = vld [vmem:[#allocation3 + $0x30] ss:$12 sps:$4 sm:$0xff]   ;;  %v257_v56 = vld [vmem:[%s10121_s16 + $0x2c] sm:$0xf] }
  0x45   : > { %1958 = vmatpush1.bf16.msra.mxu1 %v9612_v26  ;;  %523 = vst [vmem:[#allocation3 + $0x1ac] sm:$0xf] %v7841_v52  ;;  %v9626_v53 = vld [vmem:[%s13292_s1 + $0x40] sm:$0xff]   ;;  %v256_v55 = vld [vmem:[%s10121_s16 + $0x28] sm:$0xf]  ;;  %v9633_v6 = vld [vmem:[%s13292_s1 + $0x50] sm:$0xff]  }
  0x46   : > { %1959 = vmatprep.subr.bf16.mxu1 %v13297_v1  ;;  %v9610_v58 = vld [vmem:[#allocation3 + $0x140] ss:$12 sps:$4 sm:$0xff]   ;;  %304 = vst [vmem:[#allocation3 + $0x78] sm:$0xf] %v256_v55  ;;  %305 = vst [vmem:[#allocation3 + $0x84] sm:$0xf] %v257_v56 }
  0x47   : > { %1238 = vmatpush1.bf16.msra.mxu0 %v9590_v14  ;;  %9195 = vmatmul.mubr.bf16.gmra.mrb[12].mxu1 %v9591_v15  ;;  %v10300_v60 = vld [vmem:[#allocation3 + $0x4c] ss:$12 sps:$4 sm:$0xff]   ;;  %v7768_v62 = vld [vmem:[%s10121_s16 + $0x34] sm:$0xf]  ;;  %v7769_v63 = vld [vmem:[%s10121_s16 + $0x38] sm:$0xf] }
  0x48   : > { %1239 = vmatprep.subr.bf16.mxu0 %v13297_v1  ;;  %9198 = vmatprep.mubr.bf16.mxu1 %v9596_v20  ;;  %v9616_v61 = vld [vmem:[#allocation3 + $0x158] ss:$12 sps:$4 sm:$0xff]   ;;  %401 = vst [vmem:[#allocation3 + $0x7c] sm:$0xf] %v7768_v62  ;;  %v7842_v0 = vld [vmem:[%s10121_s16 + $0xa8] sm:$0xf] }
  0x49   : > { %1960 = vmatpush1.bf16.msra.mxu1 %v9619_v39  ;;  %v7843_v2 = vld [vmem:[%s10121_s16 + $0xac] sm:$0xf]  ;;  %402 = vst [vmem:[#allocation3 + $0x88] sm:$0xf] %v7769_v63  ;;  %524 = vst [vmem:[#allocation3 + $0x1b8] sm:$0xf] %v7842_v0 }
  0x4a   : > { %1961 = vmatprep.subr.bf16.mxu1 %v13297_v1  ;;  %525 = vst [vmem:[#allocation3 + $0x1c4] sm:$0xf] %v7843_v2  ;;  %v7844_v3 = vld [vmem:[%s10121_s16 + $0xb0] sm:$0xf]  ;;  %v7845_v4 = vld [vmem:[%s10121_s16 + $0xb4] sm:$0xf] }
  0x4b   : > { %1240 = vmatpush1.bf16.msra.mxu0 %v9593_v18  ;;  %526 = vst [vmem:[#allocation3 + $0x1d0] sm:$0xf] %v7844_v3  ;;  %v10312_v5 = vld [vmem:[#allocation3 + $0x48] ss:$12 sps:$4 sm:$0xff]   ;;  %527 = vst [vmem:[#allocation3 + $0x1dc] sm:$0xf] %v7845_v4 }
  0x4c   : > { %9230 = vmatprep.subr.bf16.mxu0 %v9598_v23  ;;  %v10317_v7 = vld [vmem:[#allocation3 + $0x64] ss:$12 sps:$4 sm:$0xff]   ;;  %v258_v9 = vld [vmem:[%s10121_s16 + $0x30] sm:$0xf]  ;;  %v259_v10 = vld [vmem:[%s10121_s16 + $0x34] sm:$0xf] }
  0x4d   : > { %1962 = vmatpush1.bf16.msra.mxu1 %v9620_v41  ;;  %v9634_v8 = vld [vmem:[%s13292_s1 + $0x58] sm:$0xff]   ;;  %v9618_v11 = vld [vmem:[#allocation3 + $0x170] ss:$12 sps:$4 sm:$0xff]   ;;  %306 = vst [vmem:[#allocation3 + $0x90] sm:$0xf] %v258_v9  ;;  %v9641_v22 = vld [vmem:[%s13292_s1 + $0x60] sm:$0xff]  }
  0x4e   : > { %1242 = vmatmul.mubr.bf16.vlgmr.msra.gmra.mrb[0].mxu0 %v10253_v27  ;;  %1963 = vmatprep.subr.bf16.mxu1 %v13297_v1  ;;  %307 = vst [vmem:[#allocation3 + $0x9c] sm:$0xf] %v259_v10  ;;  %v7770_v12 = vld [vmem:[%s10121_s16 + $0x3c] sm:$0xf]  ;;  %v7771_v13 = vld [vmem:[%s10121_s16 + $0x40] sm:$0xf] }
  0x4f   : > { %9231 = vmatpush3.bf16.msra.mxu0 %v9598_v23  ;;  %1249 = vmatprep.mubr.bf16.mxu0 %v10234_v16  ;;  %v7846_v14 = vld [vmem:[%s10121_s16 + $0xb8] sm:$0xf]  ;;  %403 = vst [vmem:[#allocation3 + $0x94] sm:$0xf] %v7770_v12  ;;  %404 = vst [vmem:[#allocation3 + $0xa0] sm:$0xf] %v7771_v13 }
  0x50   : > { %9199 = vmatmul.mubr.bf16.gmra.mrb[16].mxu1 %v9599_v28  ;;  %9232 = vmatprep.subr.bf16.mxu0 %v9617_v36  ;;  %v7847_v15 = vld [vmem:[%s10121_s16 + $0xbc] sm:$0xf]  ;;  %528 = vst [vmem:[#allocation3 + $0x1e8] sm:$0xf] %v7846_v14  ;;  %v9639_v17 = vld [vmem:[%s13292_s1 + $0x90] sm:$0xff]   ;;  %v9642_v26 = vld [vmem:[%s13292_s1 + $0x68] sm:$0xff]  }
  0x51   : > { %9202 = vmatprep.mubr.bf16.mxu1 %v9603_v30  ;;  %1964 = vmatpush1.bf16.msra.mxu1 %v9626_v53  ;;  %529 = vst [vmem:[#allocation3 + $0x1f4] sm:$0xf] %v7847_v15  ;;  %v7848_v18 = vld [vmem:[%s10121_s16 + $0xc0] sm:$0xf]  ;;  %v10335_v20 = vld [vmem:[#allocation3 + $0x60] ss:$12 sps:$4 sm:$0xff]  }
  0x52   : > { %1965 = vmatprep.subr.bf16.mxu1 %v13297_v1  ;;  %v9624_v19 = vld [vmem:[#allocation3 + $0x188] ss:$12 sps:$4 sm:$0xff]   ;;  %530 = vst [vmem:[#allocation3 + $0x200] sm:$0xf] %v7848_v18  ;;  %v7849_v21 = vld [vmem:[%s10121_s16 + $0xc4] sm:$0xf] }
  0x53   : > { %9233 = vmatpush3.bf16.msra.mxu0 %v9617_v36  ;;  %531 = vst [vmem:[#allocation3 + $0x20c] sm:$0xf] %v7849_v21  ;;  %v9625_v23 = vld [vmem:[#allocation3 + $0x1a0] ss:$12 sps:$4 sm:$0xff]   ;;  %v10342_v24 = vld [vmem:[#allocation3 + $0x7c] ss:$12 sps:$4 sm:$0xff]  }
  0x54   : > { %9234 = vmatprep.subr.bf16.mxu0 %v9639_v17  ;;  %v9631_v25 = vld [vmem:[#allocation3 + $0x1b8] ss:$12 sps:$4 sm:$0xff]   ;;  %v260_v28 = vld [vmem:[%s10121_s16 + $0x38] sm:$0xf]  ;;  %v7772_v30 = vld [vmem:[%s10121_s16 + $0x44] sm:$0xf] }
  0x55   : > { %1966 = vmatpush1.bf16.msra.mxu1 %v9627_v59  ;;  %v261_v29 = vld [vmem:[%s10121_s16 + $0x3c] sm:$0xf]  ;;  %308 = vst [vmem:[#allocation3 + $0xa8] sm:$0xf] %v260_v28  ;;  %v7773_v31 = vld [vmem:[%s10121_s16 + $0x48] sm:$0xf] }
  0x56   : > { %1250 = vmatmul.mubr.bf16.gmra.mrb[4].mxu0 %v10278_v44  ;;  %1967 = vmatprep.subr.bf16.mxu1 %v13297_v1  ;;  %309 = vst [vmem:[#allocation3 + $0xb4] sm:$0xf] %v261_v29  ;;  %405 = vst [vmem:[#allocation3 + $0xac] sm:$0xf] %v7772_v30  ;;  %v7850_v32 = vld [vmem:[%s10121_s16 + $0xc8] sm:$0xf] }
  0x57   : > { %1257 = vmatprep.mubr.bf16.mxu0 %v10271_v40  ;;  %9235 = vmatpush3.bf16.msra.mxu0 %v9639_v17  ;;  %v7851_v33 = vld [vmem:[%s10121_s16 + $0xcc] sm:$0xf]  ;;  %406 = vst [vmem:[#allocation3 + $0xb8] sm:$0xf] %v7773_v31  ;;  %532 = vst [vmem:[#allocation3 + $0x218] sm:$0xf] %v7850_v32 }
  0x58   : > { %9203 = vmatmul.mubr.bf16.gmra.mrb[20].mxu1 %v9604_v50  ;;  %533 = vst [vmem:[#allocation3 + $0x224] sm:$0xf] %v7851_v33  ;;  %v7852_v34 = vld [vmem:[%s10121_s16 + $0xd0] sm:$0xf]  ;;  %v7853_v35 = vld [vmem:[%s10121_s16 + $0xd4] sm:$0xf] }
  0x59   : > { %9206 = vmatprep.mubr.bf16.mxu1 %v9609_v51  ;;  %1968 = vmatpush1.bf16.msra.mxu1 %v9633_v6  ;;  %v10358_v36 = vld [vmem:[#allocation3 + $0x78] ss:$12 sps:$4 sm:$0xff]   ;;  %534 = vst [vmem:[#allocation3 + $0x230] sm:$0xf] %v7852_v34  ;;  %535 = vst [vmem:[#allocation3 + $0x23c] sm:$0xf] %v7853_v35 }
  0x5a   : > { %1969 = vmatprep.subr.bf16.mxu1 %v13297_v1  ;;  %v10361_v37 = vld [vmem:[#allocation3 + $0x94] ss:$12 sps:$4 sm:$0xff]   ;;  %v9632_v38 = vld [vmem:[#allocation3 + $0x1d0] ss:$12 sps:$4 sm:$0xff]   ;;  %v262_v45 = vld [vmem:[%s10121_s16 + $0x40] sm:$0xf] }
  0x5b   : > { %v9648_v39 = vld [vmem:[%s13292_s1 + $0x70] sm:$0xff]   ;;  %v9638_v41 = vld [vmem:[#allocation3 + $0x1e8] ss:$12 sps:$4 sm:$0xff]   ;;  %v9649_v43 = vld [vmem:[%s13292_s1 + $0x78] sm:$0xff]   ;;  %310 = vst [vmem:[#allocation3 + $0xc0] sm:$0xf] %v262_v45 }
  0x5c   : > { %v4174_v42 = vld [vmem:[#allocation2 + $0xcc] sm:$0xf]  ;;  %v263_v46 = vld [vmem:[%s10121_s16 + $0x44] sm:$0xf]  ;;  %v7775_v48 = vld [vmem:[%s10121_s16 + $0x50] sm:$0xf] }
  0x5d   : > { %1970 = vmatpush1.bf16.msra.mxu1 %v9634_v8  ;;  %311 = vst [vmem:[#allocation3 + $0xcc] sm:$0xf] %v263_v46  ;;  %v7774_v47 = vld [vmem:[%s10121_s16 + $0x4c] sm:$0xf]  ;;  %v264_v49 = vld [vmem:[%s10121_s16 + $0x48] sm:$0xf] }
  0x5e   : > { %1258 = vmatmul.mubr.bf16.gmra.mrb[8].mxu0 %v10293_v54  ;;  %1971 = vmatprep.subr.bf16.mxu1 %v13297_v1  ;;  %407 = vst [vmem:[#allocation3 + $0xc4] sm:$0xf] %v7774_v47  ;;  %408 = vst [vmem:[#allocation3 + $0xd0] sm:$0xf] %v7775_v48  ;;  %v265_v50 = vld [vmem:[%s10121_s16 + $0x4c] sm:$0xf] }
  0x5f   : > { %1265 = vmatprep.mubr.bf16.mxu0 %v10300_v60  ;;  %312 = vst [vmem:[#allocation3 + $0xd8] sm:$0xf] %v264_v49  ;;  %v7776_v51 = vld [vmem:[%s10121_s16 + $0x54] sm:$0xf]  ;;  %v4175_v52 = vld [vmem:[#allocation2 + $0xd0] sm:$0xf] }
  0x60   : > { %9207 = vmatmul.mubr.bf16.gmra.mrb[24].mxu1 %v9610_v58  ;;  %v4176_v53 = vld [vmem:[#allocation2 + $0xd4] sm:$0xf]  ;;  %313 = vst [vmem:[#allocation3 + $0xe4] sm:$0xf] %v265_v50  ;;  %409 = vst [vmem:[#allocation3 + $0xdc] sm:$0xf] %v7776_v51 }
  0x61   : > { %9210 = vmatprep.mubr.bf16.mxu1 %v9616_v61  ;;  %1972 = vmatpush1.bf16.msra.mxu1 %v9641_v22  ;;  %v10379_v55 = vld [vmem:[#allocation3 + $0x218] ss:$12 sps:$4 sm:$0xff]   ;;  %v10381_v56 = vld [vmem:[#allocation3 + $0x90] ss:$12 sps:$4 sm:$0xff]   ;;  %v7777_v61 = vld [vmem:[%s10121_s16 + $0x58] sm:$0xf] }
  0x62   : > { %1973 = vmatprep.subr.bf16.mxu1 %v13297_v1  ;;  %4222 = vst [vmem:[#allocation3 + $0x224] sm:$0xf] %v4174_v42  ;;  %v10383_v58 = vld [vmem:[#allocation3 + $0x230] ss:$12 sps:$4 sm:$0xff]   ;;  %v10385_v59 = vld [vmem:[#allocation3 + $0xac] ss:$12 sps:$4 sm:$0xff]  }
  0x63   : > { %4223 = vst [vmem:[#allocation3 + $0x230] sm:$0xf] %v4175_v52  ;;  %4224 = vst [vmem:[#allocation3 + $0x23c] sm:$0xf] %v4176_v53  ;;  %v9656_v62 = vld [vmem:[%s13292_s1 + $0x98] sm:$0xff]   ;;  %v9667_v17 = vld [vmem:[%s13292_s1 + $0xa0] sm:$0xff]  }
  0x64   : > { %410 = vst [vmem:[#allocation3 + $0xe8] sm:$0xf] %v7777_v61  ;;  %v266_v63 = vld [vmem:[%s10121_s16 + $0x50] sm:$0xf]  ;;  %v267_v0 = vld [vmem:[%s10121_s16 + $0x54] sm:$0xf]  ;;  %9236 = vmatprep.subr.bf16.mxu0 %v9656_v62 }
  0x65   : > { %1974 = vmatpush1.bf16.msra.mxu1 %v9642_v26  ;;  %314 = vst [vmem:[#allocation3 + $0xf0] sm:$0xf] %v266_v63  ;;  %315 = vst [vmem:[#allocation3 + $0xfc] sm:$0xf] %v267_v0  ;;  %v7778_v2 = vld [vmem:[%s10121_s16 + $0x5c] sm:$0xf]  ;;  %9237 = vmatpush3.bf16.msra.mxu0 %v9656_v62 }
  0x66   : > { %1266 = vmatmul.mubr.bf16.gmra.mrb[12].mxu0 %v10312_v5  ;;  %1975 = vmatprep.subr.bf16.mxu1 %v13297_v1  ;;  %v7779_v3 = vld [vmem:[%s10121_s16 + $0x60] sm:$0xf]  ;;  %v268_v4 = vld [vmem:[%s10121_s16 + $0x58] sm:$0xf]  ;;  %411 = vst [vmem:[#allocation3 + $0xf4] sm:$0xf] %v7778_v2 }
  0x67   : > { %1273 = vmatprep.mubr.bf16.mxu0 %v10317_v7  ;;  %v9640_v6 = vld [vmem:[#allocation3 + $0x200] ss:$12 sps:$4 sm:$0xff]   ;;  %412 = vst [vmem:[#allocation3 + $0x100] sm:$0xf] %v7779_v3  ;;  %316 = vst [vmem:[#allocation3 + $0x108] sm:$0xf] %v268_v4  ;;  %9238 = vmatprep.subr.bf16.mxu0 %v9667_v17 }
  0x68   : > { %9211 = vmatmul.mubr.bf16.gmra.mrb[28].mxu1 %v9618_v11  ;;  %v269_v8 = vld [vmem:[%s10121_s16 + $0x5c] sm:$0xf]  ;;  %v7780_v9 = vld [vmem:[%s10121_s16 + $0x64] sm:$0xf]  ;;  %v7781_v10 = vld [vmem:[%s10121_s16 + $0x68] sm:$0xf] }
  0x69   : > { %9214 = vmatprep.mubr.bf16.mxu1 %v9624_v19  ;;  %1976 = vmatpush1.bf16.msra.mxu1 %v9648_v39  ;;  %317 = vst [vmem:[#allocation3 + $0x114] sm:$0xf] %v269_v8  ;;  %413 = vst [vmem:[#allocation3 + $0x10c] sm:$0xf] %v7780_v9  ;;  %v270_v11 = vld [vmem:[%s10121_s16 + $0x60] sm:$0xf] }
  0x6a   : > { %1977 = vmatprep.subr.bf16.mxu1 %v13297_v1  ;;  %414 = vst [vmem:[#allocation3 + $0x118] sm:$0xf] %v7781_v10  ;;  %v271_v12 = vld [vmem:[%s10121_s16 + $0x64] sm:$0xf]  ;;  %318 = vst [vmem:[#allocation3 + $0x120] sm:$0xf] %v270_v11  ;;  %9239 = vmatpush3.bf16.msra.mxu0 %v9667_v17 }
  0x6b   : > { %v7782_v13 = vld [vmem:[%s10121_s16 + $0x6c] sm:$0xf]  ;;  %v7783_v14 = vld [vmem:[%s10121_s16 + $0x70] sm:$0xf]  ;;  %319 = vst [vmem:[#allocation3 + $0x12c] sm:$0xf] %v271_v12 }
  0x6c   : > { %v10406_v15 = vld [vmem:[#allocation3 + $0xa8] ss:$12 sps:$4 sm:$0xff]   ;;  %415 = vst [vmem:[#allocation3 + $0x124] sm:$0xf] %v7782_v13  ;;  %416 = vst [vmem:[#allocation3 + $0x130] sm:$0xf] %v7783_v14 }
  0x6d   : > { %1978 = vmatpush1.bf16.msra.mxu1 %v9649_v43  ;;  %v10412_v18 = vld [vmem:[#allocation3 + $0xc4] ss:$12 sps:$4 sm:$0xff]   ;;  %v273_v21 = vld [vmem:[%s10121_s16 + $0x6c] sm:$0xf]  ;;  %v7784_v22 = vld [vmem:[%s10121_s16 + $0x74] sm:$0xf] }
  0x6e   : > { %1274 = vmatmul.mubr.bf16.gmra.mrb[16].mxu0 %v10335_v20  ;;  %2831 = vmatprep.subr.bf16.mxu1 %v13297_v1  ;;  %v272_v19 = vld [vmem:[%s10121_s16 + $0x68] sm:$0xf]  ;;  %321 = vst [vmem:[#allocation3 + $0x144] sm:$0xf] %v273_v21  ;;  %417 = vst [vmem:[#allocation3 + $0x13c] sm:$0xf] %v7784_v22 }
  0x6f   : > { %1281 = vmatprep.mubr.bf16.mxu0 %v10342_v24  ;;  %320 = vst [vmem:[#allocation3 + $0x138] sm:$0xf] %v272_v19  ;;  %v274_v26 = vld [vmem:[%s10121_s16 + $0x70] sm:$0xf]  ;;  %v275_v28 = vld [vmem:[%s10121_s16 + $0x74] sm:$0xf] }
  0x70   : > { %9215 = vmatmul.mubr.bf16.gmra.mrb[32].mxu1 %v9625_v23  ;;  %v7785_v23 = vld [vmem:[%s10121_s16 + $0x78] sm:$0xf]  ;;  %322 = vst [vmem:[#allocation3 + $0x150] sm:$0xf] %v274_v26  ;;  %323 = vst [vmem:[#allocation3 + $0x15c] sm:$0xf] %v275_v28 }
  0x71   : > { %9218 = vmatprep.mubr.bf16.mxu1 %v9631_v25  ;;  %418 = vst [vmem:[#allocation3 + $0x148] sm:$0xf] %v7785_v23  ;;  %v10421_v25 = vld [vmem:[#allocation3 + $0xc0] ss:$12 sps:$4 sm:$0xff]   ;;  %v7786_v29 = vld [vmem:[%s10121_s16 + $0x7c] sm:$0xf] }
  0x72   : > { %v7787_v30 = vld [vmem:[%s10121_s16 + $0x80] sm:$0xf]  ;;  %419 = vst [vmem:[#allocation3 + $0x154] sm:$0xf] %v7786_v29  ;;  %v276_v33 = vld [vmem:[%s10121_s16 + $0x78] sm:$0xf] }
  0x73   : > { %v10428_v31 = vld [vmem:[#allocation3 + $0xdc] ss:$12 sps:$4 sm:$0xff]   ;;  %420 = vst [vmem:[#allocation3 + $0x160] sm:$0xf] %v7787_v30  ;;  %v277_v34 = vld [vmem:[%s10121_s16 + $0x7c] sm:$0xf] }
  0x74   : > { %v9663_v32 = vld [vmem:[%s13292_s1 + $0x180] sm:$0xff]   ;;  %324 = vst [vmem:[#allocation3 + $0x168] sm:$0xf] %v276_v33  ;;  %325 = vst [vmem:[#allocation3 + $0x174] sm:$0xf] %v277_v34  ;;  %v9679_v39 = vld [vmem:[%s13292_s1 + $0xa8] sm:$0xff]  }
  0x75   : > { %v7788_v35 = vld [vmem:[%s10121_s16 + $0x84] sm:$0xf]  ;;  %9240 = vmatprep.subr.bf16.mxu0 %v9679_v39  ;;  %v278_v42 = vld [vmem:[%s10121_s16 + $0x80] sm:$0xf]  ;;  %v7790_v45 = vld [vmem:[%s10121_s16 + $0x8c] sm:$0xf] }
  0x76   : > { %1282 = vmatmul.mubr.bf16.gmra.mrb[20].mxu0 %v10358_v36  ;;  %421 = vst [vmem:[#allocation3 + $0x16c] sm:$0xf] %v7788_v35  ;;  %v279_v43 = vld [vmem:[%s10121_s16 + $0x84] sm:$0xf]  ;;  %326 = vst [vmem:[#allocation3 + $0x180] sm:$0xf] %v278_v42 }
  0x77   : > { %1289 = vmatprep.mubr.bf16.mxu0 %v10361_v37  ;;  %9241 = vmatpush3.bf16.msra.mxu0 %v9679_v39  ;;  %327 = vst [vmem:[#allocation3 + $0x18c] sm:$0xf] %v279_v43  ;;  %v7791_v46 = vld [vmem:[%s10121_s16 + $0x90] sm:$0xf]  ;;  %v280_v47 = vld [vmem:[%s10121_s16 + $0x88] sm:$0xf] }
  0x78   : > { %9219 = vmatmul.mubr.bf16.gmra.mrb[36].mxu1 %v9632_v38  ;;  %v7789_v38 = vld [vmem:[%s10121_s16 + $0x88] sm:$0xf]  ;;  %v10452_v48 = vld [vmem:[#allocation3 + $0xd8] ss:$12 sps:$4 sm:$0xff]   ;;  %423 = vst [vmem:[#allocation3 + $0x184] sm:$0xf] %v7790_v45 }
  0x79   : > { %9222 = vmatprep.mubr.bf16.mxu1 %v9638_v41  ;;  %422 = vst [vmem:[#allocation3 + $0x178] sm:$0xf] %v7789_v38  ;;  %v9668_v41 = vld [vmem:[%s13292_s1 + $0x188] sm:$0xff]   ;;  %424 = vst [vmem:[#allocation3 + $0x190] sm:$0xf] %v7791_v46  ;;  %v9675_v52 = vld [vmem:[%s13292_s1 + $0x190] sm:$0xff]  }
  0x7a   : > { %328 = vst [vmem:[#allocation3 + $0x198] sm:$0xf] %v280_v47  ;;  %v10455_v49 = vld [vmem:[#allocation3 + $0xf4] ss:$12 sps:$4 sm:$0xff]   ;;  %v7792_v51 = vld [vmem:[%s10121_s16 + $0x94] sm:$0xf] }
  0x7b   : > { %v281_v50 = vld [vmem:[%s10121_s16 + $0x8c] sm:$0xf]  ;;  %425 = vst [vmem:[#allocation3 + $0x19c] sm:$0xf] %v7792_v51  ;;  %v7793_v53 = vld [vmem:[%s10121_s16 + $0x98] sm:$0xf] }
  0x7c   : > { %329 = vst [vmem:[#allocation3 + $0x1a4] sm:$0xf] %v281_v50  ;;  %426 = vst [vmem:[#allocation3 + $0x1a8] sm:$0xf] %v7793_v53  ;;  %v282_v61 = vld [vmem:[%s10121_s16 + $0x90] sm:$0xf] }
  0x7d   : > { %v283_v62 = vld [vmem:[%s10121_s16 + $0x94] sm:$0xf]  ;;  %330 = vst [vmem:[#allocation3 + $0x1b0] sm:$0xf] %v282_v61  ;;  %v7794_v63 = vld [vmem:[%s10121_s16 + $0x9c] sm:$0xf] }
  0x7e   : > { %1290 = vmatmul.mubr.bf16.gmra.mrb[24].mxu0 %v10381_v56  ;;  %v7795_v0 = vld [vmem:[%s10121_s16 + $0xa0] sm:$0xf]  ;;  %331 = vst [vmem:[#allocation3 + $0x1bc] sm:$0xf] %v283_v62  ;;  %427 = vst [vmem:[#allocation3 + $0x1b4] sm:$0xf] %v7794_v63 }
  0x7f   : > { %1297 = vmatprep.mubr.bf16.mxu0 %v10385_v59  ;;  %428 = vst [vmem:[#allocation3 + $0x1c0] sm:$0xf] %v7795_v0  ;;  %v9691_v2 = vld [vmem:[%s13292_s1 + $0xb0] sm:$0xff]   ;;  %v9680_v3 = vld [vmem:[%s13292_s1 + $0x198] sm:$0xff]   ;;  %v7797_v10 = vld [vmem:[%s10121_s16 + $0xa8] sm:$0xf] }
  0x80   : > { %9223 = vmatmul.mubr.bf16.gmra.mrb[40].mxu1 %v9640_v6  ;;  %v10478_v4 = vld [vmem:[#allocation3 + $0xf0] ss:$12 sps:$4 sm:$0xff]   ;;  %9242 = vmatprep.subr.bf16.mxu0 %v9691_v2  ;;  %v10481_v6 = vld [vmem:[#allocation3 + $0x10c] ss:$12 sps:$4 sm:$0xff]   ;;  %v284_v8 = vld [vmem:[%s10121_s16 + $0x98] sm:$0xf] }
  0x81   : > { %9226 = vmatprep.mubr.bf16.mxu1 %v10379_v55  ;;  %9243 = vmatpush3.bf16.msra.mxu0 %v9691_v2  ;;  %v285_v9 = vld [vmem:[%s10121_s16 + $0x9c] sm:$0xf]  ;;  %332 = vst [vmem:[#allocation3 + $0x1c8] sm:$0xf] %v284_v8  ;;  %v9687_v11 = vld [vmem:[%s13292_s1 + $0x1a0] sm:$0xff]   ;;  %v9692_v22 = vld [vmem:[%s13292_s1 + $0x1a8] sm:$0xff]  }
  0x82   : > { %333 = vst [vmem:[#allocation3 + $0x1d4] sm:$0xf] %v285_v9  ;;  %430 = vst [vmem:[#allocation3 + $0x1d8] sm:$0xf] %v7797_v10  ;;  %v286_v12 = vld [vmem:[%s10121_s16 + $0xa0] sm:$0xf] }
  0x83   : > { %v287_v13 = vld [vmem:[%s10121_s16 + $0xa4] sm:$0xf]  ;;  %v7798_v14 = vld [vmem:[%s10121_s16 + $0xac] sm:$0xf]  ;;  %334 = vst [vmem:[#allocation3 + $0x1e0] sm:$0xf] %v286_v12 }
  0x84   : > { %335 = vst [vmem:[#allocation3 + $0x1ec] sm:$0xf] %v287_v13  ;;  %431 = vst [vmem:[#allocation3 + $0x1e4] sm:$0xf] %v7798_v14  ;;  %v10497_v17 = vld [vmem:[#allocation3 + $0x108] ss:$12 sps:$4 sm:$0xff]  }
  0x85   : > { %v7799_v19 = vld [vmem:[%s10121_s16 + $0xb0] sm:$0xf]  ;;  %v10501_v21 = vld [vmem:[#allocation3 + $0x124] ss:$12 sps:$4 sm:$0xff]   ;;  %v289_v26 = vld [vmem:[%s10121_s16 + $0xac] sm:$0xf] }
  0x86   : > { %1298 = vmatmul.mubr.bf16.gmra.mrb[28].mxu0 %v10406_v15  ;;  %432 = vst [vmem:[#allocation3 + $0x1f0] sm:$0xf] %v7799_v19  ;;  %v288_v23 = vld [vmem:[%s10121_s16 + $0xa8] sm:$0xf]  ;;  %v7801_v28 = vld [vmem:[%s10121_s16 + $0xb8] sm:$0xf] }
  0x87   : > { %1305 = vmatprep.mubr.bf16.mxu0 %v10412_v18  ;;  %336 = vst [vmem:[#allocation3 + $0x1f8] sm:$0xf] %v288_v23  ;;  %337 = vst [vmem:[#allocation3 + $0x204] sm:$0xf] %v289_v26  ;;  %v9699_v29 = vld [vmem:[%s13292_s1 + $0x1b0] sm:$0xff]   ;;  %v9704_v35 = vld [vmem:[%s13292_s1 + $0x1b8] sm:$0xff]  }
  0x88   : > { %9227 = vmatmul.mubr.bf16.gmra.mrb[44].mxu1 %v10383_v58  ;;  %434 = vst [vmem:[#allocation3 + $0x208] sm:$0xf] %v7801_v28  ;;  %v290_v30 = vld [vmem:[%s10121_s16 + $0xb0] sm:$0xf]  ;;  %v7802_v33 = vld [vmem:[%s10121_s16 + $0xbc] sm:$0xf] }
  0x89   : > { %1979 = vmatprep.mubr.bf16.mxu1 %v10203_v57  ;;  %338 = vst [vmem:[#allocation3 + $0x210] sm:$0xf] %v290_v30  ;;  %v7803_v34 = vld [vmem:[%s10121_s16 + $0xc0] sm:$0xf]  ;;  %435 = vst [vmem:[#allocation3 + $0x214] sm:$0xf] %v7802_v33 }
  0x8a   : > { %436 = vst [vmem:[#allocation3 + $0x220] sm:$0xf] %v7803_v34  ;;  %v292_v38 = vld [vmem:[%s10121_s16 + $0xb8] sm:$0xf]  ;;  %v293_v39 = vld [vmem:[%s10121_s16 + $0xbc] sm:$0xf] }
  0x8b   : > { %v10532_v42 = vld [vmem:[#allocation3 + $0x120] ss:$12 sps:$4 sm:$0xff]   ;;  %340 = vst [vmem:[#allocation3 + $0x228] sm:$0xf] %v292_v38  ;;  %341 = vst [vmem:[#allocation3 + $0x234] sm:$0xf] %v293_v39 }
  0x8c   : > { %v7805_v43 = vld [vmem:[%s10121_s16 + $0xc8] sm:$0xf]  ;;  %v9711_v45 = vld [vmem:[%s13292_s1 + $0x1c0] sm:$0xff]   ;;  %v10555_v47 = vld [vmem:[#allocation3 + $0x138] ss:$12 sps:$4 sm:$0xff]  }
  0x8d   : > { %438 = vst [vmem:[#allocation3 + $0x238] sm:$0xf] %v7805_v43  ;;  %v9713_v46 = vld [vmem:[%s13292_s1 + $0x1c8] sm:$0xff]   ;;  %v9715_v51 = vld [vmem:[%s13292_s1 + $0x1d0] sm:$0xff]   ;;  %v9719_v53 = vld [vmem:[%s13292_s1 + $0x1e0] sm:$0xff]  }
  0x8e   : > { %1306 = vmatmul.mubr.bf16.gmra.mrb[32].mxu0 %v10421_v25  ;;  %v10558_v50 = vld [vmem:[#allocation3 + $0x154] ss:$12 sps:$4 sm:$0xff]   ;;  %v10602_v62 = vld [vmem:[#allocation3 + $0x19c] ss:$12 sps:$4 sm:$0xff]   ;;  %v10687_v26 = vld [vmem:[#allocation3 + $0x38] ss:$12 sps:$4 sm:$0xff]  }
  0x8f   : > { %1313 = vmatprep.mubr.bf16.mxu0 %v10428_v31  ;;  %v9721_v61 = vld [vmem:[%s13292_s1 + $0x1e8] sm:$0xff]   ;;  %v9724_v63 = vld [vmem:[%s13292_s1 + $0x1f8] sm:$0xff]  }
  0x90   : > { %1980 = vmatmul.mubr.bf16.vlgmr.msra.gmra.mrb[48].mxu1 %v10253_v27  ;;  %v10619_v0 = vld [vmem:[#allocation3 + $0x1b0] ss:$12 sps:$4 sm:$0xff]   ;;  %v10667_v13 = vld [vmem:[#allocation3 + $0x8] ss:$12 sps:$4 sm:$0xff]  }
  0x91   : > { %1987 = vmatprep.mubr.bf16.mxu1 %v10234_v16  ;;  %2832 = vmatpush1.bf16.msra.mxu1 %v9663_v32  ;;  %v291_v32 = vld [vmem:[%s10121_s16 + $0xb4] sm:$0xf]  ;;  %v10709_v34 = vld [vmem:[#allocation3 + $0x68] ss:$12 sps:$4 sm:$0xff]  }
  0x92   : > { %2833 = vmatprep.subr.bf16.mxu1 %v13297_v1  ;;  %339 = vst [vmem:[#allocation3 + $0x21c] sm:$0xf] %v291_v32  ;;  %v10660_v9 = vld [vmem:[#allocation3 + $0x228] ss:$12 sps:$4 sm:$0xff]   ;;  %v10704_v32 = vld [vmem:[#allocation3 + $0x50] ss:$12 sps:$4 sm:$0xff]  }
  0x95   : > { %2834 = vmatpush1.bf16.msra.mxu1 %v9668_v41  ;;  %v7804_v41 = vld [vmem:[%s10121_s16 + $0xc4] sm:$0xf] }
  0x96   : > { %1314 = vmatmul.mubr.bf16.gmra.mrb[36].mxu0 %v10452_v48  ;;  %2835 = vmatprep.subr.bf16.mxu1 %v13297_v1  ;;  %437 = vst [vmem:[#allocation3 + $0x22c] sm:$0xf] %v7804_v41  ;;  %v9723_v41 = vld [vmem:[%s13292_s1 + $0x228] sm:$0xff]  }
  0x97   : > { %1321 = vmatprep.mubr.bf16.mxu0 %v10455_v49 }
  0x98   : > { %1988 = vmatmul.mubr.bf16.gmra.mrb[52].mxu1 %v10278_v44 }
  0x99   : > { %1995 = vmatprep.mubr.bf16.mxu1 %v10271_v40  ;;  %2836 = vmatpush1.bf16.msra.mxu1 %v9675_v52  ;;  %v7796_v40 = vld [vmem:[%s10121_s16 + $0xa4] sm:$0xf] }
  0x9a   : > { %2837 = vmatprep.subr.bf16.mxu1 %v13297_v1  ;;  %429 = vst [vmem:[#allocation3 + $0x1cc] sm:$0xf] %v7796_v40  ;;  %v10573_v52 = vld [vmem:[#allocation3 + $0x16c] ss:$12 sps:$4 sm:$0xff]  }
  0x9d   : > { %2838 = vmatpush1.bf16.msra.mxu1 %v9680_v3  ;;  %v10644_v3 = vld [vmem:[#allocation3 + $0x1f8] ss:$12 sps:$4 sm:$0xff]  }
  0x9e   : > { %1322 = vmatmul.mubr.bf16.gmra.mrb[40].mxu0 %v10478_v4  ;;  %2839 = vmatprep.subr.bf16.mxu1 %v13297_v1  ;;  %v10654_v8 = vld [vmem:[#allocation3 + $0x22c] ss:$12 sps:$4 sm:$0xff]  }
  0x9f   : > { %1329 = vmatprep.mubr.bf16.mxu0 %v10481_v6 }
  0xa0   : > { %1996 = vmatmul.mubr.bf16.gmra.mrb[56].mxu1 %v10293_v54  ;;  %v7800_v54 = vld [vmem:[%s10121_s16 + $0xb4] sm:$0xf] }
  0xa1   : > { %2003 = vmatprep.mubr.bf16.mxu1 %v10300_v60  ;;  %2840 = vmatpush1.bf16.msra.mxu1 %v9687_v11  ;;  %433 = vst [vmem:[#allocation3 + $0x1fc] sm:$0xf] %v7800_v54  ;;  %v9703_v60 = vld [vmem:[%s13292_s1 + $0xb8] sm:$0xff]   ;;  %v10622_v2 = vld [vmem:[#allocation3 + $0x1cc] ss:$12 sps:$4 sm:$0xff]  }
  0xa2   : > { %2841 = vmatprep.subr.bf16.mxu1 %v13297_v1  ;;  %9244 = vmatprep.subr.bf16.mxu0 %v9703_v60  ;;  %v9716_v54 = vld [vmem:[%s13292_s1 + $0x210] sm:$0xff]  }
  0xa3   : > { %9245 = vmatpush3.bf16.msra.mxu0 %v9703_v60 }
  0xa5   : > { %2842 = vmatpush1.bf16.msra.mxu1 %v9692_v22  ;;  %v10681_v22 = vld [vmem:[#allocation3 + $0x20] ss:$12 sps:$4 sm:$0xff]  }
  0xa6   : > { %1330 = vmatmul.mubr.bf16.gmra.mrb[44].mxu0 %v10497_v17  ;;  %2843 = vmatprep.subr.bf16.mxu1 %v13297_v1 }
  0xa7   : > { %1337 = vmatprep.mubr.bf16.mxu0 %v10501_v21 }
  0xa8   : > { %2004 = vmatmul.mubr.bf16.gmra.mrb[60].mxu1 %v10312_v5  ;;  %v10535_v5 = vld [vmem:[#allocation3 + $0x13c] ss:$12 sps:$4 sm:$0xff]  }
  0xa9   : > { %2011 = vmatprep.mubr.bf16.mxu1 %v10317_v7  ;;  %2844 = vmatpush1.bf16.msra.mxu1 %v9699_v29  ;;  %v10544_v7 = vld [vmem:[%s13292_s1 + $0x200] sm:$0xff]   ;;  %v9718_v29 = vld [vmem:[%s13292_s1 + $0x218] sm:$0xff]  }
  0xaa   : > { %2845 = vmatprep.subr.bf16.mxu1 %v13297_v1  ;;  %9294 = vmatprep.subr.bf16.mxu0 %v10544_v7 }
  0xad   : > { %2846 = vmatpush1.bf16.msra.mxu1 %v9704_v35  ;;  %v9720_v35 = vld [vmem:[%s13292_s1 + $0x220] sm:$0xff]  }
  0xae   : > { %1338 = vmatmul.mubr.bf16.gmra.mrb[48].mxu0 %v10532_v42  ;;  %2847 = vmatprep.subr.bf16.mxu1 %v13297_v1 }
  0xaf   : > { %1345 = vmatprep.mubr.bf16.mxu0 %v10535_v5 }
  0xb0   : > { %2012 = vmatmul.mubr.bf16.gmra.mrb[64].mxu1 %v10335_v20  ;;  %v10567_v20 = vld [vmem:[#allocation3 + $0x150] ss:$12 sps:$4 sm:$0xff]  }
  0xb1   : > { %2019 = vmatprep.mubr.bf16.mxu1 %v10342_v24  ;;  %2848 = vmatpush1.bf16.msra.mxu1 %v9711_v45  ;;  %v9717_v24 = vld [vmem:[%s13292_s1 + $0x1d8] sm:$0xff]  }
  0xb2   : > { %2849 = vmatprep.subr.bf16.mxu1 %v13297_v1  ;;  %v10731_v45 = vld [vmem:[#allocation3 + $0x98] ss:$12 sps:$4 sm:$0xff]  }
  0xb5   : > { %2850 = vmatpush1.bf16.msra.mxu1 %v9713_v46 }
  0xb6   : > { %1346 = vmatmul.mubr.bf16.gmra.mrb[52].mxu0 %v10555_v47  ;;  %2851 = vmatprep.subr.bf16.mxu1 %v13297_v1 }
  0xb7   : > { %1353 = vmatprep.mubr.bf16.mxu0 %v10558_v50 }
  0xb8   : > { %2020 = vmatmul.mubr.bf16.gmra.mrb[68].mxu1 %v10358_v36  ;;  %v10583_v36 = vld [vmem:[#allocation3 + $0x168] ss:$12 sps:$4 sm:$0xff]  }
  0xb9   : > { %2027 = vmatprep.mubr.bf16.mxu1 %v10361_v37  ;;  %2852 = vmatpush1.bf16.msra.mxu1 %v9715_v51  ;;  %v10586_v37 = vld [vmem:[#allocation3 + $0x184] ss:$12 sps:$4 sm:$0xff]  }
  0xba   : > { %2853 = vmatprep.subr.bf16.mxu1 %v13297_v1 }
  0xbd   : > { %2854 = vmatpush1.bf16.msra.mxu1 %v9717_v24 }
  0xbe   : > { %1354 = vmatmul.mubr.bf16.gmra.mrb[56].mxu0 %v10567_v20  ;;  %2855 = vmatprep.subr.bf16.mxu1 %v13297_v1 }
  0xbf   : > { %1361 = vmatprep.mubr.bf16.mxu0 %v10573_v52 }
  0xc0   : > { %2028 = vmatmul.mubr.bf16.gmra.mrb[72].mxu1 %v10381_v56  ;;  %v9722_v56 = vld [vmem:[%s13292_s1 + $0x1f0] sm:$0xff]  }
  0xc1   : > { %2035 = vmatprep.mubr.bf16.mxu1 %v10385_v59  ;;  %2856 = vmatpush1.bf16.msra.mxu1 %v9719_v53  ;;  %v10599_v59 = vld [vmem:[#allocation3 + $0x180] ss:$12 sps:$4 sm:$0xff]  }
  0xc2   : > { %2857 = vmatprep.subr.bf16.mxu1 %v13297_v1 }
  0xc5   : > { %2858 = vmatpush1.bf16.msra.mxu1 %v9721_v61  ;;  %v10752_v61 = vld [vmem:[#allocation3 + $0xb0] ss:$12 sps:$4 sm:$0xff]  }
  0xc6   : > { %1362 = vmatmul.mubr.bf16.gmra.mrb[60].mxu0 %v10583_v36  ;;  %2859 = vmatprep.subr.bf16.mxu1 %v13297_v1 }
  0xc7   : > { %1369 = vmatprep.mubr.bf16.mxu0 %v10586_v37 }
  0xc8   : > { %2036 = vmatmul.mubr.bf16.gmra.mrb[76].mxu1 %v10406_v15  ;;  %v10611_v15 = vld [vmem:[#allocation3 + $0x198] ss:$12 sps:$4 sm:$0xff]  }
  0xc9   : > { %2043 = vmatprep.mubr.bf16.mxu1 %v10412_v18  ;;  %2860 = vmatpush1.bf16.msra.mxu1 %v9722_v56  ;;  %v10614_v18 = vld [vmem:[#allocation3 + $0x1b4] ss:$12 sps:$4 sm:$0xff]  }
  0xca   : > { %2861 = vmatprep.subr.bf16.mxu1 %v13297_v1 }
  0xcd   : > { %2862 = vmatpush1.bf16.msra.mxu1 %v9724_v63 }
  0xce   : > { %1370 = vmatmul.mubr.bf16.gmra.mrb[64].mxu0 %v10599_v59 }
  0xcf   : > { %1377 = vmatprep.mubr.bf16.mxu0 %v10602_v62 }
  0xd0   : > { %2044 = vmatmul.mubr.bf16.gmra.mrb[80].mxu1 %v10421_v25  ;;  %v10627_v25 = vld [vmem:[#allocation3 + $0x1c8] ss:$12 sps:$4 sm:$0xff]  }
  0xd1   : > { %2051 = vmatprep.mubr.bf16.mxu1 %v10428_v31  ;;  %v10630_v31 = vld [vmem:[#allocation3 + $0x1e4] ss:$12 sps:$4 sm:$0xff]  }
  0xd6   : > { %1378 = vmatmul.mubr.bf16.gmra.mrb[68].mxu0 %v10611_v15 }
  0xd7   : > { %1385 = vmatprep.mubr.bf16.mxu0 %v10614_v18 }
  0xd8   : > { %2052 = vmatmul.mubr.bf16.gmra.mrb[84].mxu1 %v10452_v48  ;;  %v10635_v48 = vld [vmem:[#allocation3 + $0x1e0] ss:$12 sps:$4 sm:$0xff]  }
  0xd9   : > { %2059 = vmatprep.mubr.bf16.mxu1 %v10455_v49  ;;  %v10638_v49 = vld [vmem:[#allocation3 + $0x1fc] ss:$12 sps:$4 sm:$0xff]  }
  0xde   : > { %1386 = vmatmul.mubr.bf16.gmra.mrb[72].mxu0 %v10619_v0 }
  0xdf   : > { %1393 = vmatprep.mubr.bf16.mxu0 %v10622_v2 }
  0xe0   : > { %2060 = vmatmul.mubr.bf16.gmra.mrb[88].mxu1 %v10478_v4  ;;  %v10646_v4 = vld [vmem:[#allocation3 + $0x214] ss:$12 sps:$4 sm:$0xff]  }
  0xe1   : > { %2067 = vmatprep.mubr.bf16.mxu1 %v10481_v6  ;;  %v10652_v6 = vld [vmem:[#allocation3 + $0x210] ss:$12 sps:$4 sm:$0xff]  }
  0xe6   : > { %1394 = vmatmul.mubr.bf16.gmra.mrb[76].mxu0 %v10627_v25 }
  0xe7   : > { %1401 = vmatprep.mubr.bf16.mxu0 %v10630_v31 }
  0xe8   : > { %2068 = vmatmul.mubr.bf16.gmra.mrb[92].mxu1 %v10497_v17  ;;  %v9714_v17 = vld [vmem:[%s13292_s1 + $0x208] sm:$0xff]  }
  0xe9   : > { %2075 = vmatprep.mubr.bf16.mxu1 %v10501_v21 }
  0xee   : > { %1402 = vmatmul.mubr.bf16.gmra.mrb[80].mxu0 %v10635_v48 }
  0xef   : > { %1409 = vmatprep.mubr.bf16.mxu0 %v10638_v49 }
  0xf0   : > { %2076 = vmatmul.mubr.bf16.gmra.mrb[96].mxu1 %v10532_v42 }
  0xf1   : > { %2083 = vmatprep.mubr.bf16.mxu1 %v10535_v5  ;;  %v10726_v5 = vld [vmem:[#allocation3 + $0x80] ss:$12 sps:$4 sm:$0xff]  }
  0xf6   : > { %1410 = vmatmul.mubr.bf16.gmra.mrb[84].mxu0 %v10644_v3 }
  0xf7   : > { %1417 = vmatprep.mubr.bf16.mxu0 %v10646_v4 }
  0xf8   : > { %2084 = vmatmul.mubr.bf16.gmra.mrb[100].mxu1 %v10555_v47 }
  0xf9   : > { %2091 = vmatprep.mubr.bf16.mxu1 %v10558_v50 }
  0xfe   : > { %1418 = vmatmul.mubr.bf16.gmra.mrb[88].mxu0 %v10652_v6 }
  0xff   : > { %1425 = vmatprep.mubr.bf16.mxu0 %v10654_v8 }
 0x100   : > { %2092 = vmatmul.mubr.bf16.gmra.mrb[104].mxu1 %v10567_v20 }
 0x101   : > { %2099 = vmatprep.mubr.bf16.mxu1 %v10573_v52 }
 0x102   : > { %v10662_v40 = vpop.f32.mrb[0].mxu1 }
 0x103   : > { %v1468_v10 = vpop.f32.mrb[1].mxu1 }
 0x104   : > { %v10664_v11 = vpop.f32.mrb[2].mxu1 }
 0x105   : > { %v1471_v12 = vpop.f32.mrb[3].mxu1 }
 0x106   : > { %1426 = vmatmul.mubr.bf16.gmra.mrb[92].mxu0 %v10660_v9 }
 0x107   : > { %9246 = vmatprep.mubr.bf16.mxu0 %v10667_v13 }
 0x108   : > { %2100 = vmatmul.mubr.bf16.gmra.mrb[108].mxu1 %v10583_v36  ;;  %v9726_v36 = vld [vmem:[%s13292_s1 + $0x238] sm:$0xff]  }
 0x109   : > { %2107 = vmatprep.mubr.bf16.mxu1 %v10586_v37 }
 0x10a   : > { %v10672_v14 = vpop.f32.mrb[4].mxu1 }
 0x10b   : > { %v10677_v19 = vpop.f32.mrb[5].mxu1 }
 0x10c   : > { %v10679_v21 = vpop.f32.mrb[6].mxu1 }
 0x10d   : > { %v10684_v23 = vpop.f32.mrb[7].mxu1 }
 0x10e   : > { %9247 = vmatmul.mubr.bf16.vlgmr.msra.gmra.mrb[96].mxu0 %v10681_v22 }
 0x10f   : > { %9295 = vmatpush3.bf16.msra.mxu0 %v10544_v7  ;;  %9250 = vmatprep.mubr.bf16.mxu0 %v10687_v26  ;;  %v9725_v7 = vld [vmem:[%s13292_s1 + $0x230] sm:$0xff]  }
 0x110   : > { %2108 = vmatmul.mubr.bf16.gmra.mrb[112].mxu1 %v10599_v59  ;;  %9296 = vmatprep.subr.bf16.mxu0 %v9714_v17  ;;  %v10757_v59 = vld [vmem:[#allocation3 + $0xc8] ss:$12 sps:$4 sm:$0xff]  }
 0x111   : > { %2115 = vmatprep.mubr.bf16.mxu1 %v10602_v62 }
 0x112   : > { %v10695_v28 = vpop.f32.mrb[8].mxu1 }
 0x113   : > { %9297 = vmatpush3.bf16.msra.mxu0 %v9714_v17  ;;  %v10697_v60 = vpop.f32.mrb[9].mxu1  ;;  %v10775_v17 = vld [vmem:[#allocation3 + $0xe0] ss:$12 sps:$4 sm:$0xff]  }
 0x114   : > { %9298 = vmatprep.subr.bf16.mxu0 %v9716_v54  ;;  %v10702_v30 = vpop.f32.mrb[10].mxu1 }
 0x115   : > { %v10707_v33 = vpop.f32.mrb[11].mxu1 }
 0x116   : > { %9251 = vmatmul.mubr.bf16.gmra.mrb[100].mxu0 %v10704_v32 }
 0x117   : > { %9254 = vmatprep.mubr.bf16.mxu0 %v10709_v34  ;;  %9299 = vmatpush3.bf16.msra.mxu0 %v9716_v54 }
 0x118   : > { %2116 = vmatmul.mubr.bf16.gmra.mrb[116].mxu1 %v10611_v15  ;;  %9300 = vmatprep.subr.bf16.mxu0 %v9718_v29 }
 0x119   : > { %2123 = vmatprep.mubr.bf16.mxu1 %v10614_v18 }
 0x11a   : > { %v10717_v38 = vpop.f32.mrb[12].mxu1 }
 0x11b   : > { %9301 = vmatpush3.bf16.msra.mxu0 %v9718_v29  ;;  %v10719_v39 = vpop.f32.mrb[13].mxu1 }
 0x11c   : > { %9302 = vmatprep.subr.bf16.mxu0 %v9720_v35  ;;  %v10724_v42 = vpop.f32.mrb[14].mxu1 }
 0x11d   : > { %v10729_v43 = vpop.f32.mrb[15].mxu1 }
 0x11e   : > { %9255 = vmatmul.mubr.bf16.gmra.mrb[104].mxu0 %v10726_v5 }
 0x11f   : > { %9258 = vmatprep.mubr.bf16.mxu0 %v10731_v45  ;;  %9303 = vmatpush3.bf16.msra.mxu0 %v9720_v35 }
 0x120   : > { %2124 = vmatmul.mubr.bf16.gmra.mrb[120].mxu1 %v10619_v0  ;;  %9304 = vmatprep.subr.bf16.mxu0 %v9723_v41 }
 0x121   : > { %v1243_v46 = vpop.f32.mrb[0].mxu0  ;;  %2131 = vmatprep.mubr.bf16.mxu1 %v10622_v2 }
 0x122   : > { %v10739_v47 = vadd.f32 %v1468_v10, %v1243_v46  ;;  %v1245_v50 = vpop.f32.mrb[1].mxu0 }
 0x123   : > { %v1246_v51 = vpop.f32.mrb[2].mxu0  ;;  %v10741_v20 = vpop.f32.mrb[16].mxu1  ;;  %9305 = vmatpush3.bf16.msra.mxu0 %v9723_v41 }
 0x124   : > { %13330 = vst [vmem:[#allocation5_spill] sm:$0xff] %v10739_v47  ;;  %v10743_v24 = vadd.f32 %v1471_v12, %v1246_v51  ;;  %v1248_v52 = vpop.f32.mrb[3].mxu0  ;;  %v10745_v53 = vpop.f32.mrb[17].mxu1  ;;  %9306 = vmatprep.subr.bf16.mxu0 %v9725_v7 }
 0x125   : > { %v10750_v37 = vpop.f32.mrb[18].mxu1  ;;  %v10797_v52 = vld [vmem:[#allocation3 + $0x110] ss:$12 sps:$4 sm:$0xff]  }
 0x126   : > { %13331 = vst [vmem:[#allocation6_spill] sm:$0xff] %v10743_v24  ;;  %9259 = vmatmul.mubr.bf16.gmra.mrb[108].mxu0 %v10752_v61  ;;  %v10755_v56 = vpop.f32.mrb[19].mxu1 }
 0x127   : > { %9262 = vmatprep.mubr.bf16.mxu0 %v10757_v59  ;;  %9307 = vmatpush3.bf16.msra.mxu0 %v9725_v7 }
 0x128   : > { %2132 = vmatmul.mubr.bf16.gmra.mrb[124].mxu1 %v10627_v25  ;;  %9308 = vmatprep.subr.bf16.mxu0 %v9726_v36 }
 0x129   : > { %v1251_v62 = vpop.f32.mrb[4].mxu0  ;;  %2139 = vmatprep.mubr.bf16.mxu1 %v10630_v31 }
 0x12a   : > { %v10763_v63 = vadd.f32 %v10662_v40, %v1251_v62  ;;  %v1253_v15 = vpop.f32.mrb[5].mxu0  ;;  %v10780_v40 = vld [vmem:[#allocation3 + $0xf8] ss:$12 sps:$4 sm:$0xff]  }
 0x12b   : > { %v1254_v18 = vpop.f32.mrb[6].mxu0  ;;  %v10765_v0 = vpop.f32.mrb[20].mxu1  ;;  %9309 = vmatpush3.bf16.msra.mxu0 %v9726_v36 }
 0x12c   : > { %13332 = vst [vmem:[#allocation7_spill] sm:$0xff] %v10763_v63  ;;  %v10768_v2 = vadd.f32 %v10664_v11, %v1254_v18  ;;  %v1256_v10 = vpop.f32.mrb[7].mxu0  ;;  %v10770_v12 = vpop.f32.mrb[21].mxu1  ;;  %4898 = vmatprep.subr.bf16.mxu0 %v13297_v1  ;;  %v10885_v63 = vld [vmem:[#allocation3 + $0x1d0] ss:$12 sps:$4 sm:$0xff]  }
 0x12d   : > { %v10773_v25 = vpop.f32.mrb[22].mxu1 }
 0x12e   : > { %13333 = vst [vmem:[#allocation8_spill] sm:$0xff] %v10768_v2  ;;  %9263 = vmatmul.mubr.bf16.gmra.mrb[112].mxu0 %v10775_v17  ;;  %v10778_v31 = vpop.f32.mrb[23].mxu1 }
 0x12f   : > { %9266 = vmatprep.mubr.bf16.mxu0 %v10780_v40 }
 0x130   : > { %2140 = vmatmul.mubr.bf16.gmra.mrb[128].mxu1 %v10635_v48 }
 0x131   : > { %v1259_v11 = vpop.f32.mrb[8].mxu0  ;;  %2147 = vmatprep.mubr.bf16.mxu1 %v10638_v49  ;;  %v10802_v49 = vld [vmem:[#allocation3 + $0x128] ss:$12 sps:$4 sm:$0xff]  }
 0x132   : > { %v10786_v54 = vadd.f32 %v10677_v19, %v1259_v11  ;;  %v1261_v29 = vpop.f32.mrb[9].mxu0 }
 0x133   : > { %v1262_v35 = vpop.f32.mrb[10].mxu0  ;;  %v10788_v41 = vpop.f32.mrb[24].mxu1 }
 0x134   : > { %13334 = vst [vmem:[#allocation9_spill] sm:$0xff] %v10786_v54  ;;  %v10791_v7 = vadd.f32 %v10684_v23, %v1262_v35  ;;  %v1264_v46 = vpop.f32.mrb[11].mxu0  ;;  %v10793_v50 = vpop.f32.mrb[25].mxu1  ;;  %v10819_v35 = vld [vmem:[#allocation3 + $0x140] ss:$12 sps:$4 sm:$0xff]  }
 0x135   : > { %v10795_v51 = vpop.f32.mrb[26].mxu1 }
 0x136   : > { %13335 = vst [vmem:[#allocation10_spill] sm:$0xff] %v10791_v7  ;;  %9267 = vmatmul.mubr.bf16.gmra.mrb[116].mxu0 %v10797_v52  ;;  %v10800_v48 = vpop.f32.mrb[27].mxu1 }
 0x137   : > { %9270 = vmatprep.mubr.bf16.mxu0 %v10802_v49 }
 0x138   : > { %2148 = vmatmul.mubr.bf16.gmra.mrb[132].mxu1 %v10644_v3 }
 0x139   : > { %v1267_v19 = vpop.f32.mrb[12].mxu0  ;;  %2155 = vmatprep.mubr.bf16.mxu1 %v10646_v4  ;;  %v10824_v4 = vld [vmem:[#allocation3 + $0x158] ss:$12 sps:$4 sm:$0xff]  }
 0x13a   : > { %v10808_v23 = vadd.f32 %v10672_v14, %v1267_v19  ;;  %v1269_v36 = vpop.f32.mrb[13].mxu0 }
 0x13b   : > { %v1270_v62 = vpop.f32.mrb[14].mxu0  ;;  %v10810_v15 = vpop.f32.mrb[28].mxu1 }
 0x13c   : > { %13336 = vst [vmem:[#allocation11_spill] sm:$0xff] %v10808_v23  ;;  %v10813_v18 = vadd.f32 %v10679_v21, %v1270_v62  ;;  %v1272_v10 = vpop.f32.mrb[15].mxu0  ;;  %v10815_v11 = vpop.f32.mrb[29].mxu1  ;;  %v10841_v23 = vld [vmem:[#allocation3 + $0x170] ss:$12 sps:$4 sm:$0xff]  }
 0x13d   : > { %v10817_v29 = vpop.f32.mrb[30].mxu1 }
 0x13e   : > { %13337 = vst [vmem:[#allocation12_spill] sm:$0xff] %v10813_v18  ;;  %9271 = vmatmul.mubr.bf16.gmra.mrb[120].mxu0 %v10819_v35  ;;  %v10822_v3 = vpop.f32.mrb[31].mxu1  ;;  %v10863_v18 = vld [vmem:[#allocation3 + $0x1a0] ss:$12 sps:$4 sm:$0xff]  }
 0x13f   : > { %9274 = vmatprep.mubr.bf16.mxu0 %v10824_v4 }
 0x140   : > { %2156 = vmatmul.mubr.bf16.gmra.mrb[136].mxu1 %v10652_v6 }
 0x141   : > { %v1275_v14 = vpop.f32.mrb[16].mxu0  ;;  %2163 = vmatprep.mubr.bf16.mxu1 %v10654_v8  ;;  %v10846_v8 = vld [vmem:[#allocation3 + $0x188] ss:$12 sps:$4 sm:$0xff]  }
 0x142   : > { %v10830_v21 = vadd.f32 %v10697_v60, %v1275_v14  ;;  %v1277_v46 = vpop.f32.mrb[17].mxu0 }
 0x143   : > { %v1278_v19 = vpop.f32.mrb[18].mxu0  ;;  %v10832_v36 = vpop.f32.mrb[32].mxu1 }
 0x144   : > { %13338 = vst [vmem:[#allocation13_spill] sm:$0xff] %v10830_v21  ;;  %v10835_v62 = vadd.f32 %v10707_v33, %v1278_v19  ;;  %v1280_v10 = vpop.f32.mrb[19].mxu0  ;;  %v10837_v1 = vpop.f32.mrb[33].mxu1 }
 0x145   : > { %v10839_v47 = vpop.f32.mrb[34].mxu1 }
 0x146   : > { %13339 = vst [vmem:[#allocation14_spill] sm:$0xff] %v10835_v62  ;;  %9275 = vmatmul.mubr.bf16.gmra.mrb[124].mxu0 %v10841_v23  ;;  %v10844_v6 = vpop.f32.mrb[35].mxu1 }
 0x147   : > { %9278 = vmatprep.mubr.bf16.mxu0 %v10846_v8 }
 0x148   : > { %2164 = vmatmul.mubr.bf16.gmra.mrb[140].mxu1 %v10660_v9  ;;  %v10868_v9 = vld [vmem:[#allocation3 + $0x1b8] ss:$12 sps:$4 sm:$0xff]  }
 0x149   : > { %v1283_v60 = vpop.f32.mrb[20].mxu0  ;;  %2863 = vmatprep.mubr.bf16.mxu1 %v10203_v57 }
 0x14a   : > { %v10852_v33 = vadd.f32 %v10695_v28, %v1283_v60  ;;  %v1285_v14 = vpop.f32.mrb[21].mxu0 }
 0x14b   : > { %v1286_v46 = vpop.f32.mrb[22].mxu0  ;;  %v10854_v19 = vpop.f32.mrb[36].mxu1 }
 0x14c   : > { %13340 = vst [vmem:[#allocation15_spill] sm:$0xff] %v10852_v33  ;;  %v10857_v10 = vadd.f32 %v10702_v30, %v1286_v46  ;;  %v1288_v62 = vpop.f32.mrb[23].mxu0  ;;  %v10859_v21 = vpop.f32.mrb[37].mxu1 }
 0x14d   : > { %v10861_v7 = vpop.f32.mrb[38].mxu1 }
 0x14e   : > { %13341 = vst [vmem:[#allocation16_spill] sm:$0xff] %v10857_v10  ;;  %9279 = vmatmul.mubr.bf16.gmra.mrb[128].mxu0 %v10863_v18  ;;  %v10866_v57 = vpop.f32.mrb[39].mxu1 }
 0x14f   : > { %9282 = vmatprep.mubr.bf16.mxu0 %v10868_v9 }
 0x150   : > { %2864 = vmatmul.mubr.bf16.vlgmr.msra.gmra.mrb[144].mxu1 %v10253_v27  ;;  %v10890_v27 = vld [vmem:[#allocation3 + $0x1e8] ss:$12 sps:$4 sm:$0xff]  }
 0x151   : > { %v1291_v28 = vpop.f32.mrb[24].mxu0  ;;  %2871 = vmatprep.mubr.bf16.mxu1 %v10234_v16 }
 0x152   : > { %v10874_v30 = vadd.f32 %v10719_v39, %v1291_v28  ;;  %v1293_v62 = vpop.f32.mrb[25].mxu0 }
 0x153   : > { %v1294_v60 = vpop.f32.mrb[26].mxu0  ;;  %v10876_v14 = vpop.f32.mrb[40].mxu1 }
 0x154   : > { %13342 = vst [vmem:[#allocation17_spill] sm:$0xff] %v10874_v30  ;;  %v10879_v46 = vadd.f32 %v10729_v43, %v1294_v60  ;;  %v1296_v33 = vpop.f32.mrb[27].mxu0  ;;  %v10881_v10 = vpop.f32.mrb[41].mxu1  ;;  %v9914_v43 = vld [vmem:[#allocation3 + $0x34] ss:$12 sps:$4 sm:$0xff]  }
 0x155   : > { %v10883_v54 = vpop.f32.mrb[42].mxu1 }
 0x156   : > { %13343 = vst [vmem:[#allocation18_spill] sm:$0xff] %v10879_v46  ;;  %13344 = vst [vmem:[#allocation19_spill] sm:$0xff] %v10883_v54  ;;  %9283 = vmatmul.mubr.bf16.gmra.mrb[132].mxu0 %v10885_v63  ;;  %v10888_v16 = vpop.f32.mrb[43].mxu1  ;;  %v10906_v54 = vld [vmem:[#allocation3 + $0x200] ss:$12 sps:$4 sm:$0xff]  }
 0x157   : > { %9286 = vmatprep.mubr.bf16.mxu0 %v10890_v27 }
 0x158   : > { %2872 = vmatmul.mubr.bf16.gmra.mrb[148].mxu1 %v10278_v44 }
 0x159   : > { %v1299_v39 = vpop.f32.mrb[28].mxu0  ;;  %2879 = vmatprep.mubr.bf16.mxu1 %v9914_v43  ;;  %v9917_v43 = vld [vmem:[#allocation3 + $0x4c] ss:$12 sps:$4 sm:$0xff]  }
 0x15a   : > { %v10895_v33 = vadd.f32 %v10717_v38, %v1299_v39  ;;  %v1301_v28 = vpop.f32.mrb[29].mxu0  ;;  %v9916_v38 = vld [vmem:[#allocation3 + $0x30] ss:$12 sps:$4 sm:$0xff]  }
 0x15b   : > { %v1302_v62 = vpop.f32.mrb[30].mxu0  ;;  %v10897_v60 = vpop.f32.mrb[44].mxu1 }
 0x15c   : > { %13345 = vst [vmem:[#allocation20_spill] sm:$0xff] %v10895_v33  ;;  %13346 = vst [vmem:[#allocation21_spill] sm:$0xff] %v10897_v60  ;;  %v10900_v46 = vadd.f32 %v10724_v42, %v1302_v62  ;;  %v1304_v30 = vpop.f32.mrb[31].mxu0  ;;  %v10902_v24 = vpop.f32.mrb[45].mxu1 }
 0x15d   : > { %v10904_v2 = vpop.f32.mrb[46].mxu1 }
 0x15e   : > { %13347 = vst [vmem:[#allocation22_spill] sm:$0xff] %v10900_v46  ;;  %13348 = vst [vmem:[#allocation23_spill] sm:$0xff] %v10904_v2  ;;  %9287 = vmatmul.mubr.bf16.gmra.mrb[136].mxu0 %v10906_v54  ;;  %v10909_v44 = vpop.f32.mrb[47].mxu1 }
 0x15f   : > { %9290 = vmatprep.mubr.bf16.mxu0 %v10379_v55 }
 0x160   : > { %2880 = vmatmul.mubr.bf16.gmra.mrb[152].mxu1 %v9916_v38 }
 0x161   : > { %v1307_v39 = vpop.f32.mrb[32].mxu0  ;;  %2887 = vmatprep.mubr.bf16.mxu1 %v9917_v43  ;;  %v9918_v43 = vld [vmem:[#allocation3 + $0x48] ss:$12 sps:$4 sm:$0xff]  }
 0x162   : > { %v10913_v42 = vadd.f32 %v10745_v53, %v1307_v39  ;;  %v1309_v30 = vpop.f32.mrb[33].mxu0  ;;  %v9919_v39 = vld [vmem:[#allocation3 + $0x64] ss:$12 sps:$4 sm:$0xff]  }
 0x163   : > { %v1310_v28 = vpop.f32.mrb[34].mxu0  ;;  %v10915_v62 = vpop.f32.mrb[48].mxu1 }
 0x164   : > { %13349 = vst [vmem:[#allocation24_spill] sm:$0xff] %v10913_v42  ;;  %v10918_v33 = vadd.f32 %v10755_v56, %v1310_v28  ;;  %v1312_v46 = vpop.f32.mrb[35].mxu0  ;;  %v1983_v2 = vpop.f32.mrb[49].mxu1 }
 0x165   : > { %v10920_v60 = vpop.f32.mrb[50].mxu1 }
 0x166   : > { %13350 = vst [vmem:[#allocation25_spill] sm:$0xff] %v10918_v33  ;;  %9291 = vmatmul.mubr.bf16.gmra.mrb[140].mxu0 %v10383_v58  ;;  %v1986_v38 = vpop.f32.mrb[51].mxu1 }
 0x167   : > { %9310 = vmatprep.mubr.bf16.mxu0 %v10667_v13 }
 0x168   : > { %2888 = vmatmul.mubr.bf16.gmra.mrb[156].mxu1 %v9918_v43  ;;  %v9920_v43 = vld [vmem:[#allocation3 + $0x60] ss:$12 sps:$4 sm:$0xff]  }
 0x169   : > { %v1315_v53 = vpop.f32.mrb[36].mxu0  ;;  %2895 = vmatprep.mubr.bf16.mxu1 %v9919_v39 }
 0x16a   : > { %v10925_v30 = vadd.f32 %v10741_v20, %v1315_v53  ;;  %v1317_v42 = vpop.f32.mrb[37].mxu0  ;;  %v9921_v53 = vld [vmem:[#allocation3 + $0x7c] ss:$12 sps:$4 sm:$0xff]  }
 0x16b   : > { %v1318_v56 = vpop.f32.mrb[38].mxu0  ;;  %v10927_v28 = vpop.f32.mrb[52].mxu1 }
 0x16c   : > { %v10930_v2 = vadd.f32 %v10750_v37, %v1318_v56  ;;  %v1320_v46 = vpop.f32.mrb[39].mxu0  ;;  %v1991_v33 = vpop.f32.mrb[53].mxu1 }
 0x16d   : > { %v10932_v38 = vpop.f32.mrb[54].mxu1 }
 0x16e   : > { %9311 = vmatmul.mubr.bf16.vlgmr.msra.gmra.mrb[144].mxu0 %v10681_v22  ;;  %v1994_v13 = vpop.f32.mrb[55].mxu1 }
 0x16f   : > { %9314 = vmatprep.mubr.bf16.mxu0 %v10687_v26 }
 0x170   : > { %2896 = vmatmul.mubr.bf16.gmra.mrb[160].mxu1 %v9920_v43  ;;  %v9922_v43 = vld [vmem:[#allocation3 + $0x78] ss:$12 sps:$4 sm:$0xff]  }
 0x171   : > { %v1323_v20 = vpop.f32.mrb[40].mxu0  ;;  %2903 = vmatprep.mubr.bf16.mxu1 %v9921_v53 }
 0x172   : > { %v10937_v42 = vadd.f32 %v10770_v12, %v1323_v20  ;;  %v1325_v39 = vpop.f32.mrb[41].mxu0  ;;  %v9923_v20 = vld [vmem:[#allocation3 + $0x94] ss:$12 sps:$4 sm:$0xff]  }
 0x173   : > { %v1326_v37 = vpop.f32.mrb[42].mxu0  ;;  %v10939_v56 = vpop.f32.mrb[56].mxu1 }
 0x174   : > { %v10942_v33 = vadd.f32 %v10778_v31, %v1326_v37  ;;  %v1328_v46 = vpop.f32.mrb[43].mxu0  ;;  %v1999_v22 = vpop.f32.mrb[57].mxu1 }
 0x175   : > { %v10944_v13 = vpop.f32.mrb[58].mxu1 }
 0x176   : > { %9315 = vmatmul.mubr.bf16.gmra.mrb[148].mxu0 %v10704_v32  ;;  %v2002_v26 = vpop.f32.mrb[59].mxu1 }
 0x177   : > { %9318 = vmatprep.mubr.bf16.mxu0 %v10709_v34 }
 0x178   : > { %2904 = vmatmul.mubr.bf16.gmra.mrb[164].mxu1 %v9922_v43  ;;  %v9924_v43 = vld [vmem:[#allocation3 + $0x90] ss:$12 sps:$4 sm:$0xff]  }
 0x179   : > { %v1331_v12 = vpop.f32.mrb[44].mxu0  ;;  %2911 = vmatprep.mubr.bf16.mxu1 %v9923_v20 }
 0x17a   : > { %v10949_v53 = vadd.f32 %v10765_v0, %v1331_v12  ;;  %v1333_v39 = vpop.f32.mrb[45].mxu0  ;;  %v9925_v12 = vld [vmem:[#allocation3 + $0xac] ss:$12 sps:$4 sm:$0xff]  }
 0x17b   : > { %v1334_v31 = vpop.f32.mrb[46].mxu0  ;;  %v10951_v37 = vpop.f32.mrb[60].mxu1 }
 0x17c   : > { %v10954_v46 = vadd.f32 %v10773_v25, %v1334_v31  ;;  %v1336_v22 = vpop.f32.mrb[47].mxu0  ;;  %v2007_v32 = vpop.f32.mrb[61].mxu1 }
 0x17d   : > { %v10956_v26 = vpop.f32.mrb[62].mxu1 }
 0x17e   : > { %9319 = vmatmul.mubr.bf16.gmra.mrb[152].mxu0 %v10726_v5  ;;  %v2010_v34 = vpop.f32.mrb[63].mxu1 }
 0x17f   : > { %9322 = vmatprep.mubr.bf16.mxu0 %v10731_v45 }
 0x180   : > { %2912 = vmatmul.mubr.bf16.gmra.mrb[168].mxu1 %v9924_v43  ;;  %v9926_v43 = vld [vmem:[#allocation3 + $0xa8] ss:$12 sps:$4 sm:$0xff]  }
 0x181   : > { %v1339_v0 = vpop.f32.mrb[48].mxu0  ;;  %2919 = vmatprep.mubr.bf16.mxu1 %v9925_v12  ;;  %v9727_v12 = vld [vmem:[%s13294_s3 + $0x140] sm:$0xff]  }
 0x182   : > { %v10961_v20 = vadd.f32 %v10793_v50, %v1339_v0  ;;  %v1341_v39 = vpop.f32.mrb[49].mxu0  ;;  %v9927_v0 = vld [vmem:[#allocation3 + $0xc4] ss:$12 sps:$4 sm:$0xff]   ;;  %9358 = vmatprep.subr.bf16.mxu1 %v9727_v12 }
 0x183   : > { %v1342_v25 = vpop.f32.mrb[50].mxu0  ;;  %v10963_v31 = vpop.f32.mrb[64].mxu1  ;;  %9359 = vmatpush3.bf16.msra.mxu1 %v9727_v12 }
 0x184   : > { %v10966_v22 = vadd.f32 %v10800_v48, %v1342_v25  ;;  %v1344_v32 = vpop.f32.mrb[51].mxu0  ;;  %v2015_v5 = vpop.f32.mrb[65].mxu1  ;;  %v9728_v48 = vld [vmem:[%s13294_s3 + $0xc0] sm:$0xff]  }
 0x185   : > { %v10968_v34 = vpop.f32.mrb[66].mxu1  ;;  %4899 = vmatpush1.bf16.msra.mxu0 %v9728_v48 }
 0x186   : > { %9323 = vmatmul.mubr.bf16.gmra.mrb[156].mxu0 %v10752_v61  ;;  %v2018_v45 = vpop.f32.mrb[67].mxu1 }
 0x187   : > { %9326 = vmatprep.mubr.bf16.mxu0 %v10757_v59 }
 0x188   : > { %2920 = vmatmul.mubr.bf16.gmra.mrb[172].mxu1 %v9926_v43  ;;  %v13352_v43 = vmov 0  }
 0x189   : > { %v1347_v50 = vpop.f32.mrb[52].mxu0  ;;  %2927 = vmatprep.mubr.bf16.mxu1 %v9927_v0  ;;  %4900 = vmatprep.subr.bf16.mxu0 %v13352_v43 }
 0x18a   : > { %v10979_v39 = vadd.f32 %v10788_v41, %v1347_v50  ;;  %v1349_v61 = vpop.f32.mrb[53].mxu0  ;;  %v9928_v50 = vld [vmem:[#allocation3 + $0xc0] ss:$12 sps:$4 sm:$0xff]  }
 0x18b   : > { %v1350_v25 = vpop.f32.mrb[54].mxu0  ;;  %v10981_v32 = vpop.f32.mrb[68].mxu1 }
 0x18c   : > { %13351 = vst [vmem:[#allocation26_spill] sm:$0xff] %v10979_v39  ;;  %v10984_v59 = vadd.f32 %v10795_v51, %v1350_v25  ;;  %v1352_v5 = vpop.f32.mrb[55].mxu0  ;;  %v2023_v45 = vpop.f32.mrb[69].mxu1  ;;  %v9929_v39 = vld [vmem:[#allocation3 + $0xdc] ss:$12 sps:$4 sm:$0xff]   ;;  %v9729_v51 = vld [vmem:[%s13294_s3 + $0xc8] sm:$0xff]  }
 0x18d   : > { %v10987_v0 = vpop.f32.mrb[70].mxu1  ;;  %4901 = vmatpush1.bf16.msra.mxu0 %v9729_v51 }
 0x18e   : > { %9327 = vmatmul.mubr.bf16.gmra.mrb[160].mxu0 %v10775_v17  ;;  %v2026_v41 = vpop.f32.mrb[71].mxu1  ;;  %4902 = vmatprep.subr.bf16.mxu0 %v13352_v43 }
 0x18f   : > { %9330 = vmatprep.mubr.bf16.mxu0 %v10780_v40 }
 0x190   : > { %2928 = vmatmul.mubr.bf16.gmra.mrb[176].mxu1 %v9928_v50 }
 0x191   : > { %v1355_v61 = vpop.f32.mrb[56].mxu0  ;;  %2935 = vmatprep.mubr.bf16.mxu1 %v9929_v39 }
 0x192   : > { %v10995_v12 = vadd.f32 %v10815_v11, %v1355_v61  ;;  %v1357_v48 = vpop.f32.mrb[57].mxu0  ;;  %v9930_v11 = vld [vmem:[#allocation3 + $0xd8] ss:$12 sps:$4 sm:$0xff]   ;;  %v9931_v61 = vld [vmem:[#allocation3 + $0xf4] ss:$12 sps:$4 sm:$0xff]  }
 0x193   : > { %v1358_v25 = vpop.f32.mrb[58].mxu0  ;;  %v10997_v5 = vpop.f32.mrb[72].mxu1 }
 0x194   : > { %v11000_v17 = vadd.f32 %v10822_v3, %v1358_v25  ;;  %v1360_v40 = vpop.f32.mrb[59].mxu0  ;;  %v2031_v45 = vpop.f32.mrb[73].mxu1  ;;  %v9730_v3 = vld [vmem:[%s13294_s3 + $0xd0] sm:$0xff]  }
 0x195   : > { %v11003_v39 = vpop.f32.mrb[74].mxu1  ;;  %4903 = vmatpush1.bf16.msra.mxu0 %v9730_v3  ;;  %v9732_v3 = vld [vmem:[%s13294_s3 + $0x148] sm:$0xff]  }
 0x196   : > { %9331 = vmatmul.mubr.bf16.gmra.mrb[164].mxu0 %v10797_v52  ;;  %v2034_v41 = vpop.f32.mrb[75].mxu1  ;;  %4904 = vmatprep.subr.bf16.mxu0 %v13352_v43 }
 0x197   : > { %9334 = vmatprep.mubr.bf16.mxu0 %v10802_v49  ;;  %v9731_v41 = vld [vmem:[%s13294_s3 + $0xd8] sm:$0xff]   ;;  %9360 = vmatprep.subr.bf16.mxu1 %v9732_v3 }
 0x198   : > { %2936 = vmatmul.mubr.bf16.gmra.mrb[180].mxu1 %v9930_v11 }
 0x199   : > { %v1363_v50 = vpop.f32.mrb[60].mxu0  ;;  %2943 = vmatprep.mubr.bf16.mxu1 %v9931_v61  ;;  %4905 = vmatpush1.bf16.msra.mxu0 %v9731_v41  ;;  %v9933_v61 = vld [vmem:[#allocation3 + $0x10c] ss:$12 sps:$4 sm:$0xff]  }
 0x19a   : > { %v11011_v51 = vadd.f32 %v10810_v15, %v1363_v50  ;;  %v1365_v48 = vpop.f32.mrb[61].mxu0  ;;  %v9932_v50 = vld [vmem:[#allocation3 + $0xf0] ss:$12 sps:$4 sm:$0xff]   ;;  %4906 = vmatprep.subr.bf16.mxu0 %v13352_v43  ;;  %9361 = vmatpush3.bf16.msra.mxu1 %v9732_v3 }
 0x19b   : > { %v1366_v25 = vpop.f32.mrb[62].mxu0  ;;  %v11013_v40 = vpop.f32.mrb[76].mxu1  ;;  %v9733_v48 = vld [vmem:[%s13294_s3 + $0xe0] sm:$0xff]  }
 0x19c   : > { %v11016_v52 = vadd.f32 %v10817_v29, %v1366_v25  ;;  %v1368_v49 = vpop.f32.mrb[63].mxu0  ;;  %v2039_v45 = vpop.f32.mrb[77].mxu1 }
 0x19d   : > { %v11022_v11 = vpop.f32.mrb[78].mxu1  ;;  %4907 = vmatpush1.bf16.msra.mxu0 %v9733_v48 }
 0x19e   : > { %9335 = vmatmul.mubr.bf16.gmra.mrb[168].mxu0 %v10819_v35  ;;  %v2042_v15 = vpop.f32.mrb[79].mxu1  ;;  %4908 = vmatprep.subr.bf16.mxu0 %v13352_v43 }
 0x19f   : > { %9338 = vmatprep.mubr.bf16.mxu0 %v10824_v4 }
 0x1a0   : > { %2944 = vmatmul.mubr.bf16.gmra.mrb[184].mxu1 %v9932_v50 }
 0x1a1   : > { %v1371_v29 = vpop.f32.mrb[64].mxu0  ;;  %2951 = vmatprep.mubr.bf16.mxu1 %v9933_v61 }
 0x1a2   : > { %v11034_v35 = vadd.f32 %v10837_v1, %v1371_v29  ;;  %v1373_v4 = vpop.f32.mrb[65].mxu0  ;;  %v9934_v1 = vld [vmem:[#allocation3 + $0x108] ss:$12 sps:$4 sm:$0xff]  }
 0x1a3   : > { %v1374_v25 = vpop.f32.mrb[66].mxu0  ;;  %v11036_v49 = vpop.f32.mrb[80].mxu1  ;;  %v9935_v4 = vld [vmem:[#allocation3 + $0x124] ss:$12 sps:$4 sm:$0xff]  }
 0x1a4   : > { %v11039_v45 = vadd.f32 %v10844_v6, %v1374_v25  ;;  %v1376_v41 = vpop.f32.mrb[67].mxu0  ;;  %v2047_v15 = vpop.f32.mrb[81].mxu1  ;;  %v9734_v6 = vld [vmem:[%s13294_s3 + $0xe8] sm:$0xff]  }
 0x1a5   : > { %v11042_v50 = vpop.f32.mrb[82].mxu1  ;;  %4909 = vmatpush1.bf16.msra.mxu0 %v9734_v6 }
 0x1a6   : > { %13353 = vst [vmem:[#allocation27_spill] sm:$0xff] %v11039_v45  ;;  %v2050_v61 = vpop.f32.mrb[83].mxu1  ;;  %9339 = vmatmul.mubr.bf16.gmra.mrb[172].mxu0 %v10841_v23  ;;  %4910 = vmatprep.subr.bf16.mxu0 %v13352_v43 }
 0x1a7   : > { %9342 = vmatprep.mubr.bf16.mxu0 %v10846_v8 }
 0x1a8   : > { %2952 = vmatmul.mubr.bf16.gmra.mrb[188].mxu1 %v9934_v1 }
 0x1a9   : > { %v1379_v29 = vpop.f32.mrb[68].mxu0  ;;  %2959 = vmatprep.mubr.bf16.mxu1 %v9935_v4 }
 0x1aa   : > { %v11050_v3 = vadd.f32 %v10832_v36, %v1379_v29  ;;  %v1381_v48 = vpop.f32.mrb[69].mxu0  ;;  %v9936_v36 = vld [vmem:[#allocation3 + $0x120] ss:$12 sps:$4 sm:$0xff]   ;;  %v9735_v29 = vld [vmem:[%s13294_s3 + $0xf0] sm:$0xff]  }
 0x1ab   : > { %v1382_v25 = vpop.f32.mrb[70].mxu0  ;;  %v11052_v41 = vpop.f32.mrb[84].mxu1  ;;  %4911 = vmatpush1.bf16.msra.mxu0 %v9735_v29  ;;  %v9938_v29 = vld [vmem:[#allocation3 + $0x138] ss:$12 sps:$4 sm:$0xff]  }
 0x1ac   : > { %13354 = vst [vmem:[#allocation28_spill] sm:$0xff] %v11050_v3  ;;  %v11055_v23 = vadd.f32 %v10839_v47, %v1382_v25  ;;  %v1384_v8 = vpop.f32.mrb[71].mxu0  ;;  %v2055_v15 = vpop.f32.mrb[85].mxu1  ;;  %v9937_v47 = vld [vmem:[#allocation3 + $0x13c] ss:$12 sps:$4 sm:$0xff]   ;;  %4912 = vmatprep.subr.bf16.mxu0 %v13352_v43  ;;  %v13376_v3 = vld [vmem:[#allocation7_spill] sm:$0xff] }
 0x1ad   : > { %v11058_v61 = vpop.f32.mrb[86].mxu1 }
 0x1ae   : > { %v2058_v1 = vpop.f32.mrb[87].mxu1  ;;  %9343 = vmatmul.mubr.bf16.gmra.mrb[176].mxu0 %v10863_v18 }
 0x1af   : > { %9346 = vmatprep.mubr.bf16.mxu0 %v10868_v9  ;;  %v9736_v1 = vld [vmem:[%s13294_s3 + $0xf8] sm:$0xff]  }
 0x1b0   : > { %2960 = vmatmul.mubr.bf16.gmra.mrb[192].mxu1 %v9936_v36  ;;  %4913 = vmatpush1.bf16.msra.mxu0 %v9736_v1 }
 0x1b1   : > { %v1387_v4 = vpop.f32.mrb[72].mxu0  ;;  %2967 = vmatprep.mubr.bf16.mxu1 %v9937_v47  ;;  %4914 = vmatprep.subr.bf16.mxu0 %v13352_v43  ;;  %v9737_v47 = vld [vmem:[%s13294_s3 + $0x150] sm:$0xff]  }
 0x1b2   : > { %v11066_v6 = vadd.f32 %v10859_v21, %v1387_v4  ;;  %v1389_v48 = vpop.f32.mrb[73].mxu0  ;;  %v9939_v4 = vld [vmem:[#allocation3 + $0x154] ss:$12 sps:$4 sm:$0xff]   ;;  %9362 = vmatprep.subr.bf16.mxu1 %v9737_v47 }
 0x1b3   : > { %v1390_v25 = vpop.f32.mrb[74].mxu0  ;;  %v11068_v8 = vpop.f32.mrb[88].mxu1  ;;  %v9738_v48 = vld [vmem:[%s13294_s3 + $0x100] sm:$0xff]   ;;  %9363 = vmatpush3.bf16.msra.mxu1 %v9737_v47 }
 0x1b4   : > { %13355 = vst [vmem:[#allocation29_spill] sm:$0xff] %v11066_v6  ;;  %v11072_v18 = vadd.f32 %v10866_v57, %v1390_v25  ;;  %v1392_v9 = vpop.f32.mrb[75].mxu0  ;;  %v2063_v15 = vpop.f32.mrb[89].mxu1  ;;  %4915 = vmatpush1.bf16.msra.mxu0 %v9738_v48 }
 0x1b5   : > { %v11077_v36 = vpop.f32.mrb[90].mxu1  ;;  %4916 = vmatprep.subr.bf16.mxu0 %v13352_v43 }
 0x1b6   : > { %13356 = vst [vmem:[#allocation30_spill] sm:$0xff] %v11072_v18  ;;  %v2066_v21 = vpop.f32.mrb[91].mxu1  ;;  %9347 = vmatmul.mubr.bf16.gmra.mrb[180].mxu0 %v10885_v63  ;;  %v233_v18 = vlaneseq }
 0x1b7   : > { %9350 = vmatprep.mubr.bf16.mxu0 %v10890_v27 }
 0x1b8   : > { %2968 = vmatmul.mubr.bf16.gmra.mrb[196].mxu1 %v9938_v29 }
 0x1b9   : > { %v1395_v57 = vpop.f32.mrb[76].mxu0  ;;  %2975 = vmatprep.mubr.bf16.mxu1 %v9939_v4 }
 0x1ba   : > { %v11089_v63 = vadd.f32 %v10854_v19, %v1395_v57  ;;  %v1397_v27 = vpop.f32.mrb[77].mxu0  ;;  %v9940_v19 = vld [vmem:[#allocation3 + $0x150] ss:$12 sps:$4 sm:$0xff]  }
 0x1bb   : > { %v1398_v25 = vpop.f32.mrb[78].mxu0  ;;  %v11091_v9 = vpop.f32.mrb[92].mxu1  ;;  %v9941_v27 = vld [vmem:[#allocation3 + $0x16c] ss:$12 sps:$4 sm:$0xff]  }
 0x1bc   : > { %13357 = vst [vmem:[#allocation31_spill] sm:$0xff] %v11089_v63  ;;  %v11094_v15 = vadd.f32 %v10861_v7, %v1398_v25  ;;  %v1400_v1 = vpop.f32.mrb[79].mxu0  ;;  %v2071_v21 = vpop.f32.mrb[93].mxu1  ;;  %v9739_v7 = vld [vmem:[%s13294_s3 + $0x108] sm:$0xff]  }
 0x1bd   : > { %v11097_v29 = vpop.f32.mrb[94].mxu1  ;;  %4917 = vmatpush1.bf16.msra.mxu0 %v9739_v7 }
 0x1be   : > { %13358 = vst [vmem:[#allocation32_spill] sm:$0xff] %v11094_v15  ;;  %v2074_v4 = vpop.f32.mrb[95].mxu1  ;;  %9351 = vmatmul.mubr.bf16.gmra.mrb[184].mxu0 %v10906_v54  ;;  %4918 = vmatprep.subr.bf16.mxu0 %v13352_v43  ;;  %v9752_v15 = vld [vmem:[%s13294_s3 + $0x170] sm:$0xff]  }
 0x1bf   : > { %9354 = vmatprep.mubr.bf16.mxu0 %v10379_v55 }
 0x1c0   : > { %2976 = vmatmul.mubr.bf16.gmra.mrb[200].mxu1 %v9940_v19 }
 0x1c1   : > { %v1403_v57 = vpop.f32.mrb[80].mxu0  ;;  %2983 = vmatprep.mubr.bf16.mxu1 %v9941_v27  ;;  %v9942_v27 = vld [vmem:[#allocation3 + $0x168] ss:$12 sps:$4 sm:$0xff]  }
 0x1c2   : > { %v11105_v47 = vadd.f32 %v10881_v10, %v1403_v57  ;;  %v1405_v48 = vpop.f32.mrb[81].mxu0  ;;  %v9943_v57 = vld [vmem:[#allocation3 + $0x184] ss:$12 sps:$4 sm:$0xff]  }
 0x1c3   : > { %v1406_v25 = vpop.f32.mrb[82].mxu0  ;;  %v11107_v1 = vpop.f32.mrb[96].mxu1 }
 0x1c4   : > { %13359 = vst [vmem:[#allocation33_spill] sm:$0xff] %v11105_v47  ;;  %v11110_v54 = vadd.f32 %v10888_v16, %v1406_v25  ;;  %v1408_v55 = vpop.f32.mrb[83].mxu0  ;;  %v2079_v21 = vpop.f32.mrb[97].mxu1 }
 0x1c5   : > { %v11113_v4 = vpop.f32.mrb[98].mxu1  ;;  %v13362_v55 = vld [vmem:[#allocation19_spill] sm:$0xff] }
 0x1c6   : > { %13360 = vst [vmem:[#allocation34_spill] sm:$0xff] %v11110_v54  ;;  %v2082_v19 = vpop.f32.mrb[99].mxu1  ;;  %9355 = vmatmul.mubr.bf16.gmra.mrb[188].mxu0 %v10383_v58  ;;  %v9740_v58 = vld [vmem:[%s13294_s3 + $0x110] sm:$0xff]  }
 0x1c7   : > { %4919 = vmatpush1.bf16.msra.mxu0 %v9740_v58 }
 0x1c8   : > { %2984 = vmatmul.mubr.bf16.gmra.mrb[204].mxu1 %v9942_v27  ;;  %4920 = vmatprep.subr.bf16.mxu0 %v13352_v43 }
 0x1c9   : > { %v1411_v10 = vpop.f32.mrb[84].mxu0  ;;  %2991 = vmatprep.mubr.bf16.mxu1 %v9943_v57  ;;  %v9944_v57 = vld [vmem:[#allocation3 + $0x180] ss:$12 sps:$4 sm:$0xff]  }
 0x1ca   : > { %v11117_v48 = vadd.f32 %v10876_v14, %v1411_v10  ;;  %v1413_v7 = vpop.f32.mrb[85].mxu0  ;;  %v9945_v10 = vld [vmem:[#allocation3 + $0x19c] ss:$12 sps:$4 sm:$0xff]  }
 0x1cb   : > { %v1414_v16 = vpop.f32.mrb[86].mxu0  ;;  %v11119_v25 = vpop.f32.mrb[100].mxu1 }
 0x1cc   : > { %13361 = vst [vmem:[#allocation35_spill] sm:$0xff] %v11117_v48  ;;  %v11122_v21 = vadd.f32 %v13362_v55, %v1414_v16  ;;  %v1416_v54 = vpop.f32.mrb[87].mxu0  ;;  %v2087_v47 = vpop.f32.mrb[101].mxu1  ;;  %v9743_v48 = vld [vmem:[%s13294_s3 + $0x120] sm:$0xff]  }
 0x1cd   : > { %v11124_v19 = vpop.f32.mrb[102].mxu1  ;;  %v9741_v54 = vld [vmem:[%s13294_s3 + $0x118] sm:$0xff]  }
 0x1ce   : > { %13363 = vst [vmem:[#allocation19_spill] sm:$0xff] %v11122_v21  ;;  %v2090_v27 = vpop.f32.mrb[103].mxu1  ;;  %4921 = vmatpush1.bf16.msra.mxu0 %v9741_v54  ;;  %v9946_v54 = vld [vmem:[#allocation3 + $0x198] ss:$12 sps:$4 sm:$0xff]  }
 0x1cf   : > { %4922 = vmatprep.subr.bf16.mxu0 %v13352_v43 }
 0x1d0   : > { %2992 = vmatmul.mubr.bf16.gmra.mrb[208].mxu1 %v9944_v57 }
 0x1d1   : > { %v1419_v14 = vpop.f32.mrb[88].mxu0  ;;  %2999 = vmatprep.mubr.bf16.mxu1 %v9945_v10 }
 0x1d2   : > { %v11134_v47 = vadd.f32 %v10902_v24, %v1419_v14  ;;  %v1421_v7 = vpop.f32.mrb[89].mxu0  ;;  %v9742_v14 = vld [vmem:[%s13294_s3 + $0x158] sm:$0xff]   ;;  %4923 = vmatpush1.bf16.msra.mxu0 %v9743_v48  ;;  %v9746_v48 = vld [vmem:[%s13294_s3 + $0x160] sm:$0xff]  }
 0x1d3   : > { %v1422_v16 = vpop.f32.mrb[90].mxu0  ;;  %v11136_v55 = vpop.f32.mrb[104].mxu1  ;;  %4924 = vmatprep.subr.bf16.mxu0 %v13352_v43  ;;  %v9947_v7 = vld [vmem:[#allocation3 + $0x1b4] ss:$12 sps:$4 sm:$0xff]   ;;  %9364 = vmatprep.subr.bf16.mxu1 %v9742_v14 }
 0x1d4   : > { %13364 = vst [vmem:[#allocation36_spill] sm:$0xff] %v11134_v47  ;;  %v11139_v58 = vadd.f32 %v10909_v44, %v1422_v16  ;;  %v1424_v27 = vpop.f32.mrb[91].mxu0  ;;  %v2095_v57 = vpop.f32.mrb[105].mxu1  ;;  %v9744_v16 = vld [vmem:[%s13294_s3 + $0x128] sm:$0xff]   ;;  %9365 = vmatpush3.bf16.msra.mxu1 %v9742_v14  ;;  %v9745_v14 = vld [vmem:[%s13294_s3 + $0x130] sm:$0xff]  }
 0x1d5   : > { %v11142_v10 = vpop.f32.mrb[106].mxu1  ;;  %v13366_v27 = vld [vmem:[#allocation21_spill] sm:$0xff]  ;;  %9366 = vmatprep.subr.bf16.mxu1 %v9746_v48 }
 0x1d6   : > { %13365 = vst [vmem:[#allocation37_spill] sm:$0xff] %v11139_v58  ;;  %v2098_v24 = vpop.f32.mrb[107].mxu1  ;;  %4925 = vmatpush1.bf16.msra.mxu0 %v9744_v16 }
 0x1d7   : > { %4926 = vmatprep.subr.bf16.mxu0 %v13352_v43 }
 0x1d8   : > { %3000 = vmatmul.mubr.bf16.gmra.mrb[212].mxu1 %v9946_v54  ;;  %v13368_v54 = vld [vmem:[#allocation23_spill] sm:$0xff] }
 0x1d9   : > { %v1427_v44 = vpop.f32.mrb[92].mxu0  ;;  %3007 = vmatprep.mubr.bf16.mxu1 %v9947_v7  ;;  %9367 = vmatpush3.bf16.msra.mxu1 %v9746_v48 }
 0x1da   : > { %v11155_v57 = vadd.f32 %v13366_v27, %v1427_v44  ;;  %v1429_v24 = vpop.f32.mrb[93].mxu0  ;;  %4927 = vmatpush1.bf16.msra.mxu0 %v9745_v14  ;;  %v9948_v27 = vld [vmem:[#allocation3 + $0x1b0] ss:$12 sps:$4 sm:$0xff]  }
 0x1db   : > { %v1430_v58 = vpop.f32.mrb[94].mxu0  ;;  %v11157_v47 = vpop.f32.mrb[108].mxu1  ;;  %4928 = vmatprep.subr.bf16.mxu0 %v13352_v43  ;;  %v9949_v24 = vld [vmem:[#allocation3 + $0x1cc] ss:$12 sps:$4 sm:$0xff]  }
 0x1dc   : > { %13367 = vst [vmem:[#allocation21_spill] sm:$0xff] %v11155_v57  ;;  %v11163_v7 = vadd.f32 %v13368_v54, %v1430_v58  ;;  %v1432_v21 = vpop.f32.mrb[95].mxu0  ;;  %v2103_v63 = vpop.f32.mrb[109].mxu1  ;;  %v9748_v58 = vld [vmem:[%s13294_s3 + $0x168] sm:$0xff]   ;;  %v9747_v54 = vld [vmem:[%s13294_s3 + $0x138] sm:$0xff]  }
 0x1dd   : > { %v11166_v44 = vpop.f32.mrb[110].mxu1  ;;  %v11175_v21 = vshrl.u32 %v233_v18, 7  ;;  %9368 = vmatprep.subr.bf16.mxu1 %v9748_v58 }
 0x1de   : > { %13369 = vst [vmem:[#allocation23_spill] sm:$0xff] %v11163_v7  ;;  %v2106_v16 = vpop.f32.mrb[111].mxu1  ;;  %9369 = vmatpush3.bf16.msra.mxu1 %v9748_v58  ;;  %4929 = vmatpush1.bf16.msra.mxu0 %v9747_v54 }
 0x1df   : > { %13370 = vst [vmem:[#allocation38_spill] sm:$0xff] %v11175_v21  ;;  %vm2445_vm0 = vcmp.lt.s32.totalorder %v11175_v21, 1  ;;  %9370 = vmatprep.subr.bf16.mxu1 %v9752_v15  ;;  %vm3329_vm1 = vcmp.lt.s32.totalorder %v11175_v21, 7  ;;  %vm237_vm3 = vcmp.ge.s32.totalorder %v11175_v21, 1 }
 0x1e0   : > { %3008 = vmatmul.mubr.bf16.gmra.mrb[216].mxu1 %v9948_v27 }
 0x1e1   : > { %v9248_v63 = vpop.f32.mrb[96].mxu0  ;;  %3015 = vmatprep.mubr.bf16.mxu1 %v9949_v24 }
 0x1e2   : > { %v2215_v48 = vadd.f32 %v9248_v63, %v10927_v28  ;;  %v2206_v14 = vpop.f32.mrb[97].mxu0  ;;  %9371 = vmatpush3.bf16.msra.mxu1 %v9752_v15 }
 0x1e3   : > { %v11182_v16 = vadd.f32 %v2206_v14, %v10915_v62  ;;  %v9249_v27 = vpop.f32.mrb[98].mxu0  ;;  %v11184_v57 = vpop.f32.mrb[112].mxu1 }
 0x1e4   : > { %v2218_v18 = vadd.f32 %v9249_v27, %v10932_v38  ;;  %v2209_v7 = vpop.f32.mrb[99].mxu0  ;;  %v2111_v24 = vpop.f32.mrb[113].mxu1  ;;  %v2399_v62 = vrot.slane %v2215_v48, 7  ;;  %v9950_v27 = vld [vmem:[#allocation3 + $0x1c8] ss:$12 sps:$4 sm:$0xff]  }
 0x1e5   : > { %13371 = vst [vmem:[#allocation39_spill] sm:$0xff] %v11182_v16  ;;  %v2210_v28 = vadd.f32 %v2209_v7, %v10920_v60  ;;  %v11192_v58 = vpop.f32.mrb[114].mxu1  ;;  %v13300_v54 = vrot.slane %v11182_v16, 7  ;;  %v9754_v24 = vld [vmem:[%s13294_s3 + $0x178] sm:$0xff]   ;;  %v13372_v60 = vld [vmem:[#allocation8_spill] sm:$0xff] }
 0x1e6   : > { %v2400_v63 = vrot.slane %v2218_v18, 7  ;;  %v2114_v14 = vpop.f32.mrb[115].mxu1  ;;  %9372 = vmatprep.subr.bf16.mxu1 %v9754_v24 }
 0x1e7   : > { %v2398_v6 = vrot.slane %v2210_v28, 7  ;;  %v9951_v28 = vld [vmem:[#allocation3 + $0x1e4] ss:$12 sps:$4 sm:$0xff]   ;;  %v13374_v14 = vld [vmem:[#allocation6_spill] sm:$0xff]  ;;  %9373 = vmatpush3.bf16.msra.mxu1 %v9754_v24 }
 0x1e8   : > { %v2490_v38 = vsel %vm2445_vm0, %v2399_v62, %v2400_v63  ;;  %3016 = vmatmul.mubr.bf16.gmra.mrb[220].mxu1 %v9950_v27  ;;  %5636 = vmatprep.subr.bf16.mxu1 %v13352_v43 }
 0x1e9   : > { %v11201_v7 = vadd.f32 %v2490_v38, %v13372_v60  ;;  %v2491_v48 = vsel %vm2445_vm0, %v2398_v6, %v2399_v62  ;;  %v2492_v15 = vsel %vm2445_vm0, %v13300_v54, %v2398_v6  ;;  %v9252_v18 = vpop.f32.mrb[100].mxu0  ;;  %3023 = vmatprep.mubr.bf16.mxu1 %v9951_v28 }
 0x1ea   : > { %v11210_v27 = vadd.f32 %v2492_v15, %v13374_v14  ;;  %v11213_v45 = vadd.f32 %v2491_v48, %v13376_v3  ;;  %v2231_v38 = vadd.f32 %v9252_v18, %v10951_v37  ;;  %v2222_v60 = vpop.f32.mrb[101].mxu0 }
 0x1eb   : > { %13373 = vst [vmem:[#allocation8_spill] sm:$0xff] %v11201_v7  ;;  %v2223_v62 = vadd.f32 %v2222_v60, %v10939_v56  ;;  %v9253_v7 = vpop.f32.mrb[102].mxu0  ;;  %v11217_v16 = vpop.f32.mrb[116].mxu1 }
 0x1ec   : > { %13375 = vst [vmem:[#allocation6_spill] sm:$0xff] %v11210_v27  ;;  %v2234_v6 = vadd.f32 %v9253_v7, %v10956_v26  ;;  %v2225_v54 = vpop.f32.mrb[103].mxu0  ;;  %v2119_v28 = vpop.f32.mrb[117].mxu1  ;;  %v2403_v37 = vrot.slane %v2231_v38, 7  ;;  %v13377_v27 = vld [vmem:[#allocation9_spill] sm:$0xff] }
 0x1ed   : > { %v2401_v15 = vrot.slane %v2223_v62, 7  ;;  %v2226_v3 = vadd.f32 %v2225_v54, %v10944_v13  ;;  %v11222_v48 = vpop.f32.mrb[118].mxu1  ;;  %v9952_v7 = vld [vmem:[#allocation3 + $0x1e0] ss:$12 sps:$4 sm:$0xff]   ;;  %v13378_v62 = vld [vmem:[#allocation12_spill] sm:$0xff] }
 0x1ee   : > { %v2404_v18 = vrot.slane %v2234_v6, 7  ;;  %v2122_v14 = vpop.f32.mrb[119].mxu1  ;;  %v13380_v6 = vld [vmem:[#allocation10_spill] sm:$0xff] }
 0x1ef   : > { %v2489_v56 = vsel %vm2445_vm0, %v2400_v63, %v2401_v15  ;;  %v2402_v60 = vrot.slane %v2226_v3, 7  ;;  %v9953_v63 = vld [vmem:[#allocation3 + $0x1fc] ss:$12 sps:$4 sm:$0xff]   ;;  %v13381_v3 = vld [vmem:[#allocation11_spill] sm:$0xff] }
 0x1f0   : > { %v11227_v24 = vadd.f32 %v2489_v56, %v13377_v27  ;;  %v2486_v26 = vsel %vm2445_vm0, %v2403_v37, %v2404_v18  ;;  %3024 = vmatmul.mubr.bf16.gmra.mrb[224].mxu1 %v9952_v7 }
 0x1f1   : > { %v11232_v28 = vadd.f32 %v2486_v26, %v13378_v62  ;;  %v2487_v13 = vsel %vm2445_vm0, %v2402_v60, %v2403_v37  ;;  %v2488_v54 = vsel %vm2445_vm0, %v2401_v15, %v2402_v60  ;;  %v9256_v38 = vpop.f32.mrb[104].mxu0  ;;  %3031 = vmatprep.mubr.bf16.mxu1 %v9953_v63 }
 0x1f2   : > { %v11239_v27 = vadd.f32 %v2488_v54, %v13380_v6  ;;  %v11242_v14 = vadd.f32 %v2487_v13, %v13381_v3  ;;  %v2247_v56 = vadd.f32 %v9256_v38, %v10981_v32  ;;  %v2238_v7 = vpop.f32.mrb[105].mxu0  ;;  %v11252_v54 = vld [vmem:[%s13294_s3 + $0x80] sm:$0xff]  }
 0x1f3   : > { %13379 = vst [vmem:[#allocation7_spill] sm:$0xff] %v11232_v28  ;;  %v2239_v26 = vadd.f32 %v2238_v7, %v10963_v31  ;;  %v9257_v62 = vpop.f32.mrb[106].mxu0  ;;  %v11246_v43 = vpop.f32.mrb[120].mxu1  ;;  %13382 = vst [vmem:[#allocation9_spill] sm:$0xff] %v11252_v54  ;;  %9422 = vmatprep.subr.bf16.mxu0 %v11252_v54  ;;  %v13383_v7 = vld [vmem:[#allocation13_spill] sm:$0xff] }
 0x1f4   : > { %v2250_v37 = vadd.f32 %v9257_v62, %v10987_v0  ;;  %v2241_v15 = vpop.f32.mrb[107].mxu0  ;;  %v2127_v60 = vpop.f32.mrb[121].mxu1  ;;  %v2407_v32 = vrot.slane %v2247_v56, 7 }
 0x1f5   : > { %v2405_v63 = vrot.slane %v2239_v26, 7  ;;  %v2242_v13 = vadd.f32 %v2241_v15, %v10968_v34  ;;  %v11255_v6 = vpop.f32.mrb[122].mxu1  ;;  %v9954_v26 = vld [vmem:[#allocation3 + $0x1f8] ss:$12 sps:$4 sm:$0xff]  }
 0x1f6   : > { %v2408_v38 = vrot.slane %v2250_v37, 7  ;;  %v2130_v31 = vpop.f32.mrb[123].mxu1  ;;  %v13385_v34 = vld [vmem:[#allocation16_spill] sm:$0xff] }
 0x1f7   : > { %v2485_v0 = vsel %vm2445_vm0, %v2404_v18, %v2405_v63  ;;  %v2406_v3 = vrot.slane %v2242_v13, 7  ;;  %v9955_v18 = vld [vmem:[#allocation3 + $0x214] ss:$12 sps:$4 sm:$0xff]   ;;  %v13387_v13 = vld [vmem:[#allocation14_spill] sm:$0xff] }
 0x1f8   : > { %v11261_v62 = vadd.f32 %v2485_v0, %v13383_v7  ;;  %v2482_v60 = vsel %vm2445_vm0, %v2407_v32, %v2408_v38  ;;  %3032 = vmatmul.mubr.bf16.gmra.mrb[228].mxu1 %v9954_v26  ;;  %v13388_v7 = vld [vmem:[#allocation15_spill] sm:$0xff] }
 0x1f9   : > { %v11266_v15 = vadd.f32 %v2482_v60, %v13385_v34  ;;  %v2483_v56 = vsel %vm2445_vm0, %v2406_v3, %v2407_v32  ;;  %v2484_v37 = vsel %vm2445_vm0, %v2405_v63, %v2406_v3  ;;  %v9260_v31 = vpop.f32.mrb[108].mxu0  ;;  %3039 = vmatprep.mubr.bf16.mxu1 %v9955_v18 }
 0x1fa   : > { %13384 = vst [vmem:[#allocation12_spill] sm:$0xff] %v11261_v62  ;;  %v11273_v0 = vadd.f32 %v2484_v37, %v13387_v13  ;;  %v11276_v54 = vadd.f32 %v2483_v56, %v13388_v7  ;;  %v2263_v26 = vadd.f32 %v9260_v31, %v11013_v40  ;;  %v2254_v62 = vpop.f32.mrb[109].mxu0 }
 0x1fb   : > { %13386 = vst [vmem:[#allocation10_spill] sm:$0xff] %v11266_v15  ;;  %v2255_v60 = vadd.f32 %v2254_v62, %v10997_v5  ;;  %v9261_v34 = vpop.f32.mrb[110].mxu0  ;;  %v11280_v15 = vpop.f32.mrb[124].mxu1  ;;  %v13389_v5 = vld [vmem:[#allocation17_spill] sm:$0xff] }
 0x1fc   : > { %v2266_v32 = vadd.f32 %v9261_v34, %v11022_v11  ;;  %v2257_v63 = vpop.f32.mrb[111].mxu0  ;;  %v2135_v3 = vpop.f32.mrb[125].mxu1  ;;  %v2411_v13 = vrot.slane %v2263_v26, 7  ;;  %v9956_v34 = vld [vmem:[#allocation3 + $0x210] ss:$12 sps:$4 sm:$0xff]  }
 0x1fd   : > { %v2409_v28 = vrot.slane %v2255_v60, 7  ;;  %v2258_v18 = vadd.f32 %v2257_v63, %v11003_v39  ;;  %v11284_v37 = vpop.f32.mrb[126].mxu1  ;;  %v13391_v60 = vld [vmem:[#allocation22_spill] sm:$0xff] }
 0x1fe   : > { %v2412_v56 = vrot.slane %v2266_v32, 7  ;;  %v2138_v7 = vpop.f32.mrb[127].mxu1  ;;  %v13393_v63 = vld [vmem:[#allocation18_spill] sm:$0xff] }
 0x1ff   : > { %v2481_v40 = vsel %vm2445_vm0, %v2408_v38, %v2409_v28  ;;  %v2410_v31 = vrot.slane %v2258_v18, 7  ;;  %v9957_v38 = vld [vmem:[#allocation3 + $0x22c] ss:$12 sps:$4 sm:$0xff]  }
 0x200   : > { %v11289_v62 = vadd.f32 %v2481_v40, %v13389_v5  ;;  %v2478_v11 = vsel %vm2445_vm0, %v2411_v13, %v2412_v56  ;;  %3040 = vmatmul.mubr.bf16.gmra.mrb[232].mxu1 %v9956_v34  ;;  %v13394_v7 = vld [vmem:[#allocation20_spill] sm:$0xff] }
 0x201   : > { %v11294_v3 = vadd.f32 %v2478_v11, %v13391_v60  ;;  %v2479_v39 = vsel %vm2445_vm0, %v2410_v31, %v2411_v13  ;;  %v2480_v26 = vsel %vm2445_vm0, %v2409_v28, %v2410_v31  ;;  %v9264_v32 = vpop.f32.mrb[112].mxu0  ;;  %3047 = vmatprep.mubr.bf16.mxu1 %v9957_v38 }
 0x202   : > { %13390 = vst [vmem:[#allocation11_spill] sm:$0xff] %v11289_v62  ;;  %v11301_v18 = vadd.f32 %v2480_v26, %v13393_v63  ;;  %v11304_v40 = vadd.f32 %v2479_v39, %v13394_v7  ;;  %v2279_v5 = vadd.f32 %v9264_v32, %v11052_v41  ;;  %v2270_v34 = vpop.f32.mrb[113].mxu0 }
 0x203   : > { %13392 = vst [vmem:[#allocation13_spill] sm:$0xff] %v11294_v3  ;;  %v2271_v11 = vadd.f32 %v2270_v34, %v11036_v49  ;;  %v9265_v60 = vpop.f32.mrb[114].mxu0  ;;  %v11308_v3 = vpop.f32.mrb[128].mxu1  ;;  %v13395_v49 = vld [vmem:[#allocation24_spill] sm:$0xff] }
 0x204   : > { %v2282_v13 = vadd.f32 %v9265_v60, %v11058_v61  ;;  %v2273_v28 = vpop.f32.mrb[115].mxu0  ;;  %v2143_v31 = vpop.f32.mrb[129].mxu1  ;;  %v2415_v63 = vrot.slane %v2279_v5, 7  ;;  %v9958_v60 = vld [vmem:[#allocation3 + $0x228] ss:$12 sps:$4 sm:$0xff]  }
 0x205   : > { %v2413_v62 = vrot.slane %v2271_v11, 7  ;;  %v2274_v38 = vadd.f32 %v2273_v28, %v11042_v50  ;;  %v11312_v26 = vpop.f32.mrb[130].mxu1  ;;  %v13396_v31 = vld [vmem:[#allocation25_spill] sm:$0xff] }
 0x206   : > { %v2416_v39 = vrot.slane %v2282_v13, 7  ;;  %v2146_v7 = vpop.f32.mrb[131].mxu1 }
 0x207   : > { %v2477_v41 = vsel %vm2445_vm0, %v2412_v56, %v2413_v62  ;;  %v2414_v32 = vrot.slane %v2274_v38, 7 }
 0x208   : > { %v11317_v34 = vadd.f32 %v2477_v41, %v13395_v49  ;;  %v2474_v61 = vsel %vm2445_vm0, %v2415_v63, %v2416_v39  ;;  %3048 = vmatmul.mubr.bf16.gmra.mrb[236].mxu1 %v9958_v60 }
 0x209   : > { %v11322_v11 = vadd.f32 %v2474_v61, %v10930_v2  ;;  %v2475_v50 = vsel %vm2445_vm0, %v2414_v32, %v2415_v63  ;;  %v2476_v5 = vsel %vm2445_vm0, %v2413_v62, %v2414_v32  ;;  %v9268_v13 = vpop.f32.mrb[116].mxu0 }
 0x20a   : > { %v2295_v56 = vadd.f32 %v9268_v13, %v11091_v9  ;;  %v2286_v28 = vpop.f32.mrb[117].mxu0  ;;  %v11330_v38 = vadd.f32 %v2476_v5, %v13396_v31  ;;  %v11333_v7 = vadd.f32 %v2475_v50, %v10925_v30 }
 0x20b   : > { %v2287_v41 = vadd.f32 %v2286_v28, %v11068_v8  ;;  %v9269_v2 = vpop.f32.mrb[118].mxu0  ;;  %v11336_v49 = vpop.f32.mrb[132].mxu1 }
 0x20c   : > { %v2298_v63 = vadd.f32 %v9269_v2, %v11097_v29  ;;  %v2289_v61 = vpop.f32.mrb[119].mxu0  ;;  %v2151_v60 = vpop.f32.mrb[133].mxu1  ;;  %v2419_v13 = vrot.slane %v2295_v56, 7 }
 0x20d   : > { %v2417_v62 = vrot.slane %v2287_v41, 7  ;;  %v2290_v32 = vadd.f32 %v2289_v61, %v11077_v36  ;;  %v11340_v9 = vpop.f32.mrb[134].mxu1 }
 0x20e   : > { %v2420_v5 = vrot.slane %v2298_v63, 7  ;;  %v2154_v31 = vpop.f32.mrb[135].mxu1 }
 0x20f   : > { %v2473_v30 = vsel %vm2445_vm0, %v2416_v39, %v2417_v62  ;;  %v2418_v50 = vrot.slane %v2290_v32, 7 }
 0x210   : > { %v11345_v8 = vadd.f32 %v2473_v30, %v10937_v42  ;;  %v2470_v29 = vsel %vm2445_vm0, %v2419_v13, %v2420_v5 }
 0x211   : > { %v11350_v28 = vadd.f32 %v2470_v29, %v10954_v46  ;;  %v2471_v36 = vsel %vm2445_vm0, %v2418_v50, %v2419_v13  ;;  %v2472_v56 = vsel %vm2445_vm0, %v2417_v62, %v2418_v50  ;;  %v9272_v41 = vpop.f32.mrb[120].mxu0 }
 0x212   : > { %v2311_v2 = vadd.f32 %v9272_v41, %v11119_v25  ;;  %v2302_v39 = vpop.f32.mrb[121].mxu0  ;;  %v11358_v63 = vadd.f32 %v2472_v56, %v10942_v33  ;;  %v11361_v42 = vadd.f32 %v2471_v36, %v10949_v53 }
 0x213   : > { %v2303_v61 = vadd.f32 %v2302_v39, %v11107_v1  ;;  %v9273_v46 = vpop.f32.mrb[122].mxu0  ;;  %v11364_v60 = vpop.f32.mrb[136].mxu1 }
 0x214   : > { %v2314_v32 = vadd.f32 %v9273_v46, %v11124_v19  ;;  %v2305_v13 = vpop.f32.mrb[123].mxu0  ;;  %v2159_v31 = vpop.f32.mrb[137].mxu1  ;;  %v2423_v50 = vrot.slane %v2311_v2, 7 }
 0x215   : > { %v2421_v62 = vrot.slane %v2303_v61, 7  ;;  %v2306_v30 = vadd.f32 %v2305_v13, %v11113_v4  ;;  %v11368_v25 = vpop.f32.mrb[138].mxu1 }
 0x216   : > { %v2424_v33 = vrot.slane %v2314_v32, 7  ;;  %v2162_v29 = vpop.f32.mrb[139].mxu1 }
 0x217   : > { %v2469_v53 = vsel %vm2445_vm0, %v2420_v5, %v2421_v62  ;;  %v2422_v36 = vrot.slane %v2306_v30, 7 }
 0x218   : > { %v11373_v1 = vadd.f32 %v2469_v53, %v10961_v20  ;;  %v2466_v19 = vsel %vm2445_vm0, %v2423_v50, %v2424_v33  ;;  %v13397_v20 = vld [vmem:[#allocation26_spill] sm:$0xff] }
 0x219   : > { %v11378_v56 = vadd.f32 %v2466_v19, %v10984_v59  ;;  %v2467_v4 = vsel %vm2445_vm0, %v2422_v36, %v2423_v50  ;;  %v2468_v41 = vsel %vm2445_vm0, %v2421_v62, %v2422_v36  ;;  %v9276_v2 = vpop.f32.mrb[124].mxu0 }
 0x21a   : > { %v2327_v39 = vadd.f32 %v9276_v2, %v11157_v47  ;;  %v2318_v5 = vpop.f32.mrb[125].mxu0  ;;  %v11386_v61 = vadd.f32 %v2468_v41, %v10966_v22  ;;  %v11389_v46 = vadd.f32 %v2467_v4, %v13397_v20 }
 0x21b   : > { %v2319_v32 = vadd.f32 %v2318_v5, %v11136_v55  ;;  %v9277_v59 = vpop.f32.mrb[126].mxu0  ;;  %v11392_v13 = vpop.f32.mrb[140].mxu1 }
 0x21c   : > { %v2330_v31 = vadd.f32 %v9277_v59, %v11166_v44  ;;  %v2321_v30 = vpop.f32.mrb[127].mxu0  ;;  %v2167_v50 = vpop.f32.mrb[141].mxu1  ;;  %v2427_v53 = vrot.slane %v2327_v39, 7 }
 0x21d   : > { %v2425_v62 = vrot.slane %v2319_v32, 7  ;;  %v2322_v29 = vadd.f32 %v2321_v30, %v11142_v10  ;;  %v11396_v47 = vpop.f32.mrb[142].mxu1 }
 0x21e   : > { %v2428_v22 = vrot.slane %v2330_v31, 7  ;;  %v2170_v36 = vpop.f32.mrb[143].mxu1 }
 0x21f   : > { %v2465_v19 = vsel %vm2445_vm0, %v2424_v33, %v2425_v62  ;;  %v2426_v4 = vrot.slane %v2322_v29, 7 }
 0x220   : > { %v11401_v55 = vadd.f32 %v2465_v19, %v10995_v12  ;;  %v2462_v44 = vsel %vm2445_vm0, %v2427_v53, %v2428_v22 }
 0x221   : > { %v2463_v41 = vsel %vm2445_vm0, %v2426_v4, %v2427_v53  ;;  %v2464_v10 = vsel %vm2445_vm0, %v2425_v62, %v2426_v4  ;;  %v9280_v2 = vpop.f32.mrb[128].mxu0  ;;  %v11410_v39 = vadd.f32 %v2462_v44, %v11016_v52 }
 0x222   : > { %v2343_v5 = vadd.f32 %v9280_v2, %v11217_v16  ;;  %v2334_v33 = vpop.f32.mrb[129].mxu0  ;;  %v11414_v20 = vadd.f32 %v2464_v10, %v11000_v17  ;;  %v11417_v12 = vadd.f32 %v2463_v41, %v11011_v51  ;;  %v13398_v2 = vld [vmem:[#allocation27_spill] sm:$0xff] }
 0x223   : > { %v2335_v32 = vadd.f32 %v2334_v33, %v11184_v57  ;;  %v9281_v59 = vpop.f32.mrb[130].mxu0  ;;  %v11420_v31 = vpop.f32.mrb[144].mxu1  ;;  %v13399_v33 = vld [vmem:[#allocation28_spill] sm:$0xff] }
 0x224   : > { %v2346_v30 = vadd.f32 %v9281_v59, %v11222_v48  ;;  %v2337_v50 = vpop.f32.mrb[131].mxu0  ;;  %v2867_v62 = vpop.f32.mrb[145].mxu1  ;;  %v2431_v53 = vrot.slane %v2343_v5, 7 }
 0x225   : > { %v2429_v52 = vrot.slane %v2335_v32, 7  ;;  %v2338_v29 = vadd.f32 %v2337_v50, %v11192_v58  ;;  %v11424_v16 = vpop.f32.mrb[146].mxu1 }
 0x226   : > { %v2432_v17 = vrot.slane %v2346_v30, 7  ;;  %v2870_v36 = vpop.f32.mrb[147].mxu1 }
 0x227   : > { %v2461_v51 = vsel %vm2445_vm0, %v2428_v22, %v2429_v52  ;;  %v2430_v19 = vrot.slane %v2338_v29, 7 }
 0x228   : > { %v2458_v57 = vsel %vm2445_vm0, %v2431_v53, %v2432_v17  ;;  %v11431_v4 = vadd.f32 %v2461_v51, %v11034_v35 }
 0x229   : > { %v2459_v48 = vsel %vm2445_vm0, %v2430_v19, %v2431_v53  ;;  %v2460_v58 = vsel %vm2445_vm0, %v2429_v52, %v2430_v19  ;;  %v9284_v44 = vpop.f32.mrb[132].mxu0  ;;  %v11438_v41 = vadd.f32 %v2458_v57, %v11055_v23 }
 0x22a   : > { %v2359_v10 = vadd.f32 %v9284_v44, %v11280_v15  ;;  %v2350_v22 = vpop.f32.mrb[133].mxu0  ;;  %v11442_v5 = vadd.f32 %v2460_v58, %v13398_v2  ;;  %v11445_v32 = vadd.f32 %v2459_v48, %v13399_v33  ;;  %v13400_v48 = vld [vmem:[#allocation29_spill] sm:$0xff]  ;;  %v13402_v33 = vld [vmem:[#allocation30_spill] sm:$0xff] }
 0x22b   : > { %v2351_v35 = vadd.f32 %v2350_v22, %v11246_v43  ;;  %v9285_v59 = vpop.f32.mrb[134].mxu0  ;;  %v11448_v30 = vpop.f32.mrb[148].mxu1 }
 0x22c   : > { %v2362_v50 = vadd.f32 %v9285_v59, %v11284_v37  ;;  %v2353_v62 = vpop.f32.mrb[135].mxu0  ;;  %v2875_v52 = vpop.f32.mrb[149].mxu1  ;;  %v2435_v53 = vrot.slane %v2359_v10, 7  ;;  %v13401_v10 = vld [vmem:[#allocation32_spill] sm:$0xff]  ;;  %v13403_v59 = vld [vmem:[#allocation31_spill] sm:$0xff] }
 0x22d   : > { %v2433_v23 = vrot.slane %v2351_v35, 7  ;;  %v2354_v29 = vadd.f32 %v2353_v62, %v11255_v6  ;;  %v11452_v15 = vpop.f32.mrb[150].mxu1 }
 0x22e   : > { %v2436_v36 = vrot.slane %v2362_v50, 7  ;;  %v2878_v51 = vpop.f32.mrb[151].mxu1 }
 0x22f   : > { %v2457_v19 = vsel %vm2445_vm0, %v2432_v17, %v2433_v23  ;;  %v2434_v57 = vrot.slane %v2354_v29, 7 }
 0x230   : > { %v2454_v43 = vsel %vm2445_vm0, %v2435_v53, %v2436_v36  ;;  %v11459_v58 = vadd.f32 %v2457_v19, %v13400_v48 }
 0x231   : > { %v2455_v37 = vsel %vm2445_vm0, %v2434_v57, %v2435_v53  ;;  %v2456_v6 = vsel %vm2445_vm0, %v2433_v23, %v2434_v57  ;;  %v9288_v44 = vpop.f32.mrb[136].mxu0  ;;  %v11466_v22 = vadd.f32 %v2454_v43, %v13401_v10  ;;  %v13404_v10 = vld [vmem:[#allocation33_spill] sm:$0xff] }
 0x232   : > { %v2375_v2 = vadd.f32 %v9288_v44, %v11336_v49  ;;  %v2366_v17 = vpop.f32.mrb[137].mxu0  ;;  %v11470_v35 = vadd.f32 %v2456_v6, %v13402_v33  ;;  %v11473_v50 = vadd.f32 %v2455_v37, %v13403_v59 }
 0x233   : > { %v2367_v62 = vadd.f32 %v2366_v17, %v11308_v3  ;;  %v9289_v52 = vpop.f32.mrb[138].mxu0  ;;  %v11476_v29 = vpop.f32.mrb[152].mxu1 }
 0x234   : > { %v2378_v23 = vadd.f32 %v9289_v52, %v11340_v9  ;;  %v2369_v53 = vpop.f32.mrb[139].mxu0  ;;  %v2883_v51 = vpop.f32.mrb[153].mxu1  ;;  %v2439_v43 = vrot.slane %v2375_v2, 7  ;;  %v13405_v2 = vld [vmem:[#allocation19_spill] sm:$0xff]  ;;  %v13407_v52 = vld [vmem:[#allocation34_spill] sm:$0xff] }
 0x235   : > { %v2437_v19 = vrot.slane %v2367_v62, 7  ;;  %v2370_v57 = vadd.f32 %v2369_v53, %v11312_v26  ;;  %v11480_v49 = vpop.f32.mrb[154].mxu1  ;;  %v13408_v53 = vld [vmem:[#allocation35_spill] sm:$0xff] }
 0x236   : > { %v2440_v48 = vrot.slane %v2378_v23, 7  ;;  %v2886_v6 = vpop.f32.mrb[155].mxu1 }
 0x237   : > { %v2453_v37 = vsel %vm2445_vm0, %v2436_v36, %v2437_v19  ;;  %v2438_v44 = vrot.slane %v2370_v57, 7 }
 0x238   : > { %v2450_v3 = vsel %vm2445_vm0, %v2439_v43, %v2440_v48  ;;  %v11487_v17 = vadd.f32 %v2453_v37, %v13404_v10 }
 0x239   : > { %v2451_v9 = vsel %vm2445_vm0, %v2438_v44, %v2439_v43  ;;  %v2452_v26 = vsel %vm2445_vm0, %v2437_v19, %v2438_v44  ;;  %v9292_v33 = vpop.f32.mrb[140].mxu0  ;;  %v11494_v59 = vadd.f32 %v2450_v3, %v13405_v2 }
 0x23a   : > { %v2391_v62 = vadd.f32 %v9292_v33, %v11392_v13  ;;  %v2382_v36 = vpop.f32.mrb[141].mxu0  ;;  %v11498_v23 = vadd.f32 %v2452_v26, %v13407_v52  ;;  %v11501_v51 = vadd.f32 %v2451_v9, %v13408_v53  ;;  %v13411_v53 = vld [vmem:[#allocation36_spill] sm:$0xff] }
 0x23b   : > { %13406 = vst [vmem:[#allocation16_spill] sm:$0xff] %v11494_v59  ;;  %v2383_v57 = vadd.f32 %v2382_v36, %v11364_v60  ;;  %v9293_v6 = vpop.f32.mrb[142].mxu0  ;;  %v2889_v43 = vpop.f32.mrb[156].mxu1  ;;  %v13409_v36 = vld [vmem:[#allocation39_spill] sm:$0xff] }
 0x23c   : > { %v2394_v37 = vadd.f32 %v9293_v6, %v11396_v47  ;;  %v2385_v19 = vpop.f32.mrb[143].mxu0  ;;  %v2891_v44 = vpop.f32.mrb[157].mxu1  ;;  %v2443_v13 = vrot.slane %v2391_v62, 7  ;;  %v13410_v52 = vrot.slane %v13409_v36, 7  ;;  %v13415_v36 = vld [vmem:[#allocation37_spill] sm:$0xff] }
 0x23d   : > { %v2441_v10 = vrot.slane %v2383_v57, 7  ;;  %v2386_v3 = vadd.f32 %v2385_v19, %v11368_v25  ;;  %v2892_v2 = vpop.f32.mrb[158].mxu1  ;;  %v13412_v25 = vld [vmem:[#allocation5_spill] sm:$0xff] }
 0x23e   : > { %v2444_v33 = vrot.slane %v2394_v37, 7  ;;  %v2894_v59 = vpop.f32.mrb[159].mxu1  ;;  %v13413_v37 = vld [vmem:[#allocation23_spill] sm:$0xff] }
 0x23f   : > { %v2449_v26 = vsel %vm2445_vm0, %v2440_v48, %v2441_v10  ;;  %v2442_v9 = vrot.slane %v2386_v3, 7 }
 0x240   : > { %v2446_v60 = vsel %vm2445_vm0, %v2443_v13, %v2444_v33  ;;  %v2493_v47 = vsel %vm2445_vm0, %v2444_v33, %v13410_v52  ;;  %v11515_v57 = vadd.f32 %v2449_v26, %v13411_v53  ;;  %v13417_v26 = vld [vmem:[#allocation21_spill] sm:$0xff] }
 0x241   : > { %v2494_v6 = vadd.f32 %v2493_v47, %v13412_v25  ;;  %v2447_v59 = vsel %vm2445_vm0, %v2442_v9, %v2443_v13  ;;  %v2448_v48 = vsel %vm2445_vm0, %v2441_v10, %v2442_v9  ;;  %v9312_v62 = vpop.f32.mrb[144].mxu0  ;;  %v11523_v19 = vadd.f32 %v2446_v60, %v13413_v37 }
 0x242   : > { %v3099_v44 = vadd.f32 %v9312_v62, %v11448_v30  ;;  %v3090_v3 = vpop.f32.mrb[145].mxu0  ;;  %v11527_v33 = vadd.f32 %v2448_v48, %v13415_v36  ;;  %v11530_v52 = vadd.f32 %v2447_v59, %v13417_v26  ;;  %v11551_v36 = vld [vmem:[%s13293_s2] ss:$0 sm:$0xff] }
 0x243   : > { %13414 = vst [vmem:[#allocation14_spill] sm:$0xff] %v11523_v19  ;;  %v11533_v47 = vadd.f32 %v3090_v3, %v11420_v31  ;;  %v9313_v13 = vpop.f32.mrb[146].mxu0  ;;  %v11535_v53 = vpop.f32.mrb[160].mxu1  ;;  %v11544_v31 = vadd.s32 16, %v11175_v21 }
 0x244   : > { %13416 = vst [vmem:[#allocation15_spill] sm:$0xff] %v11527_v33  ;;  %13418 = vst [vmem:[#allocation17_spill] sm:$0xff] %v11530_v52  ;;  %v3102_v10 = vadd.f32 %v9313_v13, %v11452_v15  ;;  %v3093_v9 = vpop.f32.mrb[147].mxu0  ;;  %v2899_v60 = vpop.f32.mrb[161].mxu1  ;;  %v3283_v48 = vrot.slane %v3099_v44, 1 }
 0x245   : > { %13419 = vst [vmem:[#allocation22_spill] sm:$0xff] %v11533_v47  ;;  %v3094_v30 = vadd.f32 %v3093_v9, %v11424_v16  ;;  %v11540_v25 = vpop.f32.mrb[162].mxu1  ;;  %v13304_v37 = vrot.slane %v11533_v47, 1  ;;  %v13420_v9 = vld [vmem:[#allocation6_spill] sm:$0xff]  ;;  %vm242_vm2 = vcmp.le.s32.totalorder %v11544_v31, 16 }
 0x246   : > { %v3284_v62 = vrot.slane %v3102_v10, 1  ;;  %v2902_v59 = vpop.f32.mrb[163].mxu1 }
 0x247   : > { %v3282_v3 = vrot.slane %v3094_v30, 1 }
 0x248   : > { %v3374_v15 = vsel %vm3329_vm1, %v3283_v48, %v3284_v62 }
 0x249   : > { %v3380_v16 = vadd.f32 %v3374_v15, %v11213_v45  ;;  %v3375_v44 = vsel %vm3329_vm1, %v3282_v3, %v3283_v48  ;;  %v3376_v26 = vsel %vm3329_vm1, %v13304_v37, %v3282_v3  ;;  %v9316_v13 = vpop.f32.mrb[148].mxu0 }
 0x24a   : > { %v3378_v10 = vadd.f32 %v3376_v26, %v2494_v6  ;;  %v3379_v60 = vadd.f32 %v3375_v44, %v13420_v9  ;;  %v3115_v30 = vadd.f32 %v9316_v13, %v2889_v43  ;;  %v3106_v59 = vpop.f32.mrb[149].mxu0 }
 0x24b   : > { %v3531_v19 = vadd.f32 %v11551_v36, %v3380_v16  ;;  %v3107_v45 = vadd.f32 %v3106_v59, %v11476_v29  ;;  %v9317_v15 = vpop.f32.mrb[150].mxu0  ;;  %v2905_v52 = vpop.f32.mrb[164].mxu1 }
 0x24c   : > { %v3529_v48 = vadd.f32 %v11551_v36, %v3378_v10  ;;  %v3530_v47 = vadd.f32 %v11551_v36, %v3379_v60  ;;  %v3287_v33 = vrot.slane %v3115_v30, 1  ;;  %v3118_v3 = vadd.f32 %v9317_v15, %v2892_v2  ;;  %v3109_v37 = vpop.f32.mrb[151].mxu0  ;;  %v2907_v6 = vpop.f32.mrb[165].mxu1  ;;  %v13421_v15 = vld [vmem:[#allocation8_spill] sm:$0xff] }
 0x24d   : > { %v3579_v26 = vmax.f32 %v3531_v19, 0.0  ;;  %v3285_v43 = vrot.slane %v3107_v45, 1  ;;  %v3110_v44 = vadd.f32 %v3109_v37, %v11480_v49  ;;  %v2908_v13 = vpop.f32.mrb[166].mxu1 }
 0x24e   : > { %v3577_v16 = vmax.f32 %v3529_v48, 0.0  ;;  %v3578_v9 = vmax.f32 %v3530_v47, 0.0  ;;  %v3288_v29 = vrot.slane %v3118_v3, 1  ;;  %v2910_v59 = vpop.f32.mrb[167].mxu1 }
 0x24f   : > { %v3633_v10 = vsel %vm242_vm2, %v3579_v26, 0.0  ;;  %v3373_v60 = vsel %vm3329_vm1, %v3284_v62, %v3285_v43  ;;  %v3286_v2 = vrot.slane %v3110_v44, 1 }
 0x250   : > { %v3631_v19 = vsel %vm237_vm3, %v3577_v16, 0.0  ;;  %v8581_v30 = vpack.c.bf16 %v3633_v10, %v3578_v9  ;;  %v3381_v45 = vadd.f32 %v3373_v60, %v13421_v15  ;;  %v3370_v49 = vsel %vm3329_vm1, %v3287_v33, %v3288_v29 }
 0x251   : > { %v8482_v37 = vpack.c.bf16 %v3631_v19, %v3631_v19  ;;  %v3384_v47 = vadd.f32 %v3370_v49, %v11242_v14  ;;  %v3371_v48 = vsel %vm3329_vm1, %v3286_v2, %v3287_v33  ;;  %v3372_v3 = vsel %vm3329_vm1, %v3285_v43, %v3286_v2  ;;  %v9320_v62 = vpop.f32.mrb[152].mxu0 }
 0x252   : > { %8905 = vst [vmem:[#allocation2 + $0x10] sm:$0xff] %v8581_v30   ;;  %v3532_v6 = vadd.f32 %v11551_v36, %v3381_v45  ;;  %v3382_v26 = vadd.f32 %v3372_v3, %v11227_v24  ;;  %v3383_v44 = vadd.f32 %v3371_v48, %v11239_v27  ;;  %v3131_v16 = vadd.f32 %v9320_v62, %v2905_v52  ;;  %v3122_v9 = vpop.f32.mrb[153].mxu0 }
 0x253   : > { %3888 = vst [vmem:[#allocation2 + $0xc] sm:$0xf] %v8482_v37  ;;  %v3535_v59 = vadd.f32 %v11551_v36, %v3384_v47  ;;  %v3123_v14 = vadd.f32 %v3122_v9, %v11535_v53  ;;  %v9321_v10 = vpop.f32.mrb[154].mxu0  ;;  %v2913_v33 = vpop.f32.mrb[168].mxu1 }
 0x254   : > { %v3580_v60 = vmax.f32 %v3532_v6, 0.0  ;;  %v3533_v43 = vadd.f32 %v11551_v36, %v3382_v26  ;;  %v3534_v2 = vadd.f32 %v11551_v36, %v3383_v44  ;;  %v3291_v19 = vrot.slane %v3131_v16, 1  ;;  %v3125_v30 = vpop.f32.mrb[155].mxu0  ;;  %v2915_v15 = vpop.f32.mrb[169].mxu1 }
 0x255   : > { %v3583_v24 = vmax.f32 %v3535_v59, 0.0  ;;  %v3289_v45 = vrot.slane %v3123_v14, 1  ;;  %v3134_v27 = vadd.f32 %v9321_v10, %v2908_v13  ;;  %v3126_v52 = vadd.f32 %v3125_v30, %v11540_v25  ;;  %v2916_v49 = vpop.f32.mrb[170].mxu1  ;;  %v13422_v25 = vld [vmem:[#allocation7_spill] sm:$0xff]  ;;  %v13423_v15 = vld [vmem:[#allocation12_spill] sm:$0xff] }
 0x256   : > { %v3634_v37 = vsel %vm237_vm3, %v3580_v60, 0.0  ;;  %v3581_v53 = vmax.f32 %v3533_v43, 0.0  ;;  %v3582_v47 = vmax.f32 %v3534_v2, 0.0  ;;  %v2918_v48 = vpop.f32.mrb[171].mxu1 }
 0x257   : > { %v3637_v3 = vsel %vm237_vm3, %v3583_v24, 0.0  ;;  %v3369_v62 = vsel %vm3329_vm1, %v3288_v29, %v3289_v45  ;;  %v3292_v6 = vrot.slane %v3134_v27, 1  ;;  %v3290_v26 = vrot.slane %v3126_v52, 1 }
 0x258   : > { %v3636_v13 = vsel %vm242_vm2, %v3582_v47, 0.0  ;;  %v8586_v44 = vpack.c.bf16 %v3581_v53, %v3634_v37  ;;  %v3385_v16 = vadd.f32 %v3369_v62, %v13422_v25 }
 0x259   : > { %v8591_v9 = vpack.c.bf16 %v3637_v3, %v3636_v13  ;;  %v3366_v59 = vsel %vm3329_vm1, %v3291_v19, %v3292_v6  ;;  %v3367_v14 = vsel %vm3329_vm1, %v3290_v26, %v3291_v19  ;;  %v3368_v10 = vsel %vm3329_vm1, %v3289_v45, %v3290_v26  ;;  %v9324_v60 = vpop.f32.mrb[156].mxu0  ;;  %v4033_v29 = vld [vmem:[#allocation2 + $0x10] sm:$0xf]  ;;  %v4034_v43 = vld [vmem:[#allocation2 + $0x14] sm:$0xf] }
 0x25a   : > { %8906 = vst [vmem:[#allocation2 + $0x18] sm:$0xff] %v8586_v44   ;;  %v3536_v2 = vadd.f32 %v11551_v36, %v3385_v16  ;;  %v3388_v30 = vadd.f32 %v3366_v59, %v11276_v54  ;;  %v3386_v24 = vadd.f32 %v3368_v10, %v13423_v15  ;;  %v3387_v27 = vadd.f32 %v3367_v14, %v11273_v0  ;;  %v3138_v52 = vpop.f32.mrb[157].mxu0  ;;  %v4032_v37 = vld [vmem:[#allocation2 + $0xc] sm:$0xf]  ;;  %v3940_v48 = vld [vmem:[#allocation2 + $0x10] sm:$0xf] }
 0x25b   : > { %4081 = vst [vmem:[#allocation3 + $0x10] sm:$0xf] %v4033_v29  ;;  %v3939_v53 = vld [vmem:[#allocation2 + $0xc] sm:$0xf]  ;;  %4082 = vst [vmem:[#allocation3 + $0x1c] sm:$0xf] %v4034_v43  ;;  %v3139_v45 = vadd.f32 %v3138_v52, %v2913_v33 }
 0x25c   : > { %8907 = vst [vmem:[#allocation2 + $0x20] sm:$0xff] %v8591_v9   ;;  %v2921_v19 = vpop.f32.mrb[172].mxu1  ;;  %v9325_v47 = vpop.f32.mrb[158].mxu0  ;;  %4080 = vst [vmem:[#allocation3 + $0x4] sm:$0xf] %v4032_v37  ;;  %v3539_v62 = vadd.f32 %v11551_v36, %v3388_v30  ;;  %v3537_v54 = vadd.f32 %v11551_v36, %v3386_v24  ;;  %v3538_v26 = vadd.f32 %v11551_v36, %v3387_v27  ;;  %v3584_v33 = vmax.f32 %v3536_v2, 0.0 }
 0x25d   : > { %3987 = vst [vmem:[#allocation3 + $0x24] sm:$0xf] %v3939_v53  ;;  %v3941_v3 = vld [vmem:[#allocation2 + $0x14] sm:$0xf]  ;;  %v2923_v0 = vpop.f32.mrb[173].mxu1  ;;  %v3141_v13 = vpop.f32.mrb[159].mxu0  ;;  %v3147_v44 = vadd.f32 %v9324_v60, %v2921_v19 }
 0x25e   : > { %3988 = vst [vmem:[#allocation3 + $0x30] sm:$0xf] %v3940_v48  ;;  %3989 = vst [vmem:[#allocation3 + $0x3c] sm:$0xf] %v3941_v3  ;;  %v3293_v25 = vrot.slane %v3139_v45, 1  ;;  %v2924_v16 = vpop.f32.mrb[174].mxu1  ;;  %v3142_v9 = vadd.f32 %v3141_v13, %v2916_v49 }
 0x25f   : > { %v3585_v59 = vmax.f32 %v3537_v54, 0.0  ;;  %v3586_v14 = vmax.f32 %v3538_v26, 0.0  ;;  %v11612_v10 = vadd.f32 %v9325_v47, %v2924_v16  ;;  %v2926_v29 = vpop.f32.mrb[175].mxu1  ;;  %v3587_v43 = vmax.f32 %v3539_v62, 0.0  ;;  %v13424_v52 = vld [vmem:[#allocation10_spill] sm:$0xff]  ;;  %v11631_v48 = vld [vmem:[%s13294_s3 + $0x88] sm:$0xff]  }
 0x260   : > { %v3295_v30 = vrot.slane %v3147_v44, 1  ;;  %v3365_v15 = vsel %vm3329_vm1, %v3292_v6, %v3293_v25  ;;  %v3294_v24 = vrot.slane %v3142_v9, 1  ;;  %v13425_v54 = vld [vmem:[#allocation11_spill] sm:$0xff]  ;;  %v9749_v44 = vld [vmem:[#allocation3] ss:$12 sps:$4 sm:$0xff]  }
 0x261   : > { %v3639_v27 = vsel %vm242_vm2, %v3585_v59, 0.0  ;;  %v3640_v60 = vsel %vm237_vm3, %v3586_v14, 0.0  ;;  %v3389_v49 = vadd.f32 %v3365_v15, %v13424_v52  ;;  %v3296_v2 = vrot.slane %v11612_v10, 1  ;;  %v11626_v6 = vpop.f32.mrb[160].mxu0  ;;  %v4035_v47 = vld [vmem:[#allocation2 + $0x18] sm:$0xf] }
 0x262   : > { %v8596_v37 = vpack.c.bf16 %v3639_v27, %v3584_v33  ;;  %v8601_v53 = vpack.c.bf16 %v3587_v43, %v3640_v60  ;;  %v3363_v19 = vsel %vm3329_vm1, %v3294_v24, %v3295_v30  ;;  %v3364_v45 = vsel %vm3329_vm1, %v3293_v25, %v3294_v24  ;;  %v3154_v13 = vpop.f32.mrb[161].mxu0  ;;  %4083 = vst [vmem:[#allocation3 + $0x28] sm:$0xf] %v4035_v47  ;;  %v4129_v59 = vld [vmem:[#allocation2 + $0x18] sm:$0xf]  ;;  %v9781_v47 = vld [vmem:[%s13294_s3 + $0x90] sm:$0xff]  }
 0x263   : > { %v3540_v3 = vadd.f32 %v11551_v36, %v3389_v49  ;;  %v3362_v62 = vsel %vm3329_vm1, %v3295_v30, %v3296_v2  ;;  %v3390_v26 = vadd.f32 %v3364_v45, %v13425_v54  ;;  %v3391_v0 = vadd.f32 %v3363_v19, %v11301_v18  ;;  %v9751_v25 = vld [vmem:[#allocation3 + $0x4] ss:$12 sps:$4 sm:$0xff]   ;;  %v2929_v9 = vpop.f32.mrb[176].mxu1  ;;  %v11639_v33 = vpop.f32.mrb[162].mxu0  ;;  %4177 = vst [vmem:[#allocation3 + $0x8] sm:$0xf] %v4129_v59 }
 0x264   : > { %8908 = vst [vmem:[#allocation2 + $0x28] sm:$0xff] %v8596_v37   ;;  %8909 = vst [vmem:[#allocation2 + $0x30] sm:$0xff] %v8601_v53   ;;  %v3392_v16 = vadd.f32 %v3362_v62, %v11304_v40  ;;  %v4130_v14 = vld [vmem:[#allocation2 + $0x1c] sm:$0xf]  ;;  %v3155_v30 = vadd.f32 %v3154_v13, %v2929_v9  ;;  %v2931_v18 = vpop.f32.mrb[177].mxu1  ;;  %v3157_v15 = vpop.f32.mrb[163].mxu0  ;;  %4930 = vmatprep.mubr.bf16.mxu0 %v9751_v25 }
 0x265   : > { %v3588_v10 = vmax.f32 %v3540_v3, 0.0  ;;  %v3541_v29 = vadd.f32 %v11551_v36, %v3390_v26  ;;  %v3542_v43 = vadd.f32 %v11551_v36, %v3391_v0  ;;  %4178 = vst [vmem:[#allocation3 + $0x14] sm:$0xf] %v4130_v14  ;;  %v4131_v24 = vld [vmem:[#allocation2 + $0x20] sm:$0xf]  ;;  %v2932_v40 = vpop.f32.mrb[178].mxu1  ;;  %4931 = vmatmul.mubr.bf16.vlgmr.msra.gmra.mrb[192].mxu0 %v9749_v44 }
 0x266   : > { %v3543_v27 = vadd.f32 %v11551_v36, %v3392_v16  ;;  %v4132_v60 = vld [vmem:[#allocation2 + $0x24] sm:$0xf]  ;;  %4179 = vst [vmem:[#allocation3 + $0x20] sm:$0xf] %v4131_v24  ;;  %v4036_v52 = vld [vmem:[#allocation2 + $0x1c] sm:$0xf]  ;;  %v11648_v62 = vadd.f32 %v3157_v15, %v2932_v40 }
 0x267   : > { %v3589_v49 = vmax.f32 %v3541_v29, 0.0  ;;  %v3590_v37 = vmax.f32 %v3542_v43, 0.0  ;;  %v3297_v53 = vrot.slane %v3155_v30, 1  ;;  %v13426_v19 = vld [vmem:[#allocation9_spill] sm:$0xff]  ;;  %v2934_v45 = vpop.f32.mrb[179].mxu1  ;;  %v4229_v54 = vld [vmem:[#allocation3 + $0x18] sm:$0xff] }
 0x268   : > { %9423 = vmatpush3.bf16.msra.mxu0 %v13426_v19  ;;  %4180 = vst [vmem:[#allocation3 + $0x2c] sm:$0xf] %v4132_v60  ;;  %4084 = vst [vmem:[#allocation3 + $0x34] sm:$0xf] %v4036_v52  ;;  %v3591_v3 = vmax.f32 %v3543_v27, 0.0  ;;  %v3642_v13 = vsel %vm242_vm2, %v3588_v10, 0.0 }
 0x269   : > { %v4037_v26 = vld [vmem:[#allocation2 + $0x20] sm:$0xf]  ;;  %v3942_v0 = vld [vmem:[#allocation2 + $0x18] sm:$0xf]  ;;  %9424 = vmatprep.subr.bf16.mxu0 %v11631_v48  ;;  %v3643_v44 = vsel %vm237_vm3, %v3589_v49, 0.0  ;;  %v3361_v25 = vsel %vm3329_vm1, %v3296_v2, %v3297_v53  ;;  %v3298_v30 = vrot.slane %v11648_v62, 1 }
 0x26a   : > { %4085 = vst [vmem:[#allocation3 + $0x40] sm:$0xf] %v4037_v26  ;;  %v3943_v16 = vld [vmem:[#allocation2 + $0x1c] sm:$0xf]  ;;  %3990 = vst [vmem:[#allocation3 + $0x48] sm:$0xf] %v3942_v0  ;;  %v8606_v14 = vpack.c.bf16 %v3643_v44, %v3642_v13 }
 0x26b   : > { %v4038_v9 = vld [vmem:[#allocation2 + $0x24] sm:$0xf]  ;;  %v3645_v59 = vsel %vm242_vm2, %v3591_v3, 0.0  ;;  %v13427_v29 = vld [vmem:[#allocation13_spill] sm:$0xff]  ;;  %v9755_v10 = vld [vmem:[#allocation3 + $0x1c] ss:$12 sps:$4 sm:$0xff]   ;;  %v3360_v45 = vsel %vm3329_vm1, %v3297_v53, %v3298_v30 }
 0x26c   : > { %v3393_v43 = vadd.f32 %v3361_v25, %v13427_v29  ;;  %v4231_v18 = vld [vmem:[#allocation3 + $0x24] sm:$0xff]  ;;  %v11661_v15 = vpop.f32.mrb[164].mxu0  ;;  %3991 = vst [vmem:[#allocation3 + $0x54] sm:$0xf] %v3943_v16  ;;  %4086 = vst [vmem:[#allocation3 + $0x4c] sm:$0xf] %v4038_v9  ;;  %v8611_v24 = vpack.c.bf16 %v3645_v59, %v3590_v37  ;;  %9425 = vmatpush3.bf16.msra.mxu0 %v11631_v48  ;;  %4938 = vmatprep.mubr.bf16.mxu0 %v9755_v10 }
 0x26d   : > { %v9794_v2 = vld [vmem:[%s13294_s3 + $0x98] sm:$0xff]   ;;  %v11666_v27 = vcombine.low %v4229_v54, %v4231_v18  ;;  %v11668_v40 = vpop.f32.mrb[165].mxu0  ;;  %v4133_v60 = vld [vmem:[#allocation2 + $0x28] sm:$0xf]  ;;  %v4134_v52 = vld [vmem:[#allocation2 + $0x2c] sm:$0xf]  ;;  %9426 = vmatprep.subr.bf16.mxu0 %v9781_v47  ;;  %v3394_v48 = vadd.f32 %v3360_v45, %v11317_v34 }
 0x26e   : > { %v9807_v49 = vld [vmem:[%s13294_s3] sm:$0xff]   ;;  %8910 = vst [vmem:[#allocation2 + $0x38] sm:$0xff] %v8606_v14   ;;  %v3544_v19 = vadd.f32 %v11551_v36, %v3393_v43  ;;  %v2937_v3 = vpop.f32.mrb[180].mxu1  ;;  %v11677_v37 = vpop.f32.mrb[166].mxu0  ;;  %4181 = vst [vmem:[#allocation3 + $0x38] sm:$0xf] %v4133_v60 }
 0x26f   : > { %4182 = vst [vmem:[#allocation3 + $0x44] sm:$0xf] %v4134_v52  ;;  %8911 = vst [vmem:[#allocation2 + $0x40] sm:$0xff] %v8611_v24   ;;  %v3163_v62 = vadd.f32 %v11626_v6, %v2937_v3  ;;  %v2939_v54 = vpop.f32.mrb[181].mxu1  ;;  %v9757_v26 = vld [vmem:[#allocation3 + $0x8] ss:$12 sps:$4 sm:$0xff]   ;;  %4939 = vmatmul.mubr.bf16.gmra.mrb[196].mxu0 %v11666_v27  ;;  %v3545_v53 = vadd.f32 %v11551_v36, %v3394_v48 }
 0x270   : > { %v11681_v0 = vpop.f32.mrb[167].mxu0  ;;  %v3592_v13 = vmax.f32 %v3544_v19, 0.0  ;;  %v2940_v44 = vpop.f32.mrb[182].mxu1  ;;  %v9758_v25 = vld [vmem:[#allocation3 + $0x20] ss:$12 sps:$4 sm:$0xff]   ;;  %9374 = vmatprep.mubr.bf16.mxu1 %v9757_v26  ;;  %9427 = vmatpush3.bf16.msra.mxu0 %v9781_v47  ;;  %v9812_v14 = vld [vmem:[%s13294_s3 + $0x8] sm:$0xff]  }
 0x271   : > { %v3299_v16 = vrot.slane %v3163_v62, 1  ;;  %v11686_v9 = vadd.f32 %v11639_v33, %v2940_v44  ;;  %v2942_v59 = vpop.f32.mrb[183].mxu1  ;;  %v4135_v34 = vld [vmem:[#allocation2 + $0x30] sm:$0xf]  ;;  %v9808_v6 = vld [vmem:[%s13294_s3 + $0xa0] sm:$0xff]   ;;  %9375 = vmatmul.mubr.bf16.vlgmr.msra.gmra.mrb[240].mxu1 %v9758_v25  ;;  %v4233_v43 = vld [vmem:[#allocation3 + $0x30] sm:$0xff]  ;;  %9428 = vmatprep.subr.bf16.mxu0 %v9794_v2 }
 0x272   : > { %v3646_v29 = vsel %vm237_vm3, %v3592_v13, 0.0  ;;  %v9759_v18 = vld [vmem:[#allocation3 + $0x34] ss:$12 sps:$4 sm:$0xff]   ;;  %v4136_v33 = vld [vmem:[#allocation2 + $0x34] sm:$0xf]  ;;  %v3593_v10 = vmax.f32 %v3545_v53, 0.0  ;;  %5637 = vmatpush1.bf16.msra.mxu1 %v9807_v49 }
 0x273   : > { %4183 = vst [vmem:[#allocation3 + $0x50] sm:$0xf] %v4135_v34  ;;  %v3359_v47 = vsel %vm3329_vm1, %v3298_v30, %v3299_v16  ;;  %v3300_v24 = vrot.slane %v11686_v9, 1  ;;  %v4235_v60 = vld [vmem:[#allocation3 + $0x3c] sm:$0xff]  ;;  %4184 = vst [vmem:[#allocation3 + $0x5c] sm:$0xf] %v4136_v33  ;;  %4946 = vmatprep.mubr.bf16.mxu0 %v9759_v18 }
 0x274   : > { %v4039_v52 = vld [vmem:[#allocation2 + $0x28] sm:$0xf]  ;;  %v3395_v19 = vadd.f32 %v3359_v47, %v11330_v38  ;;  %v3944_v45 = vld [vmem:[#allocation2 + $0x20] sm:$0xf]  ;;  %v3945_v3 = vld [vmem:[#allocation2 + $0x24] sm:$0xf]  ;;  %v8616_v54 = vpack.c.bf16 %v3593_v10, %v3646_v29  ;;  %9429 = vmatpush3.bf16.msra.mxu0 %v9794_v2  ;;  %v11708_v25 = vcombine.low %v4233_v43, %v4235_v60 }
 0x275   : > { %4087 = vst [vmem:[#allocation3 + $0x58] sm:$0xf] %v4039_v52  ;;  %v4040_v48 = vld [vmem:[#allocation2 + $0x2c] sm:$0xf]  ;;  %v13428_v62 = vmov 0   ;;  %v3358_v26 = vsel %vm3329_vm1, %v3299_v16, %v3300_v24  ;;  %v9816_v38 = vld [vmem:[%s13294_s3 + $0x10] sm:$0xff]   ;;  %9430 = vmatprep.subr.bf16.mxu0 %v9808_v6 }
 0x276   : > { %5638 = vmatprep.subr.bf16.mxu1 %v13428_v62  ;;  %v9761_v30 = vld [vmem:[#allocation3 + $0x38] ss:$12 sps:$4 sm:$0xff]   ;;  %3992 = vst [vmem:[#allocation3 + $0x60] sm:$0xf] %v3944_v45  ;;  %3993 = vst [vmem:[#allocation3 + $0x6c] sm:$0xf] %v3945_v3  ;;  %v3546_v49 = vadd.f32 %v11551_v36, %v3395_v19  ;;  %v3396_v13 = vadd.f32 %v3358_v26, %v11333_v7 }
 0x277   : > { %4088 = vst [vmem:[#allocation3 + $0x64] sm:$0xf] %v4040_v48  ;;  %v2945_v44 = vpop.f32.mrb[184].mxu1  ;;  %v4137_v53 = vld [vmem:[#allocation2 + $0x38] sm:$0xf]  ;;  %v11710_v59 = vpop.f32.mrb[168].mxu0  ;;  %9378 = vmatprep.mubr.bf16.mxu1 %v9761_v30  ;;  %5639 = vmatpush1.bf16.msra.mxu1 %v9812_v14 }
 0x278   : > { %v4138_v9 = vld [vmem:[#allocation2 + $0x3c] sm:$0xf]  ;;  %8912 = vst [vmem:[#allocation2 + $0x48] sm:$0xff] %v8616_v54   ;;  %v3171_v16 = vadd.f32 %v11668_v40, %v2945_v44  ;;  %v2947_v2 = vpop.f32.mrb[185].mxu1  ;;  %4185 = vst [vmem:[#allocation3 + $0x68] sm:$0xf] %v4137_v53  ;;  %v3547_v43 = vadd.f32 %v11551_v36, %v3396_v13  ;;  %4947 = vmatmul.mubr.bf16.gmra.mrb[200].mxu0 %v11708_v25  ;;  %5640 = vmatprep.subr.bf16.mxu1 %v13428_v62 }
 0x279   : > { %4186 = vst [vmem:[#allocation3 + $0x74] sm:$0xf] %v4138_v9  ;;  %v4139_v34 = vld [vmem:[#allocation2 + $0x40] sm:$0xf]  ;;  %v4140_v29 = vld [vmem:[#allocation2 + $0x44] sm:$0xf]  ;;  %9431 = vmatpush3.bf16.msra.mxu0 %v9808_v6 }
 0x27a   : > { %v11713_v18 = vpop.f32.mrb[169].mxu0  ;;  %v3594_v7 = vmax.f32 %v3546_v49, 0.0  ;;  %v2948_v33 = vpop.f32.mrb[186].mxu1  ;;  %4187 = vst [vmem:[#allocation3 + $0x80] sm:$0xf] %v4139_v34  ;;  %v3301_v40 = vrot.slane %v3171_v16, 1 }
 0x27b   : > { %4188 = vst [vmem:[#allocation3 + $0x8c] sm:$0xf] %v4140_v29  ;;  %v4041_v10 = vld [vmem:[#allocation2 + $0x30] sm:$0xf]  ;;  %v11717_v47 = vpop.f32.mrb[170].mxu0  ;;  %v11721_v60 = vadd.f32 %v11681_v0, %v2948_v33  ;;  %v2950_v52 = vpop.f32.mrb[187].mxu1  ;;  %5641 = vmatpush1.bf16.msra.mxu1 %v9816_v38 }
 0x27c   : > { %4089 = vst [vmem:[#allocation3 + $0x70] sm:$0xf] %v4041_v10  ;;  %v11723_v14 = vpop.f32.mrb[171].mxu0  ;;  %v9825_v19 = vld [vmem:[%s13294_s3 + $0xa8] sm:$0xff]   ;;  %v3595_v45 = vmax.f32 %v3547_v43, 0.0  ;;  %v3648_v48 = vsel %vm242_vm2, %v3594_v7, 0.0  ;;  %v3357_v54 = vsel %vm3329_vm1, %v3300_v24, %v3301_v40  ;;  %5642 = vmatprep.subr.bf16.mxu1 %v13428_v62 }
 0x27d   : > { %v9762_v3 = vld [vmem:[#allocation3 + $0x50] ss:$12 sps:$4 sm:$0xff]   ;;  %v3302_v0 = vrot.slane %v11721_v60, 1  ;;  %v9763_v26 = vld [vmem:[#allocation3 + $0x4c] ss:$12 sps:$4 sm:$0xff]   ;;  %v9821_v6 = vld [vmem:[%s13294_s3 + $0x18] sm:$0xff]   ;;  %9432 = vmatprep.subr.bf16.mxu0 %v9825_v19  ;;  %v3397_v49 = vadd.f32 %v3357_v54, %v11322_v11 }
 0x27e   : > { %v3649_v30 = vsel %vm237_vm3, %v3595_v45, 0.0  ;;  %9379 = vmatmul.mubr.bf16.gmra.mrb[244].mxu1 %v9762_v3  ;;  %v9766_v13 = vld [vmem:[#allocation3 + $0x48] ss:$12 sps:$4 sm:$0xff]   ;;  %v3946_v44 = vld [vmem:[#allocation2 + $0x28] sm:$0xf]  ;;  %4954 = vmatprep.mubr.bf16.mxu0 %v9763_v26  ;;  %v2953_v29 = vpop.f32.mrb[188].mxu1 }
 0x27f   : > { %v3947_v53 = vld [vmem:[#allocation2 + $0x2c] sm:$0xf]  ;;  %v8621_v24 = vpack.c.bf16 %v3649_v30, %v3648_v48  ;;  %v3356_v38 = vsel %vm3329_vm1, %v3301_v40, %v3302_v0  ;;  %3994 = vst [vmem:[#allocation3 + $0x78] sm:$0xf] %v3946_v44  ;;  %v4042_v9 = vld [vmem:[#allocation2 + $0x34] sm:$0xf]  ;;  %9433 = vmatpush3.bf16.msra.mxu0 %v9825_v19  ;;  %v3548_v43 = vadd.f32 %v11551_v36, %v3397_v49 }
 0x280   : > { %3995 = vst [vmem:[#allocation3 + $0x84] sm:$0xf] %v3947_v53  ;;  %v4043_v16 = vld [vmem:[#allocation2 + $0x38] sm:$0xf]  ;;  %v3948_v2 = vld [vmem:[#allocation2 + $0x30] sm:$0xf]  ;;  %v3398_v34 = vadd.f32 %v3356_v38, %v11345_v8  ;;  %v3179_v33 = vadd.f32 %v11661_v15, %v2953_v29  ;;  %5643 = vmatpush1.bf16.msra.mxu1 %v9821_v6  ;;  %4955 = vmatmul.mubr.bf16.gmra.mrb[204].mxu0 %v9766_v13 }
 0x281   : > { %v9823_v11 = vld [vmem:[%s13294_s3 + $0x20] sm:$0xff]   ;;  %4090 = vst [vmem:[#allocation3 + $0x7c] sm:$0xf] %v4042_v9  ;;  %4091 = vst [vmem:[#allocation3 + $0x88] sm:$0xf] %v4043_v16  ;;  %v11746_v7 = vpop.f32.mrb[172].mxu0  ;;  %5644 = vmatprep.subr.bf16.mxu1 %v13428_v62 }
 0x282   : > { %3996 = vst [vmem:[#allocation3 + $0x90] sm:$0xf] %v3948_v2  ;;  %8913 = vst [vmem:[#allocation2 + $0x50] sm:$0xff] %v8621_v24   ;;  %v2955_v10 = vpop.f32.mrb[189].mxu1  ;;  %v9765_v40 = vld [vmem:[#allocation3 + $0x68] ss:$12 sps:$4 sm:$0xff]   ;;  %v3549_v52 = vadd.f32 %v11551_v36, %v3398_v34 }
 0x283   : > { %v11750_v60 = vpop.f32.mrb[173].mxu0  ;;  %v2956_v19 = vpop.f32.mrb[190].mxu1  ;;  %v9767_v8 = vld [vmem:[#allocation3 + $0x80] ss:$12 sps:$4 sm:$0xff]   ;;  %v3303_v45 = vrot.slane %v3179_v33, 1  ;;  %9382 = vmatprep.mubr.bf16.mxu1 %v9765_v40  ;;  %v3596_v44 = vmax.f32 %v3548_v43, 0.0 }
 0x284   : > { %v11755_v3 = vadd.f32 %v11677_v37, %v2956_v19  ;;  %v9769_v48 = vld [vmem:[#allocation3 + $0x64] ss:$12 sps:$4 sm:$0xff]   ;;  %v2958_v54 = vpop.f32.mrb[191].mxu1  ;;  %v11757_v15 = vpop.f32.mrb[174].mxu0  ;;  %v3597_v26 = vmax.f32 %v3549_v52, 0.0  ;;  %5645 = vmatpush1.bf16.msra.mxu1 %v9823_v11 }
 0x285   : > { %v4141_v30 = vld [vmem:[#allocation2 + $0x48] sm:$0xf]  ;;  %v4142_v49 = vld [vmem:[#allocation2 + $0x4c] sm:$0xf]  ;;  %v11759_v6 = vpop.f32.mrb[175].mxu0  ;;  %v3355_v13 = vsel %vm3329_vm1, %v3302_v0, %v3303_v45  ;;  %4962 = vmatprep.mubr.bf16.mxu0 %v9769_v48  ;;  %5646 = vmatprep.subr.bf16.mxu1 %v13428_v62  ;;  %v2961_v10 = vpop.f32.mrb[192].mxu1 }
 0x286   : > { %v3304_v53 = vrot.slane %v11755_v3, 1  ;;  %4189 = vst [vmem:[#allocation3 + $0x98] sm:$0xf] %v4141_v30  ;;  %4190 = vst [vmem:[#allocation3 + $0xa4] sm:$0xf] %v4142_v49  ;;  %v9829_v24 = vld [vmem:[%s13294_s3 + $0x28] sm:$0xff]   ;;  %v3399_v9 = vadd.f32 %v3355_v13, %v11358_v63  ;;  %9383 = vmatmul.mubr.bf16.gmra.mrb[248].mxu1 %v9767_v8  ;;  %v3187_v8 = vadd.f32 %v11713_v18, %v2961_v10 }
 0x287   : > { %v3949_v37 = vld [vmem:[#allocation2 + $0x34] sm:$0xf]  ;;  %v3651_v38 = vsel %vm242_vm2, %v3597_v26, 0.0  ;;  %v4044_v16 = vld [vmem:[#allocation2 + $0x3c] sm:$0xf]  ;;  %v11770_v2 = vpop.f32.mrb[176].mxu0 }
 0x288   : > { %3997 = vst [vmem:[#allocation3 + $0x9c] sm:$0xf] %v3949_v37  ;;  %v4045_v0 = vld [vmem:[#allocation2 + $0x40] sm:$0xf]  ;;  %v8626_v34 = vpack.c.bf16 %v3651_v38, %v3596_v44  ;;  %v3354_v11 = vsel %vm3329_vm1, %v3303_v45, %v3304_v53  ;;  %v9772_v29 = vld [vmem:[#allocation3 + $0x60] ss:$12 sps:$4 sm:$0xff]   ;;  %v3550_v33 = vadd.f32 %v11551_v36, %v3399_v9  ;;  %5647 = vmatpush1.bf16.msra.mxu1 %v9829_v24 }
 0x289   : > { %4092 = vst [vmem:[#allocation3 + $0x94] sm:$0xf] %v4044_v16  ;;  %4093 = vst [vmem:[#allocation3 + $0xa0] sm:$0xf] %v4045_v0  ;;  %v11775_v43 = vpop.f32.mrb[177].mxu0  ;;  %v3400_v63 = vadd.f32 %v3354_v11, %v11361_v42  ;;  %v2963_v3 = vpop.f32.mrb[193].mxu1  ;;  %4963 = vmatmul.mubr.bf16.gmra.mrb[208].mxu0 %v9772_v29  ;;  %5648 = vmatprep.subr.bf16.mxu1 %v13428_v62 }
 0x28a   : > { %v4143_v40 = vld [vmem:[#allocation2 + $0x50] sm:$0xf]  ;;  %v4144_v52 = vld [vmem:[#allocation2 + $0x54] sm:$0xf]  ;;  %v11779_v19 = vpop.f32.mrb[178].mxu0  ;;  %8914 = vst [vmem:[#allocation2 + $0x58] sm:$0xff] %v8626_v34  }
 0x28b   : > { %v9773_v48 = vld [vmem:[#allocation3 + $0x7c] ss:$12 sps:$4 sm:$0xff]   ;;  %4191 = vst [vmem:[#allocation3 + $0xb0] sm:$0xf] %v4143_v40  ;;  %4192 = vst [vmem:[#allocation3 + $0xbc] sm:$0xf] %v4144_v52  ;;  %v3551_v30 = vadd.f32 %v11551_v36, %v3400_v63 }
 0x28c   : > { %v3950_v45 = vld [vmem:[#allocation2 + $0x38] sm:$0xf]  ;;  %v11782_v54 = vpop.f32.mrb[179].mxu0  ;;  %v3598_v26 = vmax.f32 %v3550_v33, 0.0  ;;  %v2964_v42 = vpop.f32.mrb[194].mxu1  ;;  %v3305_v13 = vrot.slane %v3187_v8, 1  ;;  %4970 = vmatprep.mubr.bf16.mxu0 %v9773_v48 }
 0x28d   : > { %v3951_v49 = vld [vmem:[#allocation2 + $0x3c] sm:$0xf]  ;;  %3998 = vst [vmem:[#allocation3 + $0xa8] sm:$0xf] %v3950_v45  ;;  %v4046_v44 = vld [vmem:[#allocation2 + $0x44] sm:$0xf]  ;;  %v3190_v18 = vadd.f32 %v11723_v14, %v2964_v42 }
 0x28e   : > { %v2966_v37 = vpop.f32.mrb[195].mxu1  ;;  %3999 = vst [vmem:[#allocation3 + $0xb4] sm:$0xf] %v3951_v49  ;;  %v4047_v38 = vld [vmem:[#allocation2 + $0x48] sm:$0xf]  ;;  %v3652_v24 = vsel %vm237_vm3, %v3598_v26, 0.0  ;;  %v3353_v0 = vsel %vm3329_vm1, %v3304_v53, %v3305_v13 }
 0x28f   : > { %4094 = vst [vmem:[#allocation3 + $0xac] sm:$0xf] %v4046_v44  ;;  %v3952_v9 = vld [vmem:[#allocation2 + $0x40] sm:$0xf]  ;;  %v3599_v16 = vmax.f32 %v3551_v30, 0.0  ;;  %v3306_v34 = vrot.slane %v3190_v18, 1  ;;  %v3401_v63 = vadd.f32 %v3353_v0, %v11350_v28 }
 0x290   : > { %4095 = vst [vmem:[#allocation3 + $0xb8] sm:$0xf] %v4047_v38  ;;  %4000 = vst [vmem:[#allocation3 + $0xc0] sm:$0xf] %v3952_v9  ;;  %v9771_v11 = vld [vmem:[#allocation3 + $0x98] ss:$12 sps:$4 sm:$0xff]  }
 0x291   : > { %v3953_v29 = vld [vmem:[#allocation2 + $0x44] sm:$0xf]  ;;  %v9831_v14 = vld [vmem:[%s13294_s3 + $0x30] sm:$0xff]   ;;  %v8631_v33 = vpack.c.bf16 %v3599_v16, %v3652_v24  ;;  %v11795_v40 = vpop.f32.mrb[180].mxu0  ;;  %v3352_v52 = vsel %vm3329_vm1, %v3305_v13, %v3306_v34  ;;  %9386 = vmatprep.mubr.bf16.mxu1 %v9771_v11  ;;  %v9777_v8 = vld [vmem:[#allocation3 + $0x94] ss:$12 sps:$4 sm:$0xff]   ;;  %v3552_v48 = vadd.f32 %v11551_v36, %v3401_v63 }
 0x292   : > { %v9776_v10 = vld [vmem:[#allocation3 + $0x78] ss:$12 sps:$4 sm:$0xff]   ;;  %4001 = vst [vmem:[#allocation3 + $0xcc] sm:$0xf] %v3953_v29  ;;  %v4048_v53 = vld [vmem:[#allocation2 + $0x4c] sm:$0xf]  ;;  %5649 = vmatpush1.bf16.msra.mxu1 %v9831_v14  ;;  %v3402_v45 = vadd.f32 %v3352_v52, %v11373_v1 }
 0x293   : > { %v4049_v3 = vld [vmem:[#allocation2 + $0x50] sm:$0xf]  ;;  %8915 = vst [vmem:[#allocation2 + $0x60] sm:$0xff] %v8631_v33   ;;  %v2969_v26 = vpop.f32.mrb[196].mxu1  ;;  %4096 = vst [vmem:[#allocation3 + $0xc4] sm:$0xf] %v4048_v53  ;;  %5650 = vmatprep.subr.bf16.mxu1 %v13428_v62  ;;  %4971 = vmatmul.mubr.bf16.gmra.mrb[212].mxu0 %v9776_v10 }
 0x294   : > { %4097 = vst [vmem:[#allocation3 + $0xd0] sm:$0xf] %v4049_v3  ;;  %v11801_v28 = vpop.f32.mrb[181].mxu0  ;;  %v3195_v30 = vadd.f32 %v11710_v59, %v2969_v26  ;;  %v2971_v42 = vpop.f32.mrb[197].mxu1  ;;  %v9775_v49 = vld [vmem:[#allocation3 + $0xb0] ss:$12 sps:$4 sm:$0xff]   ;;  %v3553_v37 = vadd.f32 %v11551_v36, %v3402_v45  ;;  %4978 = vmatprep.mubr.bf16.mxu0 %v9777_v8 }
 0x295   : > { %v4145_v44 = vld [vmem:[#allocation2 + $0x58] sm:$0xf]  ;;  %v11805_v13 = vpop.f32.mrb[182].mxu0  ;;  %v3600_v18 = vmax.f32 %v3552_v48, 0.0  ;;  %v2972_v38 = vpop.f32.mrb[198].mxu1  ;;  %9387 = vmatmul.mubr.bf16.gmra.mrb[252].mxu1 %v9775_v49  ;;  %v9837_v52 = vld [vmem:[%s13294_s3 + $0x40] sm:$0xff]  }
 0x296   : > { %v4146_v1 = vld [vmem:[#allocation2 + $0x5c] sm:$0xf]  ;;  %4193 = vst [vmem:[#allocation3 + $0xc8] sm:$0xf] %v4145_v44  ;;  %v11808_v9 = vpop.f32.mrb[183].mxu0  ;;  %v3307_v24 = vrot.slane %v3195_v30, 1  ;;  %v11811_v16 = vadd.f32 %v11717_v47, %v2972_v38 }
 0x297   : > { %v2974_v59 = vpop.f32.mrb[199].mxu1  ;;  %4194 = vst [vmem:[#allocation3 + $0xd4] sm:$0xf] %v4146_v1  ;;  %v9835_v0 = vld [vmem:[%s13294_s3 + $0x38] sm:$0xff]   ;;  %v3654_v11 = vsel %vm242_vm2, %v3600_v18, 0.0  ;;  %v3601_v29 = vmax.f32 %v3553_v37, 0.0 }
 0x298   : > { %v3954_v14 = vld [vmem:[#allocation2 + $0x48] sm:$0xf]  ;;  %v3351_v33 = vsel %vm3329_vm1, %v3306_v34, %v3307_v24  ;;  %v3308_v63 = vrot.slane %v11811_v16, 1  ;;  %v3955_v47 = vld [vmem:[#allocation2 + $0x4c] sm:$0xf]  ;;  %5651 = vmatpush1.bf16.msra.mxu1 %v9835_v0  ;;  %v11827_v34 = vpop.f32.mrb[184].mxu0 }
 0x299   : > { %4002 = vst [vmem:[#allocation3 + $0xd8] sm:$0xf] %v3954_v14  ;;  %v4050_v10 = vld [vmem:[#allocation2 + $0x54] sm:$0xf]  ;;  %v3655_v8 = vsel %vm237_vm3, %v3601_v29, 0.0  ;;  %v3403_v53 = vadd.f32 %v3351_v33, %v11386_v61  ;;  %5652 = vmatprep.subr.bf16.mxu1 %v13428_v62  ;;  %v11832_v49 = vpop.f32.mrb[185].mxu0 }
 0x29a   : > { %4003 = vst [vmem:[#allocation3 + $0xe4] sm:$0xf] %v3955_v47  ;;  %v4051_v3 = vld [vmem:[#allocation2 + $0x58] sm:$0xf]  ;;  %4098 = vst [vmem:[#allocation3 + $0xdc] sm:$0xf] %v4050_v10  ;;  %v8636_v30 = vpack.c.bf16 %v3655_v8, %v3654_v11  ;;  %v3350_v42 = vsel %vm3329_vm1, %v3307_v24, %v3308_v63 }
 0x29b   : > { %v3956_v48 = vld [vmem:[#allocation2 + $0x50] sm:$0xf]  ;;  %v4147_v45 = vld [vmem:[#allocation2 + $0x60] sm:$0xf]  ;;  %v4148_v26 = vld [vmem:[#allocation2 + $0x64] sm:$0xf]  ;;  %v3554_v61 = vadd.f32 %v11551_v36, %v3403_v53  ;;  %v3404_v44 = vadd.f32 %v3350_v42, %v11389_v46 }
 0x29c   : > { %4099 = vst [vmem:[#allocation3 + $0xe8] sm:$0xf] %v4051_v3  ;;  %4004 = vst [vmem:[#allocation3 + $0xf0] sm:$0xf] %v3956_v48  ;;  %v2977_v18 = vpop.f32.mrb[200].mxu1  ;;  %v11837_v0 = vpop.f32.mrb[186].mxu0  ;;  %5653 = vmatpush1.bf16.msra.mxu1 %v9837_v52 }
 0x29d   : > { %4195 = vst [vmem:[#allocation3 + $0xe0] sm:$0xf] %v4147_v45  ;;  %4196 = vst [vmem:[#allocation3 + $0xec] sm:$0xf] %v4148_v26  ;;  %v9780_v37 = vld [vmem:[#allocation3 + $0x90] ss:$12 sps:$4 sm:$0xff]   ;;  %v3203_v1 = vadd.f32 %v11750_v60, %v2977_v18  ;;  %5654 = vmatprep.subr.bf16.mxu1 %v13428_v62 }
 0x29e   : > { %v9782_v38 = vld [vmem:[#allocation3 + $0xac] ss:$12 sps:$4 sm:$0xff]   ;;  %8916 = vst [vmem:[#allocation2 + $0x68] sm:$0xff] %v8636_v30   ;;  %v2979_v16 = vpop.f32.mrb[201].mxu1  ;;  %v3957_v59 = vld [vmem:[#allocation2 + $0x54] sm:$0xf]  ;;  %4979 = vmatmul.mubr.bf16.gmra.mrb[216].mxu0 %v9780_v37 }
 0x29f   : > { %v3602_v24 = vmax.f32 %v3554_v61, 0.0  ;;  %v11842_v11 = vld [vmem:[%s13293_s2] ss:$0 sm:$0xff]  ;;  %v2980_v46 = vpop.f32.mrb[202].mxu1  ;;  %4005 = vst [vmem:[#allocation3 + $0xfc] sm:$0xf] %v3957_v59  ;;  %4986 = vmatprep.mubr.bf16.mxu0 %v9782_v38 }
 0x2a0   : > { %v3555_v36 = vadd.f32 %v11842_v11, %v3404_v44  ;;  %v9779_v29 = vld [vmem:[#allocation3 + $0xc8] ss:$12 sps:$4 sm:$0xff]   ;;  %v3309_v60 = vrot.slane %v3203_v1, 1  ;;  %v3206_v14 = vadd.f32 %v11759_v6, %v2980_v46  ;;  %v2982_v33 = vpop.f32.mrb[203].mxu1  ;;  %v4052_v47 = vld [vmem:[#allocation2 + $0x5c] sm:$0xf] }
 0x2a1   : > { %v4053_v10 = vld [vmem:[#allocation2 + $0x60] sm:$0xf]  ;;  %9390 = vmatprep.mubr.bf16.mxu1 %v9779_v29  ;;  %4100 = vst [vmem:[#allocation3 + $0xf4] sm:$0xf] %v4052_v47  ;;  %v3958_v8 = vld [vmem:[#allocation2 + $0x58] sm:$0xf] }
 0x2a2   : > { %v3603_v52 = vmax.f32 %v3555_v36, 0.0  ;;  %4101 = vst [vmem:[#allocation3 + $0x100] sm:$0xf] %v4053_v10  ;;  %v3959_v53 = vld [vmem:[#allocation2 + $0x5c] sm:$0xf]  ;;  %v11847_v3 = vpop.f32.mrb[187].mxu0  ;;  %v3349_v48 = vsel %vm3329_vm1, %v3308_v63, %v3309_v60 }
 0x2a3   : > { %v3310_v45 = vrot.slane %v3206_v14, 1  ;;  %4006 = vst [vmem:[#allocation3 + $0x108] sm:$0xf] %v3958_v8  ;;  %4007 = vst [vmem:[#allocation3 + $0x114] sm:$0xf] %v3959_v53  ;;  %v3405_v42 = vadd.f32 %v3349_v48, %v11378_v56  ;;  %v2985_v16 = vpop.f32.mrb[204].mxu1 }
 0x2a4   : > { %v4054_v26 = vld [vmem:[#allocation2 + $0x64] sm:$0xf]  ;;  %v3960_v6 = vld [vmem:[#allocation2 + $0x60] sm:$0xf]  ;;  %v3657_v30 = vsel %vm242_vm2, %v3603_v52, 0.0  ;;  %v11858_v46 = vpop.f32.mrb[188].mxu0  ;;  %v3211_v56 = vadd.f32 %v11746_v7, %v2985_v16 }
 0x2a5   : > { %v9785_v61 = vld [vmem:[#allocation3 + $0xa8] ss:$12 sps:$4 sm:$0xff]   ;;  %4102 = vst [vmem:[#allocation3 + $0x10c] sm:$0xf] %v4054_v26  ;;  %4008 = vst [vmem:[#allocation3 + $0x120] sm:$0xf] %v3960_v6  ;;  %v8641_v44 = vpack.c.bf16 %v3657_v30, %v3602_v24  ;;  %v3348_v18 = vsel %vm3329_vm1, %v3309_v60, %v3310_v45  ;;  %v3556_v63 = vadd.f32 %v11842_v11, %v3405_v42 }
 0x2a6   : > { %v9784_v37 = vld [vmem:[#allocation3 + $0xe0] ss:$12 sps:$4 sm:$0xff]   ;;  %v9786_v38 = vld [vmem:[#allocation3 + $0xc4] ss:$12 sps:$4 sm:$0xff]   ;;  %v3406_v1 = vadd.f32 %v3348_v18, %v11401_v55  ;;  %v4150_v36 = vld [vmem:[#allocation2 + $0x6c] sm:$0xf]  ;;  %4987 = vmatmul.mubr.bf16.gmra.mrb[220].mxu0 %v9785_v61 }
 0x2a7   : > { %v4149_v59 = vld [vmem:[#allocation2 + $0x68] sm:$0xf]  ;;  %8917 = vst [vmem:[#allocation2 + $0x70] sm:$0xff] %v8641_v44   ;;  %v2987_v29 = vpop.f32.mrb[205].mxu1  ;;  %9391 = vmatmul.mubr.bf16.gmra.mrb[0].mxu1 %v9784_v37  ;;  %4198 = vst [vmem:[#allocation3 + $0x104] sm:$0xf] %v4150_v36  ;;  %4994 = vmatprep.mubr.bf16.mxu0 %v9786_v38 }
 0x2a8   : > { %4197 = vst [vmem:[#allocation3 + $0xf8] sm:$0xf] %v4149_v59  ;;  %v4055_v24 = vld [vmem:[#allocation2 + $0x68] sm:$0xf]  ;;  %v3961_v60 = vld [vmem:[#allocation2 + $0x64] sm:$0xf]  ;;  %v3557_v47 = vadd.f32 %v11842_v11, %v3406_v1 }
 0x2a9   : > { %v11861_v14 = vpop.f32.mrb[189].mxu0  ;;  %v3604_v33 = vmax.f32 %v3556_v63, 0.0  ;;  %v2988_v55 = vpop.f32.mrb[206].mxu1  ;;  %4103 = vst [vmem:[#allocation3 + $0x118] sm:$0xf] %v4055_v24  ;;  %v3311_v8 = vrot.slane %v3211_v56, 1 }
 0x2aa   : > { %4009 = vst [vmem:[#allocation3 + $0x12c] sm:$0xf] %v3961_v60  ;;  %v4056_v10 = vld [vmem:[#allocation2 + $0x6c] sm:$0xf]  ;;  %v3962_v52 = vld [vmem:[#allocation2 + $0x68] sm:$0xf]  ;;  %v3214_v7 = vadd.f32 %v11757_v15, %v2988_v55 }
 0x2ab   : > { %v2990_v53 = vpop.f32.mrb[207].mxu1  ;;  %4104 = vst [vmem:[#allocation3 + $0x124] sm:$0xf] %v4056_v10  ;;  %4010 = vst [vmem:[#allocation3 + $0x138] sm:$0xf] %v3962_v52  ;;  %v3658_v48 = vsel %vm237_vm3, %v3604_v33, 0.0  ;;  %v3347_v30 = vsel %vm3329_vm1, %v3310_v45, %v3311_v8 }
 0x2ac   : > { %v3605_v26 = vmax.f32 %v3557_v47, 0.0  ;;  %v3963_v6 = vld [vmem:[#allocation2 + $0x6c] sm:$0xf]  ;;  %v3312_v42 = vrot.slane %v3214_v7, 1  ;;  %v11869_v61 = vpop.f32.mrb[190].mxu0  ;;  %v3407_v18 = vadd.f32 %v3347_v30, %v11414_v20  ;;  %v9844_v38 = vld [vmem:[%s13294_s3 + $0xb0] sm:$0xff]  }
 0x2ad   : > { %4011 = vst [vmem:[#allocation3 + $0x144] sm:$0xf] %v3963_v6  ;;  %v9841_v15 = vld [vmem:[%s13294_s3 + $0x48] sm:$0xff]   ;;  %v11875_v37 = vpop.f32.mrb[191].mxu0  ;;  %v9789_v63 = vld [vmem:[#allocation3 + $0xc0] ss:$12 sps:$4 sm:$0xff]   ;;  %9434 = vmatprep.subr.bf16.mxu0 %v9844_v38 }
 0x2ae   : > { %v8646_v44 = vpack.c.bf16 %v3605_v26, %v3658_v48  ;;  %v3346_v45 = vsel %vm3329_vm1, %v3311_v8, %v3312_v42  ;;  %v9790_v1 = vld [vmem:[#allocation3 + $0xdc] ss:$12 sps:$4 sm:$0xff]   ;;  %5655 = vmatpush1.bf16.msra.mxu1 %v9841_v15  ;;  %v4151_v59 = vld [vmem:[#allocation2 + $0x70] sm:$0xf]  ;;  %v3558_v20 = vadd.f32 %v11842_v11, %v3407_v18  ;;  %v2993_v29 = vpop.f32.mrb[208].mxu1  ;;  %9435 = vmatpush3.bf16.msra.mxu0 %v9844_v38  ;;  %v9862_v26 = vld [vmem:[%s13294_s3 + $0xb8] sm:$0xff]  }
 0x2af   : > { %v9843_v16 = vld [vmem:[%s13294_s3 + $0x50] sm:$0xff]   ;;  %v3408_v56 = vadd.f32 %v3346_v45, %v11417_v12  ;;  %5656 = vmatprep.subr.bf16.mxu1 %v13428_v62  ;;  %4199 = vst [vmem:[#allocation3 + $0x110] sm:$0xf] %v4151_v59  ;;  %v3219_v24 = vadd.f32 %v11775_v43, %v2993_v29  ;;  %v2995_v60 = vpop.f32.mrb[209].mxu1  ;;  %4995 = vmatmul.mubr.bf16.gmra.mrb[224].mxu0 %v9789_v63  ;;  %v9848_v43 = vld [vmem:[%s13294_s3 + $0x58] sm:$0xff]  }
 0x2b0   : > { %v4152_v36 = vld [vmem:[#allocation2 + $0x74] sm:$0xf]  ;;  %8918 = vst [vmem:[#allocation2 + $0x78] sm:$0xff] %v8646_v44   ;;  %v3606_v33 = vmax.f32 %v3558_v20, 0.0  ;;  %v2996_v55 = vpop.f32.mrb[210].mxu1  ;;  %5002 = vmatprep.mubr.bf16.mxu0 %v9790_v1  ;;  %9436 = vmatprep.subr.bf16.mxu0 %v9862_v26 }
 0x2b1   : > { %4200 = vst [vmem:[#allocation3 + $0x11c] sm:$0xf] %v4152_v36  ;;  %v3559_v47 = vadd.f32 %v11842_v11, %v3408_v56  ;;  %v9788_v10 = vld [vmem:[#allocation3 + $0xf8] ss:$12 sps:$4 sm:$0xff]   ;;  %v3313_v52 = vrot.slane %v3219_v24, 1  ;;  %v11891_v8 = vadd.f32 %v11782_v54, %v2996_v55  ;;  %v2998_v12 = vpop.f32.mrb[211].mxu1 }
 0x2b2   : > { %v4057_v7 = vld [vmem:[#allocation2 + $0x70] sm:$0xf]  ;;  %5657 = vmatpush1.bf16.msra.mxu1 %v9843_v16  ;;  %9394 = vmatprep.mubr.bf16.mxu1 %v9788_v10  ;;  %v4058_v48 = vld [vmem:[#allocation2 + $0x74] sm:$0xf]  ;;  %v3660_v44 = vsel %vm242_vm2, %v3606_v33, 0.0  ;;  %v3001_v56 = vpop.f32.mrb[212].mxu1 }
 0x2b3   : > { %v3607_v53 = vmax.f32 %v3559_v47, 0.0  ;;  %4105 = vst [vmem:[#allocation3 + $0x130] sm:$0xf] %v4057_v7  ;;  %5658 = vmatprep.subr.bf16.mxu1 %v13428_v62  ;;  %v3345_v54 = vsel %vm3329_vm1, %v3312_v42, %v3313_v52  ;;  %v3314_v6 = vrot.slane %v11891_v8, 1  ;;  %4106 = vst [vmem:[#allocation3 + $0x13c] sm:$0xf] %v4058_v48  ;;  %9437 = vmatpush3.bf16.msra.mxu0 %v9862_v26 }
 0x2b4   : > { %v3964_v30 = vld [vmem:[#allocation2 + $0x70] sm:$0xf]  ;;  %v3965_v15 = vld [vmem:[#allocation2 + $0x74] sm:$0xf]  ;;  %v3409_v38 = vadd.f32 %v3345_v54, %v11410_v39  ;;  %v9795_v1 = vld [vmem:[#allocation3 + $0xf4] ss:$12 sps:$4 sm:$0xff]   ;;  %6519 = vmatprep.subr.bf16.mxu0 %v13428_v62  ;;  %v3227_v24 = vadd.f32 %v11770_v2, %v3001_v56 }
 0x2b5   : > { %v3661_v18 = vsel %vm237_vm3, %v3607_v53, 0.0  ;;  %v9793_v45 = vld [vmem:[#allocation3 + $0xd8] ss:$12 sps:$4 sm:$0xff]   ;;  %4012 = vst [vmem:[#allocation3 + $0x150] sm:$0xf] %v3964_v30  ;;  %v3344_v42 = vsel %vm3329_vm1, %v3313_v52, %v3314_v6  ;;  %v9851_v39 = vld [vmem:[%s13294_s3 + $0x60] sm:$0xff]  }
 0x2b6   : > { %4013 = vst [vmem:[#allocation3 + $0x15c] sm:$0xf] %v3965_v15  ;;  %v8651_v63 = vpack.c.bf16 %v3661_v18, %v3660_v44  ;;  %5659 = vmatpush1.bf16.msra.mxu1 %v9848_v43  ;;  %v3410_v20 = vadd.f32 %v3344_v42, %v11431_v4  ;;  %v3560_v29 = vadd.f32 %v11842_v11, %v3409_v38  ;;  %v3003_v60 = vpop.f32.mrb[213].mxu1  ;;  %v3315_v8 = vrot.slane %v3227_v24, 1  ;;  %v9855_v43 = vld [vmem:[%s13294_s3 + $0x68] sm:$0xff]   ;;  %v9857_v15 = vld [vmem:[%s13294_s3 + $0x70] sm:$0xff]  }
 0x2b7   : > { %v4153_v16 = vld [vmem:[#allocation2 + $0x78] sm:$0xf]  ;;  %v4154_v59 = vld [vmem:[#allocation2 + $0x7c] sm:$0xf]  ;;  %5660 = vmatprep.subr.bf16.mxu1 %v13428_v62  ;;  %v3004_v55 = vpop.f32.mrb[214].mxu1  ;;  %5003 = vmatmul.mubr.bf16.gmra.mrb[228].mxu0 %v9793_v45 }
 0x2b8   : > { %v4059_v36 = vld [vmem:[#allocation2 + $0x78] sm:$0xf]  ;;  %4201 = vst [vmem:[#allocation3 + $0x128] sm:$0xf] %v4153_v16  ;;  %4202 = vst [vmem:[#allocation3 + $0x134] sm:$0xf] %v4154_v59  ;;  %v3561_v47 = vadd.f32 %v11842_v11, %v3410_v20  ;;  %v3230_v12 = vadd.f32 %v11779_v19, %v3004_v55  ;;  %5010 = vmatprep.mubr.bf16.mxu0 %v9795_v1  ;;  %v3343_v48 = vsel %vm3329_vm1, %v3314_v6, %v3315_v8 }
 0x2b9   : > { %4107 = vst [vmem:[#allocation3 + $0x148] sm:$0xf] %v4059_v36  ;;  %8919 = vst [vmem:[#allocation2 + $0x80] sm:$0xff] %v8651_v63   ;;  %v11918_v33 = vld [vmem:[#allocation3 + $0x110] ss:$12 sps:$4 sm:$0xff]   ;;  %v3006_v7 = vpop.f32.mrb[215].mxu1  ;;  %v3411_v54 = vadd.f32 %v3343_v48, %v11442_v5 }
 0x2ba   : > { %v4060_v4 = vld [vmem:[#allocation2 + $0x7c] sm:$0xf]  ;;  %v3966_v10 = vld [vmem:[#allocation2 + $0x78] sm:$0xf]  ;;  %9395 = vmatmul.mubr.bf16.gmra.mrb[4].mxu1 %v11918_v33  ;;  %v3609_v2 = vmax.f32 %v3561_v47, 0.0  ;;  %v3608_v53 = vmax.f32 %v3560_v29, 0.0 }
 0x2bb   : > { %4108 = vst [vmem:[#allocation3 + $0x154] sm:$0xf] %v4060_v4  ;;  %v3967_v52 = vld [vmem:[#allocation2 + $0x7c] sm:$0xf]  ;;  %4014 = vst [vmem:[#allocation3 + $0x168] sm:$0xf] %v3966_v10  ;;  %5661 = vmatpush1.bf16.msra.mxu1 %v9851_v39  ;;  %v3562_v63 = vadd.f32 %v11842_v11, %v3411_v54 }
 0x2bc   : > { %4015 = vst [vmem:[#allocation3 + $0x174] sm:$0xf] %v3967_v52  ;;  %v3316_v26 = vrot.slane %v3230_v12, 1  ;;  %5662 = vmatprep.subr.bf16.mxu1 %v13428_v62  ;;  %v3663_v19 = vsel %vm242_vm2, %v3609_v2, 0.0  ;;  %v9798_v30 = vld [vmem:[#allocation3 + $0xf0] ss:$12 sps:$4 sm:$0xff]  }
 0x2bd   : > { %v8656_v44 = vpack.c.bf16 %v3663_v19, %v3608_v53  ;;  %v3009_v1 = vpop.f32.mrb[216].mxu1  ;;  %v11943_v59 = vld [vmem:[#allocation3 + $0x10c] ss:$12 sps:$4 sm:$0xff]   ;;  %v3610_v36 = vmax.f32 %v3562_v63, 0.0  ;;  %v9861_v10 = vld [vmem:[%s13294_s3 + $0x78] sm:$0xff]  }
 0x2be   : > { %v3342_v18 = vsel %vm3329_vm1, %v3315_v8, %v3316_v26  ;;  %v3235_v5 = vadd.f32 %v11801_v28, %v3009_v1  ;;  %v3011_v16 = vpop.f32.mrb[217].mxu1  ;;  %v11960_v8 = vld [vmem:[%s13294_s3 + $0x200] sm:$0xff]   ;;  %v11967_v53 = vld [vmem:[#allocation3 + $0x124] ss:$12 sps:$4 sm:$0xff]  }
 0x2bf   : > { %v11937_v38 = vld [vmem:[#allocation3 + $0x128] ss:$12 sps:$4 sm:$0xff]   ;;  %v3412_v42 = vadd.f32 %v3342_v18, %v11445_v32  ;;  %5663 = vmatpush1.bf16.msra.mxu1 %v9855_v43  ;;  %8920 = vst [vmem:[#allocation2 + $0x88] sm:$0xff] %v8656_v44   ;;  %v3012_v56 = vpop.f32.mrb[218].mxu1  ;;  %5011 = vmatmul.mubr.bf16.gmra.mrb[232].mxu0 %v9798_v30  ;;  %v3664_v47 = vsel %vm237_vm3, %v3610_v36, 0.0 }
 0x2c0   : > { %v4155_v6 = vld [vmem:[#allocation2 + $0x80] sm:$0xf]  ;;  %v4156_v45 = vld [vmem:[#allocation2 + $0x84] sm:$0xf]  ;;  %9398 = vmatprep.mubr.bf16.mxu1 %v11937_v38  ;;  %5664 = vmatprep.subr.bf16.mxu1 %v13428_v62  ;;  %v3317_v29 = vrot.slane %v3235_v5, 1  ;;  %v3238_v24 = vadd.f32 %v11808_v9, %v3012_v56  ;;  %v3014_v28 = vpop.f32.mrb[219].mxu1 }
 0x2c1   : > { %4203 = vst [vmem:[#allocation3 + $0x140] sm:$0xf] %v4155_v6  ;;  %4204 = vst [vmem:[#allocation3 + $0x14c] sm:$0xf] %v4156_v45  ;;  %v3563_v20 = vadd.f32 %v11842_v11, %v3412_v42  ;;  %v4061_v32 = vld [vmem:[#allocation2 + $0x80] sm:$0xf]  ;;  %5018 = vmatprep.mubr.bf16.mxu0 %v11943_v59 }
 0x2c2   : > { %v4062_v39 = vld [vmem:[#allocation2 + $0x84] sm:$0xf]  ;;  %4109 = vst [vmem:[#allocation3 + $0x160] sm:$0xf] %v4061_v32  ;;  %v3968_v60 = vld [vmem:[#allocation2 + $0x80] sm:$0xf]  ;;  %v3341_v9 = vsel %vm3329_vm1, %v3316_v26, %v3317_v29 }
 0x2c3   : > { %4110 = vst [vmem:[#allocation3 + $0x16c] sm:$0xf] %v4062_v39  ;;  %v3969_v4 = vld [vmem:[#allocation2 + $0x84] sm:$0xf]  ;;  %v3611_v55 = vmax.f32 %v3563_v20, 0.0  ;;  %5665 = vmatpush1.bf16.msra.mxu1 %v9857_v15  ;;  %v3318_v52 = vrot.slane %v3238_v24, 1  ;;  %v3413_v7 = vadd.f32 %v3341_v9, %v11438_v41 }
 0x2c4   : > { %4016 = vst [vmem:[#allocation3 + $0x180] sm:$0xf] %v3968_v60  ;;  %4017 = vst [vmem:[#allocation3 + $0x18c] sm:$0xf] %v3969_v4  ;;  %5666 = vmatprep.subr.bf16.mxu1 %v13428_v62  ;;  %v11965_v43 = vld [vmem:[#allocation3 + $0x108] ss:$12 sps:$4 sm:$0xff]  }
 0x2c5   : > { %v8661_v12 = vpack.c.bf16 %v3611_v55, %v3664_v47  ;;  %v3340_v2 = vsel %vm3329_vm1, %v3317_v29, %v3318_v52  ;;  %v3564_v48 = vadd.f32 %v11842_v11, %v3413_v7  ;;  %v3017_v19 = vpop.f32.mrb[220].mxu1  ;;  %v11987_v29 = vld [vmem:[#allocation3 + $0x120] ss:$12 sps:$4 sm:$0xff]   ;;  %v11991_v47 = vld [vmem:[#allocation3 + $0x13c] ss:$12 sps:$4 sm:$0xff]  }
 0x2c6   : > { %v3414_v26 = vadd.f32 %v3340_v2, %v11459_v58  ;;  %v3243_v54 = vadd.f32 %v11795_v40, %v3017_v19  ;;  %v3019_v30 = vpop.f32.mrb[221].mxu1  ;;  %v4157_v41 = vld [vmem:[#allocation2 + $0x88] sm:$0xf]  ;;  %v4158_v45 = vld [vmem:[#allocation2 + $0x8c] sm:$0xf] }
 0x2c7   : > { %8921 = vst [vmem:[#allocation2 + $0x90] sm:$0xff] %v8661_v12   ;;  %5667 = vmatpush1.bf16.msra.mxu1 %v9861_v10  ;;  %v3612_v44 = vmax.f32 %v3564_v48, 0.0  ;;  %v3020_v6 = vpop.f32.mrb[222].mxu1  ;;  %5019 = vmatmul.mubr.bf16.gmra.mrb[236].mxu0 %v11965_v43  ;;  %4205 = vst [vmem:[#allocation3 + $0x158] sm:$0xf] %v4157_v41 }
 0x2c8   : > { %v11972_v15 = vld [vmem:[#allocation3 + $0x140] ss:$12 sps:$4 sm:$0xff]   ;;  %9486 = vmatprep.subr.bf16.mxu1 %v11960_v8  ;;  %v3565_v18 = vadd.f32 %v11842_v11, %v3414_v26  ;;  %v3319_v63 = vrot.slane %v3243_v54, 1  ;;  %v3246_v58 = vadd.f32 %v11805_v13, %v3020_v6  ;;  %5026 = vmatprep.mubr.bf16.mxu0 %v11967_v53  ;;  %v3022_v40 = vpop.f32.mrb[223].mxu1  ;;  %4206 = vst [vmem:[#allocation3 + $0x164] sm:$0xf] %v4158_v45 }
 0x2c9   : > { %9399 = vmatmul.mubr.bf16.gmra.mrb[8].mxu1 %v11972_v15  ;;  %v4063_v1 = vld [vmem:[#allocation2 + $0x88] sm:$0xf]  ;;  %v4064_v5 = vld [vmem:[#allocation2 + $0x8c] sm:$0xf]  ;;  %v3666_v13 = vsel %vm242_vm2, %v3612_v44, 0.0  ;;  %v3025_v9 = vpop.f32.mrb[224].mxu1 }
 0x2ca   : > { %v3613_v42 = vmax.f32 %v3565_v18, 0.0  ;;  %v3339_v16 = vsel %vm3329_vm1, %v3318_v52, %v3319_v63  ;;  %v3320_v36 = vrot.slane %v3246_v58, 1  ;;  %4111 = vst [vmem:[#allocation3 + $0x178] sm:$0xf] %v4063_v1  ;;  %4112 = vst [vmem:[#allocation3 + $0x184] sm:$0xf] %v4064_v5  ;;  %v3251_v7 = vadd.f32 %v11832_v49, %v3025_v9 }
 0x2cb   : > { %v3970_v20 = vld [vmem:[#allocation2 + $0x88] sm:$0xf]  ;;  %v3971_v56 = vld [vmem:[#allocation2 + $0x8c] sm:$0xf]  ;;  %v3415_v39 = vadd.f32 %v3339_v16, %v11470_v35  ;;  %v3027_v2 = vpop.f32.mrb[225].mxu1 }
 0x2cc   : > { %v3667_v32 = vsel %vm237_vm3, %v3613_v42, 0.0  ;;  %4018 = vst [vmem:[#allocation3 + $0x198] sm:$0xf] %v3970_v20  ;;  %4019 = vst [vmem:[#allocation3 + $0x1a4] sm:$0xf] %v3971_v56  ;;  %v3338_v4 = vsel %vm3329_vm1, %v3319_v63, %v3320_v36  ;;  %v3028_v19 = vpop.f32.mrb[226].mxu1 }
 0x2cd   : > { %v8666_v60 = vpack.c.bf16 %v3667_v32, %v3666_v13  ;;  %v3416_v10 = vadd.f32 %v3338_v4, %v11473_v50  ;;  %v3566_v12 = vadd.f32 %v11842_v11, %v3415_v39  ;;  %v3321_v50 = vrot.slane %v3251_v7, 1  ;;  %v3030_v41 = vpop.f32.mrb[227].mxu1  ;;  %v12008_v58 = vld [vmem:[#allocation3 + $0x138] ss:$12 sps:$4 sm:$0xff]  }
 0x2ce   : > { %v4159_v24 = vld [vmem:[#allocation2 + $0x90] sm:$0xf]  ;;  %v4160_v28 = vld [vmem:[#allocation2 + $0x94] sm:$0xf]  ;;  %v3254_v30 = vadd.f32 %v11847_v3, %v3028_v19  ;;  %v3033_v16 = vpop.f32.mrb[228].mxu1 }
 0x2cf   : > { %v4065_v55 = vld [vmem:[#allocation2 + $0x90] sm:$0xf]  ;;  %4207 = vst [vmem:[#allocation3 + $0x170] sm:$0xf] %v4159_v24  ;;  %4208 = vst [vmem:[#allocation3 + $0x17c] sm:$0xf] %v4160_v28  ;;  %v3567_v26 = vadd.f32 %v11842_v11, %v3416_v10  ;;  %5027 = vmatmul.mubr.bf16.gmra.mrb[240].mxu0 %v11987_v29  ;;  %v3337_v18 = vsel %vm3329_vm1, %v3320_v36, %v3321_v50  ;;  %v3259_v56 = vadd.f32 %v11827_v34, %v3033_v16 }
 0x2d0   : > { %4113 = vst [vmem:[#allocation3 + $0x190] sm:$0xf] %v4065_v55  ;;  %v4066_v35 = vld [vmem:[#allocation2 + $0x94] sm:$0xf]  ;;  %v3972_v52 = vld [vmem:[#allocation2 + $0x90] sm:$0xf]  ;;  %5034 = vmatprep.mubr.bf16.mxu0 %v11991_v47  ;;  %v3417_v63 = vadd.f32 %v3337_v18, %v11466_v22 }
 0x2d1   : > { %8922 = vst [vmem:[#allocation2 + $0x98] sm:$0xff] %v8666_v60   ;;  %4114 = vst [vmem:[#allocation3 + $0x19c] sm:$0xf] %v4066_v35  ;;  %v3973_v48 = vld [vmem:[#allocation2 + $0x94] sm:$0xf]  ;;  %v3615_v44 = vmax.f32 %v3567_v26, 0.0 }
 0x2d2   : > { %4020 = vst [vmem:[#allocation3 + $0x1b0] sm:$0xf] %v3972_v52  ;;  %v11997_v54 = vld [vmem:[#allocation3 + $0x158] ss:$12 sps:$4 sm:$0xff]   ;;  %4021 = vst [vmem:[#allocation3 + $0x1bc] sm:$0xf] %v3973_v48  ;;  %v3568_v1 = vadd.f32 %v11842_v11, %v3417_v63 }
 0x2d3   : > { %9402 = vmatprep.mubr.bf16.mxu1 %v11997_v54  ;;  %v3614_v49 = vmax.f32 %v3566_v12, 0.0  ;;  %v3322_v6 = vrot.slane %v3254_v30, 1  ;;  %v3669_v45 = vsel %vm242_vm2, %v3615_v44, 0.0  ;;  %v3035_v13 = vpop.f32.mrb[229].mxu1  ;;  %v12018_v22 = vld [vmem:[#allocation3 + $0x154] ss:$12 sps:$4 sm:$0xff]  }
 0x2d4   : > { %v3616_v32 = vmax.f32 %v3568_v1, 0.0  ;;  %v3036_v24 = vpop.f32.mrb[230].mxu1  ;;  %v3323_v60 = vrot.slane %v3259_v56, 1  ;;  %v12031_v48 = vld [vmem:[#allocation3 + $0x150] ss:$12 sps:$4 sm:$0xff]  }
 0x2d5   : > { %v8671_v40 = vpack.c.bf16 %v3669_v45, %v3614_v49  ;;  %v3336_v3 = vsel %vm3329_vm1, %v3321_v50, %v3322_v6  ;;  %v3262_v4 = vadd.f32 %v11837_v0, %v3036_v24  ;;  %v3038_v34 = vpop.f32.mrb[231].mxu1  ;;  %v12033_v26 = vld [vmem:[#allocation3 + $0x16c] ss:$12 sps:$4 sm:$0xff]   ;;  %v12052_v24 = vld [vmem:[#allocation3 + $0x168] ss:$12 sps:$4 sm:$0xff]  }
 0x2d6   : > { %v12012_v42 = vld [vmem:[#allocation3 + $0x170] ss:$12 sps:$4 sm:$0xff]   ;;  %v3418_v5 = vadd.f32 %v3336_v3, %v11487_v17  ;;  %v3670_v9 = vsel %vm237_vm3, %v3616_v32, 0.0  ;;  %v3335_v52 = vsel %vm3329_vm1, %v3322_v6, %v3323_v60  ;;  %v3041_v44 = vpop.f32.mrb[232].mxu1 }
 0x2d7   : > { %8923 = vst [vmem:[#allocation2 + $0xa0] sm:$0xff] %v8671_v40   ;;  %9403 = vmatmul.mubr.bf16.gmra.mrb[12].mxu1 %v12012_v42  ;;  %5035 = vmatmul.mubr.bf16.gmra.mrb[244].mxu0 %v12008_v58  ;;  %v3324_v12 = vrot.slane %v3262_v4, 1  ;;  %v3419_v0 = vadd.f32 %v3335_v52, %v11498_v23  ;;  %v3267_v49 = vadd.f32 %v11861_v14, %v3041_v44  ;;  %v3043_v23 = vpop.f32.mrb[233].mxu1  ;;  %v13429_v32 = vld [vmem:[#allocation16_spill] sm:$0xff] }
 0x2d8   : > { %v4161_v36 = vld [vmem:[#allocation2 + $0x98] sm:$0xf]  ;;  %v4162_v20 = vld [vmem:[#allocation2 + $0x9c] sm:$0xf]  ;;  %v3569_v39 = vadd.f32 %v11842_v11, %v3418_v5  ;;  %5042 = vmatprep.mubr.bf16.mxu0 %v12018_v22  ;;  %v3044_v45 = vpop.f32.mrb[234].mxu1 }
 0x2d9   : > { %4209 = vst [vmem:[#allocation3 + $0x188] sm:$0xf] %v4161_v36  ;;  %4210 = vst [vmem:[#allocation3 + $0x194] sm:$0xf] %v4162_v20  ;;  %v4067_v17 = vld [vmem:[#allocation2 + $0x98] sm:$0xf]  ;;  %v3334_v2 = vsel %vm3329_vm1, %v3323_v60, %v3324_v12  ;;  %v3570_v30 = vadd.f32 %v11842_v11, %v3419_v0  ;;  %v3270_v3 = vadd.f32 %v11875_v37, %v3044_v45 }
 0x2da   : > { %v4068_v28 = vld [vmem:[#allocation2 + $0x9c] sm:$0xf]  ;;  %4115 = vst [vmem:[#allocation3 + $0x1a8] sm:$0xf] %v4067_v17  ;;  %v3974_v55 = vld [vmem:[#allocation2 + $0x98] sm:$0xf]  ;;  %v3420_v41 = vadd.f32 %v3334_v2, %v11501_v51 }
 0x2db   : > { %4116 = vst [vmem:[#allocation3 + $0x1b4] sm:$0xf] %v4068_v28  ;;  %v3975_v10 = vld [vmem:[#allocation2 + $0x9c] sm:$0xf]  ;;  %v3617_v35 = vmax.f32 %v3569_v39, 0.0  ;;  %v3618_v18 = vmax.f32 %v3570_v30, 0.0 }
 0x2dc   : > { %4022 = vst [vmem:[#allocation3 + $0x1c8] sm:$0xf] %v3974_v55  ;;  %4023 = vst [vmem:[#allocation3 + $0x1d4] sm:$0xf] %v3975_v10  ;;  %v3571_v6 = vadd.f32 %v11842_v11, %v3420_v41  ;;  %v3325_v40 = vrot.slane %v3267_v49, 1  ;;  %v3046_v51 = vpop.f32.mrb[235].mxu1 }
 0x2dd   : > { %v8676_v7 = vpack.c.bf16 %v3617_v35, %v3670_v9  ;;  %v3326_v36 = vrot.slane %v3270_v3, 1  ;;  %v3672_v13 = vsel %vm242_vm2, %v3618_v18, 0.0  ;;  %v12056_v60 = vld [vmem:[#allocation3 + $0x184] ss:$12 sps:$4 sm:$0xff]   ;;  %v3049_v9 = vpop.f32.mrb[236].mxu1 }
 0x2de   : > { %v4163_v19 = vld [vmem:[#allocation2 + $0xa0] sm:$0xf]  ;;  %v4164_v50 = vld [vmem:[#allocation2 + $0xa4] sm:$0xf]  ;;  %v3619_v1 = vmax.f32 %v3571_v6, 0.0  ;;  %v3333_v16 = vsel %vm3329_vm1, %v3324_v12, %v3325_v40  ;;  %v3275_v52 = vadd.f32 %v11858_v46, %v3049_v9  ;;  %v3051_v12 = vpop.f32.mrb[237].mxu1 }
 0x2df   : > { %8924 = vst [vmem:[#allocation2 + $0xa8] sm:$0xff] %v8676_v7   ;;  %4211 = vst [vmem:[#allocation3 + $0x1a0] sm:$0xf] %v4163_v19  ;;  %5043 = vmatmul.mubr.bf16.gmra.mrb[248].mxu0 %v12031_v48  ;;  %v4069_v5 = vld [vmem:[#allocation2 + $0xa0] sm:$0xf]  ;;  %v3421_v39 = vadd.f32 %v3333_v16, %v13429_v32  ;;  %v3332_v28 = vsel %vm3329_vm1, %v3325_v40, %v3326_v36  ;;  %v3052_v19 = vpop.f32.mrb[238].mxu1 }
 0x2e0   : > { %4212 = vst [vmem:[#allocation3 + $0x1ac] sm:$0xf] %v4164_v50  ;;  %v12039_v63 = vld [vmem:[#allocation3 + $0x188] ss:$12 sps:$4 sm:$0xff]   ;;  %5050 = vmatprep.mubr.bf16.mxu0 %v12033_v26  ;;  %v4070_v14 = vld [vmem:[#allocation2 + $0xa4] sm:$0xf]  ;;  %v3422_v10 = vadd.f32 %v3332_v28, %v11515_v57  ;;  %v3278_v41 = vadd.f32 %v11869_v61, %v3052_v19 }
 0x2e1   : > { %9406 = vmatprep.mubr.bf16.mxu1 %v12039_v63  ;;  %4117 = vst [vmem:[#allocation3 + $0x1c0] sm:$0xf] %v4069_v5  ;;  %4118 = vst [vmem:[#allocation3 + $0x1cc] sm:$0xf] %v4070_v14  ;;  %v3976_v20 = vld [vmem:[#allocation2 + $0xa0] sm:$0xf]  ;;  %v3572_v35 = vadd.f32 %v11842_v11, %v3421_v39 }
 0x2e2   : > { %v3977_v56 = vld [vmem:[#allocation2 + $0xa4] sm:$0xf]  ;;  %v3673_v37 = vsel %vm237_vm3, %v3619_v1, 0.0  ;;  %4024 = vst [vmem:[#allocation3 + $0x1e0] sm:$0xf] %v3976_v20  ;;  %v3573_v2 = vadd.f32 %v11842_v11, %v3422_v10  ;;  %v3327_v30 = vrot.slane %v3275_v52, 1 }
 0x2e3   : > { %4025 = vst [vmem:[#allocation3 + $0x1ec] sm:$0xf] %v3977_v56  ;;  %v8681_v17 = vpack.c.bf16 %v3673_v37, %v3672_v13  ;;  %v3054_v46 = vpop.f32.mrb[239].mxu1  ;;  %v3620_v49 = vmax.f32 %v3572_v35, 0.0  ;;  %v3328_v18 = vrot.slane %v3278_v41, 1  ;;  %v13430_v45 = vld [vmem:[#allocation15_spill] sm:$0xff] }
 0x2e4   : > { %v3621_v44 = vmax.f32 %v3573_v2, 0.0  ;;  %v3331_v23 = vsel %vm3329_vm1, %v3326_v36, %v3327_v30  ;;  %v12073_v3 = vld [vmem:[#allocation3 + $0x180] ss:$12 sps:$4 sm:$0xff]  }
 0x2e5   : > { %8925 = vst [vmem:[#allocation2 + $0xb0] sm:$0xff] %v8681_v17   ;;  %v3423_v40 = vadd.f32 %v3331_v23, %v13430_v45  ;;  %v3330_v51 = vsel %vm3329_vm1, %v3327_v30, %v3328_v18  ;;  %v13431_v1 = vld [vmem:[#allocation22_spill] sm:$0xff]  ;;  %v13433_v13 = vld [vmem:[#allocation17_spill] sm:$0xff] }
 0x2e6   : > { %v4165_v4 = vld [vmem:[#allocation2 + $0xa8] sm:$0xf]  ;;  %v4166_v34 = vld [vmem:[#allocation2 + $0xac] sm:$0xf]  ;;  %v3675_v6 = vsel %vm242_vm2, %v3621_v44, 0.0  ;;  %v13432_v5 = vrot.slane %v13431_v1, 1  ;;  %v3424_v37 = vadd.f32 %v3330_v51, %v13433_v13 }
 0x2e7   : > { %v4071_v55 = vld [vmem:[#allocation2 + $0xa8] sm:$0xf]  ;;  %4213 = vst [vmem:[#allocation3 + $0x1b8] sm:$0xf] %v4165_v4  ;;  %4214 = vst [vmem:[#allocation3 + $0x1c4] sm:$0xf] %v4166_v34  ;;  %5051 = vmatmul.mubr.bf16.gmra.mrb[252].mxu0 %v12052_v24  ;;  %v8686_v61 = vpack.c.bf16 %v3675_v6, %v3620_v49  ;;  %v3574_v56 = vadd.f32 %v11842_v11, %v3423_v40 }
 0x2e8   : > { %4119 = vst [vmem:[#allocation3 + $0x1d8] sm:$0xf] %v4071_v55  ;;  %v12061_v7 = vld [vmem:[#allocation3 + $0x1a0] ss:$12 sps:$4 sm:$0xff]   ;;  %v4072_v0 = vld [vmem:[#allocation2 + $0xac] sm:$0xf]  ;;  %5058 = vmatprep.mubr.bf16.mxu0 %v12056_v60  ;;  %v3377_v14 = vsel %vm3329_vm1, %v3328_v18, %v13432_v5  ;;  %v3575_v34 = vadd.f32 %v11842_v11, %v3424_v37 }
 0x2e9   : > { %4120 = vst [vmem:[#allocation3 + $0x1e4] sm:$0xf] %v4072_v0  ;;  %v3978_v57 = vld [vmem:[#allocation2 + $0xa8] sm:$0xf]  ;;  %v3979_v50 = vld [vmem:[#allocation2 + $0xac] sm:$0xf]  ;;  %9407 = vmatmul.mubr.bf16.gmra.mrb[16].mxu1 %v12061_v7 }
 0x2ea   : > { %4026 = vst [vmem:[#allocation3 + $0x1f8] sm:$0xf] %v3978_v57  ;;  %4027 = vst [vmem:[#allocation3 + $0x204] sm:$0xf] %v3979_v50  ;;  %v13434_v32 = vld [vmem:[#allocation14_spill] sm:$0xff]  ;;  %v3622_v4 = vmax.f32 %v3574_v56, 0.0 }
 0x2eb   : > { %v3425_v39 = vadd.f32 %v3377_v14, %v13434_v32  ;;  %8926 = vst [vmem:[#allocation2 + $0xb8] sm:$0xff] %v8686_v61   ;;  %v12087_v17 = vld [vmem:[#allocation3 + $0x19c] ss:$12 sps:$4 sm:$0xff]   ;;  %v3623_v12 = vmax.f32 %v3575_v34, 0.0  ;;  %v12097_v57 = vld [vmem:[#allocation3 + $0x198] ss:$12 sps:$4 sm:$0xff]  }
 0x2ec   : > { %v4167_v36 = vld [vmem:[#allocation2 + $0xb0] sm:$0xf]  ;;  %v4168_v20 = vld [vmem:[#allocation2 + $0xb4] sm:$0xf]  ;;  %v3676_v52 = vsel %vm237_vm3, %v3622_v4, 0.0  ;;  %v9874_v34 = vld [vmem:[%s13294_s3 + $0x208] sm:$0xff]  }
 0x2ed   : > { %4215 = vst [vmem:[#allocation3 + $0x1d0] sm:$0xf] %v4167_v36  ;;  %4216 = vst [vmem:[#allocation3 + $0x1dc] sm:$0xf] %v4168_v20  ;;  %v4073_v28 = vld [vmem:[#allocation2 + $0xb0] sm:$0xf]  ;;  %v3576_v55 = vadd.f32 %v11842_v11, %v3425_v39  ;;  %v8691_v11 = vpack.c.bf16 %v3623_v12, %v3676_v52 }
 0x2ee   : > { %v12081_v16 = vld [vmem:[#allocation3 + $0x1b8] ss:$12 sps:$4 sm:$0xff]   ;;  %4121 = vst [vmem:[#allocation3 + $0x1f0] sm:$0xf] %v4073_v28  ;;  %v4074_v10 = vld [vmem:[#allocation2 + $0xb4] sm:$0xf] }
 0x2ef   : > { %9410 = vmatprep.mubr.bf16.mxu1 %v12081_v16  ;;  %5059 = vmatmul.mubr.bf16.gmra.mrb[0].mxu0 %v12073_v3  ;;  %v3980_v9 = vld [vmem:[#allocation2 + $0xb0] sm:$0xf]  ;;  %4122 = vst [vmem:[#allocation3 + $0x1fc] sm:$0xf] %v4074_v10  ;;  %v3981_v35 = vld [vmem:[#allocation2 + $0xb4] sm:$0xf] }
 0x2f0   : > { %5066 = vmatprep.mubr.bf16.mxu0 %v12087_v17  ;;  %4028 = vst [vmem:[#allocation3 + $0x210] sm:$0xf] %v3980_v9  ;;  %v3624_v0 = vmax.f32 %v3576_v55, 0.0  ;;  %4029 = vst [vmem:[#allocation3 + $0x21c] sm:$0xf] %v3981_v35  ;;  %v9879_v35 = vld [vmem:[%s13294_s3 + $0x210] sm:$0xff]  }
 0x2f1   : > { %v12099_v50 = vld [vmem:[#allocation3 + $0x1b4] ss:$12 sps:$4 sm:$0xff]   ;;  %8927 = vst [vmem:[#allocation2 + $0xc0] sm:$0xff] %v8691_v11   ;;  %v12106_v18 = vld [vmem:[#allocation3 + $0x1b0] ss:$12 sps:$4 sm:$0xff]  }
 0x2f2   : > { %v3678_v2 = vsel %vm242_vm2, %v3624_v0, 0.0  ;;  %v4169_v41 = vld [vmem:[#allocation2 + $0xb8] sm:$0xf]  ;;  %v4170_v46 = vld [vmem:[#allocation2 + $0xbc] sm:$0xf] }
 0x2f3   : > { %v8529_v19 = vpack.c.bf16 %v3678_v2, %v3678_v2  ;;  %4217 = vst [vmem:[#allocation3 + $0x1e8] sm:$0xf] %v4169_v41  ;;  %4218 = vst [vmem:[#allocation3 + $0x1f4] sm:$0xf] %v4170_v46  ;;  %v4075_v31 = vld [vmem:[#allocation2 + $0xb8] sm:$0xf] }
 0x2f4   : > { %v12101_v30 = vld [vmem:[#allocation3 + $0x1d0] ss:$12 sps:$4 sm:$0xff]   ;;  %4123 = vst [vmem:[#allocation3 + $0x208] sm:$0xf] %v4075_v31  ;;  %v4076_v44 = vld [vmem:[#allocation2 + $0xbc] sm:$0xf] }
 0x2f5   : > { %3935 = vst [vmem:[#allocation2 + $0xc8] sm:$0xf] %v8529_v19  ;;  %9411 = vmatmul.mubr.bf16.gmra.mrb[20].mxu1 %v12101_v30  ;;  %v3982_v49 = vld [vmem:[#allocation2 + $0xb8] sm:$0xf]  ;;  %4124 = vst [vmem:[#allocation3 + $0x214] sm:$0xf] %v4076_v44 }
 0x2f6   : > { %v3983_v23 = vld [vmem:[#allocation2 + $0xbc] sm:$0xf]  ;;  %4030 = vst [vmem:[#allocation3 + $0x228] sm:$0xf] %v3982_v49  ;;  %v12108_v40 = vld [vmem:[#allocation3 + $0x1cc] ss:$12 sps:$4 sm:$0xff]  }
 0x2f7   : > { %5067 = vmatmul.mubr.bf16.gmra.mrb[4].mxu0 %v12097_v57  ;;  %4031 = vst [vmem:[#allocation3 + $0x234] sm:$0xf] %v3983_v23  ;;  %v12115_v36 = vld [vmem:[#allocation3 + $0x1c8] ss:$12 sps:$4 sm:$0xff]   ;;  %v12122_v13 = vld [vmem:[#allocation3 + $0x1e4] ss:$12 sps:$4 sm:$0xff]  }
 0x2f8   : > { %5074 = vmatprep.mubr.bf16.mxu0 %v12099_v50  ;;  %v4171_v6 = vld [vmem:[#allocation2 + $0xc0] sm:$0xf]  ;;  %v4172_v45 = vld [vmem:[#allocation2 + $0xc4] sm:$0xf]  ;;  %v12127_v37 = vld [vmem:[#allocation3 + $0x230] ss:$12 sps:$4 sm:$0xff]  }
 0x2f9   : > { %v4077_v61 = vld [vmem:[#allocation2 + $0xc0] sm:$0xf]  ;;  %4219 = vst [vmem:[#allocation3 + $0x200] sm:$0xf] %v4171_v6  ;;  %4220 = vst [vmem:[#allocation3 + $0x20c] sm:$0xf] %v4172_v45 }
 0x2fa   : > { %4125 = vst [vmem:[#allocation3 + $0x220] sm:$0xf] %v4077_v61  ;;  %v4078_v1 = vld [vmem:[#allocation2 + $0xc4] sm:$0xf]  ;;  %v12110_v14 = vld [vmem:[#allocation3 + $0x1e8] ss:$12 sps:$4 sm:$0xff]  }
 0x2fb   : > { %4126 = vst [vmem:[#allocation3 + $0x22c] sm:$0xf] %v4078_v1  ;;  %9414 = vmatprep.mubr.bf16.mxu1 %v12110_v14  ;;  %v12129_v32 = vld [vmem:[#allocation3 + $0x1e0] ss:$12 sps:$4 sm:$0xff]   ;;  %v12132_v39 = vld [vmem:[#allocation3 + $0x1fc] ss:$12 sps:$4 sm:$0xff]  }
 0x2fc   : > { %v4173_v51 = vld [vmem:[#allocation2 + $0xc8] sm:$0xf]  ;;  %v12139_v4 = vld [vmem:[#allocation3 + $0x1f8] ss:$12 sps:$4 sm:$0xff]   ;;  %v12144_v55 = vld [vmem:[#allocation3] ss:$12 sps:$4 sm:$0xff]  }
 0x2fd   : > { %v4079_v5 = vld [vmem:[#allocation2 + $0xc8] sm:$0xf]  ;;  %4221 = vst [vmem:[#allocation3 + $0x218] sm:$0xf] %v4173_v51  ;;  %v12149_v9 = vld [vmem:[#allocation3 + $0x1c] ss:$12 sps:$4 sm:$0xff]  }
 0x2fe   : > { %4127 = vst [vmem:[#allocation3 + $0x238] sm:$0xf] %v4079_v5  ;;  %v12134_v28 = vld [vmem:[#allocation3 + $0x4] ss:$12 sps:$4 sm:$0xff]   ;;  %v12166_v2 = vld [vmem:[#allocation3 + $0x34] ss:$12 sps:$4 sm:$0xff]  }
 0x2ff   : > { %5075 = vmatmul.mubr.bf16.gmra.mrb[8].mxu0 %v12106_v18  ;;  %v12158_v52 = vld [vmem:[#allocation3 + $0x210] ss:$12 sps:$4 sm:$0xff]   ;;  %v9884_v12 = vld [vmem:[%s13294_s3 + $0x218] sm:$0xff]   ;;  %v12174_v11 = vld [vmem:[#allocation3 + $0x228] ss:$12 sps:$4 sm:$0xff]  }
 0x300   : > { %5082 = vmatprep.mubr.bf16.mxu0 %v12108_v40  ;;  %v12117_v20 = vld [vmem:[#allocation3 + $0x200] ss:$12 sps:$4 sm:$0xff]   ;;  %13436 = vst [vmem:[#allocation20_spill] sm:$0xff] %v12158_v52  ;;  %13438 = vst [vmem:[#allocation25_spill] sm:$0xff] %v12174_v11  ;;  %v9890_v41 = vld [vmem:[%s13294_s3 + $0x228] sm:$0xff]  }
 0x301   : > { %9415 = vmatmul.mubr.bf16.gmra.mrb[24].mxu1 %v12117_v20  ;;  %v12147_v10 = vld [vmem:[#allocation3 + $0x214] ss:$12 sps:$4 sm:$0xff]   ;;  %v12177_v19 = vld [vmem:[#allocation3 + $0x4c] ss:$12 sps:$4 sm:$0xff]   ;;  %v12193_v49 = vld [vmem:[#allocation3 + $0x64] ss:$12 sps:$4 sm:$0xff]  }
 0x302   : > { %13435 = vst [vmem:[#allocation18_spill] sm:$0xff] %v12147_v10  ;;  %v12184_v46 = vld [vmem:[#allocation3 + $0x8] ss:$12 sps:$4 sm:$0xff]   ;;  %v12196_v23 = vld [vmem:[#allocation3 + $0x20] ss:$12 sps:$4 sm:$0xff]   ;;  %v9872_v61 = vld [vmem:[%s13294_s3 + $0x190] sm:$0xff]  }
 0x303   : > { %13439 = vst [vmem:[#allocation26_spill] sm:$0xff] %v12184_v46  ;;  %v9870_v31 = vld [vmem:[%s13294_s3 + $0x180] sm:$0xff]   ;;  %13440 = vst [vmem:[#allocation27_spill] sm:$0xff] %v12196_v23  ;;  %v12199_v6 = vld [vmem:[#allocation3 + $0x38] ss:$12 sps:$4 sm:$0xff]  }
 0x304   : > { %v12119_v56 = vld [vmem:[#allocation3 + $0x218] ss:$12 sps:$4 sm:$0xff]   ;;  %v12190_v44 = vld [vmem:[#allocation3 + $0x48] ss:$12 sps:$4 sm:$0xff]   ;;  %13441 = vst [vmem:[#allocation28_spill] sm:$0xff] %v12199_v6 }
 0x305   : > { %9418 = vmatprep.mubr.bf16.mxu1 %v12119_v56  ;;  %v12164_v0 = vld [vmem:[#allocation3 + $0x22c] ss:$12 sps:$4 sm:$0xff]   ;;  %v9871_v45 = vld [vmem:[%s13294_s3 + $0x188] sm:$0xff]   ;;  %v12213_v1 = vld [vmem:[#allocation3 + $0x7c] ss:$12 sps:$4 sm:$0xff]  }
 0x306   : > { %13437 = vst [vmem:[#allocation24_spill] sm:$0xff] %v12164_v0  ;;  %v12210_v51 = vld [vmem:[#allocation3 + $0x60] ss:$12 sps:$4 sm:$0xff]   ;;  %v12216_v5 = vld [vmem:[#allocation3 + $0x50] ss:$12 sps:$4 sm:$0xff]  }
 0x307   : > { %5083 = vmatmul.mubr.bf16.gmra.mrb[12].mxu0 %v12115_v36  ;;  %13442 = vst [vmem:[#allocation29_spill] sm:$0xff] %v12216_v5 }
 0x308   : > { %5090 = vmatprep.mubr.bf16.mxu0 %v12122_v13 }
 0x309   : > { %9419 = vmatmul.mubr.bf16.gmra.mrb[28].mxu1 %v12127_v37 }
 0x30a   : > { %5668 = vmatprep.mubr.bf16.mxu1 %v12134_v28 }
 0x30f   : > { %5091 = vmatmul.mubr.bf16.gmra.mrb[16].mxu0 %v12129_v32 }
 0x310   : > { %5098 = vmatprep.mubr.bf16.mxu0 %v12132_v39 }
 0x311   : > { %5669 = vmatmul.mubr.bf16.vlgmr.msra.gmra.mrb[32].mxu1 %v12144_v55 }
 0x312   : > { %5676 = vmatprep.mubr.bf16.mxu1 %v12149_v9  ;;  %9487 = vmatpush3.bf16.msra.mxu1 %v11960_v8  ;;  %v9889_v8 = vld [vmem:[%s13294_s3 + $0x220] sm:$0xff]  }
 0x313   : > { %9488 = vmatprep.subr.bf16.mxu1 %v9874_v34 }
 0x316   : > { %9489 = vmatpush3.bf16.msra.mxu1 %v9874_v34  ;;  %v12219_v34 = vld [vmem:[#allocation3 + $0x68] ss:$12 sps:$4 sm:$0xff]  }
 0x317   : > { %5099 = vmatmul.mubr.bf16.gmra.mrb[20].mxu0 %v12139_v4  ;;  %9490 = vmatprep.subr.bf16.mxu1 %v9879_v35  ;;  %13443 = vst [vmem:[#allocation32_spill] sm:$0xff] %v12219_v34 }
 0x318   : > { %5106 = vmatprep.mubr.bf16.mxu0 %v12147_v10  ;;  %v12282_v10 = vld [vmem:[#allocation3 + $0xc4] ss:$12 sps:$4 sm:$0xff]  }
 0x319   : > { %5677 = vmatmul.mubr.bf16.gmra.mrb[36].mxu1 %v11666_v27 }
 0x31a   : > { %5684 = vmatprep.mubr.bf16.mxu1 %v12166_v2  ;;  %9491 = vmatpush3.bf16.msra.mxu1 %v9879_v35  ;;  %v9873_v35 = vld [vmem:[%s13294_s3 + $0x198] sm:$0xff]  }
 0x31b   : > { %9492 = vmatprep.subr.bf16.mxu1 %v9884_v12 }
 0x31e   : > { %9493 = vmatpush3.bf16.msra.mxu1 %v9884_v12  ;;  %v9875_v12 = vld [vmem:[%s13294_s3 + $0x1a0] sm:$0xff]  }
 0x31f   : > { %5107 = vmatmul.mubr.bf16.gmra.mrb[24].mxu0 %v12158_v52  ;;  %9494 = vmatprep.subr.bf16.mxu1 %v9889_v8 }
 0x320   : > { %5114 = vmatprep.mubr.bf16.mxu0 %v12164_v0 }
 0x321   : > { %5685 = vmatmul.mubr.bf16.gmra.mrb[40].mxu1 %v11708_v25 }
 0x322   : > { %5692 = vmatprep.mubr.bf16.mxu1 %v12177_v19  ;;  %9495 = vmatpush3.bf16.msra.mxu1 %v9889_v8  ;;  %v12230_v8 = vld [vmem:[#allocation3 + $0x78] ss:$12 sps:$4 sm:$0xff]  }
 0x323   : > { %9496 = vmatprep.subr.bf16.mxu1 %v9890_v41 }
 0x326   : > { %9497 = vmatpush3.bf16.msra.mxu1 %v9890_v41  ;;  %v12233_v41 = vld [vmem:[#allocation3 + $0x94] ss:$12 sps:$4 sm:$0xff]  }
 0x327   : > { %5115 = vmatmul.mubr.bf16.gmra.mrb[28].mxu0 %v12174_v11 }
 0x328   : > { %9438 = vmatprep.mubr.bf16.mxu0 %v12184_v46 }
 0x329   : > { %5693 = vmatmul.mubr.bf16.gmra.mrb[44].mxu1 %v12190_v44 }
 0x32a   : > { %5700 = vmatprep.mubr.bf16.mxu1 %v12193_v49 }
 0x32f   : > { %9439 = vmatmul.mubr.bf16.vlgmr.msra.gmra.mrb[32].mxu0 %v12196_v23  ;;  %v12259_v23 = vld [vmem:[#allocation3 + $0xb0] ss:$12 sps:$4 sm:$0xff]  }
 0x330   : > { %9442 = vmatprep.mubr.bf16.mxu0 %v12199_v6  ;;  %6520 = vmatpush1.bf16.msra.mxu0 %v9870_v31  ;;  %v12236_v31 = vld [vmem:[#allocation3 + $0x80] ss:$12 sps:$4 sm:$0xff]   ;;  %13448 = vst [vmem:[#allocation34_spill] sm:$0xff] %v12259_v23 }
 0x331   : > { %6521 = vmatprep.subr.bf16.mxu0 %v13428_v62  ;;  %5701 = vmatmul.mubr.bf16.gmra.mrb[48].mxu1 %v12210_v51  ;;  %13444 = vst [vmem:[#allocation30_spill] sm:$0xff] %v12236_v31 }
 0x332   : > { %5708 = vmatprep.mubr.bf16.mxu1 %v12213_v1 }
 0x334   : > { %6522 = vmatpush1.bf16.msra.mxu0 %v9871_v45  ;;  %v9891_v45 = vld [vmem:[%s13294_s3 + $0x230] sm:$0xff]  }
 0x335   : > { %6523 = vmatprep.subr.bf16.mxu0 %v13428_v62  ;;  %9498 = vmatprep.subr.bf16.mxu1 %v9891_v45 }
 0x336   : > { %9499 = vmatpush3.bf16.msra.mxu1 %v9891_v45 }
 0x337   : > { %9443 = vmatmul.mubr.bf16.gmra.mrb[36].mxu0 %v12216_v5  ;;  %v9877_v5 = vld [vmem:[%s13294_s3 + $0x1b0] sm:$0xff]  }
 0x338   : > { %9446 = vmatprep.mubr.bf16.mxu0 %v12219_v34  ;;  %6524 = vmatpush1.bf16.msra.mxu0 %v9872_v61  ;;  %v12242_v61 = vld [vmem:[#allocation3 + $0x98] ss:$12 sps:$4 sm:$0xff]   ;;  %v4932_v21 = vpop.f32.mrb[192].mxu0 }
 0x339   : > { %6525 = vmatprep.subr.bf16.mxu0 %v13428_v62  ;;  %5709 = vmatmul.mubr.bf16.gmra.mrb[52].mxu1 %v12230_v8  ;;  %13445 = vst [vmem:[#allocation31_spill] sm:$0xff] %v12242_v61  ;;  %v4934_v34 = vpop.f32.mrb[193].mxu0 }
 0x33a   : > { %5716 = vmatprep.mubr.bf16.mxu1 %v12233_v41  ;;  %v12262_v34 = vld [vmem:[#allocation3 + $0xc8] ss:$12 sps:$4 sm:$0xff]  }
 0x33b   : > { %13449 = vst [vmem:[#allocation35_spill] sm:$0xff] %v12262_v34 }
 0x33c   : > { %6526 = vmatpush1.bf16.msra.mxu0 %v9873_v35  ;;  %v9876_v35 = vld [vmem:[%s13294_s3 + $0x1a8] sm:$0xff]  }
 0x33d   : > { %6527 = vmatprep.subr.bf16.mxu0 %v13428_v62 }
 0x33f   : > { %9447 = vmatmul.mubr.bf16.gmra.mrb[40].mxu0 %v12236_v31  ;;  %v4935_v31 = vpop.f32.mrb[194].mxu0 }
 0x340   : > { %9450 = vmatprep.mubr.bf16.mxu0 %v12242_v61  ;;  %6528 = vmatpush1.bf16.msra.mxu0 %v9875_v12  ;;  %v4937_v6 = vpop.f32.mrb[195].mxu0  ;;  %v12253_v12 = vld [vmem:[#allocation3 + $0x90] ss:$12 sps:$4 sm:$0xff]   ;;  %v12256_v61 = vld [vmem:[#allocation3 + $0xac] ss:$12 sps:$4 sm:$0xff]  }
 0x341   : > { %6529 = vmatprep.subr.bf16.mxu0 %v13428_v62  ;;  %13446 = vst [vmem:[#allocation33_spill] sm:$0xff] %v12253_v12  ;;  %5717 = vmatmul.mubr.bf16.gmra.mrb[56].mxu1 %v12253_v12  ;;  %13447 = vst [vmem:[#allocation19_spill] sm:$0xff] %v12256_v61  ;;  %v9878_v6 = vld [vmem:[%s13294_s3 + $0x1b8] sm:$0xff]   ;;  %v12277_v12 = vld [vmem:[#allocation3 + $0xa8] ss:$12 sps:$4 sm:$0xff]  }
 0x342   : > { %5724 = vmatprep.mubr.bf16.mxu1 %v12256_v61  ;;  %v4940_v45 = vpop.f32.mrb[196].mxu0 }
 0x344   : > { %6530 = vmatpush1.bf16.msra.mxu0 %v9876_v35  ;;  %v4942_v35 = vpop.f32.mrb[197].mxu0  ;;  %v9376_v46 = vpop.f32.mrb[240].mxu1 }
 0x345   : > { %6531 = vmatprep.subr.bf16.mxu0 %v13428_v62  ;;  %v4943_v11 = vpop.f32.mrb[198].mxu0  ;;  %v12272_v0 = vadd.f32 %v9376_v46, %v4940_v45  ;;  %v5157_v52 = vpop.f32.mrb[241].mxu1  ;;  %v12285_v46 = vld [vmem:[#allocation3 + $0xe0] ss:$12 sps:$4 sm:$0xff]  }
 0x346   : > { %v9377_v61 = vpop.f32.mrb[242].mxu1  ;;  %13453 = vst [vmem:[#allocation23_spill] sm:$0xff] %v12285_v46 }
 0x347   : > { %9451 = vmatmul.mubr.bf16.gmra.mrb[44].mxu0 %v12259_v23  ;;  %v9880_v23 = vld [vmem:[%s13294_s3 + $0x1c0] sm:$0xff]   ;;  %13450 = vst [vmem:[#allocation39_spill] sm:$0xff] %v12272_v0  ;;  %v12280_v35 = vadd.f32 %v9377_v61, %v4943_v11  ;;  %v9892_v11 = vld [vmem:[%s13294_s3 + $0x238] sm:$0xff]  }
 0x348   : > { %9454 = vmatprep.mubr.bf16.mxu0 %v12262_v34  ;;  %6532 = vmatpush1.bf16.msra.mxu0 %v9877_v5  ;;  %v4945_v34 = vpop.f32.mrb[199].mxu0  ;;  %v12275_v5 = vadd.f32 %v5157_v52, %v4932_v21  ;;  %v12290_v21 = vld [vmem:[#allocation3 + $0xf8] ss:$12 sps:$4 sm:$0xff]   ;;  %v9881_v52 = vld [vmem:[%s13294_s3 + $0x1c8] sm:$0xff]   ;;  %v12304_v0 = vld [vmem:[#allocation3 + $0xc0] ss:$12 sps:$4 sm:$0xff]  }
 0x349   : > { %6533 = vmatprep.subr.bf16.mxu0 %v13428_v62  ;;  %5725 = vmatmul.mubr.bf16.gmra.mrb[60].mxu1 %v12277_v12  ;;  %13452 = vst [vmem:[#allocation5_spill] sm:$0xff] %v12280_v35  ;;  %13455 = vst [vmem:[#allocation21_spill] sm:$0xff] %v12290_v21  ;;  %v12307_v35 = vld [vmem:[#allocation3 + $0xdc] ss:$12 sps:$4 sm:$0xff]  }
 0x34a   : > { %13451 = vst [vmem:[#allocation36_spill] sm:$0xff] %v12275_v5  ;;  %5732 = vmatprep.mubr.bf16.mxu1 %v12282_v10  ;;  %9500 = vmatprep.subr.bf16.mxu1 %v9892_v11  ;;  %13456 = vst [vmem:[#allocation6_spill] sm:$0xff] %v12304_v0 }
 0x34b   : > { %v4948_v61 = vpop.f32.mrb[200].mxu0  ;;  %9501 = vmatpush3.bf16.msra.mxu1 %v9892_v11  ;;  %13457 = vst [vmem:[#allocation8_spill] sm:$0xff] %v12307_v35 }
 0x34c   : > { %6534 = vmatpush1.bf16.msra.mxu0 %v9878_v6  ;;  %v5160_v6 = vpop.f32.mrb[243].mxu1  ;;  %v4950_v45 = vpop.f32.mrb[201].mxu0 }
 0x34d   : > { %6535 = vmatprep.subr.bf16.mxu0 %v13428_v62  ;;  %v12288_v34 = vadd.f32 %v5160_v6, %v4935_v31  ;;  %v4951_v31 = vpop.f32.mrb[202].mxu0  ;;  %v9883_v45 = vld [vmem:[%s13294_s3 + $0x1d8] sm:$0xff]  }
 0x34e   : > { %v4953_v6 = vpop.f32.mrb[203].mxu0 }
 0x34f   : > { %9455 = vmatmul.mubr.bf16.gmra.mrb[48].mxu0 %v12285_v46  ;;  %13454 = vst [vmem:[#allocation37_spill] sm:$0xff] %v12288_v34 }
 0x350   : > { %9458 = vmatprep.mubr.bf16.mxu0 %v12290_v21  ;;  %6536 = vmatpush1.bf16.msra.mxu0 %v9880_v23  ;;  %v9882_v23 = vld [vmem:[%s13294_s3 + $0x1d0] sm:$0xff]  }
 0x351   : > { %6537 = vmatprep.subr.bf16.mxu0 %v13428_v62  ;;  %v9380_v5 = vpop.f32.mrb[244].mxu1  ;;  %5733 = vmatmul.mubr.bf16.gmra.mrb[64].mxu1 %v12304_v0 }
 0x352   : > { %v5173_v34 = vpop.f32.mrb[245].mxu1  ;;  %5740 = vmatprep.mubr.bf16.mxu1 %v12307_v35 }
 0x353   : > { %v9381_v11 = vpop.f32.mrb[246].mxu1  ;;  %v4956_v46 = vpop.f32.mrb[204].mxu0 }
 0x354   : > { %6538 = vmatpush1.bf16.msra.mxu0 %v9881_v52  ;;  %v12311_v52 = vadd.f32 %v5173_v34, %v4948_v61  ;;  %v5176_v6 = vpop.f32.mrb[247].mxu1  ;;  %v12320_v0 = vadd.f32 %v9380_v5, %v4956_v46  ;;  %v4958_v35 = vpop.f32.mrb[205].mxu0  ;;  %v12331_v5 = vld [vmem:[#allocation3 + $0xf4] ss:$12 sps:$4 sm:$0xff]  }
 0x355   : > { %6539 = vmatprep.subr.bf16.mxu0 %v13428_v62  ;;  %v12318_v21 = vadd.f32 %v5176_v6, %v4951_v31  ;;  %v9886_v46 = vld [vmem:[%s13294_s3 + $0x1e8] sm:$0xff]  }
 0x356   : > { %13458 = vst [vmem:[#allocation7_spill] sm:$0xff] %v12311_v52  ;;  %13459 = vst [vmem:[#allocation12_spill] sm:$0xff] %v12320_v0  ;;  %v12328_v52 = vld [vmem:[#allocation3 + $0xd8] ss:$12 sps:$4 sm:$0xff]  }
 0x357   : > { %9459 = vmatmul.mubr.bf16.gmra.mrb[52].mxu0 %v11918_v33  ;;  %v4959_v33 = vpop.f32.mrb[206].mxu0 }
 0x358   : > { %9462 = vmatprep.mubr.bf16.mxu0 %v11937_v38  ;;  %6540 = vmatpush1.bf16.msra.mxu0 %v9882_v23  ;;  %v9885_v38 = vld [vmem:[%s13294_s3 + $0x1e0] sm:$0xff]   ;;  %v12325_v34 = vadd.f32 %v9381_v11, %v4959_v33  ;;  %v4961_v61 = vpop.f32.mrb[207].mxu0 }
 0x359   : > { %6541 = vmatprep.subr.bf16.mxu0 %v13428_v62  ;;  %v9384_v23 = vpop.f32.mrb[248].mxu1  ;;  %5741 = vmatmul.mubr.bf16.gmra.mrb[68].mxu1 %v12328_v52 }
 0x35a   : > { %v5189_v31 = vpop.f32.mrb[249].mxu1  ;;  %5748 = vmatprep.mubr.bf16.mxu1 %v12331_v5 }
 0x35b   : > { %v9385_v35 = vpop.f32.mrb[250].mxu1 }
 0x35c   : > { %6542 = vmatpush1.bf16.msra.mxu0 %v9883_v45  ;;  %v5192_v11 = vpop.f32.mrb[251].mxu1  ;;  %v4964_v45 = vpop.f32.mrb[208].mxu0 }
 0x35d   : > { %6543 = vmatprep.subr.bf16.mxu0 %v13428_v62  ;;  %v12340_v6 = vadd.f32 %v5189_v31, %v4964_v45  ;;  %v4966_v33 = vpop.f32.mrb[209].mxu0  ;;  %v9888_v31 = vld [vmem:[%s13294_s3 + $0x1f8] sm:$0xff]  }
 0x35e   : > { %v4967_v61 = vpop.f32.mrb[210].mxu0 }
 0x35f   : > { %9463 = vmatmul.mubr.bf16.gmra.mrb[56].mxu0 %v11972_v15  ;;  %v9887_v15 = vld [vmem:[%s13294_s3 + $0x1f0] sm:$0xff]   ;;  %v12345_v0 = vadd.f32 %v5192_v11, %v4967_v61 }
 0x360   : > { %9466 = vmatprep.mubr.bf16.mxu0 %v11997_v54  ;;  %6544 = vmatpush1.bf16.msra.mxu0 %v9885_v38  ;;  %v4969_v54 = vpop.f32.mrb[211].mxu0  ;;  %v12348_v38 = vld [vmem:[#allocation3 + $0xf0] ss:$12 sps:$4 sm:$0xff]  }
 0x361   : > { %6545 = vmatprep.subr.bf16.mxu0 %v13428_v62  ;;  %13460 = vst [vmem:[#allocation10_spill] sm:$0xff] %v12345_v0  ;;  %5749 = vmatmul.mubr.bf16.gmra.mrb[72].mxu1 %v12348_v38 }
 0x362   : > { %5756 = vmatprep.mubr.bf16.mxu1 %v11943_v59 }
 0x364   : > { %6546 = vmatpush1.bf16.msra.mxu0 %v9886_v46 }
 0x365   : > { %6547 = vmatprep.subr.bf16.mxu0 %v13428_v62 }
 0x366   : > { %v4972_v46 = vpop.f32.mrb[212].mxu0 }
 0x367   : > { %9467 = vmatmul.mubr.bf16.gmra.mrb[60].mxu0 %v12012_v42  ;;  %v12358_v45 = vadd.f32 %v9384_v23, %v4972_v46  ;;  %v4974_v33 = vpop.f32.mrb[213].mxu0 }
 0x368   : > { %9470 = vmatprep.mubr.bf16.mxu0 %v12039_v63  ;;  %6548 = vmatpush1.bf16.msra.mxu0 %v9887_v15  ;;  %v9388_v11 = vpop.f32.mrb[252].mxu1  ;;  %v4975_v54 = vpop.f32.mrb[214].mxu0 }
 0x369   : > { %6549 = vmatprep.subr.bf16.mxu0 %v13428_v62  ;;  %v5205_v61 = vpop.f32.mrb[253].mxu1  ;;  %v12360_v0 = vadd.f32 %v9385_v35, %v4975_v54  ;;  %v4977_v42 = vpop.f32.mrb[215].mxu0  ;;  %5757 = vmatmul.mubr.bf16.gmra.mrb[76].mxu1 %v11965_v43 }
 0x36a   : > { %v9389_v59 = vpop.f32.mrb[254].mxu1  ;;  %5764 = vmatprep.mubr.bf16.mxu1 %v11967_v53 }
 0x36b   : > { %v5208_v63 = vpop.f32.mrb[255].mxu1 }
 0x36c   : > { %6550 = vmatpush1.bf16.msra.mxu0 %v9888_v31 }
 0x36f   : > { %9471 = vmatmul.mubr.bf16.gmra.mrb[64].mxu0 %v12061_v7 }
 0x370   : > { %9474 = vmatprep.mubr.bf16.mxu0 %v12081_v16 }
 0x371   : > { %v4980_v62 = vpop.f32.mrb[216].mxu0  ;;  %5765 = vmatmul.mubr.bf16.gmra.mrb[80].mxu1 %v11987_v29 }
 0x372   : > { %v12366_v23 = vadd.f32 %v5205_v61, %v4980_v62  ;;  %v4982_v15 = vpop.f32.mrb[217].mxu0  ;;  %5772 = vmatprep.mubr.bf16.mxu1 %v11991_v47 }
 0x373   : > { %v4983_v46 = vpop.f32.mrb[218].mxu0 }
 0x374   : > { %v12368_v33 = vadd.f32 %v5208_v63, %v4983_v46  ;;  %v4985_v31 = vpop.f32.mrb[219].mxu0 }
 0x377   : > { %9475 = vmatmul.mubr.bf16.gmra.mrb[68].mxu0 %v12101_v30 }
 0x378   : > { %9478 = vmatprep.mubr.bf16.mxu0 %v12110_v14 }
 0x379   : > { %v4988_v7 = vpop.f32.mrb[220].mxu0  ;;  %5773 = vmatmul.mubr.bf16.gmra.mrb[84].mxu1 %v12008_v58 }
 0x37a   : > { %v9392_v43 = vpop.f32.mrb[0].mxu1  ;;  %v12374_v16 = vadd.f32 %v9388_v11, %v4988_v7  ;;  %v4990_v61 = vpop.f32.mrb[221].mxu0  ;;  %5780 = vmatprep.mubr.bf16.mxu1 %v12018_v22 }
 0x37b   : > { %v5221_v53 = vpop.f32.mrb[1].mxu1  ;;  %v4991_v42 = vpop.f32.mrb[222].mxu0 }
 0x37c   : > { %v9393_v35 = vpop.f32.mrb[2].mxu1  ;;  %v12376_v63 = vadd.f32 %v9389_v59, %v4991_v42  ;;  %v4993_v62 = vpop.f32.mrb[223].mxu0 }
 0x37d   : > { %v5224_v54 = vpop.f32.mrb[3].mxu1 }
 0x37f   : > { %9479 = vmatmul.mubr.bf16.gmra.mrb[72].mxu0 %v12117_v20 }
 0x380   : > { %9482 = vmatprep.mubr.bf16.mxu0 %v12119_v56 }
 0x381   : > { %5781 = vmatmul.mubr.bf16.gmra.mrb[88].mxu1 %v12031_v48 }
 0x382   : > { %v4996_v29 = vpop.f32.mrb[224].mxu0  ;;  %5788 = vmatprep.mubr.bf16.mxu1 %v12033_v26 }
 0x383   : > { %v12382_v47 = vadd.f32 %v5221_v53, %v4996_v29  ;;  %v4998_v30 = vpop.f32.mrb[225].mxu0 }
 0x384   : > { %v4999_v14 = vpop.f32.mrb[226].mxu0 }
 0x385   : > { %v12384_v11 = vadd.f32 %v5224_v54, %v4999_v14  ;;  %v5001_v15 = vpop.f32.mrb[227].mxu0 }
 0x387   : > { %9483 = vmatmul.mubr.bf16.gmra.mrb[76].mxu0 %v12127_v37 }
 0x388   : > { %6551 = vmatprep.mubr.bf16.mxu0 %v12134_v28 }
 0x389   : > { %5789 = vmatmul.mubr.bf16.gmra.mrb[92].mxu1 %v12052_v24 }
 0x38a   : > { %v5004_v58 = vpop.f32.mrb[228].mxu0  ;;  %5796 = vmatprep.mubr.bf16.mxu1 %v12056_v60 }
 0x38b   : > { %v12390_v20 = vadd.f32 %v9392_v43, %v5004_v58  ;;  %v5006_v56 = vpop.f32.mrb[229].mxu0 }
 0x38c   : > { %v5007_v46 = vpop.f32.mrb[230].mxu0 }
 0x38d   : > { %v9396_v22 = vpop.f32.mrb[4].mxu1  ;;  %v12392_v53 = vadd.f32 %v9393_v35, %v5007_v46  ;;  %v5009_v7 = vpop.f32.mrb[231].mxu0 }
 0x38e   : > { %v5237_v59 = vpop.f32.mrb[5].mxu1 }
 0x38f   : > { %v9397_v31 = vpop.f32.mrb[6].mxu1  ;;  %6552 = vmatmul.mubr.bf16.vlgmr.msra.gmra.mrb[80].mxu0 %v12144_v55 }
 0x390   : > { %v5240_v61 = vpop.f32.mrb[7].mxu1  ;;  %6559 = vmatprep.mubr.bf16.mxu0 %v12149_v9 }
 0x391   : > { %5797 = vmatmul.mubr.bf16.gmra.mrb[96].mxu1 %v12073_v3 }
 0x392   : > { %v5012_v48 = vpop.f32.mrb[232].mxu0  ;;  %5804 = vmatprep.mubr.bf16.mxu1 %v12087_v17 }
 0x393   : > { %v12398_v26 = vadd.f32 %v5237_v59, %v5012_v48  ;;  %v5014_v37 = vpop.f32.mrb[233].mxu0 }
 0x394   : > { %v5015_v28 = vpop.f32.mrb[234].mxu0 }
 0x395   : > { %v12400_v43 = vadd.f32 %v5240_v61, %v5015_v28  ;;  %v5017_v54 = vpop.f32.mrb[235].mxu0 }
 0x397   : > { %6560 = vmatmul.mubr.bf16.gmra.mrb[84].mxu0 %v11666_v27 }
 0x398   : > { %6567 = vmatprep.mubr.bf16.mxu0 %v12166_v2 }
 0x399   : > { %5805 = vmatmul.mubr.bf16.gmra.mrb[100].mxu1 %v12097_v57 }
 0x39a   : > { %v5020_v24 = vpop.f32.mrb[236].mxu0  ;;  %5812 = vmatprep.mubr.bf16.mxu1 %v12099_v50 }
 0x39b   : > { %v12406_v55 = vadd.f32 %v9396_v22, %v5020_v24  ;;  %v5022_v9 = vpop.f32.mrb[237].mxu0 }
 0x39c   : > { %v9400_v60 = vpop.f32.mrb[8].mxu1  ;;  %v5023_v42 = vpop.f32.mrb[238].mxu0 }
 0x39d   : > { %v5253_v35 = vpop.f32.mrb[9].mxu1  ;;  %v12408_v29 = vadd.f32 %v9397_v31, %v5023_v42  ;;  %v5025_v30 = vpop.f32.mrb[239].mxu0 }
 0x39e   : > { %v9401_v62 = vpop.f32.mrb[10].mxu1 }
 0x39f   : > { %v5256_v14 = vpop.f32.mrb[11].mxu1  ;;  %6568 = vmatmul.mubr.bf16.gmra.mrb[88].mxu0 %v11708_v25 }
 0x3a0   : > { %6575 = vmatprep.mubr.bf16.mxu0 %v12177_v19 }
 0x3a1   : > { %5813 = vmatmul.mubr.bf16.gmra.mrb[104].mxu1 %v12106_v18 }
 0x3a2   : > { %v5028_v27 = vpop.f32.mrb[240].mxu0  ;;  %5820 = vmatprep.mubr.bf16.mxu1 %v12108_v40 }
 0x3a3   : > { %v12414_v3 = vadd.f32 %v5253_v35, %v5028_v27  ;;  %v5030_v17 = vpop.f32.mrb[241].mxu0  ;;  %v13464_v27 = vld [vmem:[#allocation20_spill] sm:$0xff] }
 0x3a4   : > { %v5031_v2 = vpop.f32.mrb[242].mxu0  ;;  %v13465_v17 = vld [vmem:[#allocation24_spill] sm:$0xff] }
 0x3a5   : > { %v12416_v15 = vadd.f32 %v5256_v14, %v5031_v2  ;;  %v5033_v58 = vpop.f32.mrb[243].mxu0 }
 0x3a7   : > { %6576 = vmatmul.mubr.bf16.gmra.mrb[92].mxu0 %v12190_v44 }
 0x3a8   : > { %6583 = vmatprep.mubr.bf16.mxu0 %v12193_v49 }
 0x3a9   : > { %5821 = vmatmul.mubr.bf16.gmra.mrb[108].mxu1 %v12115_v36 }
 0x3aa   : > { %v9404_v57 = vpop.f32.mrb[12].mxu1  ;;  %v5036_v50 = vpop.f32.mrb[244].mxu0  ;;  %5828 = vmatprep.mubr.bf16.mxu1 %v12122_v13 }
 0x3ab   : > { %v5269_v25 = vpop.f32.mrb[13].mxu1  ;;  %v12422_v19 = vadd.f32 %v9400_v60, %v5036_v50  ;;  %v5038_v56 = vpop.f32.mrb[245].mxu0 }
 0x3ac   : > { %v9405_v22 = vpop.f32.mrb[14].mxu1  ;;  %v5039_v46 = vpop.f32.mrb[246].mxu0 }
 0x3ad   : > { %v5272_v59 = vpop.f32.mrb[15].mxu1  ;;  %v12424_v31 = vadd.f32 %v9401_v62, %v5039_v46  ;;  %v5041_v7 = vpop.f32.mrb[247].mxu0 }
 0x3ae   : > { %v13466_v7 = vld [vmem:[#allocation25_spill] sm:$0xff] }
 0x3af   : > { %6584 = vmatmul.mubr.bf16.gmra.mrb[96].mxu0 %v12210_v51 }
 0x3b0   : > { %6591 = vmatprep.mubr.bf16.mxu0 %v12213_v1 }
 0x3b1   : > { %5829 = vmatmul.mubr.bf16.gmra.mrb[112].mxu1 %v12129_v32  ;;  %v13461_v32 = vld [vmem:[#allocation18_spill] sm:$0xff] }
 0x3b2   : > { %v5044_v18 = vpop.f32.mrb[248].mxu0  ;;  %5836 = vmatprep.mubr.bf16.mxu1 %v12132_v39  ;;  %v13462_v39 = vld [vmem:[#allocation33_spill] sm:$0xff] }
 0x3b3   : > { %v12430_v40 = vadd.f32 %v5269_v25, %v5044_v18  ;;  %v5046_v44 = vpop.f32.mrb[249].mxu0  ;;  %v13467_v18 = vld [vmem:[#allocation26_spill] sm:$0xff] }
 0x3b4   : > { %v5047_v49 = vpop.f32.mrb[250].mxu0  ;;  %v13468_v44 = vld [vmem:[#allocation6_spill] sm:$0xff] }
 0x3b5   : > { %v12432_v61 = vadd.f32 %v5272_v59, %v5047_v49  ;;  %v5049_v48 = vpop.f32.mrb[251].mxu0 }
 0x3b7   : > { %6592 = vmatmul.mubr.bf16.gmra.mrb[100].mxu0 %v12230_v8  ;;  %v13463_v8 = vld [vmem:[#allocation19_spill] sm:$0xff] }
 0x3b8   : > { %6599 = vmatprep.mubr.bf16.mxu0 %v12233_v41 }
 0x3b9   : > { %5837 = vmatmul.mubr.bf16.gmra.mrb[116].mxu1 %v12139_v4 }
 0x3ba   : > { %v5052_v36 = vpop.f32.mrb[252].mxu0  ;;  %5844 = vmatprep.mubr.bf16.mxu1 %v13461_v32 }
 0x3bb   : > { %v12438_v51 = vadd.f32 %v9404_v57, %v5052_v36  ;;  %v5054_v1 = vpop.f32.mrb[253].mxu0 }
 0x3bc   : > { %v9408_v13 = vpop.f32.mrb[16].mxu1  ;;  %v5055_v28 = vpop.f32.mrb[254].mxu0 }
 0x3bd   : > { %v5285_v37 = vpop.f32.mrb[17].mxu1  ;;  %v12440_v24 = vadd.f32 %v9405_v22, %v5055_v28  ;;  %v5057_v60 = vpop.f32.mrb[255].mxu0  ;;  %v13471_v28 = vld [vmem:[#allocation28_spill] sm:$0xff] }
 0x3be   : > { %v9409_v54 = vpop.f32.mrb[18].mxu1 }
 0x3bf   : > { %v5288_v9 = vpop.f32.mrb[19].mxu1  ;;  %6600 = vmatmul.mubr.bf16.gmra.mrb[104].mxu0 %v13462_v39 }
 0x3c0   : > { %6607 = vmatprep.mubr.bf16.mxu0 %v13463_v8 }
 0x3c1   : > { %5845 = vmatmul.mubr.bf16.gmra.mrb[120].mxu1 %v13464_v27  ;;  %v13472_v27 = vld [vmem:[#allocation29_spill] sm:$0xff] }
 0x3c2   : > { %v5060_v41 = vpop.f32.mrb[0].mxu0  ;;  %5852 = vmatprep.mubr.bf16.mxu1 %v13465_v17  ;;  %v13473_v17 = vld [vmem:[#allocation32_spill] sm:$0xff] }
 0x3c3   : > { %v12446_v35 = vadd.f32 %v5285_v37, %v5060_v41  ;;  %v5062_v42 = vpop.f32.mrb[1].mxu0  ;;  %v13470_v37 = vld [vmem:[#allocation27_spill] sm:$0xff] }
 0x3c4   : > { %v5063_v62 = vpop.f32.mrb[2].mxu0 }
 0x3c5   : > { %v12448_v30 = vadd.f32 %v5288_v9, %v5063_v62  ;;  %v5065_v14 = vpop.f32.mrb[3].mxu0 }
 0x3c7   : > { %6608 = vmatmul.mubr.bf16.gmra.mrb[108].mxu0 %v12277_v12  ;;  %v13469_v12 = vld [vmem:[#allocation8_spill] sm:$0xff] }
 0x3c8   : > { %6615 = vmatprep.mubr.bf16.mxu0 %v12282_v10  ;;  %v9412_v4 = vpop.f32.mrb[20].mxu1 }
 0x3c9   : > { %v5301_v57 = vpop.f32.mrb[21].mxu1  ;;  %5853 = vmatmul.mubr.bf16.gmra.mrb[124].mxu1 %v13466_v7 }
 0x3ca   : > { %v5068_v2 = vpop.f32.mrb[4].mxu0  ;;  %v9413_v50 = vpop.f32.mrb[22].mxu1  ;;  %9502 = vmatprep.mubr.bf16.mxu1 %v13467_v18  ;;  %v13474_v18 = vld [vmem:[#allocation30_spill] sm:$0xff] }
 0x3cb   : > { %v12454_v58 = vadd.f32 %v9408_v13, %v5068_v2  ;;  %v5070_v25 = vpop.f32.mrb[5].mxu0  ;;  %v5304_v59 = vpop.f32.mrb[23].mxu1 }
 0x3cc   : > { %v5071_v22 = vpop.f32.mrb[6].mxu0 }
 0x3cd   : > { %v12456_v56 = vadd.f32 %v9409_v54, %v5071_v22  ;;  %v5073_v46 = vpop.f32.mrb[7].mxu0 }
 0x3cf   : > { %6616 = vmatmul.mubr.bf16.gmra.mrb[112].mxu0 %v13468_v44  ;;  %v13475_v44 = vld [vmem:[#allocation31_spill] sm:$0xff] }
 0x3d0   : > { %6623 = vmatprep.mubr.bf16.mxu0 %v13469_v12  ;;  %v9992_v12 = vld [vmem:[#allocation3 + $0x108] ss:$12 sps:$4 sm:$0xff]  }
 0x3d1   : > { %9503 = vmatmul.mubr.bf16.vlgmr.msra.gmra.mrb[128].mxu1 %v13470_v37 }
 0x3d2   : > { %v5076_v10 = vpop.f32.mrb[8].mxu0  ;;  %9506 = vmatprep.mubr.bf16.mxu1 %v13471_v28 }
 0x3d3   : > { %v12462_v49 = vadd.f32 %v5301_v57, %v5076_v10  ;;  %v5078_v48 = vpop.f32.mrb[9].mxu0 }
 0x3d4   : > { %v5079_v36 = vpop.f32.mrb[10].mxu0  ;;  %v9416_v54 = vpop.f32.mrb[24].mxu1 }
 0x3d5   : > { %v12464_v13 = vadd.f32 %v5304_v59, %v5079_v36  ;;  %v5081_v1 = vpop.f32.mrb[11].mxu0  ;;  %v5317_v60 = vpop.f32.mrb[25].mxu1 }
 0x3d6   : > { %v9417_v39 = vpop.f32.mrb[26].mxu1 }
 0x3d7   : > { %6624 = vmatmul.mubr.bf16.gmra.mrb[116].mxu0 %v12328_v52  ;;  %v5320_v41 = vpop.f32.mrb[27].mxu1  ;;  %v9991_v52 = vld [vmem:[#allocation3 + $0x10c] ss:$12 sps:$4 sm:$0xff]  }
 0x3d8   : > { %6631 = vmatprep.mubr.bf16.mxu0 %v12331_v5 }
 0x3d9   : > { %9507 = vmatmul.mubr.bf16.gmra.mrb[132].mxu1 %v13472_v27  ;;  %v9994_v27 = vld [vmem:[#allocation3 + $0x120] ss:$12 sps:$4 sm:$0xff]  }
 0x3da   : > { %v5084_v9 = vpop.f32.mrb[12].mxu0  ;;  %9510 = vmatprep.mubr.bf16.mxu1 %v13473_v17  ;;  %v9995_v17 = vld [vmem:[#allocation3 + $0x13c] ss:$12 sps:$4 sm:$0xff]  }
 0x3db   : > { %v12470_v32 = vadd.f32 %v9412_v4, %v5084_v9  ;;  %v5086_v8 = vpop.f32.mrb[13].mxu0 }
 0x3dc   : > { %v5087_v42 = vpop.f32.mrb[14].mxu0  ;;  %v9420_v5 = vpop.f32.mrb[28].mxu1 }
 0x3dd   : > { %v12472_v62 = vadd.f32 %v9413_v50, %v5087_v42  ;;  %v5089_v14 = vpop.f32.mrb[15].mxu0  ;;  %v5333_v57 = vpop.f32.mrb[29].mxu1  ;;  %v13477_v42 = vld [vmem:[#allocation34_spill] sm:$0xff] }
 0x3de   : > { %v9421_v22 = vpop.f32.mrb[30].mxu1  ;;  %v13478_v14 = vld [vmem:[#allocation35_spill] sm:$0xff] }
 0x3df   : > { %6632 = vmatmul.mubr.bf16.gmra.mrb[120].mxu0 %v12348_v38  ;;  %v5336_v46 = vpop.f32.mrb[31].mxu1  ;;  %v9993_v38 = vld [vmem:[#allocation3 + $0x124] ss:$12 sps:$4 sm:$0xff]  }
 0x3e0   : > { %6639 = vmatprep.mubr.bf16.mxu0 %v9991_v52 }
 0x3e1   : > { %9511 = vmatmul.mubr.bf16.gmra.mrb[136].mxu1 %v13474_v18 }
 0x3e2   : > { %v5092_v2 = vpop.f32.mrb[16].mxu0  ;;  %9514 = vmatprep.mubr.bf16.mxu1 %v13475_v44 }
 0x3e3   : > { %v12477_v4 = vadd.f32 %v5317_v60, %v5092_v2  ;;  %v5094_v25 = vpop.f32.mrb[17].mxu0 }
 0x3e4   : > { %v5095_v59 = vpop.f32.mrb[18].mxu0  ;;  %v5670_v10 = vpop.f32.mrb[32].mxu1 }
 0x3e5   : > { %v12479_v50 = vadd.f32 %v5320_v41, %v5095_v59  ;;  %v5097_v7 = vpop.f32.mrb[19].mxu0  ;;  %v5672_v48 = vpop.f32.mrb[33].mxu1 }
 0x3e6   : > { %v5673_v37 = vpop.f32.mrb[34].mxu1  ;;  %v13482_v48 = vld [vmem:[#allocation21_spill] sm:$0xff] }
 0x3e7   : > { %6640 = vmatmul.mubr.bf16.gmra.mrb[124].mxu0 %v9992_v12  ;;  %v5675_v60 = vpop.f32.mrb[35].mxu1 }
 0x3e8   : > { %6647 = vmatprep.mubr.bf16.mxu0 %v9993_v38  ;;  %v13481_v38 = vld [vmem:[#allocation23_spill] sm:$0xff] }
 0x3e9   : > { %9515 = vmatmul.mubr.bf16.gmra.mrb[140].mxu1 %v13477_v42 }
 0x3ea   : > { %v5100_v36 = vpop.f32.mrb[20].mxu0  ;;  %9518 = vmatprep.mubr.bf16.mxu1 %v13478_v14 }
 0x3eb   : > { %v12483_v1 = vadd.f32 %v9416_v54, %v5100_v36  ;;  %v5102_v28 = vpop.f32.mrb[21].mxu0  ;;  %v9996_v36 = vld [vmem:[#allocation3 + $0x138] ss:$12 sps:$4 sm:$0xff]  }
 0x3ec   : > { %v5103_v9 = vpop.f32.mrb[22].mxu0  ;;  %v5678_v52 = vpop.f32.mrb[36].mxu1  ;;  %v9997_v28 = vld [vmem:[#allocation3 + $0x154] ss:$12 sps:$4 sm:$0xff]  }
 0x3ed   : > { %v12485_v8 = vadd.f32 %v9417_v39, %v5103_v9  ;;  %v5105_v41 = vpop.f32.mrb[23].mxu0  ;;  %v5680_v2 = vpop.f32.mrb[37].mxu1 }
 0x3ee   : > { %v5681_v59 = vpop.f32.mrb[38].mxu1 }
 0x3ef   : > { %13476 = vst [vmem:[#allocation11_spill] sm:$0xff] %v12485_v8  ;;  %6648 = vmatmul.mubr.bf16.gmra.mrb[128].mxu0 %v9994_v27  ;;  %v5683_v18 = vpop.f32.mrb[39].mxu1  ;;  %v10006_v8 = vld [vmem:[#allocation3 + $0x170] ss:$12 sps:$4 sm:$0xff]  }
 0x3f0   : > { %6655 = vmatprep.mubr.bf16.mxu0 %v9995_v17  ;;  %v10000_v18 = vld [vmem:[#allocation3 + $0x150] ss:$12 sps:$4 sm:$0xff]  }
 0x3f1   : > { %9519 = vmatmul.mubr.bf16.gmra.mrb[144].mxu1 %v13481_v38 }
 0x3f2   : > { %v5108_v25 = vpop.f32.mrb[24].mxu0  ;;  %9522 = vmatprep.mubr.bf16.mxu1 %v13482_v48 }
 0x3f3   : > { %v12489_v54 = vadd.f32 %v5333_v57, %v5108_v25  ;;  %v5110_v7 = vpop.f32.mrb[25].mxu0  ;;  %v9998_v25 = vld [vmem:[#allocation3 + $0x110] ss:$12 sps:$4 sm:$0xff]  }
 0x3f4   : > { %v5111_v44 = vpop.f32.mrb[26].mxu0  ;;  %v5686_v60 = vpop.f32.mrb[40].mxu1  ;;  %v9999_v7 = vld [vmem:[#allocation3 + $0x128] ss:$12 sps:$4 sm:$0xff]  }
 0x3f5   : > { %13479 = vst [vmem:[#allocation9_spill] sm:$0xff] %v12489_v54  ;;  %v12491_v39 = vadd.f32 %v5336_v46, %v5111_v44  ;;  %v5113_v12 = vpop.f32.mrb[27].mxu0  ;;  %v5688_v9 = vpop.f32.mrb[41].mxu1  ;;  %v10001_v44 = vld [vmem:[#allocation3 + $0x16c] ss:$12 sps:$4 sm:$0xff]  }
 0x3f6   : > { %v5689_v42 = vpop.f32.mrb[42].mxu1 }
 0x3f7   : > { %13480 = vst [vmem:[#allocation13_spill] sm:$0xff] %v12491_v39  ;;  %6656 = vmatmul.mubr.bf16.gmra.mrb[132].mxu0 %v9996_v36  ;;  %v5691_v27 = vpop.f32.mrb[43].mxu1 }
 0x3f8   : > { %6663 = vmatprep.mubr.bf16.mxu0 %v9997_v28 }
 0x3f9   : > { %9523 = vmatmul.mubr.bf16.gmra.mrb[148].mxu1 %v9998_v25 }
 0x3fa   : > { %v5116_v41 = vpop.f32.mrb[28].mxu0  ;;  %9526 = vmatprep.mubr.bf16.mxu1 %v9999_v7 }
 0x3fb   : > { %v12495_v57 = vadd.f32 %v9420_v5, %v5116_v41  ;;  %v5118_v14 = vpop.f32.mrb[29].mxu0 }
 0x3fc   : > { %v5119_v17 = vpop.f32.mrb[30].mxu0  ;;  %v5694_v12 = vpop.f32.mrb[44].mxu1 }
 0x3fd   : > { %13483 = vst [vmem:[#allocation16_spill] sm:$0xff] %v12495_v57  ;;  %v12497_v46 = vadd.f32 %v9421_v22, %v5119_v17  ;;  %v5121_v2 = vpop.f32.mrb[31].mxu0  ;;  %v5696_v38 = vpop.f32.mrb[45].mxu1 }
 0x3fe   : > { %v5697_v5 = vpop.f32.mrb[46].mxu1  ;;  %v10002_v2 = vld [vmem:[#allocation3 + $0x140] ss:$12 sps:$4 sm:$0xff]  }
 0x3ff   : > { %13484 = vst [vmem:[#allocation15_spill] sm:$0xff] %v12497_v46  ;;  %6664 = vmatmul.mubr.bf16.gmra.mrb[136].mxu0 %v10000_v18  ;;  %v5699_v9 = vpop.f32.mrb[47].mxu1  ;;  %v10003_v18 = vld [vmem:[#allocation3 + $0x158] ss:$12 sps:$4 sm:$0xff]  }
 0x400   : > { %6671 = vmatprep.mubr.bf16.mxu0 %v10001_v44  ;;  %v10004_v44 = vld [vmem:[#allocation3 + $0x168] ss:$12 sps:$4 sm:$0xff]  }
 0x401   : > { %9527 = vmatmul.mubr.bf16.gmra.mrb[152].mxu1 %v10002_v2  ;;  %v13490_v2 = vld [vmem:[#allocation39_spill] sm:$0xff] }
 0x402   : > { %v9440_v48 = vpop.f32.mrb[32].mxu0  ;;  %9530 = vmatprep.mubr.bf16.mxu1 %v10003_v18 }
 0x403   : > { %v5904_v36 = vadd.f32 %v9440_v48, %v5678_v52  ;;  %v5895_v28 = vpop.f32.mrb[33].mxu0  ;;  %v10005_v52 = vld [vmem:[#allocation3 + $0x184] ss:$12 sps:$4 sm:$0xff]  }
 0x404   : > { %v12499_v41 = vadd.f32 %v5895_v28, %v5670_v10  ;;  %v9441_v22 = vpop.f32.mrb[34].mxu0  ;;  %v5702_v28 = vpop.f32.mrb[48].mxu1 }
 0x405   : > { %v5907_v14 = vadd.f32 %v9441_v22, %v5681_v59  ;;  %v5898_v27 = vpop.f32.mrb[35].mxu0  ;;  %v6088_v25 = vrot.slane %v5904_v36, 7  ;;  %v13487_v59 = vld [vmem:[#allocation5_spill] sm:$0xff]  ;;  %v5704_v22 = vpop.f32.mrb[49].mxu1 }
 0x406   : > { %13485 = vst [vmem:[#allocation22_spill] sm:$0xff] %v12499_v41  ;;  %v5899_v17 = vadd.f32 %v5898_v27, %v5673_v37  ;;  %v13327_v38 = vrot.slane %v12499_v41, 7  ;;  %v13489_v27 = vld [vmem:[#allocation37_spill] sm:$0xff] }
 0x407   : > { %v6089_v7 = vrot.slane %v5907_v14, 7  ;;  %6672 = vmatmul.mubr.bf16.gmra.mrb[140].mxu0 %v10004_v44  ;;  %v5705_v44 = vpop.f32.mrb[50].mxu1 }
 0x408   : > { %v6087_v46 = vrot.slane %v5899_v17, 7  ;;  %6679 = vmatprep.mubr.bf16.mxu0 %v10005_v52 }
 0x409   : > { %v6178_v10 = vsel %vm2445_vm0, %v6088_v25, %v6089_v7  ;;  %9531 = vmatmul.mubr.bf16.gmra.mrb[156].mxu1 %v10006_v8 }
 0x40a   : > { %v12505_v9 = vadd.f32 %v6178_v10, %v13487_v59  ;;  %v6179_v37 = vsel %vm2445_vm0, %v6087_v46, %v6088_v25  ;;  %v6180_v36 = vsel %vm2445_vm0, %v13327_v38, %v6087_v46  ;;  %v9444_v14 = vpop.f32.mrb[36].mxu0  ;;  %v5707_v59 = vpop.f32.mrb[51].mxu1  ;;  %v10007_v38 = vld [vmem:[#allocation3 + $0x188] ss:$12 sps:$4 sm:$0xff]  }
 0x40b   : > { %v12514_v17 = vadd.f32 %v6180_v36, %v13489_v27  ;;  %v12517_v18 = vadd.f32 %v6179_v37, %v13490_v2  ;;  %v5920_v52 = vadd.f32 %v9444_v14, %v5694_v12  ;;  %v5911_v10 = vpop.f32.mrb[37].mxu0  ;;  %9534 = vmatprep.mubr.bf16.mxu1 %v10007_v38  ;;  %v10008_v36 = vld [vmem:[#allocation3 + $0x180] ss:$12 sps:$4 sm:$0xff]   ;;  %v10009_v14 = vld [vmem:[#allocation3 + $0x19c] ss:$12 sps:$4 sm:$0xff]  }
 0x40c   : > { %13488 = vst [vmem:[#allocation17_spill] sm:$0xff] %v12505_v9  ;;  %v5912_v9 = vadd.f32 %v5911_v10, %v5686_v60  ;;  %v9445_v57 = vpop.f32.mrb[38].mxu0  ;;  %v13491_v60 = vld [vmem:[#allocation7_spill] sm:$0xff] }
 0x40d   : > { %v5923_v25 = vadd.f32 %v9445_v57, %v5697_v5  ;;  %v5914_v39 = vpop.f32.mrb[39].mxu0  ;;  %v6092_v46 = vrot.slane %v5920_v52, 7  ;;  %v5710_v57 = vpop.f32.mrb[52].mxu1 }
 0x40e   : > { %v6090_v41 = vrot.slane %v5912_v9, 7  ;;  %v5915_v54 = vadd.f32 %v5914_v39, %v5689_v42  ;;  %v13492_v9 = vld [vmem:[#allocation12_spill] sm:$0xff] }
 0x40f   : > { %v6093_v22 = vrot.slane %v5923_v25, 7  ;;  %6680 = vmatmul.mubr.bf16.gmra.mrb[144].mxu0 %v10008_v36 }
 0x410   : > { %v6177_v37 = vsel %vm2445_vm0, %v6089_v7, %v6090_v41  ;;  %v6091_v12 = vrot.slane %v5915_v54, 7  ;;  %6687 = vmatprep.mubr.bf16.mxu0 %v10009_v14  ;;  %v5712_v7 = vpop.f32.mrb[53].mxu1 }
 0x411   : > { %v12522_v27 = vadd.f32 %v6177_v37, %v13491_v60  ;;  %v6174_v39 = vsel %vm2445_vm0, %v6092_v46, %v6093_v22  ;;  %v5713_v52 = vpop.f32.mrb[54].mxu1  ;;  %v10011_v7 = vld [vmem:[#allocation3 + $0x1b8] ss:$12 sps:$4 sm:$0xff]  }
 0x412   : > { %v12527_v8 = vadd.f32 %v6174_v39, %v12325_v34  ;;  %v6175_v42 = vsel %vm2445_vm0, %v6091_v12, %v6092_v46  ;;  %v6176_v5 = vsel %vm2445_vm0, %v6090_v41, %v6091_v12  ;;  %v9448_v54 = vpop.f32.mrb[40].mxu0  ;;  %v5715_v25 = vpop.f32.mrb[55].mxu1  ;;  %v10010_v39 = vld [vmem:[#allocation3 + $0x1a0] ss:$12 sps:$4 sm:$0xff]  }
 0x413   : > { %v12534_v38 = vadd.f32 %v6176_v5, %v12318_v21  ;;  %v12537_v2 = vadd.f32 %v6175_v42, %v13492_v9  ;;  %v5936_v10 = vadd.f32 %v9448_v54, %v5710_v57  ;;  %v5927_v59 = vpop.f32.mrb[41].mxu0  ;;  %9535 = vmatmul.mubr.bf16.gmra.mrb[160].mxu1 %v10010_v39  ;;  %v10012_v21 = vld [vmem:[#allocation3 + $0x198] ss:$12 sps:$4 sm:$0xff]   ;;  %v10013_v5 = vld [vmem:[#allocation3 + $0x1b4] ss:$12 sps:$4 sm:$0xff]   ;;  %v13493_v25 = vld [vmem:[#allocation10_spill] sm:$0xff] }
 0x414   : > { %v5928_v34 = vadd.f32 %v5927_v59, %v5702_v28  ;;  %v9449_v36 = vpop.f32.mrb[42].mxu0  ;;  %9538 = vmatprep.mubr.bf16.mxu1 %v10011_v7  ;;  %v5718_v54 = vpop.f32.mrb[56].mxu1 }
 0x415   : > { %v5939_v37 = vadd.f32 %v9449_v36, %v5713_v52  ;;  %v5930_v14 = vpop.f32.mrb[43].mxu0  ;;  %v6096_v41 = vrot.slane %v5936_v10, 7 }
 0x416   : > { %v6094_v46 = vrot.slane %v5928_v34, 7  ;;  %v5931_v60 = vadd.f32 %v5930_v14, %v5705_v44 }
 0x417   : > { %v6097_v12 = vrot.slane %v5939_v37, 7  ;;  %6688 = vmatmul.mubr.bf16.gmra.mrb[148].mxu0 %v10012_v21 }
 0x418   : > { %v6173_v42 = vsel %vm2445_vm0, %v6093_v22, %v6094_v46  ;;  %v6095_v57 = vrot.slane %v5931_v60, 7  ;;  %6695 = vmatprep.mubr.bf16.mxu0 %v10013_v5  ;;  %v5720_v22 = vpop.f32.mrb[57].mxu1 }
 0x419   : > { %v12542_v28 = vadd.f32 %v6173_v42, %v12340_v6  ;;  %v6170_v44 = vsel %vm2445_vm0, %v6096_v41, %v6097_v12  ;;  %v5721_v36 = vpop.f32.mrb[58].mxu1  ;;  %v10015_v42 = vld [vmem:[#allocation3 + $0x1e8] ss:$12 sps:$4 sm:$0xff]  }
 0x41a   : > { %v12547_v9 = vadd.f32 %v6170_v44, %v12360_v0  ;;  %v6171_v52 = vsel %vm2445_vm0, %v6095_v57, %v6096_v41  ;;  %v6172_v10 = vsel %vm2445_vm0, %v6094_v46, %v6095_v57  ;;  %v9452_v59 = vpop.f32.mrb[44].mxu0  ;;  %v5723_v14 = vpop.f32.mrb[59].mxu1  ;;  %v10014_v41 = vld [vmem:[#allocation3 + $0x1d0] ss:$12 sps:$4 sm:$0xff]  }
 0x41b   : > { %v12554_v34 = vadd.f32 %v6172_v10, %v13493_v25  ;;  %v12557_v6 = vadd.f32 %v6171_v52, %v12358_v45  ;;  %v5943_v37 = vpop.f32.mrb[45].mxu0  ;;  %9539 = vmatmul.mubr.bf16.gmra.mrb[164].mxu1 %v10014_v41  ;;  %v10016_v46 = vld [vmem:[#allocation3 + $0x1b0] ss:$12 sps:$4 sm:$0xff]   ;;  %v10017_v45 = vld [vmem:[#allocation3 + $0x1cc] ss:$12 sps:$4 sm:$0xff]  }
 0x41c   : > { %v5944_v60 = vadd.f32 %v5943_v37, %v5718_v54  ;;  %v9453_v0 = vpop.f32.mrb[46].mxu0  ;;  %9542 = vmatprep.mubr.bf16.mxu1 %v10015_v42  ;;  %v5726_v54 = vpop.f32.mrb[60].mxu1 }
 0x41d   : > { %v5946_v39 = vpop.f32.mrb[47].mxu0  ;;  %v5952_v10 = vadd.f32 %v9452_v59, %v5726_v54  ;;  %v5728_v22 = vpop.f32.mrb[61].mxu1 }
 0x41e   : > { %v6098_v7 = vrot.slane %v5944_v60, 7  ;;  %v5947_v21 = vadd.f32 %v5946_v39, %v5721_v36  ;;  %v5729_v37 = vpop.f32.mrb[62].mxu1 }
 0x41f   : > { %6696 = vmatmul.mubr.bf16.gmra.mrb[152].mxu0 %v10016_v46  ;;  %v6100_v60 = vrot.slane %v5952_v10, 7  ;;  %v5731_v39 = vpop.f32.mrb[63].mxu1  ;;  %v10018_v46 = vld [vmem:[#allocation3 + $0x200] ss:$12 sps:$4 sm:$0xff]  }
 0x420   : > { %v6169_v57 = vsel %vm2445_vm0, %v6097_v12, %v6098_v7  ;;  %v6099_v5 = vrot.slane %v5947_v21, 7  ;;  %6703 = vmatprep.mubr.bf16.mxu0 %v10017_v45  ;;  %v5955_v12 = vadd.f32 %v9453_v0, %v5729_v37  ;;  %v10021_v0 = vld [vmem:[#allocation3 + $0x1e4] ss:$12 sps:$4 sm:$0xff]  }
 0x421   : > { %v12562_v44 = vadd.f32 %v6169_v57, %v12366_v23 }
 0x422   : > { %v6168_v52 = vsel %vm2445_vm0, %v6098_v7, %v6099_v5  ;;  %v9456_v25 = vpop.f32.mrb[48].mxu0  ;;  %v6167_v23 = vsel %vm2445_vm0, %v6099_v5, %v6100_v60  ;;  %v6101_v42 = vrot.slane %v5955_v12, 7  ;;  %v10019_v7 = vld [vmem:[#allocation3 + $0x218] ss:$12 sps:$4 sm:$0xff]  }
 0x423   : > { %v12567_v36 = vadd.f32 %v6168_v52, %v12368_v33  ;;  %v5959_v14 = vpop.f32.mrb[49].mxu0  ;;  %9543 = vmatmul.mubr.bf16.gmra.mrb[168].mxu1 %v10018_v46  ;;  %v12572_v59 = vadd.f32 %v6167_v23, %v12374_v16  ;;  %v10020_v33 = vld [vmem:[#allocation3 + $0x1c8] ss:$12 sps:$4 sm:$0xff]  }
 0x424   : > { %v9457_v21 = vpop.f32.mrb[50].mxu0  ;;  %9546 = vmatprep.mubr.bf16.mxu1 %v10019_v7  ;;  %v6166_v57 = vsel %vm2445_vm0, %v6100_v60, %v6101_v42  ;;  %v5734_v54 = vpop.f32.mrb[64].mxu1 }
 0x425   : > { %v5962_v41 = vpop.f32.mrb[51].mxu0  ;;  %v12577_v45 = vadd.f32 %v6166_v57, %v12376_v63  ;;  %v5960_v5 = vadd.f32 %v5959_v14, %v5734_v54  ;;  %v5736_v52 = vpop.f32.mrb[65].mxu1  ;;  %v10023_v57 = vld [vmem:[#allocation3 + $0x1e0] ss:$12 sps:$4 sm:$0xff]  }
 0x426   : > { %v5737_v22 = vpop.f32.mrb[66].mxu1 }
 0x427   : > { %6704 = vmatmul.mubr.bf16.gmra.mrb[156].mxu0 %v10020_v33  ;;  %v6102_v16 = vrot.slane %v5960_v5, 7  ;;  %v5963_v12 = vadd.f32 %v5962_v41, %v5737_v22  ;;  %v5739_v39 = vpop.f32.mrb[67].mxu1  ;;  %v10022_v33 = vld [vmem:[#allocation3 + $0x230] ss:$12 sps:$4 sm:$0xff]  }
 0x428   : > { %6711 = vmatprep.mubr.bf16.mxu0 %v10021_v0  ;;  %v10024_v0 = vld [vmem:[#allocation3 + $0x1fc] ss:$12 sps:$4 sm:$0xff]  }
 0x429   : > { %v6165_v7 = vsel %vm2445_vm0, %v6101_v42, %v6102_v16  ;;  %v6103_v60 = vrot.slane %v5963_v12, 7 }
 0x42a   : > { %v9460_v10 = vpop.f32.mrb[52].mxu0  ;;  %v12582_v63 = vadd.f32 %v6165_v7, %v12382_v47 }
 0x42b   : > { %v5975_v37 = vpop.f32.mrb[53].mxu0  ;;  %9547 = vmatmul.mubr.bf16.gmra.mrb[172].mxu1 %v10022_v33  ;;  %v6164_v14 = vsel %vm2445_vm0, %v6102_v16, %v6103_v60 }
 0x42c   : > { %v9461_v23 = vpop.f32.mrb[54].mxu0  ;;  %13494 = vst [vmem:[#allocation14_spill] sm:$0xff] %v12582_v63  ;;  %v12587_v41 = vadd.f32 %v6164_v14, %v12384_v11  ;;  %v5742_v54 = vpop.f32.mrb[68].mxu1  ;;  %v10025_v14 = vld [vmem:[#allocation3 + $0x1f8] ss:$12 sps:$4 sm:$0xff]  }
 0x42d   : > { %v5978_v46 = vpop.f32.mrb[55].mxu0  ;;  %v5968_v5 = vadd.f32 %v9456_v25, %v5742_v54  ;;  %v5744_v52 = vpop.f32.mrb[69].mxu1  ;;  %v10026_v54 = vld [vmem:[#allocation3 + $0x214] ss:$12 sps:$4 sm:$0xff]  }
 0x42e   : > { %13495 = vst [vmem:[#allocation18_spill] sm:$0xff] %v12587_v41  ;;  %v5745_v22 = vpop.f32.mrb[70].mxu1 }
 0x42f   : > { %6712 = vmatmul.mubr.bf16.gmra.mrb[160].mxu0 %v10023_v57  ;;  %v6104_v39 = vrot.slane %v5968_v5, 7  ;;  %v5971_v47 = vadd.f32 %v9457_v21, %v5745_v22  ;;  %v5747_v7 = vpop.f32.mrb[71].mxu1 }
 0x430   : > { %6719 = vmatprep.mubr.bf16.mxu0 %v10024_v0 }
 0x431   : > { %v6163_v16 = vsel %vm2445_vm0, %v6103_v60, %v6104_v39  ;;  %v6105_v0 = vrot.slane %v5971_v47, 7 }
 0x432   : > { %v12589_v42 = vpop.f32.mrb[56].mxu0  ;;  %v12596_v11 = vadd.f32 %v6163_v16, %v12390_v20 }
 0x433   : > { %v5991_v12 = vpop.f32.mrb[57].mxu0  ;;  %v6162_v25 = vsel %vm2445_vm0, %v6104_v39, %v6105_v0 }
 0x434   : > { %v12591_v33 = vpop.f32.mrb[58].mxu0  ;;  %v12601_v21 = vadd.f32 %v6162_v25, %v12392_v53  ;;  %v5750_v5 = vpop.f32.mrb[72].mxu1 }
 0x435   : > { %v5994_v57 = vpop.f32.mrb[59].mxu0  ;;  %v5976_v52 = vadd.f32 %v5975_v37, %v5750_v5  ;;  %v5752_v22 = vpop.f32.mrb[73].mxu1  ;;  %v10027_v37 = vld [vmem:[#allocation3 + $0x210] ss:$12 sps:$4 sm:$0xff]   ;;  %v10028_v5 = vld [vmem:[#allocation3 + $0x22c] ss:$12 sps:$4 sm:$0xff]  }
 0x436   : > { %13496 = vst [vmem:[#allocation33_spill] sm:$0xff] %v12601_v21  ;;  %v5753_v60 = vpop.f32.mrb[74].mxu1 }
 0x437   : > { %6720 = vmatmul.mubr.bf16.gmra.mrb[164].mxu0 %v10025_v14  ;;  %v6106_v20 = vrot.slane %v5976_v52, 7  ;;  %v5979_v16 = vadd.f32 %v5978_v46, %v5753_v60  ;;  %v5755_v41 = vpop.f32.mrb[75].mxu1 }
 0x438   : > { %6727 = vmatprep.mubr.bf16.mxu0 %v10026_v54 }
 0x439   : > { %v6161_v39 = vsel %vm2445_vm0, %v6105_v0, %v6106_v20  ;;  %v6107_v53 = vrot.slane %v5979_v16, 7 }
 0x43a   : > { %v12603_v7 = vpop.f32.mrb[60].mxu0  ;;  %v12614_v25 = vadd.f32 %v6161_v39, %v12398_v26 }
 0x43b   : > { %v12605_v47 = vpop.f32.mrb[61].mxu0  ;;  %v6160_v54 = vsel %vm2445_vm0, %v6106_v20, %v6107_v53 }
 0x43c   : > { %v12607_v14 = vpop.f32.mrb[62].mxu0  ;;  %13497 = vst [vmem:[#allocation19_spill] sm:$0xff] %v12614_v25  ;;  %v12619_v46 = vadd.f32 %v6160_v54, %v12400_v43  ;;  %v5758_v41 = vpop.f32.mrb[76].mxu1 }
 0x43d   : > { %v12609_v63 = vpop.f32.mrb[63].mxu0  ;;  %v5984_v52 = vadd.f32 %v9460_v10, %v5758_v41  ;;  %v5760_v22 = vpop.f32.mrb[77].mxu1  ;;  %v10029_v10 = vld [vmem:[#allocation3 + $0x228] ss:$12 sps:$4 sm:$0xff]  }
 0x43e   : > { %13498 = vst [vmem:[#allocation20_spill] sm:$0xff] %v12619_v46  ;;  %v5761_v0 = vpop.f32.mrb[78].mxu1 }
 0x43f   : > { %6728 = vmatmul.mubr.bf16.gmra.mrb[168].mxu0 %v10027_v37  ;;  %v6108_v26 = vrot.slane %v5984_v52, 7  ;;  %v5987_v39 = vadd.f32 %v9461_v23, %v5761_v0  ;;  %v5763_v25 = vpop.f32.mrb[79].mxu1 }
 0x440   : > { %6735 = vmatprep.mubr.bf16.mxu0 %v10028_v5 }
 0x441   : > { %v6159_v20 = vsel %vm2445_vm0, %v6107_v53, %v6108_v26  ;;  %v6109_v43 = vrot.slane %v5987_v39, 7 }
 0x442   : > { %v12621_v60 = vpop.f32.mrb[64].mxu0  ;;  %v12632_v54 = vadd.f32 %v6159_v20, %v12406_v55 }
 0x443   : > { %v12623_v16 = vpop.f32.mrb[65].mxu0  ;;  %v6158_v5 = vsel %vm2445_vm0, %v6108_v26, %v6109_v43 }
 0x444   : > { %v12625_v37 = vpop.f32.mrb[66].mxu0  ;;  %13499 = vst [vmem:[#allocation24_spill] sm:$0xff] %v12632_v54  ;;  %v12637_v41 = vadd.f32 %v6158_v5, %v12408_v29  ;;  %v5766_v23 = vpop.f32.mrb[80].mxu1 }
 0x445   : > { %v12627_v21 = vpop.f32.mrb[67].mxu0  ;;  %v5992_v25 = vadd.f32 %v5991_v12, %v5766_v23  ;;  %v5768_v52 = vpop.f32.mrb[81].mxu1 }
 0x446   : > { %13500 = vst [vmem:[#allocation25_spill] sm:$0xff] %v12637_v41  ;;  %v5769_v0 = vpop.f32.mrb[82].mxu1 }
 0x447   : > { %6736 = vmatmul.mubr.bf16.gmra.mrb[172].mxu0 %v10029_v10  ;;  %v6110_v53 = vrot.slane %v5992_v25, 7  ;;  %v5995_v39 = vadd.f32 %v5994_v57, %v5769_v0  ;;  %v5771_v55 = vpop.f32.mrb[83].mxu1 }
 0x449   : > { %v6157_v26 = vsel %vm2445_vm0, %v6109_v43, %v6110_v53  ;;  %v6111_v29 = vrot.slane %v5995_v39, 7 }
 0x44a   : > { %v12639_v22 = vpop.f32.mrb[68].mxu0  ;;  %v12650_v5 = vadd.f32 %v6157_v26, %v12414_v3 }
 0x44b   : > { %v12641_v46 = vpop.f32.mrb[69].mxu0  ;;  %v6156_v12 = vsel %vm2445_vm0, %v6110_v53, %v6111_v29 }
 0x44c   : > { %v12643_v20 = vpop.f32.mrb[70].mxu0  ;;  %13501 = vst [vmem:[#allocation26_spill] sm:$0xff] %v12650_v5  ;;  %v12655_v23 = vadd.f32 %v6156_v12, %v12416_v15  ;;  %v5774_v25 = vpop.f32.mrb[84].mxu1 }
 0x44d   : > { %v12645_v10 = vpop.f32.mrb[71].mxu0  ;;  %v6000_v57 = vadd.f32 %v12589_v42, %v5774_v25  ;;  %v5776_v52 = vpop.f32.mrb[85].mxu1 }
 0x44e   : > { %13502 = vst [vmem:[#allocation6_spill] sm:$0xff] %v12655_v23  ;;  %v5777_v55 = vpop.f32.mrb[86].mxu1 }
 0x44f   : > { %v6112_v43 = vrot.slane %v6000_v57, 7  ;;  %v6003_v39 = vadd.f32 %v12591_v33, %v5777_v55  ;;  %v5779_v3 = vpop.f32.mrb[87].mxu1 }
 0x451   : > { %v6155_v15 = vsel %vm2445_vm0, %v6111_v29, %v6112_v43  ;;  %v6113_v53 = vrot.slane %v6003_v39, 7 }
 0x452   : > { %v12658_v0 = vpop.f32.mrb[72].mxu0  ;;  %v12670_v42 = vadd.f32 %v6155_v15, %v12422_v19 }
 0x453   : > { %v12660_v41 = vpop.f32.mrb[73].mxu0  ;;  %v6154_v12 = vsel %vm2445_vm0, %v6112_v43, %v6113_v53 }
 0x454   : > { %v12663_v26 = vpop.f32.mrb[74].mxu0  ;;  %13503 = vst [vmem:[#allocation8_spill] sm:$0xff] %v12670_v42  ;;  %v12675_v25 = vadd.f32 %v6154_v12, %v12424_v31  ;;  %v5782_v57 = vpop.f32.mrb[88].mxu1 }
 0x455   : > { %v12665_v5 = vpop.f32.mrb[75].mxu0  ;;  %v6008_v33 = vadd.f32 %v12605_v47, %v5782_v57  ;;  %v5784_v52 = vpop.f32.mrb[89].mxu1 }
 0x456   : > { %13504 = vst [vmem:[#allocation27_spill] sm:$0xff] %v12675_v25  ;;  %v5785_v3 = vpop.f32.mrb[90].mxu1 }
 0x457   : > { %v6114_v29 = vrot.slane %v6008_v33, 7  ;;  %v6011_v39 = vadd.f32 %v12609_v63, %v5785_v3  ;;  %v5787_v19 = vpop.f32.mrb[91].mxu1 }
 0x459   : > { %v6153_v31 = vsel %vm2445_vm0, %v6113_v53, %v6114_v29  ;;  %v6115_v43 = vrot.slane %v6011_v39, 7 }
 0x45a   : > { %v12678_v55 = vpop.f32.mrb[76].mxu0  ;;  %v12690_v47 = vadd.f32 %v6153_v31, %v12430_v40 }
 0x45b   : > { %v12680_v23 = vpop.f32.mrb[77].mxu0  ;;  %v6152_v12 = vsel %vm2445_vm0, %v6114_v29, %v6115_v43 }
 0x45c   : > { %v12683_v15 = vpop.f32.mrb[78].mxu0  ;;  %13505 = vst [vmem:[#allocation28_spill] sm:$0xff] %v12690_v47  ;;  %v12695_v57 = vadd.f32 %v6152_v12, %v12432_v61  ;;  %v5790_v33 = vpop.f32.mrb[92].mxu1  ;;  %v13534_v47 = vld [vmem:[#allocation17_spill] sm:$0xff] }
 0x45d   : > { %v12685_v42 = vpop.f32.mrb[79].mxu0  ;;  %v6016_v63 = vadd.f32 %v12603_v7, %v5790_v33  ;;  %v5792_v52 = vpop.f32.mrb[93].mxu1 }
 0x45e   : > { %13506 = vst [vmem:[#allocation29_spill] sm:$0xff] %v12695_v57  ;;  %v5793_v19 = vpop.f32.mrb[94].mxu1 }
 0x45f   : > { %v6116_v54 = vrot.slane %v6016_v63, 7  ;;  %v6019_v53 = vadd.f32 %v12607_v14, %v5793_v19  ;;  %v5795_v39 = vpop.f32.mrb[95].mxu1 }
 0x461   : > { %v6151_v29 = vsel %vm2445_vm0, %v6115_v43, %v6116_v54  ;;  %v6117_v61 = vrot.slane %v6019_v53, 7 }
 0x462   : > { %v12698_v3 = vpop.f32.mrb[80].mxu0  ;;  %v12706_v12 = vadd.f32 %v6151_v29, %v12438_v51 }
 0x463   : > { %v6555_v25 = vpop.f32.mrb[81].mxu0  ;;  %v6150_v7 = vsel %vm2445_vm0, %v6116_v54, %v6117_v61 }
 0x464   : > { %v12701_v40 = vpop.f32.mrb[82].mxu0  ;;  %13507 = vst [vmem:[#allocation32_spill] sm:$0xff] %v12706_v12  ;;  %v12711_v33 = vadd.f32 %v6150_v7, %v12440_v24  ;;  %v5798_v25 = vpop.f32.mrb[96].mxu1 }
 0x465   : > { %v6558_v31 = vpop.f32.mrb[83].mxu0  ;;  %v6024_v14 = vadd.f32 %v12623_v16, %v5798_v25  ;;  %v5800_v63 = vpop.f32.mrb[97].mxu1 }
 0x466   : > { %13508 = vst [vmem:[#allocation30_spill] sm:$0xff] %v12711_v33  ;;  %v5801_v19 = vpop.f32.mrb[98].mxu1 }
 0x467   : > { %v6118_v31 = vrot.slane %v6024_v14, 7  ;;  %v6027_v43 = vadd.f32 %v12627_v21, %v5801_v19  ;;  %v5803_v53 = vpop.f32.mrb[99].mxu1 }
 0x469   : > { %v6149_v54 = vsel %vm2445_vm0, %v6117_v61, %v6118_v31  ;;  %v6119_v24 = vrot.slane %v6027_v43, 7 }
 0x46a   : > { %v12714_v52 = vpop.f32.mrb[84].mxu0  ;;  %v12722_v7 = vadd.f32 %v6149_v54, %v12446_v35 }
 0x46b   : > { %v6563_v39 = vpop.f32.mrb[85].mxu0  ;;  %v6148_v16 = vsel %vm2445_vm0, %v6118_v31, %v6119_v24 }
 0x46c   : > { %v12717_v51 = vpop.f32.mrb[86].mxu0  ;;  %13509 = vst [vmem:[#allocation31_spill] sm:$0xff] %v12722_v7  ;;  %v12727_v25 = vadd.f32 %v6148_v16, %v12448_v30  ;;  %v5806_v14 = vpop.f32.mrb[100].mxu1 }
 0x46d   : > { %v6566_v29 = vpop.f32.mrb[87].mxu0  ;;  %v6032_v21 = vadd.f32 %v12621_v60, %v5806_v14  ;;  %v5808_v63 = vpop.f32.mrb[101].mxu1 }
 0x46e   : > { %13510 = vst [vmem:[#allocation34_spill] sm:$0xff] %v12727_v25  ;;  %v5809_v39 = vpop.f32.mrb[102].mxu1 }
 0x46f   : > { %v6120_v29 = vrot.slane %v6032_v21, 7  ;;  %v6035_v61 = vadd.f32 %v12625_v37, %v5809_v39  ;;  %v5811_v43 = vpop.f32.mrb[103].mxu1 }
 0x471   : > { %v6147_v31 = vsel %vm2445_vm0, %v6119_v24, %v6120_v29  ;;  %v6121_v30 = vrot.slane %v6035_v61, 7 }
 0x472   : > { %v12730_v19 = vpop.f32.mrb[88].mxu0  ;;  %v12738_v16 = vadd.f32 %v6147_v31, %v12454_v58 }
 0x473   : > { %v6571_v53 = vpop.f32.mrb[89].mxu0  ;;  %v6146_v60 = vsel %vm2445_vm0, %v6120_v29, %v6121_v30 }
 0x474   : > { %v12733_v35 = vpop.f32.mrb[90].mxu0  ;;  %13511 = vst [vmem:[#allocation35_spill] sm:$0xff] %v12738_v16  ;;  %v12743_v14 = vadd.f32 %v6146_v60, %v12456_v56  ;;  %v5814_v21 = vpop.f32.mrb[104].mxu1 }
 0x475   : > { %v6574_v54 = vpop.f32.mrb[91].mxu0  ;;  %v6040_v37 = vadd.f32 %v12641_v46, %v5814_v21  ;;  %v5816_v63 = vpop.f32.mrb[105].mxu1 }
 0x476   : > { %13512 = vst [vmem:[#allocation23_spill] sm:$0xff] %v12743_v14  ;;  %v5817_v53 = vpop.f32.mrb[106].mxu1 }
 0x477   : > { %v6122_v54 = vrot.slane %v6040_v37, 7  ;;  %v6043_v24 = vadd.f32 %v12645_v10, %v5817_v53  ;;  %v5819_v61 = vpop.f32.mrb[107].mxu1 }
 0x479   : > { %v6145_v29 = vsel %vm2445_vm0, %v6121_v30, %v6122_v54  ;;  %v6123_v56 = vrot.slane %v6043_v24, 7 }
 0x47a   : > { %v12746_v39 = vpop.f32.mrb[92].mxu0  ;;  %v12754_v60 = vadd.f32 %v6145_v29, %v12462_v49 }
 0x47b   : > { %v6579_v43 = vpop.f32.mrb[93].mxu0  ;;  %v6144_v46 = vsel %vm2445_vm0, %v6122_v54, %v6123_v56 }
 0x47c   : > { %v12749_v58 = vpop.f32.mrb[94].mxu0  ;;  %13513 = vst [vmem:[#allocation21_spill] sm:$0xff] %v12754_v60  ;;  %v12759_v21 = vadd.f32 %v6144_v46, %v12464_v13  ;;  %v5822_v37 = vpop.f32.mrb[108].mxu1 }
 0x47d   : > { %v6582_v31 = vpop.f32.mrb[95].mxu0  ;;  %v6048_v10 = vadd.f32 %v12639_v22, %v5822_v37  ;;  %v5824_v63 = vpop.f32.mrb[109].mxu1 }
 0x47e   : > { %13514 = vst [vmem:[#allocation38_spill] sm:$0xff] %v12759_v21  ;;  %v5825_v43 = vpop.f32.mrb[110].mxu1 }
 0x47f   : > { %v6124_v31 = vrot.slane %v6048_v10, 7  ;;  %v6051_v30 = vadd.f32 %v12643_v20, %v5825_v43  ;;  %v5827_v24 = vpop.f32.mrb[111].mxu1 }
 0x481   : > { %v6143_v54 = vsel %vm2445_vm0, %v6123_v56, %v6124_v31  ;;  %v6125_v13 = vrot.slane %v6051_v30, 7 }
 0x482   : > { %v12762_v53 = vpop.f32.mrb[96].mxu0  ;;  %v12770_v46 = vadd.f32 %v6143_v54, %v12470_v32 }
 0x483   : > { %v6587_v61 = vpop.f32.mrb[97].mxu0  ;;  %v6142_v22 = vsel %vm2445_vm0, %v6124_v31, %v6125_v13 }
 0x484   : > { %v12765_v49 = vpop.f32.mrb[98].mxu0  ;;  %13515 = vst [vmem:[#allocation5_spill] sm:$0xff] %v12770_v46  ;;  %v12775_v37 = vadd.f32 %v6142_v22, %v12472_v62  ;;  %v5830_v10 = vpop.f32.mrb[112].mxu1 }
 0x485   : > { %v6590_v29 = vpop.f32.mrb[99].mxu0  ;;  %v6056_v20 = vadd.f32 %v12660_v41, %v5830_v10  ;;  %v5832_v63 = vpop.f32.mrb[113].mxu1 }
 0x486   : > { %13516 = vst [vmem:[#allocation37_spill] sm:$0xff] %v12775_v37  ;;  %v5833_v61 = vpop.f32.mrb[114].mxu1 }
 0x487   : > { %v6126_v29 = vrot.slane %v6056_v20, 7  ;;  %v6059_v56 = vadd.f32 %v12665_v5, %v5833_v61  ;;  %v5835_v30 = vpop.f32.mrb[115].mxu1 }
 0x489   : > { %v6141_v31 = vsel %vm2445_vm0, %v6125_v13, %v6126_v29  ;;  %v6127_v62 = vrot.slane %v6059_v56, 7 }
 0x48a   : > { %v12778_v43 = vpop.f32.mrb[100].mxu0  ;;  %v12786_v22 = vadd.f32 %v6141_v31, %v12477_v4 }
 0x48b   : > { %v6595_v24 = vpop.f32.mrb[101].mxu0  ;;  %v6140_v41 = vsel %vm2445_vm0, %v6126_v29, %v6127_v62 }
 0x48c   : > { %v12781_v32 = vpop.f32.mrb[102].mxu0  ;;  %13517 = vst [vmem:[#allocation39_spill] sm:$0xff] %v12786_v22  ;;  %v12791_v10 = vadd.f32 %v6140_v41, %v12479_v50  ;;  %v5838_v20 = vpop.f32.mrb[116].mxu1 }
 0x48d   : > { %v6598_v54 = vpop.f32.mrb[103].mxu0  ;;  %v6064_v5 = vadd.f32 %v12658_v0, %v5838_v20  ;;  %v5840_v63 = vpop.f32.mrb[117].mxu1  ;;  %v13520_v20 = vld [vmem:[#allocation11_spill] sm:$0xff] }
 0x48e   : > { %13518 = vst [vmem:[#allocation7_spill] sm:$0xff] %v12791_v10  ;;  %v5841_v24 = vpop.f32.mrb[118].mxu1 }
 0x48f   : > { %v6128_v54 = vrot.slane %v6064_v5, 7  ;;  %v6067_v13 = vadd.f32 %v12663_v26, %v5841_v24  ;;  %v5843_v56 = vpop.f32.mrb[119].mxu1 }
 0x491   : > { %v6139_v29 = vsel %vm2445_vm0, %v6127_v62, %v6128_v54  ;;  %v6129_v50 = vrot.slane %v6067_v13, 7 }
 0x492   : > { %v12794_v61 = vpop.f32.mrb[104].mxu0  ;;  %v12802_v41 = vadd.f32 %v6139_v29, %v12483_v1 }
 0x493   : > { %v6603_v30 = vpop.f32.mrb[105].mxu0  ;;  %v6138_v0 = vsel %vm2445_vm0, %v6128_v54, %v6129_v50 }
 0x494   : > { %v12797_v4 = vpop.f32.mrb[106].mxu0  ;;  %13519 = vst [vmem:[#allocation12_spill] sm:$0xff] %v12802_v41  ;;  %v12807_v63 = vadd.f32 %v6138_v0, %v13520_v20  ;;  %v5846_v5 = vpop.f32.mrb[120].mxu1  ;;  %v13522_v20 = vld [vmem:[#allocation9_spill] sm:$0xff] }
 0x495   : > { %v6606_v31 = vpop.f32.mrb[107].mxu0  ;;  %v6072_v26 = vadd.f32 %v12680_v23, %v5846_v5  ;;  %v5848_v24 = vpop.f32.mrb[121].mxu1  ;;  %v13524_v5 = vld [vmem:[#allocation13_spill] sm:$0xff] }
 0x496   : > { %13521 = vst [vmem:[#allocation10_spill] sm:$0xff] %v12807_v63  ;;  %v5849_v56 = vpop.f32.mrb[122].mxu1 }
 0x497   : > { %v6130_v10 = vrot.slane %v6072_v26, 7  ;;  %v6075_v62 = vadd.f32 %v12685_v42, %v5849_v56  ;;  %v5851_v13 = vpop.f32.mrb[123].mxu1 }
 0x499   : > { %v6137_v54 = vsel %vm2445_vm0, %v6129_v50, %v6130_v10  ;;  %v6131_v0 = vrot.slane %v6075_v62, 7 }
 0x49a   : > { %v12810_v30 = vpop.f32.mrb[108].mxu0  ;;  %v12818_v63 = vadd.f32 %v6137_v54, %v13522_v20 }
 0x49b   : > { %v6611_v31 = vpop.f32.mrb[109].mxu0  ;;  %v6136_v23 = vsel %vm2445_vm0, %v6130_v10, %v6131_v0 }
 0x49c   : > { %v12813_v1 = vpop.f32.mrb[110].mxu0  ;;  %13523 = vst [vmem:[#allocation11_spill] sm:$0xff] %v12818_v63  ;;  %v12823_v24 = vadd.f32 %v6136_v23, %v13524_v5  ;;  %v5854_v26 = vpop.f32.mrb[124].mxu1 }
 0x49d   : > { %v6614_v29 = vpop.f32.mrb[111].mxu0  ;;  %v6080_v42 = vadd.f32 %v12678_v55, %v5854_v26  ;;  %v5856_v56 = vpop.f32.mrb[125].mxu1  ;;  %v13526_v55 = vld [vmem:[#allocation16_spill] sm:$0xff] }
 0x49e   : > { %13525 = vst [vmem:[#allocation9_spill] sm:$0xff] %v12823_v24  ;;  %v5857_v13 = vpop.f32.mrb[126].mxu1 }
 0x49f   : > { %v6132_v41 = vrot.slane %v6080_v42, 7  ;;  %v6083_v50 = vadd.f32 %v12683_v15, %v5857_v13  ;;  %v5859_v62 = vpop.f32.mrb[127].mxu1  ;;  %v13528_v42 = vld [vmem:[#allocation22_spill] sm:$0xff]  ;;  %v13530_v13 = vld [vmem:[#allocation36_spill] sm:$0xff] }
 0x4a0   : > { %v13529_v56 = vrot.slane %v13528_v42, 7  ;;  %v13531_v62 = vld [vmem:[#allocation15_spill] sm:$0xff] }
 0x4a1   : > { %v6135_v10 = vsel %vm2445_vm0, %v6131_v0, %v6132_v41  ;;  %v6133_v23 = vrot.slane %v6083_v50, 7 }
 0x4a2   : > { %v12826_v31 = vpop.f32.mrb[112].mxu0  ;;  %v12834_v5 = vadd.f32 %v6135_v10, %v13526_v55  ;;  %v12850_v55 = vld [vmem:[%s10121_s16 + $0x10] sm:$0xff]  }
 0x4a3   : > { %v6619_v29 = vpop.f32.mrb[113].mxu0  ;;  %v6134_v26 = vsel %vm2445_vm0, %v6132_v41, %v6133_v23  ;;  %v6181_v15 = vsel %vm2445_vm0, %v6133_v23, %v13529_v56  ;;  %v8384_v56 = vld [vmem:[%s10121_s16 + $0xc] sm:$0xf] }
 0x4a4   : > { %v12829_v54 = vpop.f32.mrb[114].mxu0  ;;  %13527 = vst [vmem:[#allocation13_spill] sm:$0xff] %v12834_v5  ;;  %v6182_v29 = vadd.f32 %v6181_v15, %v13530_v13  ;;  %v9504_v0 = vpop.f32.mrb[128].mxu1  ;;  %v12857_v15 = vld [vmem:[%s10121_s16 + $0x18] sm:$0xff]   ;;  %v7312_v22 = vunpack.c.l.bf16 %v8384_v56 }
 0x4a5   : > { %v6622_v20 = vpop.f32.mrb[115].mxu0  ;;  %v6787_v50 = vadd.f32 %v9504_v0, %v12714_v52  ;;  %v6778_v24 = vpop.f32.mrb[129].mxu1  ;;  %v12863_v52 = vld [vmem:[%s10121_s16 + $0x20] sm:$0xff]  }
 0x4a6   : > { %v12844_v20 = vadd.f32 %v6134_v26, %v13531_v62  ;;  %v12853_v41 = vadd.f32 %v6778_v24, %v12698_v3  ;;  %v9505_v42 = vpop.f32.mrb[130].mxu1  ;;  %v8695_v3 = vunpack.c.l.bf16 %v12850_v55  ;;  %v12893_v0 = vld [vmem:[%s13295_s4] ss:$0 sm:$0xff] }
 0x4a7   : > { %v6790_v26 = vadd.f32 %v9505_v42, %v12717_v51  ;;  %v6781_v13 = vpop.f32.mrb[131].mxu1  ;;  %v6971_v5 = vrot.slane %v6787_v50, 1  ;;  %v12873_v42 = vld [vmem:[%s10121_s16 + $0x30] sm:$0xff]   ;;  %v12887_v51 = vld [vmem:[%s10121_s16 + $0x40] sm:$0xff]  }
 0x4a8   : > { %13532 = vst [vmem:[#allocation16_spill] sm:$0xff] %v12844_v20  ;;  %13533 = vst [vmem:[#allocation22_spill] sm:$0xff] %v12853_v41  ;;  %v6782_v20 = vadd.f32 %v6781_v13, %v12701_v40  ;;  %v13329_v37 = vrot.slane %v12853_v41, 1 }
 0x4a9   : > { %v6972_v63 = vrot.slane %v6790_v26, 1  ;;  %v12884_v26 = vld [vmem:[%s10121_s16 + $0x38] sm:$0xff]  }
 0x4aa   : > { %v12847_v10 = vpop.f32.mrb[116].mxu0  ;;  %v6970_v46 = vrot.slane %v6782_v20, 1 }
 0x4ab   : > { %v6627_v23 = vpop.f32.mrb[117].mxu0  ;;  %v7061_v13 = vsel %vm3329_vm1, %v6971_v5, %v6972_v63 }
 0x4ac   : > { %v12860_v62 = vpop.f32.mrb[118].mxu0  ;;  %v12869_v23 = vld [vmem:[%s10121_s16 + $0x28] sm:$0xff]   ;;  %v7067_v20 = vadd.f32 %v7061_v13, %v12517_v18  ;;  %v7062_v40 = vsel %vm3329_vm1, %v6970_v46, %v6971_v5  ;;  %v7063_v50 = vsel %vm3329_vm1, %v13329_v37, %v6970_v46  ;;  %v9508_v56 = vpop.f32.mrb[132].mxu1 }
 0x4ad   : > { %v6630_v24 = vpop.f32.mrb[119].mxu0  ;;  %v7065_v21 = vadd.f32 %v7063_v50, %v6182_v29  ;;  %v7066_v60 = vadd.f32 %v7062_v40, %v12514_v17  ;;  %v6803_v18 = vadd.f32 %v9508_v56, %v12746_v39  ;;  %v6794_v13 = vpop.f32.mrb[133].mxu1  ;;  %v12908_v5 = vld [vmem:[%s10121_s16 + $0x48] sm:$0xff]  }
 0x4ae   : > { %v6795_v41 = vadd.f32 %v6794_v13, %v12730_v19  ;;  %v9509_v46 = vpop.f32.mrb[134].mxu1  ;;  %v12921_v19 = vld [vmem:[%s10121_s16 + $0x50] sm:$0xff]  }
 0x4af   : > { %v7216_v39 = vadd.f32 %v12893_v0, %v7065_v21  ;;  %v7217_v40 = vadd.f32 %v12893_v0, %v7066_v60  ;;  %v6806_v50 = vadd.f32 %v9509_v46, %v12749_v58  ;;  %v6797_v56 = vpop.f32.mrb[135].mxu1  ;;  %v8723_v21 = vunpack.c.l.bf16 %v12908_v5 }
 0x4b0   : > { %v6973_v13 = vrot.slane %v6795_v41, 1  ;;  %v6798_v29 = vadd.f32 %v6797_v56, %v12733_v35  ;;  %v6975_v58 = vrot.slane %v6803_v18, 1  ;;  %v8728_v33 = vunpack.c.h.bf16 %v12921_v19 }
 0x4b1   : > { %v7360_v60 = vadd.f32 %v7312_v22, %v7216_v39  ;;  %v7361_v24 = vadd.f32 %v8695_v3, %v7217_v40  ;;  %v6976_v46 = vrot.slane %v6806_v50, 1  ;;  %v13535_v22 = vunpack.c.h.bf16 %v12850_v55 }
 0x4b2   : > { %v12904_v14 = vpop.f32.mrb[120].mxu0  ;;  %v7060_v7 = vsel %vm3329_vm1, %v6972_v63, %v6973_v13  ;;  %v6974_v25 = vrot.slane %v6798_v29, 1 }
 0x4b3   : > { %v6635_v37 = vpop.f32.mrb[121].mxu0  ;;  %v7408_v57 = vmax.f32 %v7360_v60, 0.0  ;;  %v7409_v41 = vmax.f32 %v7361_v24, 0.0  ;;  %v7068_v12 = vadd.f32 %v7060_v7, %v13534_v47  ;;  %v7057_v35 = vsel %vm3329_vm1, %v6975_v58, %v6976_v46 }
 0x4b4   : > { %v12917_v16 = vpop.f32.mrb[122].mxu0  ;;  %v7218_v37 = vadd.f32 %v12893_v0, %v7067_v20  ;;  %v8724_v20 = vunpack.c.h.bf16 %v12908_v5  ;;  %v7071_v63 = vadd.f32 %v7057_v35, %v12537_v2  ;;  %v7058_v24 = vsel %vm3329_vm1, %v6974_v25, %v6975_v58  ;;  %v9512_v7 = vpop.f32.mrb[136].mxu1  ;;  %v13096_v5 = vld [vmem:[%s10121_s16 + $0x78] sm:$0xff]  }
 0x4b5   : > { %v6638_v17 = vpop.f32.mrb[123].mxu0  ;;  %v7059_v47 = vsel %vm3329_vm1, %v6973_v13, %v6974_v25  ;;  %v8788_v18 = vpack.c.bf16 %v7409_v41, %v7408_v57  ;;  %v7219_v29 = vadd.f32 %v12893_v0, %v7068_v12  ;;  %v7070_v39 = vadd.f32 %v7058_v24, %v12534_v38  ;;  %v6810_v40 = vpop.f32.mrb[137].mxu1 }
 0x4b6   : > { %v12935_v17 = vld [vmem:[%s10121_s16 + $0x58] sm:$0xff]   ;;  %v7362_v3 = vadd.f32 %v13535_v22, %v7218_v37  ;;  %v7069_v55 = vadd.f32 %v7059_v47, %v12522_v27  ;;  %v6819_v2 = vadd.f32 %v9512_v7, %v12778_v43  ;;  %v6811_v56 = vadd.f32 %v6810_v40, %v12762_v53  ;;  %v9513_v37 = vpop.f32.mrb[138].mxu1 }
 0x4b7   : > { %v8727_v58 = vunpack.c.l.bf16 %v12921_v19  ;;  %v8731_v25 = vunpack.c.l.bf16 %v12935_v17  ;;  %8789 = vst [vmem:[%s12942_s8] sm:$0xff] %v8788_v18   ;;  %v13536_v57 = vunpack.c.l.bf16 %v12857_v15  ;;  %v7221_v38 = vadd.f32 %v12893_v0, %v7070_v39  ;;  %v6813_v41 = vpop.f32.mrb[139].mxu1 }
 0x4b8   : > { %v7220_v27 = vadd.f32 %v12893_v0, %v7069_v55  ;;  %v6822_v13 = vadd.f32 %v9513_v37, %v12781_v32  ;;  %v7410_v53 = vmax.f32 %v7362_v3, 0.0  ;;  %v7222_v35 = vadd.f32 %v12893_v0, %v7071_v63 }
 0x4b9   : > { %v7363_v12 = vadd.f32 %v13536_v57, %v7219_v29  ;;  %v6977_v22 = vrot.slane %v6811_v56, 1  ;;  %v6814_v24 = vadd.f32 %v6813_v41, %v12765_v49  ;;  %v13537_v18 = vunpack.c.h.bf16 %v12857_v15 }
 0x4ba   : > { %v12952_v50 = vpop.f32.mrb[124].mxu0  ;;  %v13538_v55 = vunpack.c.l.bf16 %v12863_v52  ;;  %v6980_v32 = vrot.slane %v6822_v13, 1  ;;  %v6979_v40 = vrot.slane %v6819_v2, 1  ;;  %v8732_v63 = vunpack.c.h.bf16 %v12935_v17 }
 0x4bb   : > { %v6643_v60 = vpop.f32.mrb[125].mxu0  ;;  %v7411_v7 = vmax.f32 %v7363_v12, 0.0  ;;  %v7364_v29 = vadd.f32 %v13537_v18, %v7220_v27  ;;  %v7056_v3 = vsel %vm3329_vm1, %v6976_v46, %v6977_v22  ;;  %v6978_v37 = vrot.slane %v6814_v24, 1  ;;  %v12977_v12 = vld [vmem:[%s10121_s16 + $0x60] sm:$0xff]  }
 0x4bc   : > { %v12964_v43 = vpop.f32.mrb[126].mxu0  ;;  %v7365_v39 = vadd.f32 %v13538_v55, %v7221_v38  ;;  %v7072_v57 = vadd.f32 %v7056_v3, %v12527_v8  ;;  %v13539_v15 = vunpack.c.h.bf16 %v12863_v52  ;;  %v7053_v38 = vsel %vm3329_vm1, %v6979_v40, %v6980_v32  ;;  %v9516_v13 = vpop.f32.mrb[140].mxu1 }
 0x4bd   : > { %v6646_v47 = vpop.f32.mrb[127].mxu0  ;;  %v8793_v56 = vpack.c.bf16 %v7411_v7, %v7410_v53  ;;  %v7412_v60 = vmax.f32 %v7364_v29, 0.0  ;;  %v7054_v2 = vsel %vm3329_vm1, %v6978_v37, %v6979_v40  ;;  %v7055_v46 = vsel %vm3329_vm1, %v6977_v22, %v6978_v37 }
 0x4be   : > { %v7413_v49 = vmax.f32 %v7365_v39, 0.0  ;;  %v7366_v27 = vadd.f32 %v13539_v15, %v7222_v35  ;;  %v7223_v8 = vadd.f32 %v12893_v0, %v7072_v57  ;;  %v7075_v53 = vadd.f32 %v7053_v38, %v12557_v6  ;;  %v6826_v35 = vpop.f32.mrb[141].mxu1 }
 0x4bf   : > { %8951 = vst [vmem:[%s12942_s8 + $0x8] sm:$0xff] %v8793_v56   ;;  %v7073_v52 = vadd.f32 %v7055_v46, %v12542_v28  ;;  %v7074_v47 = vadd.f32 %v7054_v2, %v12554_v34  ;;  %v6835_v7 = vadd.f32 %v9516_v13, %v12810_v30  ;;  %v6827_v18 = vadd.f32 %v6826_v35, %v12794_v61  ;;  %v9517_v29 = vpop.f32.mrb[142].mxu1 }
 0x4c0   : > { %v8798_v41 = vpack.c.bf16 %v7413_v49, %v7412_v60  ;;  %v8736_v55 = vunpack.c.h.bf16 %v12977_v12  ;;  %v13540_v39 = vunpack.c.l.bf16 %v12869_v23  ;;  %v7226_v6 = vadd.f32 %v12893_v0, %v7075_v53  ;;  %v6829_v37 = vpop.f32.mrb[143].mxu1 }
 0x4c1   : > { %v7224_v28 = vadd.f32 %v12893_v0, %v7073_v52  ;;  %v6838_v3 = vadd.f32 %v9517_v29, %v12813_v1  ;;  %v7225_v30 = vadd.f32 %v12893_v0, %v7074_v47  ;;  %v6981_v61 = vrot.slane %v6827_v18, 1  ;;  %v13018_v18 = vld [vmem:[%s10121_s16 + $0x68] sm:$0xff]  }
 0x4c2   : > { %v12991_v24 = vpop.f32.mrb[128].mxu0  ;;  %8952 = vst [vmem:[%s12942_s8 + $0x10] sm:$0xff] %v8798_v41   ;;  %v7367_v40 = vadd.f32 %v13540_v39, %v7223_v8  ;;  %v6830_v56 = vadd.f32 %v6829_v37, %v12797_v4  ;;  %v8735_v49 = vunpack.c.l.bf16 %v12977_v12  ;;  %v7414_v57 = vmax.f32 %v7366_v27, 0.0 }
 0x4c3   : > { %v6651_v22 = vpop.f32.mrb[129].mxu0  ;;  %v13541_v38 = vunpack.c.h.bf16 %v12869_v23  ;;  %v6984_v46 = vrot.slane %v6838_v3, 1  ;;  %v13542_v1 = vunpack.c.l.bf16 %v12873_v42  ;;  %v6983_v41 = vrot.slane %v6835_v7, 1 }
 0x4c4   : > { %v13003_v34 = vpop.f32.mrb[130].mxu0  ;;  %v7415_v15 = vmax.f32 %v7367_v40, 0.0  ;;  %v7052_v8 = vsel %vm3329_vm1, %v6980_v32, %v6981_v61  ;;  %v6982_v53 = vrot.slane %v6830_v56, 1  ;;  %v13543_v4 = vunpack.c.h.bf16 %v12873_v42  ;;  %v9520_v22 = vpop.f32.mrb[144].mxu1 }
 0x4c5   : > { %v6654_v60 = vpop.f32.mrb[131].mxu0  ;;  %v7368_v2 = vadd.f32 %v13541_v38, %v7224_v28  ;;  %v7369_v13 = vadd.f32 %v13542_v1, %v7225_v30  ;;  %v7076_v27 = vadd.f32 %v7052_v8, %v12547_v9  ;;  %v7049_v29 = vsel %vm3329_vm1, %v6983_v41, %v6984_v46 }
 0x4c6   : > { %v8803_v52 = vpack.c.bf16 %v7415_v15, %v7414_v57  ;;  %v7370_v35 = vadd.f32 %v13543_v4, %v7226_v6  ;;  %v7050_v7 = vsel %vm3329_vm1, %v6982_v53, %v6983_v41  ;;  %v7051_v32 = vsel %vm3329_vm1, %v6981_v61, %v6982_v53  ;;  %v6842_v6 = vpop.f32.mrb[145].mxu1 }
 0x4c7   : > { %v7416_v47 = vmax.f32 %v7368_v2, 0.0  ;;  %v7417_v23 = vmax.f32 %v7369_v13, 0.0  ;;  %v7227_v42 = vadd.f32 %v12893_v0, %v7076_v27  ;;  %v7079_v39 = vadd.f32 %v7049_v29, %v12572_v59  ;;  %v9521_v61 = vpop.f32.mrb[146].mxu1 }
 0x4c8   : > { %8953 = vst [vmem:[%s12942_s8 + $0x18] sm:$0xff] %v8803_v52   ;;  %v7077_v9 = vadd.f32 %v7051_v32, %v12562_v44  ;;  %v7078_v40 = vadd.f32 %v7050_v7, %v12567_v36  ;;  %v6851_v37 = vadd.f32 %v9520_v22, %v12847_v10  ;;  %v6843_v30 = vadd.f32 %v6842_v6, %v12826_v31  ;;  %v6845_v38 = vpop.f32.mrb[147].mxu1 }
 0x4c9   : > { %v8808_v3 = vpack.c.bf16 %v7417_v23, %v7416_v47  ;;  %v8739_v60 = vunpack.c.l.bf16 %v13018_v18  ;;  %v13544_v57 = vunpack.c.l.bf16 %v12884_v26  ;;  %v7230_v44 = vadd.f32 %v12893_v0, %v7079_v39  ;;  %v13056_v39 = vld [vmem:[%s10121_s16 + $0x70] sm:$0xff]  }
 0x4ca   : > { %v13031_v28 = vpop.f32.mrb[132].mxu0  ;;  %v7228_v15 = vadd.f32 %v12893_v0, %v7077_v9  ;;  %v7229_v36 = vadd.f32 %v12893_v0, %v7078_v40  ;;  %v6985_v10 = vrot.slane %v6843_v30, 1  ;;  %v6854_v31 = vadd.f32 %v9521_v61, %v12860_v62  ;;  %v13549_v61 = vld [vmem:[#allocation18_spill] sm:$0xff] }
 0x4cb   : > { %v6659_v56 = vpop.f32.mrb[133].mxu0  ;;  %v7371_v59 = vadd.f32 %v13544_v57, %v7227_v42  ;;  %8954 = vst [vmem:[%s12942_s8 + $0x20] sm:$0xff] %v8808_v3   ;;  %v6846_v1 = vadd.f32 %v6845_v38, %v12829_v54  ;;  %v8740_v41 = vunpack.c.h.bf16 %v13018_v18  ;;  %v7418_v8 = vmax.f32 %v7370_v35, 0.0 }
 0x4cc   : > { %v13041_v2 = vpop.f32.mrb[134].mxu0  ;;  %v13545_v52 = vunpack.c.h.bf16 %v12884_v26  ;;  %v13546_v47 = vunpack.c.l.bf16 %v12887_v51  ;;  %v6987_v23 = vrot.slane %v6851_v37, 1  ;;  %v7048_v29 = vsel %vm3329_vm1, %v6984_v46, %v6985_v10  ;;  %v9524_v6 = vpop.f32.mrb[148].mxu1  ;;  %v13548_v37 = vld [vmem:[#allocation14_spill] sm:$0xff] }
 0x4cd   : > { %v6662_v13 = vpop.f32.mrb[135].mxu0  ;;  %v7419_v53 = vmax.f32 %v7371_v59, 0.0  ;;  %v6988_v62 = vrot.slane %v6854_v31, 1  ;;  %v6986_v7 = vrot.slane %v6846_v1, 1  ;;  %v13547_v54 = vunpack.c.h.bf16 %v12887_v51 }
 0x4ce   : > { %v7372_v4 = vadd.f32 %v13545_v52, %v7228_v15  ;;  %v7373_v27 = vadd.f32 %v13546_v47, %v7229_v36  ;;  %v7080_v26 = vadd.f32 %v7048_v29, %v12577_v45  ;;  %v6858_v45 = vpop.f32.mrb[149].mxu1  ;;  %v8743_v47 = vunpack.c.l.bf16 %v13056_v39 }
 0x4cf   : > { %v8813_v32 = vpack.c.bf16 %v7419_v53, %v7418_v8  ;;  %v7374_v22 = vadd.f32 %v13547_v54, %v7230_v44  ;;  %v7045_v9 = vsel %vm3329_vm1, %v6987_v23, %v6988_v62  ;;  %v7046_v40 = vsel %vm3329_vm1, %v6986_v7, %v6987_v23  ;;  %v9525_v36 = vpop.f32.mrb[150].mxu1 }
 0x4d0   : > { %v7420_v42 = vmax.f32 %v7372_v4, 0.0  ;;  %v7421_v35 = vmax.f32 %v7373_v27, 0.0  ;;  %v7047_v46 = vsel %vm3329_vm1, %v6985_v10, %v6986_v7  ;;  %v7083_v3 = vadd.f32 %v7045_v9, %v12596_v11  ;;  %v6861_v8 = vpop.f32.mrb[151].mxu1 }
 0x4d1   : > { %8955 = vst [vmem:[%s12942_s8 + $0x28] sm:$0xff] %v8813_v32   ;;  %v7081_v30 = vadd.f32 %v7047_v46, %v13548_v37  ;;  %v7082_v56 = vadd.f32 %v7046_v40, %v13549_v61  ;;  %v7231_v59 = vadd.f32 %v12893_v0, %v7080_v26  ;;  %v6867_v44 = vadd.f32 %v9524_v6, %v12952_v50  ;;  %v13551_v46 = vld [vmem:[#allocation24_spill] sm:$0xff] }
 0x4d2   : > { %v8818_v51 = vpack.c.bf16 %v7421_v35, %v7420_v42  ;;  %v13069_v57 = vpop.f32.mrb[136].mxu0  ;;  %v6859_v15 = vadd.f32 %v6858_v45, %v12904_v14  ;;  %v8744_v10 = vunpack.c.h.bf16 %v13056_v39  ;;  %v7234_v11 = vadd.f32 %v12893_v0, %v7083_v3  ;;  %v13553_v61 = vld [vmem:[#allocation20_spill] sm:$0xff] }
 0x4d3   : > { %v6667_v38 = vpop.f32.mrb[137].mxu0  ;;  %v7232_v31 = vadd.f32 %v12893_v0, %v7081_v30  ;;  %v7233_v1 = vadd.f32 %v12893_v0, %v7082_v56  ;;  %v6870_v13 = vadd.f32 %v9525_v36, %v12964_v43  ;;  %v7375_v50 = vadd.f32 %v8723_v21, %v7231_v59 }
 0x4d4   : > { %8956 = vst [vmem:[%s12942_s8 + $0x30] sm:$0xff] %v8818_v51   ;;  %v13080_v53 = vpop.f32.mrb[138].mxu0  ;;  %v6989_v14 = vrot.slane %v6859_v15, 1  ;;  %v6862_v52 = vadd.f32 %v6861_v8, %v12917_v16  ;;  %v7422_v27 = vmax.f32 %v7374_v22, 0.0  ;;  %v6991_v32 = vrot.slane %v6867_v44, 1  ;;  %v13550_v22 = vld [vmem:[#allocation33_spill] sm:$0xff] }
 0x4d5   : > { %v6670_v4 = vpop.f32.mrb[139].mxu0  ;;  %v7376_v23 = vadd.f32 %v8724_v20, %v7232_v31  ;;  %v7377_v43 = vadd.f32 %v8727_v58, %v7233_v1  ;;  %v6992_v29 = vrot.slane %v6870_v13, 1  ;;  %v7423_v7 = vmax.f32 %v7375_v50, 0.0  ;;  %v9528_v19 = vpop.f32.mrb[152].mxu1  ;;  %v13552_v51 = vld [vmem:[#allocation19_spill] sm:$0xff] }
 0x4d6   : > { %v7044_v21 = vsel %vm3329_vm1, %v6988_v62, %v6989_v14  ;;  %v6990_v54 = vrot.slane %v6862_v52, 1  ;;  %v7378_v16 = vadd.f32 %v8728_v33, %v7234_v11  ;;  %v6874_v37 = vpop.f32.mrb[153].mxu1  ;;  %v6883_v45 = vadd.f32 %v9528_v19, %v13031_v28 }
 0x4d7   : > { %v7424_v42 = vmax.f32 %v7376_v23, 0.0  ;;  %v7425_v35 = vmax.f32 %v7377_v43, 0.0  ;;  %v7084_v26 = vadd.f32 %v7044_v21, %v13550_v22  ;;  %v8823_v20 = vpack.c.bf16 %v7423_v7, %v7422_v27  ;;  %v9529_v44 = vpop.f32.mrb[154].mxu1 }
 0x4d8   : > { %v7041_v58 = vsel %vm3329_vm1, %v6991_v32, %v6992_v29  ;;  %v7042_v9 = vsel %vm3329_vm1, %v6990_v54, %v6991_v32  ;;  %v7043_v62 = vsel %vm3329_vm1, %v6989_v14, %v6990_v54  ;;  %v6875_v59 = vadd.f32 %v6874_v37, %v12991_v24  ;;  %v6877_v13 = vpop.f32.mrb[155].mxu1 }
 0x4d9   : > { %v8828_v33 = vpack.c.bf16 %v7425_v35, %v7424_v42  ;;  %v7235_v40 = vadd.f32 %v12893_v0, %v7084_v26  ;;  %v7087_v6 = vadd.f32 %v7041_v58, %v13551_v46  ;;  %v7085_v3 = vadd.f32 %v7043_v62, %v13552_v51  ;;  %8957 = vst [vmem:[%s12942_s8 + $0x38] sm:$0xff] %v8823_v20   ;;  %v13131_v35 = vld [vmem:[%s10121_s16 + $0x80] sm:$0xff]  }
 0x4da   : > { %v6673_v30 = vpop.f32.mrb[140].mxu0  ;;  %v7086_v56 = vadd.f32 %v7042_v9, %v13553_v61  ;;  %v8747_v36 = vunpack.c.l.bf16 %v13096_v5  ;;  %v6886_v1 = vadd.f32 %v9529_v44, %v13041_v2  ;;  %v6993_v50 = vrot.slane %v6875_v59, 1  ;;  %v13556_v20 = vld [vmem:[#allocation26_spill] sm:$0xff] }
 0x4db   : > { %v6675_v15 = vpop.f32.mrb[141].mxu0  ;;  %8958 = vst [vmem:[%s12942_s8 + $0x40] sm:$0xff] %v8828_v33   ;;  %v7379_v38 = vadd.f32 %v8731_v25, %v7235_v40  ;;  %v7238_v11 = vadd.f32 %v12893_v0, %v7087_v6  ;;  %v7236_v31 = vadd.f32 %v12893_v0, %v7085_v3  ;;  %v6878_v24 = vadd.f32 %v6877_v13, %v13003_v34  ;;  %v13557_v9 = vld [vmem:[#allocation6_spill] sm:$0xff] }
 0x4dc   : > { %v6676_v8 = vpop.f32.mrb[142].mxu0  ;;  %v7237_v28 = vadd.f32 %v12893_v0, %v7086_v56  ;;  %v8748_v52 = vunpack.c.h.bf16 %v13096_v5  ;;  %v7426_v4 = vmax.f32 %v7378_v16, 0.0  ;;  %v6996_v23 = vrot.slane %v6886_v1, 1  ;;  %v13554_v16 = vld [vmem:[#allocation25_spill] sm:$0xff]  ;;  %v9532_v22 = vpop.f32.mrb[156].mxu1  ;;  %v13154_v1 = vld [vmem:[%s10121_s16 + $0x88] sm:$0xff]  }
 0x4dd   : > { %v6678_v14 = vpop.f32.mrb[143].mxu0  ;;  %v7427_v27 = vmax.f32 %v7379_v38, 0.0  ;;  %v7380_v25 = vadd.f32 %v8732_v63, %v7236_v31  ;;  %v6995_v43 = vrot.slane %v6883_v45, 1  ;;  %v7040_v7 = vsel %vm3329_vm1, %v6992_v29, %v6993_v50  ;;  %v6890_v19 = vpop.f32.mrb[157].mxu1 }
 0x4de   : > { %v7381_v2 = vadd.f32 %v8735_v49, %v7237_v28  ;;  %v6994_v32 = vrot.slane %v6878_v24, 1  ;;  %v7382_v34 = vadd.f32 %v8736_v55, %v7238_v11  ;;  %v7088_v42 = vadd.f32 %v7040_v7, %v13554_v16  ;;  %v13555_v55 = vld [vmem:[#allocation8_spill] sm:$0xff]  ;;  %v9533_v51 = vpop.f32.mrb[158].mxu1 }
 0x4df   : > { %v8833_v21 = vpack.c.bf16 %v7427_v27, %v7426_v4  ;;  %v7428_v54 = vmax.f32 %v7380_v25, 0.0  ;;  %v7037_v63 = vsel %vm3329_vm1, %v6995_v43, %v6996_v23  ;;  %v6899_v46 = vadd.f32 %v9532_v22, %v6673_v30  ;;  %v6893_v59 = vpop.f32.mrb[159].mxu1 }
 0x4e0   : > { %v7429_v17 = vmax.f32 %v7381_v2, 0.0  ;;  %v7038_v49 = vsel %vm3329_vm1, %v6994_v32, %v6995_v43  ;;  %v7039_v29 = vsel %vm3329_vm1, %v6993_v50, %v6994_v32  ;;  %v7239_v12 = vadd.f32 %v12893_v0, %v7088_v42  ;;  %v13558_v43 = vld [vmem:[#allocation27_spill] sm:$0xff]  ;;  %v13561_v42 = vld [vmem:[#allocation29_spill] sm:$0xff] }
 0x4e1   : > { %8959 = vst [vmem:[%s12942_s8 + $0x48] sm:$0xff] %v8833_v21   ;;  %v7091_v26 = vadd.f32 %v7037_v63, %v13555_v55  ;;  %v7089_v58 = vadd.f32 %v7039_v29, %v13556_v20  ;;  %v7090_v62 = vadd.f32 %v7038_v49, %v13557_v9  ;;  %v6891_v6 = vadd.f32 %v6890_v19, %v13069_v57  ;;  %v13559_v21 = vld [vmem:[#allocation32_spill] sm:$0xff] }
 0x4e2   : > { %v6681_v33 = vpop.f32.mrb[144].mxu0  ;;  %v8838_v40 = vpack.c.bf16 %v7429_v17, %v7428_v54  ;;  %v8752_v3 = vunpack.c.h.bf16 %v13131_v35  ;;  %v7383_v61 = vadd.f32 %v8739_v60, %v7239_v12  ;;  %v8751_v44 = vunpack.c.l.bf16 %v13131_v35  ;;  %v13560_v54 = vld [vmem:[#allocation28_spill] sm:$0xff]  ;;  %v13563_v35 = vld [vmem:[#allocation31_spill] sm:$0xff] }
 0x4e3   : > { %v6683_v37 = vpop.f32.mrb[145].mxu0  ;;  %v7240_v56 = vadd.f32 %v12893_v0, %v7089_v58  ;;  %v7241_v45 = vadd.f32 %v12893_v0, %v7090_v62  ;;  %v7430_v38 = vmax.f32 %v7382_v34, 0.0  ;;  %v6997_v30 = vrot.slane %v6891_v6, 1  ;;  %v13179_v58 = vld [vmem:[%s10121_s16 + $0x90] sm:$0xff]  }
 0x4e4   : > { %v6684_v15 = vpop.f32.mrb[146].mxu0  ;;  %8960 = vst [vmem:[%s12942_s8 + $0x50] sm:$0xff] %v8838_v40   ;;  %v6902_v57 = vadd.f32 %v9533_v51, %v6676_v8  ;;  %v6894_v11 = vadd.f32 %v6893_v59, %v13080_v53  ;;  %v7431_v13 = vmax.f32 %v7383_v61, 0.0  ;;  %v7242_v60 = vadd.f32 %v12893_v0, %v7091_v26 }
 0x4e5   : > { %v6686_v31 = vpop.f32.mrb[147].mxu0  ;;  %v7384_v28 = vadd.f32 %v8740_v41, %v7240_v56  ;;  %v7385_v50 = vadd.f32 %v8743_v47, %v7241_v45  ;;  %v6999_v24 = vrot.slane %v6899_v46, 1  ;;  %v7036_v14 = vsel %vm3329_vm1, %v6996_v23, %v6997_v30 }
 0x4e6   : > { %v7000_v8 = vrot.slane %v6902_v57, 1  ;;  %v6998_v4 = vrot.slane %v6894_v11, 1  ;;  %v8843_v53 = vpack.c.bf16 %v7431_v13, %v7430_v38  ;;  %v8755_v2 = vunpack.c.l.bf16 %v13154_v1  ;;  %v9536_v23 = vpop.f32.mrb[160].mxu1 }
 0x4e7   : > { %v7432_v27 = vmax.f32 %v7384_v28, 0.0  ;;  %v7433_v25 = vmax.f32 %v7385_v50, 0.0  ;;  %v7092_v7 = vadd.f32 %v7036_v14, %v13558_v43  ;;  %v6906_v63 = vpop.f32.mrb[161].mxu1  ;;  %v7386_v29 = vadd.f32 %v8744_v10, %v7242_v60 }
 0x4e8   : > { %v7033_v18 = vsel %vm3329_vm1, %v6999_v24, %v7000_v8  ;;  %v7034_v41 = vsel %vm3329_vm1, %v6998_v4, %v6999_v24  ;;  %v7035_v47 = vsel %vm3329_vm1, %v6997_v30, %v6998_v4  ;;  %8961 = vst [vmem:[%s12942_s8 + $0x58] sm:$0xff] %v8843_v53   ;;  %v6907_v12 = vadd.f32 %v6906_v63, %v6681_v33  ;;  %v9537_v26 = vpop.f32.mrb[162].mxu1 }
 0x4e9   : > { %v8848_v32 = vpack.c.bf16 %v7433_v25, %v7432_v27  ;;  %v7095_v34 = vadd.f32 %v7033_v18, %v13559_v21  ;;  %v7093_v16 = vadd.f32 %v7035_v47, %v13560_v54  ;;  %v7094_v17 = vadd.f32 %v7034_v41, %v13561_v42  ;;  %v6909_v40 = vpop.f32.mrb[163].mxu1 }
 0x4ea   : > { %v6689_v49 = vpop.f32.mrb[148].mxu0  ;;  %v7243_v22 = vadd.f32 %v12893_v0, %v7092_v7  ;;  %v8756_v46 = vunpack.c.h.bf16 %v13154_v1  ;;  %v7001_v33 = vrot.slane %v6907_v12, 1  ;;  %v6910_v51 = vadd.f32 %v6909_v40, %v6684_v15  ;;  %v13562_v1 = vld [vmem:[#allocation30_spill] sm:$0xff] }
 0x4eb   : > { %v6915_v55 = vadd.f32 %v9536_v23, %v6689_v49  ;;  %v6691_v20 = vpop.f32.mrb[149].mxu0  ;;  %8962 = vst [vmem:[%s12942_s8 + $0x60] sm:$0xff] %v8848_v32   ;;  %v7246_v9 = vadd.f32 %v12893_v0, %v7095_v34  ;;  %v7244_v62 = vadd.f32 %v12893_v0, %v7093_v16  ;;  %v7245_v19 = vadd.f32 %v12893_v0, %v7094_v17  ;;  %v13565_v23 = vld [vmem:[#allocation35_spill] sm:$0xff] }
 0x4ec   : > { %v6692_v39 = vpop.f32.mrb[150].mxu0  ;;  %v7387_v10 = vadd.f32 %v8747_v36, %v7243_v22  ;;  %v8759_v45 = vunpack.c.l.bf16 %v13179_v58  ;;  %v7434_v38 = vmax.f32 %v7386_v29, 0.0  ;;  %v7032_v57 = vsel %vm3329_vm1, %v7000_v8, %v7001_v33  ;;  %v8945_v22 = vld [vmem:[%s10121_s16 + $0x98] sm:$0xff]  }
 0x4ed   : > { %v7003_v6 = vrot.slane %v6915_v55, 1  ;;  %v6694_v37 = vpop.f32.mrb[151].mxu0  ;;  %v7388_v61 = vadd.f32 %v8748_v52, %v7244_v62  ;;  %v7389_v56 = vadd.f32 %v8751_v44, %v7245_v19  ;;  %v6918_v59 = vadd.f32 %v9537_v26, %v6692_v39  ;;  %v13566_v19 = vld [vmem:[#allocation23_spill] sm:$0xff] }
 0x4ee   : > { %v7435_v30 = vmax.f32 %v7387_v10, 0.0  ;;  %v7002_v11 = vrot.slane %v6910_v51, 1  ;;  %v7390_v36 = vadd.f32 %v8752_v3, %v7246_v9  ;;  %v7096_v13 = vadd.f32 %v7032_v57, %v13562_v1  ;;  %v9540_v28 = vpop.f32.mrb[164].mxu1  ;;  %v13564_v3 = vld [vmem:[#allocation34_spill] sm:$0xff] }
 0x4ef   : > { %v7436_v31 = vmax.f32 %v7388_v61, 0.0  ;;  %v7437_v15 = vmax.f32 %v7389_v56, 0.0  ;;  %v7004_v60 = vrot.slane %v6918_v59, 1  ;;  %v6922_v4 = vpop.f32.mrb[165].mxu1  ;;  %v8763_v39 = vunpack.c.l.bf16 %v8945_v22 }
 0x4f0   : > { %v8853_v5 = vpack.c.bf16 %v7435_v30, %v7434_v38  ;;  %v7030_v52 = vsel %vm3329_vm1, %v7002_v11, %v7003_v6  ;;  %v7031_v44 = vsel %vm3329_vm1, %v7001_v33, %v7002_v11  ;;  %v7247_v24 = vadd.f32 %v12893_v0, %v7096_v13  ;;  %v9541_v43 = vpop.f32.mrb[166].mxu1 }
 0x4f1   : > { %v8858_v50 = vpack.c.bf16 %v7437_v15, %v7436_v31  ;;  %v7097_v14 = vadd.f32 %v7031_v44, %v13563_v35  ;;  %v7098_v8 = vadd.f32 %v7030_v52, %v13564_v3  ;;  %v7029_v27 = vsel %vm3329_vm1, %v7003_v6, %v7004_v60  ;;  %v6925_v21 = vpop.f32.mrb[167].mxu1  ;;  %v13567_v6 = vld [vmem:[#allocation21_spill] sm:$0xff]  ;;  %v8946_v31 = vld [vmem:[%s10121_s16 + $0xa0] sm:$0xff]  }
 0x4f2   : > { %v6697_v53 = vpop.f32.mrb[152].mxu0  ;;  %8963 = vst [vmem:[%s12942_s8 + $0x68] sm:$0xff] %v8853_v5   ;;  %v7391_v18 = vadd.f32 %v8755_v2, %v7247_v24  ;;  %v7099_v32 = vadd.f32 %v7029_v27, %v13565_v23  ;;  %v7438_v17 = vmax.f32 %v7390_v36, 0.0  ;;  %v8760_v2 = vunpack.c.h.bf16 %v13179_v58  ;;  %v13569_v27 = vld [vmem:[#allocation5_spill] sm:$0xff] }
 0x4f3   : > { %v6923_v25 = vadd.f32 %v6922_v4, %v6697_v53  ;;  %v6699_v7 = vpop.f32.mrb[153].mxu0  ;;  %8964 = vst [vmem:[%s12942_s8 + $0x70] sm:$0xff] %v8858_v50   ;;  %v7248_v41 = vadd.f32 %v12893_v0, %v7097_v14  ;;  %v7249_v47 = vadd.f32 %v12893_v0, %v7098_v8  ;;  %v8764_v5 = vunpack.c.h.bf16 %v8945_v22  ;;  %v13568_v50 = vld [vmem:[#allocation38_spill] sm:$0xff] }
 0x4f4   : > { %v6700_v34 = vpop.f32.mrb[154].mxu0  ;;  %v7439_v63 = vmax.f32 %v7391_v18, 0.0  ;;  %v7250_v12 = vadd.f32 %v12893_v0, %v7099_v32  ;;  %v8767_v35 = vunpack.c.l.bf16 %v8946_v31 }
 0x4f5   : > { %v7005_v54 = vrot.slane %v6923_v25, 1  ;;  %v6926_v16 = vadd.f32 %v6925_v21, %v6700_v34  ;;  %v6702_v42 = vpop.f32.mrb[155].mxu0  ;;  %v7392_v49 = vadd.f32 %v8756_v46, %v7248_v41  ;;  %v7393_v29 = vadd.f32 %v8759_v45, %v7249_v47 }
 0x4f6   : > { %v8863_v20 = vpack.c.bf16 %v7439_v63, %v7438_v17  ;;  %v9544_v10 = vpop.f32.mrb[168].mxu1  ;;  %v7394_v61 = vadd.f32 %v8760_v2, %v7250_v12 }
 0x4f7   : > { %v7028_v55 = vsel %vm3329_vm1, %v7004_v60, %v7005_v54  ;;  %v7006_v26 = vrot.slane %v6926_v16, 1  ;;  %v7440_v9 = vmax.f32 %v7392_v49, 0.0  ;;  %v7441_v62 = vmax.f32 %v7393_v29, 0.0  ;;  %v6938_v51 = vpop.f32.mrb[169].mxu1 }
 0x4f8   : > { %v7100_v40 = vadd.f32 %v7028_v55, %v13566_v19  ;;  %8965 = vst [vmem:[%s12942_s8 + $0x78] sm:$0xff] %v8863_v20   ;;  %v9545_v59 = vpop.f32.mrb[170].mxu1  ;;  %v7442_v52 = vmax.f32 %v7394_v61, 0.0  ;;  %v8768_v29 = vunpack.c.h.bf16 %v8946_v31  ;;  %v13570_v55 = vld [vmem:[#allocation37_spill] sm:$0xff]  ;;  %v8948_v61 = vld [vmem:[%s10121_s16 + $0xb0] sm:$0xff]  }
 0x4f9   : > { %v7027_v46 = vsel %vm3329_vm1, %v7005_v54, %v7006_v26  ;;  %v8868_v33 = vpack.c.bf16 %v7441_v62, %v7440_v9  ;;  %v6941_v30 = vpop.f32.mrb[171].mxu1  ;;  %v8947_v54 = vld [vmem:[%s10121_s16 + $0xa8] sm:$0xff]  }
 0x4fa   : > { %v7101_v58 = vadd.f32 %v7027_v46, %v13567_v6  ;;  %v6705_v37 = vpop.f32.mrb[156].mxu0  ;;  %v7251_v56 = vadd.f32 %v12893_v0, %v7100_v40  ;;  %v8771_v20 = vunpack.c.l.bf16 %v8947_v54  ;;  %v13571_v40 = vld [vmem:[#allocation39_spill] sm:$0xff] }
 0x4fb   : > { %v6931_v45 = vadd.f32 %v9540_v28, %v6705_v37  ;;  %v6707_v38 = vpop.f32.mrb[157].mxu0  ;;  %8966 = vst [vmem:[%s12942_s8 + $0x80] sm:$0xff] %v8868_v33  }
 0x4fc   : > { %v6708_v57 = vpop.f32.mrb[158].mxu0  ;;  %v7395_v11 = vadd.f32 %v8763_v39, %v7251_v56  ;;  %v7252_v13 = vadd.f32 %v12893_v0, %v7101_v58 }
 0x4fd   : > { %v7007_v36 = vrot.slane %v6931_v45, 1  ;;  %v6934_v15 = vadd.f32 %v9541_v43, %v6708_v57  ;;  %v6710_v1 = vpop.f32.mrb[159].mxu0 }
 0x4fe   : > { %v7443_v44 = vmax.f32 %v7395_v11, 0.0  ;;  %v13229_v8 = vpop.f32.mrb[172].mxu1  ;;  %v7396_v4 = vadd.f32 %v8764_v5, %v7252_v13  ;;  %v8772_v11 = vunpack.c.h.bf16 %v8947_v54  ;;  %v8775_v13 = vunpack.c.l.bf16 %v8948_v61 }
 0x4ff   : > { %v7026_v60 = vsel %vm3329_vm1, %v7006_v26, %v7007_v36  ;;  %v7008_v28 = vrot.slane %v6934_v15, 1  ;;  %v6954_v7 = vpop.f32.mrb[173].mxu1 }
 0x500   : > { %v7102_v24 = vadd.f32 %v7026_v60, %v13568_v50  ;;  %v8873_v14 = vpack.c.bf16 %v7443_v44, %v7442_v52  ;;  %v13234_v47 = vpop.f32.mrb[174].mxu1  ;;  %v7444_v17 = vmax.f32 %v7396_v4, 0.0  ;;  %v13573_v44 = vld [vmem:[#allocation12_spill] sm:$0xff]  ;;  %v8949_v4 = vld [vmem:[%s10121_s16 + $0xb8] sm:$0xff]  }
 0x501   : > { %v7025_v3 = vsel %vm3329_vm1, %v7007_v36, %v7008_v28  ;;  %v6957_v21 = vpop.f32.mrb[175].mxu1 }
 0x502   : > { %v7253_v53 = vadd.f32 %v12893_v0, %v7102_v24  ;;  %v7103_v25 = vadd.f32 %v7025_v3, %v13569_v27  ;;  %v6713_v43 = vpop.f32.mrb[160].mxu0  ;;  %8967 = vst [vmem:[%s12942_s8 + $0x88] sm:$0xff] %v8873_v14  }
 0x503   : > { %v6939_v18 = vadd.f32 %v6938_v51, %v6713_v43  ;;  %v6715_v41 = vpop.f32.mrb[161].mxu0 }
 0x504   : > { %v7397_v23 = vadd.f32 %v8767_v35, %v7253_v53  ;;  %v6716_v32 = vpop.f32.mrb[162].mxu0  ;;  %v7254_v49 = vadd.f32 %v12893_v0, %v7103_v25  ;;  %v8776_v41 = vunpack.c.h.bf16 %v8948_v61 }
 0x505   : > { %v7009_v34 = vrot.slane %v6939_v18, 1  ;;  %v6942_v16 = vadd.f32 %v6941_v30, %v6716_v32  ;;  %v6718_v42 = vpop.f32.mrb[163].mxu0 }
 0x506   : > { %v7445_v63 = vmax.f32 %v7397_v23, 0.0  ;;  %v7398_v62 = vadd.f32 %v8768_v29, %v7254_v49 }
 0x507   : > { %v7024_v22 = vsel %vm3329_vm1, %v7008_v28, %v7009_v34  ;;  %v7010_v12 = vrot.slane %v6942_v16, 1  ;;  %v8779_v16 = vunpack.c.l.bf16 %v8949_v4 }
 0x508   : > { %v8878_v2 = vpack.c.bf16 %v7445_v63, %v7444_v17  ;;  %v7104_v26 = vadd.f32 %v7024_v22, %v13570_v55  ;;  %v7446_v38 = vmax.f32 %v7398_v62, 0.0  ;;  %v13575_v63 = vld [vmem:[#allocation11_spill] sm:$0xff] }
 0x509   : > { %v7023_v9 = vsel %vm3329_vm1, %v7009_v34, %v7010_v12 }
 0x50a   : > { %8968 = vst [vmem:[%s12942_s8 + $0x90] sm:$0xff] %v8878_v2   ;;  %v7255_v19 = vadd.f32 %v12893_v0, %v7104_v26  ;;  %v7105_v39 = vadd.f32 %v7023_v9, %v13571_v40  ;;  %v6721_v46 = vpop.f32.mrb[164].mxu0 }
 0x50b   : > { %v6947_v33 = vadd.f32 %v9544_v10, %v6721_v46  ;;  %v6723_v6 = vpop.f32.mrb[165].mxu0  ;;  %v13572_v10 = vld [vmem:[#allocation7_spill] sm:$0xff]  ;;  %v8780_v46 = vunpack.c.h.bf16 %v8949_v4 }
 0x50c   : > { %v7399_v58 = vadd.f32 %v8771_v20, %v7255_v19  ;;  %v6724_v51 = vpop.f32.mrb[166].mxu0  ;;  %v7256_v57 = vadd.f32 %v12893_v0, %v7105_v39  ;;  %v8950_v20 = vld [vmem:[%s10121_s16 + $0xc0] sm:$0xff]  }
 0x50d   : > { %v7011_v37 = vrot.slane %v6947_v33, 1  ;;  %v6950_v56 = vadd.f32 %v9545_v59, %v6724_v51  ;;  %v6726_v45 = vpop.f32.mrb[167].mxu0  ;;  %v8431_v33 = vld [vmem:[%s10121_s16 + $0xc8] sm:$0xf]  ;;  %v13576_v51 = vld [vmem:[#allocation9_spill] sm:$0xff]  ;;  %v8783_v61 = vunpack.c.l.bf16 %v8950_v20 }
 0x50e   : > { %v7447_v30 = vmax.f32 %v7399_v58, 0.0  ;;  %v7400_v59 = vadd.f32 %v8772_v11, %v7256_v57  ;;  %v10030_v11 = vld [vmem:[%s13295_s4] ss:$0 sm:$0xff] }
 0x50f   : > { %v7022_v36 = vsel %vm3329_vm1, %v7010_v12, %v7011_v37  ;;  %v7012_v31 = vrot.slane %v6950_v56, 1 }
 0x510   : > { %v8883_v15 = vpack.c.bf16 %v7447_v30, %v7446_v38  ;;  %v7106_v1 = vadd.f32 %v7022_v36, %v13572_v10  ;;  %v7448_v25 = vmax.f32 %v7400_v59, 0.0  ;;  %v8784_v30 = vunpack.c.h.bf16 %v8950_v20  ;;  %v13580_v10 = vld [vmem:[#allocation16_spill] sm:$0xff] }
 0x511   : > { %v7021_v5 = vsel %vm3329_vm1, %v7011_v37, %v7012_v31 }
 0x512   : > { %8969 = vst [vmem:[%s12942_s8 + $0x98] sm:$0xff] %v8883_v15   ;;  %v7257_v52 = vadd.f32 %v12893_v0, %v7106_v1  ;;  %v7107_v60 = vadd.f32 %v7021_v5, %v13573_v44  ;;  %v6729_v28 = vpop.f32.mrb[168].mxu0 }
 0x513   : > { %v6955_v50 = vadd.f32 %v6954_v7, %v6729_v28  ;;  %v6731_v24 = vpop.f32.mrb[169].mxu0  ;;  %v13574_v7 = vld [vmem:[#allocation10_spill] sm:$0xff] }
 0x514   : > { %v7401_v35 = vadd.f32 %v8775_v13, %v7257_v52  ;;  %v6732_v14 = vpop.f32.mrb[170].mxu0  ;;  %v7258_v18 = vadd.f32 %v12893_v0, %v7107_v60 }
 0x515   : > { %v7013_v3 = vrot.slane %v6955_v50, 1  ;;  %v6958_v53 = vadd.f32 %v6957_v21, %v6732_v14  ;;  %v6734_v27 = vpop.f32.mrb[171].mxu0 }
 0x516   : > { %v7449_v43 = vmax.f32 %v7401_v35, 0.0  ;;  %v7402_v21 = vadd.f32 %v8776_v41, %v7258_v18 }
 0x517   : > { %v7020_v23 = vsel %vm3329_vm1, %v7012_v31, %v7013_v3  ;;  %v7014_v32 = vrot.slane %v6958_v53, 1  ;;  %v13579_v31 = vld [vmem:[#allocation13_spill] sm:$0xff] }
 0x518   : > { %v8888_v34 = vpack.c.bf16 %v7449_v43, %v7448_v25  ;;  %v7108_v54 = vadd.f32 %v7020_v23, %v13574_v7  ;;  %v7450_v19 = vmax.f32 %v7402_v21, 0.0 }
 0x519   : > { %v7019_v42 = vsel %vm3329_vm1, %v7013_v3, %v7014_v32 }
 0x51a   : > { %8970 = vst [vmem:[%s12942_s8 + $0xa0] sm:$0xff] %v8888_v34   ;;  %v7259_v17 = vadd.f32 %v12893_v0, %v7108_v54  ;;  %v7109_v49 = vadd.f32 %v7019_v42, %v13575_v63  ;;  %v6737_v29 = vpop.f32.mrb[172].mxu0 }
 0x51b   : > { %v6963_v22 = vadd.f32 %v13229_v8, %v6737_v29  ;;  %v6739_v12 = vpop.f32.mrb[173].mxu0 }
 0x51c   : > { %v7403_v2 = vadd.f32 %v8779_v16, %v7259_v17  ;;  %v6740_v55 = vpop.f32.mrb[174].mxu0  ;;  %v7260_v39 = vadd.f32 %v12893_v0, %v7109_v49  ;;  %v7359_v0 = vunpack.c.l.bf16 %v8431_v33 }
 0x51d   : > { %v7015_v26 = vrot.slane %v6963_v22, 1  ;;  %v6966_v9 = vadd.f32 %v13234_v47, %v6740_v55  ;;  %v6742_v62 = vpop.f32.mrb[175].mxu0  ;;  %v13577_v47 = vld [vmem:[#allocation22_spill] sm:$0xff] }
 0x51e   : > { %v7451_v40 = vmax.f32 %v7403_v2, 0.0  ;;  %v13578_v45 = vrot.slane %v13577_v47, 1  ;;  %v7404_v57 = vadd.f32 %v8780_v46, %v7260_v39 }
 0x51f   : > { %v7018_v6 = vsel %vm3329_vm1, %v7014_v32, %v7015_v26  ;;  %v7016_v58 = vrot.slane %v6966_v9, 1 }
 0x520   : > { %v8893_v8 = vpack.c.bf16 %v7451_v40, %v7450_v19  ;;  %v7110_v37 = vadd.f32 %v7018_v6, %v13576_v51  ;;  %v7452_v48 = vmax.f32 %v7404_v57, 0.0 }
 0x521   : > { %v7017_v56 = vsel %vm3329_vm1, %v7015_v26, %v7016_v58  ;;  %v7064_v38 = vsel %vm3329_vm1, %v7016_v58, %v13578_v45 }
 0x522   : > { %8971 = vst [vmem:[%s12942_s8 + $0xa8] sm:$0xff] %v8893_v8   ;;  %v7261_v36 = vadd.f32 %v10030_v11, %v7110_v37  ;;  %v7111_v15 = vadd.f32 %v7017_v56, %v13579_v31  ;;  %v7112_v1 = vadd.f32 %v7064_v38, %v13580_v10 }
 0x524   : > { %v7405_v13 = vadd.f32 %v8783_v61, %v7261_v36  ;;  %v7262_v5 = vadd.f32 %v10030_v11, %v7111_v15  ;;  %v7263_v59 = vadd.f32 %v10030_v11, %v7112_v1 }
 0x526   : > { %v7453_v52 = vmax.f32 %v7405_v13, 0.0  ;;  %v7406_v44 = vadd.f32 %v8784_v30, %v7262_v5  ;;  %v7407_v60 = vadd.f32 %v7359_v0, %v7263_v59 }
 0x528   : > { %v8898_v28 = vpack.c.bf16 %v7453_v52, %v7452_v48  ;;  %v7454_v50 = vmax.f32 %v7406_v44, 0.0  ;;  %v7455_v24 = vmax.f32 %v7407_v60, 0.0 }
 0x52a   : > { %8972 = vst [vmem:[%s12942_s8 + $0xb0] sm:$0xff] %v8898_v28   ;;  %v8903_v35 = vpack.c.bf16 %v7455_v24, %v7454_v50 }
 0x52c   : > { %8973 = vst [vmem:[%s12942_s8 + $0xb8] sm:$0xff] %v8903_v35  }
 0x52d PF: > { %s15_s18 = sadd.s32 1, %s10037_s18  }
 0x52e   : > { %p12_p4 = scmp.ge.s32.totalorder %s15_s18, 4  }
 0x530   :  { %14 = sbr.rel (!%p12_p4) target bundleno = 1 (0x1), region = 79 }

</bundles_post_ra>
